<compile_context>
chip_gen: v7x
topology: tpu7x:2x2x1
jax: 0.10.0
libtpu: 0.0.40
codegen_flags: <defaults>
</compile_context>

<pallas_src>
import numpy as np
import jax
import jax.numpy as jnp
from jax import lax
from jax.experimental import pallas as pl
from jax.experimental.pallas import tpu as pltpu


def _round_up(x, n):
    return ((x + n - 1) // n) * n


# ----------------------------- Pallas kernel ---------------------------------
def _make_kkt_kernel(n_elim):
    """Gauss-Jordan elimination of one augmented KKT slab per grid step.

    aug_ref block: (1, NP, LANES) f32 holding [K_pad | rhs_x | rhs_y | 0-pad].
    out_ref block: (1, NP, LANES) f32, the fully reduced slab (solutions live in the
    rhs columns).  n_elim is the true system size (static), NP >= n_elim is padded
    with an identity block so padded rows are no-ops.
    """
    def kernel(aug_ref, out_ref):
        A = aug_ref[0]                                    # (NP, LANES), kept in vregs
        NP = A.shape[0]
        row_iota = lax.broadcasted_iota(jnp.int32, (NP, 1), 0)
        # Fully unrolled: static slices only, no full-matrix masked reductions.
        for k in range(n_elim):
            col = A[:, k:k + 1]                           # pivot column (NP, 1)
            pr = A[k:k + 1, :]                            # pivot row    (1, LANES)
            pivot = col[k:k + 1, :]                       # (1, 1)
            pr_n = pr * (1.0 / pivot)                     # one exact reciprocal
            e_k = (row_iota == k).astype(jnp.float32)     # (NP, 1)
            # Single rank-1 update: rows != k eliminated, row k -> normalized pivot row.
            A = A - (col - e_k) * pr_n
        out_ref[0] = A                                    # lane-dense unmasked store
    return kernel


def kkt_solve_batched(aug, n_elim):
    """aug: (B, NP, LANES) f32 batch of augmented systems. Returns reduced slabs."""
    B, NP, LANES = aug.shape
    return pl.pallas_call(
        _make_kkt_kernel(n_elim),
        out_shape=jax.ShapeDtypeStruct((B, NP, LANES), jnp.float32),
        grid=(B,),
        in_specs=[pl.BlockSpec((1, NP, LANES), lambda b: (b, 0, 0))],
        out_specs=pl.BlockSpec((1, NP, LANES), lambda b: (b, 0, 0)),
        compiler_params=pltpu.CompilerParams(
            dimension_semantics=("parallel",)),   # batch axis: parallel (2 TCs on v7x)
    )(aug)


# ------------------------------ Planner (JAX) ---------------------------------
class UAVTrajectoryPlannerPallas:
    def __init__(self, total_time, poly_order, start_vel, start_acc, end_vel, end_acc):
        self.total_time = float(total_time)
        self.poly_order = int(poly_order)
        self.start_vel = [float(v) for v in start_vel]
        self.start_acc = [float(v) for v in start_acc]
        self.end_vel = [float(v) for v in end_vel]
        self.end_acc = [float(v) for v in end_acc]
        self.reg = 1e8                       # Tikhonov term, as in the reference
        self.sigma = 1e4                     # sqrt(reg): constraint-block equilibration

    # --- helpers ---------------------------------------------------------------
    def init_time_segments(self, num_segments):
        dt = self.total_time / num_segments
        return jnp.arange(0, num_segments + 1, dtype=jnp.float32) * jnp.float32(dt)

    def calculate_time_vector(self, t, order, derivative_order):
        entries = []
        for i in range(1, order + 2):
            if i >= derivative_order + 1:
                c = float(np.prod(np.arange(i - derivative_order, i), dtype=np.float64))
                entries.append(jnp.float32(c) * lax.integer_pow(t, i - derivative_order - 1))
            else:
                entries.append(jnp.zeros_like(t))
        return jnp.stack(entries)

    def compute_Q_matrix(self, poly_order, derivative_order, t0, t1):
        p, r = poly_order, derivative_order
        n_tdp = (p - r) * 2 + 1
        tdp = [lax.integer_pow(t1, i + 1) - lax.integer_pow(t0, i + 1) for i in range(n_tdp)]
        zero = jnp.zeros_like(t0)
        Q = [[zero for _ in range(p + 1)] for _ in range(p + 1)]
        for i in range(r + 1, p + 2):
            for j in range(i, p + 2):
                k1 = i - r - 1
                k2 = j - r - 1
                k = k1 + k2 + 1
                prod_k1 = float(np.prod(np.arange(k1 + 1, k1 + r + 1), dtype=np.float64))
                prod_k2 = float(np.prod(np.arange(k2 + 1, k2 + r + 1), dtype=np.float64))
                val = jnp.float32(prod_k1 * prod_k2 / k) * tdp[k - 1]
                Q[i - 1][j - 1] = val
                Q[j - 1][i - 1] = val
        return jnp.stack([jnp.stack(row) for row in Q])

    # --- KKT assembly (K shared across axes; rhs has x and y columns) ----------
    def _assemble_aug(self, waypoints_xy, time_stamps):
        """waypoints_xy: (2, P); time_stamps: (P,). Returns (NP, LANES) slab."""
        p = self.poly_order
        P = waypoints_xy.shape[1]
        m = P - 1
        n_coef = p + 1
        n_var = n_coef * m
        n_eq = 4 * m + 2
        N = n_var + n_eq
        NP = _round_up(N, 8)
        LANES = max(128, _round_up(NP + 2, 128))

        # block-diagonal snap cost + 1e8 Tikhonov (as in the reference)
        Q_all = jnp.zeros((n_var, n_var), jnp.float32)
        for s in range(m):
            Qs = self.compute_Q_matrix(p, 3, time_stamps[s], time_stamps[s + 1])
            Q_all = Q_all.at[s * n_coef:(s + 1) * n_coef,
                             s * n_coef:(s + 1) * n_coef].set(Qs)
        Q_all = Q_all + jnp.float32(self.reg) * jnp.eye(n_var, dtype=jnp.float32)

        # equality constraints: Aeq depends only on time_stamps
        Aeq = jnp.zeros((n_eq, n_var), jnp.float32)
        tv0 = jnp.stack([self.calculate_time_vector(time_stamps[0], p, d) for d in range(3)])
        tvE = jnp.stack([self.calculate_time_vector(time_stamps[m], p, d) for d in range(3)])
        Aeq = Aeq.at[0:3, 0:n_coef].set(tv0)
        Aeq = Aeq.at[3:6, n_var - n_coef:].set(tvE)
        row = 6
        for i in range(1, m):
            Aeq = Aeq.at[row, i * n_coef:(i + 1) * n_coef].set(
                self.calculate_time_vector(time_stamps[i], p, 0))
            row += 1
        for i in range(1, m):
            tvp = self.calculate_time_vector(time_stamps[i], p, 0)
            tvv = self.calculate_time_vector(time_stamps[i], p, 1)
            tva = self.calculate_time_vector(time_stamps[i], p, 2)
            block = jnp.stack([jnp.concatenate([tvp, -tvp]),
                               jnp.concatenate([tvv, -tvv]),
                               jnp.concatenate([tva, -tva])])
            Aeq = Aeq.at[row:row + 3, (i - 1) * n_coef:(i + 1) * n_coef].set(block)
            row += 3

        # per-axis rhs (waypoints & boundary vel/acc only enter beq, never K)
        def beq_axis(axis):
            wp = waypoints_xy[axis]
            b = jnp.zeros((n_eq,), jnp.float32)
            b = b.at[0:6].set(jnp.stack([wp[0], jnp.float32(self.start_vel[axis]),
                                         jnp.float32(self.start_acc[axis]), wp[-1],
                                         jnp.float32(self.end_vel[axis]),
                                         jnp.float32(self.end_acc[axis])]))
            if m > 1:
                b = b.at[6:6 + (m - 1)].set(wp[1:m])
            return b

        beq_x = beq_axis(0)
        beq_y = beq_axis(1)

        # TODO(synk): the reference calls qpth QPFunction(PDIPM_BATCHED, maxIter=1, eps=1e-12)
        # with dummy all-zero inequality constraints (an unconverged interior-point iterate);
        # here the underlying equality-constrained QP is solved exactly via its KKT system.
        # Constraint rows/cols are scaled by sigma=sqrt(reg) (equilibration); the primal
        # solution x is mathematically unchanged.
        sig = jnp.float32(self.sigma)
        aug = jnp.zeros((NP, LANES), jnp.float32)
        aug = aug.at[:n_var, :n_var].set(Q_all)
        aug = aug.at[:n_var, n_var:N].set(sig * Aeq.T)
        aug = aug.at[n_var:N, :n_var].set(sig * Aeq)
        if NP > N:  # identity pad so padded rows are inert during elimination
            aug = aug.at[jnp.arange(N, NP), jnp.arange(N, NP)].set(1.0)
        aug = aug.at[n_var:N, NP].set(sig * beq_x)
        aug = aug.at[n_var:N, NP + 1].set(sig * beq_y)
        return aug

    def _solve_batched(self, waypoints_xy, T_batch):
        """T_batch: (B, m+1) -> (B, n_var, 2) polynomial coefficients (x, y axes)."""
        m = waypoints_xy.shape[1] - 1
        n_coef = self.poly_order + 1
        n_var = n_coef * m
        n_eq = 4 * m + 2
        N = n_var + n_eq
        NP = _round_up(N, 8)
        aug = jax.vmap(lambda T: self._assemble_aug(waypoints_xy, T))(T_batch)
        reduced = kkt_solve_batched(aug, n_elim=N)
        return reduced[:, :n_var, NP:NP + 2]

    def _batched_costs(self, waypoints_xy, T_batch):
        coeffs = self._solve_batched(waypoints_xy, T_batch)      # (B, n_var, 2)
        # sum |polys_x| + sum |polys_y|  (reshape-invariant)
        return jnp.sum(jnp.abs(coeffs), axis=(1, 2))

    # --- coordinate-descent time-segment optimization --------------------------
    def optimize_time_segments(self, waypoints):
        m = waypoints.shape[1] - 1
        T0 = self.init_time_segments(m)

        # static search directions (same construction as the reference)
        dirs_np = np.zeros((m, m + 1), np.float32)
        for i in range(m):
            dirs_np[i, i] = 1.0
            for j in range(m):
                if j != i:
                    dirs_np[i, j] = -1.0 / (m - 2)
        dirs = jnp.asarray(dirs_np)                               # (m, m+1)

        h = jnp.float32(0.01)
        n_alpha = 18                                              # 2^0 .. 2^-17 (< 1e-5 breaks)
        alphas = jnp.asarray((0.5 ** np.arange(n_alpha, dtype=np.float64)).astype(np.float32))

        def line_search_alpha(T, gi):
            # Batched equivalent of the reference backtracking loop: evaluate f(T) and
            # f(T + alpha_j * gi) for every candidate alpha in ONE kernel launch, then
            # pick the first alpha with cost <= f(T) - 0.01 (else the smallest alpha).
            T_cand = jnp.concatenate(
                [T[None, :], T[None, :] + alphas[:, None] * gi[None, :]], axis=0)
            costs = self._batched_costs(waypoints, T_cand)        # (1 + n_alpha,)
            cost_initial = costs[0]
            passes = costs[1:] <= cost_initial - jnp.float32(0.01)
            idx = jnp.where(jnp.any(passes), jnp.argmax(passes), n_alpha - 1)
            return alphas[idx]

        def outer_body(_, T):
            # f(T) and all m directional evaluations in ONE batched kernel launch
            T_grad = jnp.concatenate([T[None, :], T[None, :] + h * dirs], axis=0)
            costs = self._batched_costs(waypoints, T_grad)        # (m+1,)
            grad_total = (costs[1:] - costs[0]) / h               # (m,)
            for i in range(m):
                gi = dirs[i]
                alpha = line_search_alpha(T, gi)
                T = T + alpha * gi * grad_total[i]
            T = jnp.float32(self.total_time) * (T / jnp.sum(T))
            return T

        return lax.fori_loop(0, 100, outer_body, T0)

    # --- forward ----------------------------------------------------------------
    def __call__(self, waypoints):
        T = self.optimize_time_segments(waypoints)
        m = waypoints.shape[1] - 1
        n_coef = self.poly_order + 1
        # Reference only recomputes polys on the CUDA branch (CPU branch is a bug);
        # we always compute them, matching the accelerator path.  One dual-rhs solve.
        coeffs = self._solve_batched(waypoints, T[None, :])[0]    # (n_var, 2)
        polys_x = coeffs[:, 0].reshape(m, n_coef).T               # (n_coef, m)
        polys_y = coeffs[:, 1].reshape(m, n_coef).T
        return polys_x, polys_y, T


if __name__ == "__main__":
    planner = UAVTrajectoryPlannerPallas(
        total_time=3.0, poly_order=5,
        start_vel=(0.0, 0.0), start_acc=(0.0, 0.0),
        end_vel=(0.0, 0.0), end_acc=(0.0, 0.0))

    key = jax.random.PRNGKey(0)
    waypoints = jax.random.uniform(key, (2, 4), dtype=jnp.float32, minval=-5.0, maxval=5.0)

    fwd = jax.jit(planner.__call__)
    polys_x, polys_y, T = fwd(waypoints)
    jax.block_until_ready((polys_x, polys_y, T))
    print("KERNEL_OK")
</pallas_src>

<mosaic_0001>
module attributes {stable_mosaic.version = 11 : i64} {
  func.func @kernel(%arg0: i32, %arg1: memref<1x32x128xf32, #tpu.memory_space<vmem>>, %arg2: memref<1x32x128xf32, #tpu.memory_space<vmem>>) attributes {dimension_semantics = [#tpu.dimension_semantics<parallel>], iteration_bounds = array<i64: 19>, scalar_prefetch = 0 : i64, scratch_operands = 0 : i64, tpu.core_type = #tpu.core_type<tc>, window_params = [{transform_indices = @transform_0, window_bounds = array<i64: 1, 32, 128>}, {transform_indices = @transform_1, window_bounds = array<i64: 1, 32, 128>}]} {
    %c0 = arith.constant 0 : index
    %c0_0 = arith.constant 0 : index
    %c0_1 = arith.constant 0 : index
    %0 = vector.load %arg1[%c0, %c0_0, %c0_1] : memref<1x32x128xf32, #tpu.memory_space<vmem>>, vector<1x32x128xf32>
    %1 = vector.shape_cast %0 : vector<1x32x128xf32> to vector<32x128xf32>
    %2 = tpu.iota {dimensions = array<i32: 0>} : vector<32x1xi32>
    %3 = vector.extract_strided_slice %1 {offsets = [0, 0], sizes = [32, 1], strides = [1, 1]} : vector<32x128xf32> to vector<32x1xf32>
    %4 = vector.extract_strided_slice %1 {offsets = [0, 0], sizes = [1, 128], strides = [1, 1]} : vector<32x128xf32> to vector<1x128xf32>
    %5 = vector.extract_strided_slice %3 {offsets = [0, 0], sizes = [1, 1], strides = [1, 1]} : vector<32x1xf32> to vector<1x1xf32>
    %cst = arith.constant 1.000000e+00 : f32
    %6 = vector.broadcast %cst : f32 to vector<1x1xf32>
    %7 = arith.divf %6, %5 : vector<1x1xf32>
    %8 = vector.broadcast %7 : vector<1x1xf32> to vector<1x128xf32>
    %9 = arith.mulf %4, %8 : vector<1x128xf32>
    %c0_i32 = arith.constant 0 : i32
    %10 = vector.broadcast %c0_i32 : i32 to vector<32x1xi32>
    %11 = arith.cmpi eq, %2, %10 : vector<32x1xi32>
    %12 = arith.extui %11 : vector<32x1xi1> to vector<32x1xi32>
    %13 = arith.sitofp %12 : vector<32x1xi32> to vector<32x1xf32>
    %14 = arith.subf %3, %13 : vector<32x1xf32>
    %15 = vector.broadcast %14 : vector<32x1xf32> to vector<32x128xf32>
    %16 = vector.broadcast %9 : vector<1x128xf32> to vector<32x128xf32>
    %17 = arith.mulf %15, %16 : vector<32x128xf32>
    %18 = arith.subf %1, %17 : vector<32x128xf32>
    %19 = vector.extract_strided_slice %18 {offsets = [0, 1], sizes = [32, 1], strides = [1, 1]} : vector<32x128xf32> to vector<32x1xf32>
    %20 = vector.extract_strided_slice %18 {offsets = [1, 0], sizes = [1, 128], strides = [1, 1]} : vector<32x128xf32> to vector<1x128xf32>
    %21 = vector.extract_strided_slice %19 {offsets = [1, 0], sizes = [1, 1], strides = [1, 1]} : vector<32x1xf32> to vector<1x1xf32>
    %cst_2 = arith.constant 1.000000e+00 : f32
    %22 = vector.broadcast %cst_2 : f32 to vector<1x1xf32>
    %23 = arith.divf %22, %21 : vector<1x1xf32>
    %24 = vector.broadcast %23 : vector<1x1xf32> to vector<1x128xf32>
    %25 = arith.mulf %20, %24 : vector<1x128xf32>
    %c1_i32 = arith.constant 1 : i32
    %26 = vector.broadcast %c1_i32 : i32 to vector<32x1xi32>
    %27 = arith.cmpi eq, %2, %26 : vector<32x1xi32>
    %28 = arith.extui %27 : vector<32x1xi1> to vector<32x1xi32>
    %29 = arith.sitofp %28 : vector<32x1xi32> to vector<32x1xf32>
    %30 = arith.subf %19, %29 : vector<32x1xf32>
    %31 = vector.broadcast %30 : vector<32x1xf32> to vector<32x128xf32>
    %32 = vector.broadcast %25 : vector<1x128xf32> to vector<32x128xf32>
    %33 = arith.mulf %31, %32 : vector<32x128xf32>
    %34 = arith.subf %18, %33 : vector<32x128xf32>
    %35 = vector.extract_strided_slice %34 {offsets = [0, 2], sizes = [32, 1], strides = [1, 1]} : vector<32x128xf32> to vector<32x1xf32>
    %36 = vector.extract_strided_slice %34 {offsets = [2, 0], sizes = [1, 128], strides = [1, 1]} : vector<32x128xf32> to vector<1x128xf32>
    %37 = vector.extract_strided_slice %35 {offsets = [2, 0], sizes = [1, 1], strides = [1, 1]} : vector<32x1xf32> to vector<1x1xf32>
    %cst_3 = arith.constant 1.000000e+00 : f32
    %38 = vector.broadcast %cst_3 : f32 to vector<1x1xf32>
    %39 = arith.divf %38, %37 : vector<1x1xf32>
    %40 = vector.broadcast %39 : vector<1x1xf32> to vector<1x128xf32>
    %41 = arith.mulf %36, %40 : vector<1x128xf32>
    %c2_i32 = arith.constant 2 : i32
    %42 = vector.broadcast %c2_i32 : i32 to vector<32x1xi32>
    %43 = arith.cmpi eq, %2, %42 : vector<32x1xi32>
    %44 = arith.extui %43 : vector<32x1xi1> to vector<32x1xi32>
    %45 = arith.sitofp %44 : vector<32x1xi32> to vector<32x1xf32>
    %46 = arith.subf %35, %45 : vector<32x1xf32>
    %47 = vector.broadcast %46 : vector<32x1xf32> to vector<32x128xf32>
    %48 = vector.broadcast %41 : vector<1x128xf32> to vector<32x128xf32>
    %49 = arith.mulf %47, %48 : vector<32x128xf32>
    %50 = arith.subf %34, %49 : vector<32x128xf32>
    %51 = vector.extract_strided_slice %50 {offsets = [0, 3], sizes = [32, 1], strides = [1, 1]} : vector<32x128xf32> to vector<32x1xf32>
    %52 = vector.extract_strided_slice %50 {offsets = [3, 0], sizes = [1, 128], strides = [1, 1]} : vector<32x128xf32> to vector<1x128xf32>
    %53 = vector.extract_strided_slice %51 {offsets = [3, 0], sizes = [1, 1], strides = [1, 1]} : vector<32x1xf32> to vector<1x1xf32>
    %cst_4 = arith.constant 1.000000e+00 : f32
    %54 = vector.broadcast %cst_4 : f32 to vector<1x1xf32>
    %55 = arith.divf %54, %53 : vector<1x1xf32>
    %56 = vector.broadcast %55 : vector<1x1xf32> to vector<1x128xf32>
    %57 = arith.mulf %52, %56 : vector<1x128xf32>
    %c3_i32 = arith.constant 3 : i32
    %58 = vector.broadcast %c3_i32 : i32 to vector<32x1xi32>
    %59 = arith.cmpi eq, %2, %58 : vector<32x1xi32>
    %60 = arith.extui %59 : vector<32x1xi1> to vector<32x1xi32>
    %61 = arith.sitofp %60 : vector<32x1xi32> to vector<32x1xf32>
    %62 = arith.subf %51, %61 : vector<32x1xf32>
    %63 = vector.broadcast %62 : vector<32x1xf32> to vector<32x128xf32>
    %64 = vector.broadcast %57 : vector<1x128xf32> to vector<32x128xf32>
    %65 = arith.mulf %63, %64 : vector<32x128xf32>
    %66 = arith.subf %50, %65 : vector<32x128xf32>
    %67 = vector.extract_strided_slice %66 {offsets = [0, 4], sizes = [32, 1], strides = [1, 1]} : vector<32x128xf32> to vector<32x1xf32>
    %68 = vector.extract_strided_slice %66 {offsets = [4, 0], sizes = [1, 128], strides = [1, 1]} : vector<32x128xf32> to vector<1x128xf32>
    %69 = vector.extract_strided_slice %67 {offsets = [4, 0], sizes = [1, 1], strides = [1, 1]} : vector<32x1xf32> to vector<1x1xf32>
    %cst_5 = arith.constant 1.000000e+00 : f32
    %70 = vector.broadcast %cst_5 : f32 to vector<1x1xf32>
    %71 = arith.divf %70, %69 : vector<1x1xf32>
    %72 = vector.broadcast %71 : vector<1x1xf32> to vector<1x128xf32>
    %73 = arith.mulf %68, %72 : vector<1x128xf32>
    %c4_i32 = arith.constant 4 : i32
    %74 = vector.broadcast %c4_i32 : i32 to vector<32x1xi32>
    %75 = arith.cmpi eq, %2, %74 : vector<32x1xi32>
    %76 = arith.extui %75 : vector<32x1xi1> to vector<32x1xi32>
    %77 = arith.sitofp %76 : vector<32x1xi32> to vector<32x1xf32>
    %78 = arith.subf %67, %77 : vector<32x1xf32>
    %79 = vector.broadcast %78 : vector<32x1xf32> to vector<32x128xf32>
    %80 = vector.broadcast %73 : vector<1x128xf32> to vector<32x128xf32>
    %81 = arith.mulf %79, %80 : vector<32x128xf32>
    %82 = arith.subf %66, %81 : vector<32x128xf32>
    %83 = vector.extract_strided_slice %82 {offsets = [0, 5], sizes = [32, 1], strides = [1, 1]} : vector<32x128xf32> to vector<32x1xf32>
    %84 = vector.extract_strided_slice %82 {offsets = [5, 0], sizes = [1, 128], strides = [1, 1]} : vector<32x128xf32> to vector<1x128xf32>
    %85 = vector.extract_strided_slice %83 {offsets = [5, 0], sizes = [1, 1], strides = [1, 1]} : vector<32x1xf32> to vector<1x1xf32>
    %cst_6 = arith.constant 1.000000e+00 : f32
    %86 = vector.broadcast %cst_6 : f32 to vector<1x1xf32>
    %87 = arith.divf %86, %85 : vector<1x1xf32>
    %88 = vector.broadcast %87 : vector<1x1xf32> to vector<1x128xf32>
    %89 = arith.mulf %84, %88 : vector<1x128xf32>
    %c5_i32 = arith.constant 5 : i32
    %90 = vector.broadcast %c5_i32 : i32 to vector<32x1xi32>
    %91 = arith.cmpi eq, %2, %90 : vector<32x1xi32>
    %92 = arith.extui %91 : vector<32x1xi1> to vector<32x1xi32>
    %93 = arith.sitofp %92 : vector<32x1xi32> to vector<32x1xf32>
    %94 = arith.subf %83, %93 : vector<32x1xf32>
    %95 = vector.broadcast %94 : vector<32x1xf32> to vector<32x128xf32>
    %96 = vector.broadcast %89 : vector<1x128xf32> to vector<32x128xf32>
    %97 = arith.mulf %95, %96 : vector<32x128xf32>
    %98 = arith.subf %82, %97 : vector<32x128xf32>
    %99 = vector.extract_strided_slice %98 {offsets = [0, 6], sizes = [32, 1], strides = [1, 1]} : vector<32x128xf32> to vector<32x1xf32>
    %100 = vector.extract_strided_slice %98 {offsets = [6, 0], sizes = [1, 128], strides = [1, 1]} : vector<32x128xf32> to vector<1x128xf32>
    %101 = vector.extract_strided_slice %99 {offsets = [6, 0], sizes = [1, 1], strides = [1, 1]} : vector<32x1xf32> to vector<1x1xf32>
    %cst_7 = arith.constant 1.000000e+00 : f32
    %102 = vector.broadcast %cst_7 : f32 to vector<1x1xf32>
    %103 = arith.divf %102, %101 : vector<1x1xf32>
    %104 = vector.broadcast %103 : vector<1x1xf32> to vector<1x128xf32>
    %105 = arith.mulf %100, %104 : vector<1x128xf32>
    %c6_i32 = arith.constant 6 : i32
    %106 = vector.broadcast %c6_i32 : i32 to vector<32x1xi32>
    %107 = arith.cmpi eq, %2, %106 : vector<32x1xi32>
    %108 = arith.extui %107 : vector<32x1xi1> to vector<32x1xi32>
    %109 = arith.sitofp %108 : vector<32x1xi32> to vector<32x1xf32>
    %110 = arith.subf %99, %109 : vector<32x1xf32>
    %111 = vector.broadcast %110 : vector<32x1xf32> to vector<32x128xf32>
    %112 = vector.broadcast %105 : vector<1x128xf32> to vector<32x128xf32>
    %113 = arith.mulf %111, %112 : vector<32x128xf32>
    %114 = arith.subf %98, %113 : vector<32x128xf32>
    %115 = vector.extract_strided_slice %114 {offsets = [0, 7], sizes = [32, 1], strides = [1, 1]} : vector<32x128xf32> to vector<32x1xf32>
    %116 = vector.extract_strided_slice %114 {offsets = [7, 0], sizes = [1, 128], strides = [1, 1]} : vector<32x128xf32> to vector<1x128xf32>
    %117 = vector.extract_strided_slice %115 {offsets = [7, 0], sizes = [1, 1], strides = [1, 1]} : vector<32x1xf32> to vector<1x1xf32>
    %cst_8 = arith.constant 1.000000e+00 : f32
    %118 = vector.broadcast %cst_8 : f32 to vector<1x1xf32>
    %119 = arith.divf %118, %117 : vector<1x1xf32>
    %120 = vector.broadcast %119 : vector<1x1xf32> to vector<1x128xf32>
    %121 = arith.mulf %116, %120 : vector<1x128xf32>
    %c7_i32 = arith.constant 7 : i32
    %122 = vector.broadcast %c7_i32 : i32 to vector<32x1xi32>
    %123 = arith.cmpi eq, %2, %122 : vector<32x1xi32>
    %124 = arith.extui %123 : vector<32x1xi1> to vector<32x1xi32>
    %125 = arith.sitofp %124 : vector<32x1xi32> to vector<32x1xf32>
    %126 = arith.subf %115, %125 : vector<32x1xf32>
    %127 = vector.broadcast %126 : vector<32x1xf32> to vector<32x128xf32>
    %128 = vector.broadcast %121 : vector<1x128xf32> to vector<32x128xf32>
    %129 = arith.mulf %127, %128 : vector<32x128xf32>
    %130 = arith.subf %114, %129 : vector<32x128xf32>
    %131 = vector.extract_strided_slice %130 {offsets = [0, 8], sizes = [32, 1], strides = [1, 1]} : vector<32x128xf32> to vector<32x1xf32>
    %132 = vector.extract_strided_slice %130 {offsets = [8, 0], sizes = [1, 128], strides = [1, 1]} : vector<32x128xf32> to vector<1x128xf32>
    %133 = vector.extract_strided_slice %131 {offsets = [8, 0], sizes = [1, 1], strides = [1, 1]} : vector<32x1xf32> to vector<1x1xf32>
    %cst_9 = arith.constant 1.000000e+00 : f32
    %134 = vector.broadcast %cst_9 : f32 to vector<1x1xf32>
    %135 = arith.divf %134, %133 : vector<1x1xf32>
    %136 = vector.broadcast %135 : vector<1x1xf32> to vector<1x128xf32>
    %137 = arith.mulf %132, %136 : vector<1x128xf32>
    %c8_i32 = arith.constant 8 : i32
    %138 = vector.broadcast %c8_i32 : i32 to vector<32x1xi32>
    %139 = arith.cmpi eq, %2, %138 : vector<32x1xi32>
    %140 = arith.extui %139 : vector<32x1xi1> to vector<32x1xi32>
    %141 = arith.sitofp %140 : vector<32x1xi32> to vector<32x1xf32>
    %142 = arith.subf %131, %141 : vector<32x1xf32>
    %143 = vector.broadcast %142 : vector<32x1xf32> to vector<32x128xf32>
    %144 = vector.broadcast %137 : vector<1x128xf32> to vector<32x128xf32>
    %145 = arith.mulf %143, %144 : vector<32x128xf32>
    %146 = arith.subf %130, %145 : vector<32x128xf32>
    %147 = vector.extract_strided_slice %146 {offsets = [0, 9], sizes = [32, 1], strides = [1, 1]} : vector<32x128xf32> to vector<32x1xf32>
    %148 = vector.extract_strided_slice %146 {offsets = [9, 0], sizes = [1, 128], strides = [1, 1]} : vector<32x128xf32> to vector<1x128xf32>
    %149 = vector.extract_strided_slice %147 {offsets = [9, 0], sizes = [1, 1], strides = [1, 1]} : vector<32x1xf32> to vector<1x1xf32>
    %cst_10 = arith.constant 1.000000e+00 : f32
    %150 = vector.broadcast %cst_10 : f32 to vector<1x1xf32>
    %151 = arith.divf %150, %149 : vector<1x1xf32>
    %152 = vector.broadcast %151 : vector<1x1xf32> to vector<1x128xf32>
    %153 = arith.mulf %148, %152 : vector<1x128xf32>
    %c9_i32 = arith.constant 9 : i32
    %154 = vector.broadcast %c9_i32 : i32 to vector<32x1xi32>
    %155 = arith.cmpi eq, %2, %154 : vector<32x1xi32>
    %156 = arith.extui %155 : vector<32x1xi1> to vector<32x1xi32>
    %157 = arith.sitofp %156 : vector<32x1xi32> to vector<32x1xf32>
    %158 = arith.subf %147, %157 : vector<32x1xf32>
    %159 = vector.broadcast %158 : vector<32x1xf32> to vector<32x128xf32>
    %160 = vector.broadcast %153 : vector<1x128xf32> to vector<32x128xf32>
    %161 = arith.mulf %159, %160 : vector<32x128xf32>
    %162 = arith.subf %146, %161 : vector<32x128xf32>
    %163 = vector.extract_strided_slice %162 {offsets = [0, 10], sizes = [32, 1], strides = [1, 1]} : vector<32x128xf32> to vector<32x1xf32>
    %164 = vector.extract_strided_slice %162 {offsets = [10, 0], sizes = [1, 128], strides = [1, 1]} : vector<32x128xf32> to vector<1x128xf32>
    %165 = vector.extract_strided_slice %163 {offsets = [10, 0], sizes = [1, 1], strides = [1, 1]} : vector<32x1xf32> to vector<1x1xf32>
    %cst_11 = arith.constant 1.000000e+00 : f32
    %166 = vector.broadcast %cst_11 : f32 to vector<1x1xf32>
    %167 = arith.divf %166, %165 : vector<1x1xf32>
    %168 = vector.broadcast %167 : vector<1x1xf32> to vector<1x128xf32>
    %169 = arith.mulf %164, %168 : vector<1x128xf32>
    %c10_i32 = arith.constant 10 : i32
    %170 = vector.broadcast %c10_i32 : i32 to vector<32x1xi32>
    %171 = arith.cmpi eq, %2, %170 : vector<32x1xi32>
    %172 = arith.extui %171 : vector<32x1xi1> to vector<32x1xi32>
    %173 = arith.sitofp %172 : vector<32x1xi32> to vector<32x1xf32>
    %174 = arith.subf %163, %173 : vector<32x1xf32>
    %175 = vector.broadcast %174 : vector<32x1xf32> to vector<32x128xf32>
    %176 = vector.broadcast %169 : vector<1x128xf32> to vector<32x128xf32>
    %177 = arith.mulf %175, %176 : vector<32x128xf32>
    %178 = arith.subf %162, %177 : vector<32x128xf32>
    %179 = vector.extract_strided_slice %178 {offsets = [0, 11], sizes = [32, 1], strides = [1, 1]} : vector<32x128xf32> to vector<32x1xf32>
    %180 = vector.extract_strided_slice %178 {offsets = [11, 0], sizes = [1, 128], strides = [1, 1]} : vector<32x128xf32> to vector<1x128xf32>
    %181 = vector.extract_strided_slice %179 {offsets = [11, 0], sizes = [1, 1], strides = [1, 1]} : vector<32x1xf32> to vector<1x1xf32>
    %cst_12 = arith.constant 1.000000e+00 : f32
    %182 = vector.broadcast %cst_12 : f32 to vector<1x1xf32>
    %183 = arith.divf %182, %181 : vector<1x1xf32>
    %184 = vector.broadcast %183 : vector<1x1xf32> to vector<1x128xf32>
    %185 = arith.mulf %180, %184 : vector<1x128xf32>
    %c11_i32 = arith.constant 11 : i32
    %186 = vector.broadcast %c11_i32 : i32 to vector<32x1xi32>
    %187 = arith.cmpi eq, %2, %186 : vector<32x1xi32>
    %188 = arith.extui %187 : vector<32x1xi1> to vector<32x1xi32>
    %189 = arith.sitofp %188 : vector<32x1xi32> to vector<32x1xf32>
    %190 = arith.subf %179, %189 : vector<32x1xf32>
    %191 = vector.broadcast %190 : vector<32x1xf32> to vector<32x128xf32>
    %192 = vector.broadcast %185 : vector<1x128xf32> to vector<32x128xf32>
    %193 = arith.mulf %191, %192 : vector<32x128xf32>
    %194 = arith.subf %178, %193 : vector<32x128xf32>
    %195 = vector.extract_strided_slice %194 {offsets = [0, 12], sizes = [32, 1], strides = [1, 1]} : vector<32x128xf32> to vector<32x1xf32>
    %196 = vector.extract_strided_slice %194 {offsets = [12, 0], sizes = [1, 128], strides = [1, 1]} : vector<32x128xf32> to vector<1x128xf32>
    %197 = vector.extract_strided_slice %195 {offsets = [12, 0], sizes = [1, 1], strides = [1, 1]} : vector<32x1xf32> to vector<1x1xf32>
    %cst_13 = arith.constant 1.000000e+00 : f32
    %198 = vector.broadcast %cst_13 : f32 to vector<1x1xf32>
    %199 = arith.divf %198, %197 : vector<1x1xf32>
    %200 = vector.broadcast %199 : vector<1x1xf32> to vector<1x128xf32>
    %201 = arith.mulf %196, %200 : vector<1x128xf32>
    %c12_i32 = arith.constant 12 : i32
    %202 = vector.broadcast %c12_i32 : i32 to vector<32x1xi32>
    %203 = arith.cmpi eq, %2, %202 : vector<32x1xi32>
    %204 = arith.extui %203 : vector<32x1xi1> to vector<32x1xi32>
    %205 = arith.sitofp %204 : vector<32x1xi32> to vector<32x1xf32>
    %206 = arith.subf %195, %205 : vector<32x1xf32>
    %207 = vector.broadcast %206 : vector<32x1xf32> to vector<32x128xf32>
    %208 = vector.broadcast %201 : vector<1x128xf32> to vector<32x128xf32>
    %209 = arith.mulf %207, %208 : vector<32x128xf32>
    %210 = arith.subf %194, %209 : vector<32x128xf32>
    %211 = vector.extract_strided_slice %210 {offsets = [0, 13], sizes = [32, 1], strides = [1, 1]} : vector<32x128xf32> to vector<32x1xf32>
    %212 = vector.extract_strided_slice %210 {offsets = [13, 0], sizes = [1, 128], strides = [1, 1]} : vector<32x128xf32> to vector<1x128xf32>
    %213 = vector.extract_strided_slice %211 {offsets = [13, 0], sizes = [1, 1], strides = [1, 1]} : vector<32x1xf32> to vector<1x1xf32>
    %cst_14 = arith.constant 1.000000e+00 : f32
    %214 = vector.broadcast %cst_14 : f32 to vector<1x1xf32>
    %215 = arith.divf %214, %213 : vector<1x1xf32>
    %216 = vector.broadcast %215 : vector<1x1xf32> to vector<1x128xf32>
    %217 = arith.mulf %212, %216 : vector<1x128xf32>
    %c13_i32 = arith.constant 13 : i32
    %218 = vector.broadcast %c13_i32 : i32 to vector<32x1xi32>
    %219 = arith.cmpi eq, %2, %218 : vector<32x1xi32>
    %220 = arith.extui %219 : vector<32x1xi1> to vector<32x1xi32>
    %221 = arith.sitofp %220 : vector<32x1xi32> to vector<32x1xf32>
    %222 = arith.subf %211, %221 : vector<32x1xf32>
    %223 = vector.broadcast %222 : vector<32x1xf32> to vector<32x128xf32>
    %224 = vector.broadcast %217 : vector<1x128xf32> to vector<32x128xf32>
    %225 = arith.mulf %223, %224 : vector<32x128xf32>
    %226 = arith.subf %210, %225 : vector<32x128xf32>
    %227 = vector.extract_strided_slice %226 {offsets = [0, 14], sizes = [32, 1], strides = [1, 1]} : vector<32x128xf32> to vector<32x1xf32>
    %228 = vector.extract_strided_slice %226 {offsets = [14, 0], sizes = [1, 128], strides = [1, 1]} : vector<32x128xf32> to vector<1x128xf32>
    %229 = vector.extract_strided_slice %227 {offsets = [14, 0], sizes = [1, 1], strides = [1, 1]} : vector<32x1xf32> to vector<1x1xf32>
    %cst_15 = arith.constant 1.000000e+00 : f32
    %230 = vector.broadcast %cst_15 : f32 to vector<1x1xf32>
    %231 = arith.divf %230, %229 : vector<1x1xf32>
    %232 = vector.broadcast %231 : vector<1x1xf32> to vector<1x128xf32>
    %233 = arith.mulf %228, %232 : vector<1x128xf32>
    %c14_i32 = arith.constant 14 : i32
    %234 = vector.broadcast %c14_i32 : i32 to vector<32x1xi32>
    %235 = arith.cmpi eq, %2, %234 : vector<32x1xi32>
    %236 = arith.extui %235 : vector<32x1xi1> to vector<32x1xi32>
    %237 = arith.sitofp %236 : vector<32x1xi32> to vector<32x1xf32>
    %238 = arith.subf %227, %237 : vector<32x1xf32>
    %239 = vector.broadcast %238 : vector<32x1xf32> to vector<32x128xf32>
    %240 = vector.broadcast %233 : vector<1x128xf32> to vector<32x128xf32>
    %241 = arith.mulf %239, %240 : vector<32x128xf32>
    %242 = arith.subf %226, %241 : vector<32x128xf32>
    %243 = vector.extract_strided_slice %242 {offsets = [0, 15], sizes = [32, 1], strides = [1, 1]} : vector<32x128xf32> to vector<32x1xf32>
    %244 = vector.extract_strided_slice %242 {offsets = [15, 0], sizes = [1, 128], strides = [1, 1]} : vector<32x128xf32> to vector<1x128xf32>
    %245 = vector.extract_strided_slice %243 {offsets = [15, 0], sizes = [1, 1], strides = [1, 1]} : vector<32x1xf32> to vector<1x1xf32>
    %cst_16 = arith.constant 1.000000e+00 : f32
    %246 = vector.broadcast %cst_16 : f32 to vector<1x1xf32>
    %247 = arith.divf %246, %245 : vector<1x1xf32>
    %248 = vector.broadcast %247 : vector<1x1xf32> to vector<1x128xf32>
    %249 = arith.mulf %244, %248 : vector<1x128xf32>
    %c15_i32 = arith.constant 15 : i32
    %250 = vector.broadcast %c15_i32 : i32 to vector<32x1xi32>
    %251 = arith.cmpi eq, %2, %250 : vector<32x1xi32>
    %252 = arith.extui %251 : vector<32x1xi1> to vector<32x1xi32>
    %253 = arith.sitofp %252 : vector<32x1xi32> to vector<32x1xf32>
    %254 = arith.subf %243, %253 : vector<32x1xf32>
    %255 = vector.broadcast %254 : vector<32x1xf32> to vector<32x128xf32>
    %256 = vector.broadcast %249 : vector<1x128xf32> to vector<32x128xf32>
    %257 = arith.mulf %255, %256 : vector<32x128xf32>
    %258 = arith.subf %242, %257 : vector<32x128xf32>
    %259 = vector.extract_strided_slice %258 {offsets = [0, 16], sizes = [32, 1], strides = [1, 1]} : vector<32x128xf32> to vector<32x1xf32>
    %260 = vector.extract_strided_slice %258 {offsets = [16, 0], sizes = [1, 128], strides = [1, 1]} : vector<32x128xf32> to vector<1x128xf32>
    %261 = vector.extract_strided_slice %259 {offsets = [16, 0], sizes = [1, 1], strides = [1, 1]} : vector<32x1xf32> to vector<1x1xf32>
    %cst_17 = arith.constant 1.000000e+00 : f32
    %262 = vector.broadcast %cst_17 : f32 to vector<1x1xf32>
    %263 = arith.divf %262, %261 : vector<1x1xf32>
    %264 = vector.broadcast %263 : vector<1x1xf32> to vector<1x128xf32>
    %265 = arith.mulf %260, %264 : vector<1x128xf32>
    %c16_i32 = arith.constant 16 : i32
    %266 = vector.broadcast %c16_i32 : i32 to vector<32x1xi32>
    %267 = arith.cmpi eq, %2, %266 : vector<32x1xi32>
    %268 = arith.extui %267 : vector<32x1xi1> to vector<32x1xi32>
    %269 = arith.sitofp %268 : vector<32x1xi32> to vector<32x1xf32>
    %270 = arith.subf %259, %269 : vector<32x1xf32>
    %271 = vector.broadcast %270 : vector<32x1xf32> to vector<32x128xf32>
    %272 = vector.broadcast %265 : vector<1x128xf32> to vector<32x128xf32>
    %273 = arith.mulf %271, %272 : vector<32x128xf32>
    %274 = arith.subf %258, %273 : vector<32x128xf32>
    %275 = vector.extract_strided_slice %274 {offsets = [0, 17], sizes = [32, 1], strides = [1, 1]} : vector<32x128xf32> to vector<32x1xf32>
    %276 = vector.extract_strided_slice %274 {offsets = [17, 0], sizes = [1, 128], strides = [1, 1]} : vector<32x128xf32> to vector<1x128xf32>
    %277 = vector.extract_strided_slice %275 {offsets = [17, 0], sizes = [1, 1], strides = [1, 1]} : vector<32x1xf32> to vector<1x1xf32>
    %cst_18 = arith.constant 1.000000e+00 : f32
    %278 = vector.broadcast %cst_18 : f32 to vector<1x1xf32>
    %279 = arith.divf %278, %277 : vector<1x1xf32>
    %280 = vector.broadcast %279 : vector<1x1xf32> to vector<1x128xf32>
    %281 = arith.mulf %276, %280 : vector<1x128xf32>
    %c17_i32 = arith.constant 17 : i32
    %282 = vector.broadcast %c17_i32 : i32 to vector<32x1xi32>
    %283 = arith.cmpi eq, %2, %282 : vector<32x1xi32>
    %284 = arith.extui %283 : vector<32x1xi1> to vector<32x1xi32>
    %285 = arith.sitofp %284 : vector<32x1xi32> to vector<32x1xf32>
    %286 = arith.subf %275, %285 : vector<32x1xf32>
    %287 = vector.broadcast %286 : vector<32x1xf32> to vector<32x128xf32>
    %288 = vector.broadcast %281 : vector<1x128xf32> to vector<32x128xf32>
    %289 = arith.mulf %287, %288 : vector<32x128xf32>
    %290 = arith.subf %274, %289 : vector<32x128xf32>
    %291 = vector.extract_strided_slice %290 {offsets = [0, 18], sizes = [32, 1], strides = [1, 1]} : vector<32x128xf32> to vector<32x1xf32>
    %292 = vector.extract_strided_slice %290 {offsets = [18, 0], sizes = [1, 128], strides = [1, 1]} : vector<32x128xf32> to vector<1x128xf32>
    %293 = vector.extract_strided_slice %291 {offsets = [18, 0], sizes = [1, 1], strides = [1, 1]} : vector<32x1xf32> to vector<1x1xf32>
    %cst_19 = arith.constant 1.000000e+00 : f32
    %294 = vector.broadcast %cst_19 : f32 to vector<1x1xf32>
    %295 = arith.divf %294, %293 : vector<1x1xf32>
    %296 = vector.broadcast %295 : vector<1x1xf32> to vector<1x128xf32>
    %297 = arith.mulf %292, %296 : vector<1x128xf32>
    %c18_i32 = arith.constant 18 : i32
    %298 = vector.broadcast %c18_i32 : i32 to vector<32x1xi32>
    %299 = arith.cmpi eq, %2, %298 : vector<32x1xi32>
    %300 = arith.extui %299 : vector<32x1xi1> to vector<32x1xi32>
    %301 = arith.sitofp %300 : vector<32x1xi32> to vector<32x1xf32>
    %302 = arith.subf %291, %301 : vector<32x1xf32>
    %303 = vector.broadcast %302 : vector<32x1xf32> to vector<32x128xf32>
    %304 = vector.broadcast %297 : vector<1x128xf32> to vector<32x128xf32>
    %305 = arith.mulf %303, %304 : vector<32x128xf32>
    %306 = arith.subf %290, %305 : vector<32x128xf32>
    %307 = vector.extract_strided_slice %306 {offsets = [0, 19], sizes = [32, 1], strides = [1, 1]} : vector<32x128xf32> to vector<32x1xf32>
    %308 = vector.extract_strided_slice %306 {offsets = [19, 0], sizes = [1, 128], strides = [1, 1]} : vector<32x128xf32> to vector<1x128xf32>
    %309 = vector.extract_strided_slice %307 {offsets = [19, 0], sizes = [1, 1], strides = [1, 1]} : vector<32x1xf32> to vector<1x1xf32>
    %cst_20 = arith.constant 1.000000e+00 : f32
    %310 = vector.broadcast %cst_20 : f32 to vector<1x1xf32>
    %311 = arith.divf %310, %309 : vector<1x1xf32>
    %312 = vector.broadcast %311 : vector<1x1xf32> to vector<1x128xf32>
    %313 = arith.mulf %308, %312 : vector<1x128xf32>
    %c19_i32 = arith.constant 19 : i32
    %314 = vector.broadcast %c19_i32 : i32 to vector<32x1xi32>
    %315 = arith.cmpi eq, %2, %314 : vector<32x1xi32>
    %316 = arith.extui %315 : vector<32x1xi1> to vector<32x1xi32>
    %317 = arith.sitofp %316 : vector<32x1xi32> to vector<32x1xf32>
    %318 = arith.subf %307, %317 : vector<32x1xf32>
    %319 = vector.broadcast %318 : vector<32x1xf32> to vector<32x128xf32>
    %320 = vector.broadcast %313 : vector<1x128xf32> to vector<32x128xf32>
    %321 = arith.mulf %319, %320 : vector<32x128xf32>
    %322 = arith.subf %306, %321 : vector<32x128xf32>
    %323 = vector.extract_strided_slice %322 {offsets = [0, 20], sizes = [32, 1], strides = [1, 1]} : vector<32x128xf32> to vector<32x1xf32>
    %324 = vector.extract_strided_slice %322 {offsets = [20, 0], sizes = [1, 128], strides = [1, 1]} : vector<32x128xf32> to vector<1x128xf32>
    %325 = vector.extract_strided_slice %323 {offsets = [20, 0], sizes = [1, 1], strides = [1, 1]} : vector<32x1xf32> to vector<1x1xf32>
    %cst_21 = arith.constant 1.000000e+00 : f32
    %326 = vector.broadcast %cst_21 : f32 to vector<1x1xf32>
    %327 = arith.divf %326, %325 : vector<1x1xf32>
    %328 = vector.broadcast %327 : vector<1x1xf32> to vector<1x128xf32>
    %329 = arith.mulf %324, %328 : vector<1x128xf32>
    %c20_i32 = arith.constant 20 : i32
    %330 = vector.broadcast %c20_i32 : i32 to vector<32x1xi32>
    %331 = arith.cmpi eq, %2, %330 : vector<32x1xi32>
    %332 = arith.extui %331 : vector<32x1xi1> to vector<32x1xi32>
    %333 = arith.sitofp %332 : vector<32x1xi32> to vector<32x1xf32>
    %334 = arith.subf %323, %333 : vector<32x1xf32>
    %335 = vector.broadcast %334 : vector<32x1xf32> to vector<32x128xf32>
    %336 = vector.broadcast %329 : vector<1x128xf32> to vector<32x128xf32>
    %337 = arith.mulf %335, %336 : vector<32x128xf32>
    %338 = arith.subf %322, %337 : vector<32x128xf32>
    %339 = vector.extract_strided_slice %338 {offsets = [0, 21], sizes = [32, 1], strides = [1, 1]} : vector<32x128xf32> to vector<32x1xf32>
    %340 = vector.extract_strided_slice %338 {offsets = [21, 0], sizes = [1, 128], strides = [1, 1]} : vector<32x128xf32> to vector<1x128xf32>
    %341 = vector.extract_strided_slice %339 {offsets = [21, 0], sizes = [1, 1], strides = [1, 1]} : vector<32x1xf32> to vector<1x1xf32>
    %cst_22 = arith.constant 1.000000e+00 : f32
    %342 = vector.broadcast %cst_22 : f32 to vector<1x1xf32>
    %343 = arith.divf %342, %341 : vector<1x1xf32>
    %344 = vector.broadcast %343 : vector<1x1xf32> to vector<1x128xf32>
    %345 = arith.mulf %340, %344 : vector<1x128xf32>
    %c21_i32 = arith.constant 21 : i32
    %346 = vector.broadcast %c21_i32 : i32 to vector<32x1xi32>
    %347 = arith.cmpi eq, %2, %346 : vector<32x1xi32>
    %348 = arith.extui %347 : vector<32x1xi1> to vector<32x1xi32>
    %349 = arith.sitofp %348 : vector<32x1xi32> to vector<32x1xf32>
    %350 = arith.subf %339, %349 : vector<32x1xf32>
    %351 = vector.broadcast %350 : vector<32x1xf32> to vector<32x128xf32>
    %352 = vector.broadcast %345 : vector<1x128xf32> to vector<32x128xf32>
    %353 = arith.mulf %351, %352 : vector<32x128xf32>
    %354 = arith.subf %338, %353 : vector<32x128xf32>
    %355 = vector.extract_strided_slice %354 {offsets = [0, 22], sizes = [32, 1], strides = [1, 1]} : vector<32x128xf32> to vector<32x1xf32>
    %356 = vector.extract_strided_slice %354 {offsets = [22, 0], sizes = [1, 128], strides = [1, 1]} : vector<32x128xf32> to vector<1x128xf32>
    %357 = vector.extract_strided_slice %355 {offsets = [22, 0], sizes = [1, 1], strides = [1, 1]} : vector<32x1xf32> to vector<1x1xf32>
    %cst_23 = arith.constant 1.000000e+00 : f32
    %358 = vector.broadcast %cst_23 : f32 to vector<1x1xf32>
    %359 = arith.divf %358, %357 : vector<1x1xf32>
    %360 = vector.broadcast %359 : vector<1x1xf32> to vector<1x128xf32>
    %361 = arith.mulf %356, %360 : vector<1x128xf32>
    %c22_i32 = arith.constant 22 : i32
    %362 = vector.broadcast %c22_i32 : i32 to vector<32x1xi32>
    %363 = arith.cmpi eq, %2, %362 : vector<32x1xi32>
    %364 = arith.extui %363 : vector<32x1xi1> to vector<32x1xi32>
    %365 = arith.sitofp %364 : vector<32x1xi32> to vector<32x1xf32>
    %366 = arith.subf %355, %365 : vector<32x1xf32>
    %367 = vector.broadcast %366 : vector<32x1xf32> to vector<32x128xf32>
    %368 = vector.broadcast %361 : vector<1x128xf32> to vector<32x128xf32>
    %369 = arith.mulf %367, %368 : vector<32x128xf32>
    %370 = arith.subf %354, %369 : vector<32x128xf32>
    %371 = vector.extract_strided_slice %370 {offsets = [0, 23], sizes = [32, 1], strides = [1, 1]} : vector<32x128xf32> to vector<32x1xf32>
    %372 = vector.extract_strided_slice %370 {offsets = [23, 0], sizes = [1, 128], strides = [1, 1]} : vector<32x128xf32> to vector<1x128xf32>
    %373 = vector.extract_strided_slice %371 {offsets = [23, 0], sizes = [1, 1], strides = [1, 1]} : vector<32x1xf32> to vector<1x1xf32>
    %cst_24 = arith.constant 1.000000e+00 : f32
    %374 = vector.broadcast %cst_24 : f32 to vector<1x1xf32>
    %375 = arith.divf %374, %373 : vector<1x1xf32>
    %376 = vector.broadcast %375 : vector<1x1xf32> to vector<1x128xf32>
    %377 = arith.mulf %372, %376 : vector<1x128xf32>
    %c23_i32 = arith.constant 23 : i32
    %378 = vector.broadcast %c23_i32 : i32 to vector<32x1xi32>
    %379 = arith.cmpi eq, %2, %378 : vector<32x1xi32>
    %380 = arith.extui %379 : vector<32x1xi1> to vector<32x1xi32>
    %381 = arith.sitofp %380 : vector<32x1xi32> to vector<32x1xf32>
    %382 = arith.subf %371, %381 : vector<32x1xf32>
    %383 = vector.broadcast %382 : vector<32x1xf32> to vector<32x128xf32>
    %384 = vector.broadcast %377 : vector<1x128xf32> to vector<32x128xf32>
    %385 = arith.mulf %383, %384 : vector<32x128xf32>
    %386 = arith.subf %370, %385 : vector<32x128xf32>
    %387 = vector.extract_strided_slice %386 {offsets = [0, 24], sizes = [32, 1], strides = [1, 1]} : vector<32x128xf32> to vector<32x1xf32>
    %388 = vector.extract_strided_slice %386 {offsets = [24, 0], sizes = [1, 128], strides = [1, 1]} : vector<32x128xf32> to vector<1x128xf32>
    %389 = vector.extract_strided_slice %387 {offsets = [24, 0], sizes = [1, 1], strides = [1, 1]} : vector<32x1xf32> to vector<1x1xf32>
    %cst_25 = arith.constant 1.000000e+00 : f32
    %390 = vector.broadcast %cst_25 : f32 to vector<1x1xf32>
    %391 = arith.divf %390, %389 : vector<1x1xf32>
    %392 = vector.broadcast %391 : vector<1x1xf32> to vector<1x128xf32>
    %393 = arith.mulf %388, %392 : vector<1x128xf32>
    %c24_i32 = arith.constant 24 : i32
    %394 = vector.broadcast %c24_i32 : i32 to vector<32x1xi32>
    %395 = arith.cmpi eq, %2, %394 : vector<32x1xi32>
    %396 = arith.extui %395 : vector<32x1xi1> to vector<32x1xi32>
    %397 = arith.sitofp %396 : vector<32x1xi32> to vector<32x1xf32>
    %398 = arith.subf %387, %397 : vector<32x1xf32>
    %399 = vector.broadcast %398 : vector<32x1xf32> to vector<32x128xf32>
    %400 = vector.broadcast %393 : vector<1x128xf32> to vector<32x128xf32>
    %401 = arith.mulf %399, %400 : vector<32x128xf32>
    %402 = arith.subf %386, %401 : vector<32x128xf32>
    %403 = vector.extract_strided_slice %402 {offsets = [0, 25], sizes = [32, 1], strides = [1, 1]} : vector<32x128xf32> to vector<32x1xf32>
    %404 = vector.extract_strided_slice %402 {offsets = [25, 0], sizes = [1, 128], strides = [1, 1]} : vector<32x128xf32> to vector<1x128xf32>
    %405 = vector.extract_strided_slice %403 {offsets = [25, 0], sizes = [1, 1], strides = [1, 1]} : vector<32x1xf32> to vector<1x1xf32>
    %cst_26 = arith.constant 1.000000e+00 : f32
    %406 = vector.broadcast %cst_26 : f32 to vector<1x1xf32>
    %407 = arith.divf %406, %405 : vector<1x1xf32>
    %408 = vector.broadcast %407 : vector<1x1xf32> to vector<1x128xf32>
    %409 = arith.mulf %404, %408 : vector<1x128xf32>
    %c25_i32 = arith.constant 25 : i32
    %410 = vector.broadcast %c25_i32 : i32 to vector<32x1xi32>
    %411 = arith.cmpi eq, %2, %410 : vector<32x1xi32>
    %412 = arith.extui %411 : vector<32x1xi1> to vector<32x1xi32>
    %413 = arith.sitofp %412 : vector<32x1xi32> to vector<32x1xf32>
    %414 = arith.subf %403, %413 : vector<32x1xf32>
    %415 = vector.broadcast %414 : vector<32x1xf32> to vector<32x128xf32>
    %416 = vector.broadcast %409 : vector<1x128xf32> to vector<32x128xf32>
    %417 = arith.mulf %415, %416 : vector<32x128xf32>
    %418 = arith.subf %402, %417 : vector<32x128xf32>
    %419 = vector.extract_strided_slice %418 {offsets = [0, 26], sizes = [32, 1], strides = [1, 1]} : vector<32x128xf32> to vector<32x1xf32>
    %420 = vector.extract_strided_slice %418 {offsets = [26, 0], sizes = [1, 128], strides = [1, 1]} : vector<32x128xf32> to vector<1x128xf32>
    %421 = vector.extract_strided_slice %419 {offsets = [26, 0], sizes = [1, 1], strides = [1, 1]} : vector<32x1xf32> to vector<1x1xf32>
    %cst_27 = arith.constant 1.000000e+00 : f32
    %422 = vector.broadcast %cst_27 : f32 to vector<1x1xf32>
    %423 = arith.divf %422, %421 : vector<1x1xf32>
    %424 = vector.broadcast %423 : vector<1x1xf32> to vector<1x128xf32>
    %425 = arith.mulf %420, %424 : vector<1x128xf32>
    %c26_i32 = arith.constant 26 : i32
    %426 = vector.broadcast %c26_i32 : i32 to vector<32x1xi32>
    %427 = arith.cmpi eq, %2, %426 : vector<32x1xi32>
    %428 = arith.extui %427 : vector<32x1xi1> to vector<32x1xi32>
    %429 = arith.sitofp %428 : vector<32x1xi32> to vector<32x1xf32>
    %430 = arith.subf %419, %429 : vector<32x1xf32>
    %431 = vector.broadcast %430 : vector<32x1xf32> to vector<32x128xf32>
    %432 = vector.broadcast %425 : vector<1x128xf32> to vector<32x128xf32>
    %433 = arith.mulf %431, %432 : vector<32x128xf32>
    %434 = arith.subf %418, %433 : vector<32x128xf32>
    %435 = vector.extract_strided_slice %434 {offsets = [0, 27], sizes = [32, 1], strides = [1, 1]} : vector<32x128xf32> to vector<32x1xf32>
    %436 = vector.extract_strided_slice %434 {offsets = [27, 0], sizes = [1, 128], strides = [1, 1]} : vector<32x128xf32> to vector<1x128xf32>
    %437 = vector.extract_strided_slice %435 {offsets = [27, 0], sizes = [1, 1], strides = [1, 1]} : vector<32x1xf32> to vector<1x1xf32>
    %cst_28 = arith.constant 1.000000e+00 : f32
    %438 = vector.broadcast %cst_28 : f32 to vector<1x1xf32>
    %439 = arith.divf %438, %437 : vector<1x1xf32>
    %440 = vector.broadcast %439 : vector<1x1xf32> to vector<1x128xf32>
    %441 = arith.mulf %436, %440 : vector<1x128xf32>
    %c27_i32 = arith.constant 27 : i32
    %442 = vector.broadcast %c27_i32 : i32 to vector<32x1xi32>
    %443 = arith.cmpi eq, %2, %442 : vector<32x1xi32>
    %444 = arith.extui %443 : vector<32x1xi1> to vector<32x1xi32>
    %445 = arith.sitofp %444 : vector<32x1xi32> to vector<32x1xf32>
    %446 = arith.subf %435, %445 : vector<32x1xf32>
    %447 = vector.broadcast %446 : vector<32x1xf32> to vector<32x128xf32>
    %448 = vector.broadcast %441 : vector<1x128xf32> to vector<32x128xf32>
    %449 = arith.mulf %447, %448 : vector<32x128xf32>
    %450 = arith.subf %434, %449 : vector<32x128xf32>
    %451 = vector.extract_strided_slice %450 {offsets = [0, 28], sizes = [32, 1], strides = [1, 1]} : vector<32x128xf32> to vector<32x1xf32>
    %452 = vector.extract_strided_slice %450 {offsets = [28, 0], sizes = [1, 128], strides = [1, 1]} : vector<32x128xf32> to vector<1x128xf32>
    %453 = vector.extract_strided_slice %451 {offsets = [28, 0], sizes = [1, 1], strides = [1, 1]} : vector<32x1xf32> to vector<1x1xf32>
    %cst_29 = arith.constant 1.000000e+00 : f32
    %454 = vector.broadcast %cst_29 : f32 to vector<1x1xf32>
    %455 = arith.divf %454, %453 : vector<1x1xf32>
    %456 = vector.broadcast %455 : vector<1x1xf32> to vector<1x128xf32>
    %457 = arith.mulf %452, %456 : vector<1x128xf32>
    %c28_i32 = arith.constant 28 : i32
    %458 = vector.broadcast %c28_i32 : i32 to vector<32x1xi32>
    %459 = arith.cmpi eq, %2, %458 : vector<32x1xi32>
    %460 = arith.extui %459 : vector<32x1xi1> to vector<32x1xi32>
    %461 = arith.sitofp %460 : vector<32x1xi32> to vector<32x1xf32>
    %462 = arith.subf %451, %461 : vector<32x1xf32>
    %463 = vector.broadcast %462 : vector<32x1xf32> to vector<32x128xf32>
    %464 = vector.broadcast %457 : vector<1x128xf32> to vector<32x128xf32>
    %465 = arith.mulf %463, %464 : vector<32x128xf32>
    %466 = arith.subf %450, %465 : vector<32x128xf32>
    %467 = vector.extract_strided_slice %466 {offsets = [0, 29], sizes = [32, 1], strides = [1, 1]} : vector<32x128xf32> to vector<32x1xf32>
    %468 = vector.extract_strided_slice %466 {offsets = [29, 0], sizes = [1, 128], strides = [1, 1]} : vector<32x128xf32> to vector<1x128xf32>
    %469 = vector.extract_strided_slice %467 {offsets = [29, 0], sizes = [1, 1], strides = [1, 1]} : vector<32x1xf32> to vector<1x1xf32>
    %cst_30 = arith.constant 1.000000e+00 : f32
    %470 = vector.broadcast %cst_30 : f32 to vector<1x1xf32>
    %471 = arith.divf %470, %469 : vector<1x1xf32>
    %472 = vector.broadcast %471 : vector<1x1xf32> to vector<1x128xf32>
    %473 = arith.mulf %468, %472 : vector<1x128xf32>
    %c29_i32 = arith.constant 29 : i32
    %474 = vector.broadcast %c29_i32 : i32 to vector<32x1xi32>
    %475 = arith.cmpi eq, %2, %474 : vector<32x1xi32>
    %476 = arith.extui %475 : vector<32x1xi1> to vector<32x1xi32>
    %477 = arith.sitofp %476 : vector<32x1xi32> to vector<32x1xf32>
    %478 = arith.subf %467, %477 : vector<32x1xf32>
    %479 = vector.broadcast %478 : vector<32x1xf32> to vector<32x128xf32>
    %480 = vector.broadcast %473 : vector<1x128xf32> to vector<32x128xf32>
    %481 = arith.mulf %479, %480 : vector<32x128xf32>
    %482 = arith.subf %466, %481 : vector<32x128xf32>
    %483 = vector.extract_strided_slice %482 {offsets = [0, 30], sizes = [32, 1], strides = [1, 1]} : vector<32x128xf32> to vector<32x1xf32>
    %484 = vector.extract_strided_slice %482 {offsets = [30, 0], sizes = [1, 128], strides = [1, 1]} : vector<32x128xf32> to vector<1x128xf32>
    %485 = vector.extract_strided_slice %483 {offsets = [30, 0], sizes = [1, 1], strides = [1, 1]} : vector<32x1xf32> to vector<1x1xf32>
    %cst_31 = arith.constant 1.000000e+00 : f32
    %486 = vector.broadcast %cst_31 : f32 to vector<1x1xf32>
    %487 = arith.divf %486, %485 : vector<1x1xf32>
    %488 = vector.broadcast %487 : vector<1x1xf32> to vector<1x128xf32>
    %489 = arith.mulf %484, %488 : vector<1x128xf32>
    %c30_i32 = arith.constant 30 : i32
    %490 = vector.broadcast %c30_i32 : i32 to vector<32x1xi32>
    %491 = arith.cmpi eq, %2, %490 : vector<32x1xi32>
    %492 = arith.extui %491 : vector<32x1xi1> to vector<32x1xi32>
    %493 = arith.sitofp %492 : vector<32x1xi32> to vector<32x1xf32>
    %494 = arith.subf %483, %493 : vector<32x1xf32>
    %495 = vector.broadcast %494 : vector<32x1xf32> to vector<32x128xf32>
    %496 = vector.broadcast %489 : vector<1x128xf32> to vector<32x128xf32>
    %497 = arith.mulf %495, %496 : vector<32x128xf32>
    %498 = arith.subf %482, %497 : vector<32x128xf32>
    %499 = vector.extract_strided_slice %498 {offsets = [0, 31], sizes = [32, 1], strides = [1, 1]} : vector<32x128xf32> to vector<32x1xf32>
    %500 = vector.extract_strided_slice %498 {offsets = [31, 0], sizes = [1, 128], strides = [1, 1]} : vector<32x128xf32> to vector<1x128xf32>
    %501 = vector.extract_strided_slice %499 {offsets = [31, 0], sizes = [1, 1], strides = [1, 1]} : vector<32x1xf32> to vector<1x1xf32>
    %cst_32 = arith.constant 1.000000e+00 : f32
    %502 = vector.broadcast %cst_32 : f32 to vector<1x1xf32>
    %503 = arith.divf %502, %501 : vector<1x1xf32>
    %504 = vector.broadcast %503 : vector<1x1xf32> to vector<1x128xf32>
    %505 = arith.mulf %500, %504 : vector<1x128xf32>
    %c31_i32 = arith.constant 31 : i32
    %506 = vector.broadcast %c31_i32 : i32 to vector<32x1xi32>
    %507 = arith.cmpi eq, %2, %506 : vector<32x1xi32>
    %508 = arith.extui %507 : vector<32x1xi1> to vector<32x1xi32>
    %509 = arith.sitofp %508 : vector<32x1xi32> to vector<32x1xf32>
    %510 = arith.subf %499, %509 : vector<32x1xf32>
    %511 = vector.broadcast %510 : vector<32x1xf32> to vector<32x128xf32>
    %512 = vector.broadcast %505 : vector<1x128xf32> to vector<32x128xf32>
    %513 = arith.mulf %511, %512 : vector<32x128xf32>
    %514 = arith.subf %498, %513 : vector<32x128xf32>
    %c0_33 = arith.constant 0 : index
    %c0_34 = arith.constant 0 : index
    %c0_35 = arith.constant 0 : index
    %515 = vector.load %arg2[%c0_33, %c0_34, %c0_35] : memref<1x32x128xf32, #tpu.memory_space<vmem>>, vector<1x32x128xf32>
    %516 = vector.shape_cast %515 : vector<1x32x128xf32> to vector<32x128xf32>
    %517 = vector.shape_cast %514 : vector<32x128xf32> to vector<1x32x128xf32>
    tpu.vector_store %arg2[%c0_33, %c0_34, %c0_35], %517 {strides = array<i32>} : memref<1x32x128xf32, #tpu.memory_space<vmem>>, vector<1x32x128xf32>,
    return
  }
  func.func @transform_0(%arg0: i32) -> (i32, i32, i32) {
    %c0_i32 = arith.constant 0 : i32
    %c0_i32_0 = arith.constant 0 : i32
    %c0_i32_1 = arith.constant 0 : i32
    return %arg0, %c0_i32, %c0_i32_0 : i32, i32, i32
  }
  func.func @transform_1(%arg0: i32) -> (i32, i32, i32) {
    %c0_i32 = arith.constant 0 : i32
    %c0_i32_0 = arith.constant 0 : i32
    %c0_i32_1 = arith.constant 0 : i32
    return %arg0, %c0_i32, %c0_i32_0 : i32, i32, i32
  }
}

module attributes {stable_mosaic.version = 11 : i64} {
  func.func @kernel(%arg0: i32, %arg1: memref<1x32x128xf32, #tpu.memory_space<vmem>>, %arg2: memref<1x32x128xf32, #tpu.memory_space<vmem>>) attributes {dimension_semantics = [#tpu.dimension_semantics<parallel>], iteration_bounds = array<i64: 4>, scalar_prefetch = 0 : i64, scratch_operands = 0 : i64, tpu.core_type = #tpu.core_type<tc>, window_params = [{transform_indices = @transform_0, window_bounds = array<i64: 1, 32, 128>}, {transform_indices = @transform_1, window_bounds = array<i64: 1, 32, 128>}]} {
    %c0 = arith.constant 0 : index
    %c0_0 = arith.constant 0 : index
    %c0_1 = arith.constant 0 : index
    %0 = vector.load %arg1[%c0, %c0_0, %c0_1] : memref<1x32x128xf32, #tpu.memory_space<vmem>>, vector<1x32x128xf32>
    %1 = vector.shape_cast %0 : vector<1x32x128xf32> to vector<32x128xf32>
    %2 = tpu.iota {dimensions = array<i32: 0>} : vector<32x1xi32>
    %3 = vector.extract_strided_slice %1 {offsets = [0, 0], sizes = [32, 1], strides = [1, 1]} : vector<32x128xf32> to vector<32x1xf32>
    %4 = vector.extract_strided_slice %1 {offsets = [0, 0], sizes = [1, 128], strides = [1, 1]} : vector<32x128xf32> to vector<1x128xf32>
    %5 = vector.extract_strided_slice %3 {offsets = [0, 0], sizes = [1, 1], strides = [1, 1]} : vector<32x1xf32> to vector<1x1xf32>
    %cst = arith.constant 1.000000e+00 : f32
    %6 = vector.broadcast %cst : f32 to vector<1x1xf32>
    %7 = arith.divf %6, %5 : vector<1x1xf32>
    %8 = vector.broadcast %7 : vector<1x1xf32> to vector<1x128xf32>
    %9 = arith.mulf %4, %8 : vector<1x128xf32>
    %c0_i32 = arith.constant 0 : i32
    %10 = vector.broadcast %c0_i32 : i32 to vector<32x1xi32>
    %11 = arith.cmpi eq, %2, %10 : vector<32x1xi32>
    %12 = arith.extui %11 : vector<32x1xi1> to vector<32x1xi32>
    %13 = arith.sitofp %12 : vector<32x1xi32> to vector<32x1xf32>
    %14 = arith.subf %3, %13 : vector<32x1xf32>
    %15 = vector.broadcast %14 : vector<32x1xf32> to vector<32x128xf32>
    %16 = vector.broadcast %9 : vector<1x128xf32> to vector<32x128xf32>
    %17 = arith.mulf %15, %16 : vector<32x128xf32>
    %18 = arith.subf %1, %17 : vector<32x128xf32>
    %19 = vector.extract_strided_slice %18 {offsets = [0, 1], sizes = [32, 1], strides = [1, 1]} : vector<32x128xf32> to vector<32x1xf32>
    %20 = vector.extract_strided_slice %18 {offsets = [1, 0], sizes = [1, 128], strides = [1, 1]} : vector<32x128xf32> to vector<1x128xf32>
    %21 = vector.extract_strided_slice %19 {offsets = [1, 0], sizes = [1, 1], strides = [1, 1]} : vector<32x1xf32> to vector<1x1xf32>
    %cst_2 = arith.constant 1.000000e+00 : f32
    %22 = vector.broadcast %cst_2 : f32 to vector<1x1xf32>
    %23 = arith.divf %22, %21 : vector<1x1xf32>
    %24 = vector.broadcast %23 : vector<1x1xf32> to vector<1x128xf32>
    %25 = arith.mulf %20, %24 : vector<1x128xf32>
    %c1_i32 = arith.constant 1 : i32
    %26 = vector.broadcast %c1_i32 : i32 to vector<32x1xi32>
    %27 = arith.cmpi eq, %2, %26 : vector<32x1xi32>
    %28 = arith.extui %27 : vector<32x1xi1> to vector<32x1xi32>
    %29 = arith.sitofp %28 : vector<32x1xi32> to vector<32x1xf32>
    %30 = arith.subf %19, %29 : vector<32x1xf32>
    %31 = vector.broadcast %30 : vector<32x1xf32> to vector<32x128xf32>
    %32 = vector.broadcast %25 : vector<1x128xf32> to vector<32x128xf32>
    %33 = arith.mulf %31, %32 : vector<32x128xf32>
    %34 = arith.subf %18, %33 : vector<32x128xf32>
    %35 = vector.extract_strided_slice %34 {offsets = [0, 2], sizes = [32, 1], strides = [1, 1]} : vector<32x128xf32> to vector<32x1xf32>
    %36 = vector.extract_strided_slice %34 {offsets = [2, 0], sizes = [1, 128], strides = [1, 1]} : vector<32x128xf32> to vector<1x128xf32>
    %37 = vector.extract_strided_slice %35 {offsets = [2, 0], sizes = [1, 1], strides = [1, 1]} : vector<32x1xf32> to vector<1x1xf32>
    %cst_3 = arith.constant 1.000000e+00 : f32
    %38 = vector.broadcast %cst_3 : f32 to vector<1x1xf32>
    %39 = arith.divf %38, %37 : vector<1x1xf32>
    %40 = vector.broadcast %39 : vector<1x1xf32> to vector<1x128xf32>
    %41 = arith.mulf %36, %40 : vector<1x128xf32>
    %c2_i32 = arith.constant 2 : i32
    %42 = vector.broadcast %c2_i32 : i32 to vector<32x1xi32>
    %43 = arith.cmpi eq, %2, %42 : vector<32x1xi32>
    %44 = arith.extui %43 : vector<32x1xi1> to vector<32x1xi32>
    %45 = arith.sitofp %44 : vector<32x1xi32> to vector<32x1xf32>
    %46 = arith.subf %35, %45 : vector<32x1xf32>
    %47 = vector.broadcast %46 : vector<32x1xf32> to vector<32x128xf32>
    %48 = vector.broadcast %41 : vector<1x128xf32> to vector<32x128xf32>
    %49 = arith.mulf %47, %48 : vector<32x128xf32>
    %50 = arith.subf %34, %49 : vector<32x128xf32>
    %51 = vector.extract_strided_slice %50 {offsets = [0, 3], sizes = [32, 1], strides = [1, 1]} : vector<32x128xf32> to vector<32x1xf32>
    %52 = vector.extract_strided_slice %50 {offsets = [3, 0], sizes = [1, 128], strides = [1, 1]} : vector<32x128xf32> to vector<1x128xf32>
    %53 = vector.extract_strided_slice %51 {offsets = [3, 0], sizes = [1, 1], strides = [1, 1]} : vector<32x1xf32> to vector<1x1xf32>
    %cst_4 = arith.constant 1.000000e+00 : f32
    %54 = vector.broadcast %cst_4 : f32 to vector<1x1xf32>
    %55 = arith.divf %54, %53 : vector<1x1xf32>
    %56 = vector.broadcast %55 : vector<1x1xf32> to vector<1x128xf32>
    %57 = arith.mulf %52, %56 : vector<1x128xf32>
    %c3_i32 = arith.constant 3 : i32
    %58 = vector.broadcast %c3_i32 : i32 to vector<32x1xi32>
    %59 = arith.cmpi eq, %2, %58 : vector<32x1xi32>
    %60 = arith.extui %59 : vector<32x1xi1> to vector<32x1xi32>
    %61 = arith.sitofp %60 : vector<32x1xi32> to vector<32x1xf32>
    %62 = arith.subf %51, %61 : vector<32x1xf32>
    %63 = vector.broadcast %62 : vector<32x1xf32> to vector<32x128xf32>
    %64 = vector.broadcast %57 : vector<1x128xf32> to vector<32x128xf32>
    %65 = arith.mulf %63, %64 : vector<32x128xf32>
    %66 = arith.subf %50, %65 : vector<32x128xf32>
    %67 = vector.extract_strided_slice %66 {offsets = [0, 4], sizes = [32, 1], strides = [1, 1]} : vector<32x128xf32> to vector<32x1xf32>
    %68 = vector.extract_strided_slice %66 {offsets = [4, 0], sizes = [1, 128], strides = [1, 1]} : vector<32x128xf32> to vector<1x128xf32>
    %69 = vector.extract_strided_slice %67 {offsets = [4, 0], sizes = [1, 1], strides = [1, 1]} : vector<32x1xf32> to vector<1x1xf32>
    %cst_5 = arith.constant 1.000000e+00 : f32
    %70 = vector.broadcast %cst_5 : f32 to vector<1x1xf32>
    %71 = arith.divf %70, %69 : vector<1x1xf32>
    %72 = vector.broadcast %71 : vector<1x1xf32> to vector<1x128xf32>
    %73 = arith.mulf %68, %72 : vector<1x128xf32>
    %c4_i32 = arith.constant 4 : i32
    %74 = vector.broadcast %c4_i32 : i32 to vector<32x1xi32>
    %75 = arith.cmpi eq, %2, %74 : vector<32x1xi32>
    %76 = arith.extui %75 : vector<32x1xi1> to vector<32x1xi32>
    %77 = arith.sitofp %76 : vector<32x1xi32> to vector<32x1xf32>
    %78 = arith.subf %67, %77 : vector<32x1xf32>
    %79 = vector.broadcast %78 : vector<32x1xf32> to vector<32x128xf32>
    %80 = vector.broadcast %73 : vector<1x128xf32> to vector<32x128xf32>
    %81 = arith.mulf %79, %80 : vector<32x128xf32>
    %82 = arith.subf %66, %81 : vector<32x128xf32>
    %83 = vector.extract_strided_slice %82 {offsets = [0, 5], sizes = [32, 1], strides = [1, 1]} : vector<32x128xf32> to vector<32x1xf32>
    %84 = vector.extract_strided_slice %82 {offsets = [5, 0], sizes = [1, 128], strides = [1, 1]} : vector<32x128xf32> to vector<1x128xf32>
    %85 = vector.extract_strided_slice %83 {offsets = [5, 0], sizes = [1, 1], strides = [1, 1]} : vector<32x1xf32> to vector<1x1xf32>
    %cst_6 = arith.constant 1.000000e+00 : f32
    %86 = vector.broadcast %cst_6 : f32 to vector<1x1xf32>
    %87 = arith.divf %86, %85 : vector<1x1xf32>
    %88 = vector.broadcast %87 : vector<1x1xf32> to vector<1x128xf32>
    %89 = arith.mulf %84, %88 : vector<1x128xf32>
    %c5_i32 = arith.constant 5 : i32
    %90 = vector.broadcast %c5_i32 : i32 to vector<32x1xi32>
    %91 = arith.cmpi eq, %2, %90 : vector<32x1xi32>
    %92 = arith.extui %91 : vector<32x1xi1> to vector<32x1xi32>
    %93 = arith.sitofp %92 : vector<32x1xi32> to vector<32x1xf32>
    %94 = arith.subf %83, %93 : vector<32x1xf32>
    %95 = vector.broadcast %94 : vector<32x1xf32> to vector<32x128xf32>
    %96 = vector.broadcast %89 : vector<1x128xf32> to vector<32x128xf32>
    %97 = arith.mulf %95, %96 : vector<32x128xf32>
    %98 = arith.subf %82, %97 : vector<32x128xf32>
    %99 = vector.extract_strided_slice %98 {offsets = [0, 6], sizes = [32, 1], strides = [1, 1]} : vector<32x128xf32> to vector<32x1xf32>
    %100 = vector.extract_strided_slice %98 {offsets = [6, 0], sizes = [1, 128], strides = [1, 1]} : vector<32x128xf32> to vector<1x128xf32>
    %101 = vector.extract_strided_slice %99 {offsets = [6, 0], sizes = [1, 1], strides = [1, 1]} : vector<32x1xf32> to vector<1x1xf32>
    %cst_7 = arith.constant 1.000000e+00 : f32
    %102 = vector.broadcast %cst_7 : f32 to vector<1x1xf32>
    %103 = arith.divf %102, %101 : vector<1x1xf32>
    %104 = vector.broadcast %103 : vector<1x1xf32> to vector<1x128xf32>
    %105 = arith.mulf %100, %104 : vector<1x128xf32>
    %c6_i32 = arith.constant 6 : i32
    %106 = vector.broadcast %c6_i32 : i32 to vector<32x1xi32>
    %107 = arith.cmpi eq, %2, %106 : vector<32x1xi32>
    %108 = arith.extui %107 : vector<32x1xi1> to vector<32x1xi32>
    %109 = arith.sitofp %108 : vector<32x1xi32> to vector<32x1xf32>
    %110 = arith.subf %99, %109 : vector<32x1xf32>
    %111 = vector.broadcast %110 : vector<32x1xf32> to vector<32x128xf32>
    %112 = vector.broadcast %105 : vector<1x128xf32> to vector<32x128xf32>
    %113 = arith.mulf %111, %112 : vector<32x128xf32>
    %114 = arith.subf %98, %113 : vector<32x128xf32>
    %115 = vector.extract_strided_slice %114 {offsets = [0, 7], sizes = [32, 1], strides = [1, 1]} : vector<32x128xf32> to vector<32x1xf32>
    %116 = vector.extract_strided_slice %114 {offsets = [7, 0], sizes = [1, 128], strides = [1, 1]} : vector<32x128xf32> to vector<1x128xf32>
    %117 = vector.extract_strided_slice %115 {offsets = [7, 0], sizes = [1, 1], strides = [1, 1]} : vector<32x1xf32> to vector<1x1xf32>
    %cst_8 = arith.constant 1.000000e+00 : f32
    %118 = vector.broadcast %cst_8 : f32 to vector<1x1xf32>
    %119 = arith.divf %118, %117 : vector<1x1xf32>
    %120 = vector.broadcast %119 : vector<1x1xf32> to vector<1x128xf32>
    %121 = arith.mulf %116, %120 : vector<1x128xf32>
    %c7_i32 = arith.constant 7 : i32
    %122 = vector.broadcast %c7_i32 : i32 to vector<32x1xi32>
    %123 = arith.cmpi eq, %2, %122 : vector<32x1xi32>
    %124 = arith.extui %123 : vector<32x1xi1> to vector<32x1xi32>
    %125 = arith.sitofp %124 : vector<32x1xi32> to vector<32x1xf32>
    %126 = arith.subf %115, %125 : vector<32x1xf32>
    %127 = vector.broadcast %126 : vector<32x1xf32> to vector<32x128xf32>
    %128 = vector.broadcast %121 : vector<1x128xf32> to vector<32x128xf32>
    %129 = arith.mulf %127, %128 : vector<32x128xf32>
    %130 = arith.subf %114, %129 : vector<32x128xf32>
    %131 = vector.extract_strided_slice %130 {offsets = [0, 8], sizes = [32, 1], strides = [1, 1]} : vector<32x128xf32> to vector<32x1xf32>
    %132 = vector.extract_strided_slice %130 {offsets = [8, 0], sizes = [1, 128], strides = [1, 1]} : vector<32x128xf32> to vector<1x128xf32>
    %133 = vector.extract_strided_slice %131 {offsets = [8, 0], sizes = [1, 1], strides = [1, 1]} : vector<32x1xf32> to vector<1x1xf32>
    %cst_9 = arith.constant 1.000000e+00 : f32
    %134 = vector.broadcast %cst_9 : f32 to vector<1x1xf32>
    %135 = arith.divf %134, %133 : vector<1x1xf32>
    %136 = vector.broadcast %135 : vector<1x1xf32> to vector<1x128xf32>
    %137 = arith.mulf %132, %136 : vector<1x128xf32>
    %c8_i32 = arith.constant 8 : i32
    %138 = vector.broadcast %c8_i32 : i32 to vector<32x1xi32>
    %139 = arith.cmpi eq, %2, %138 : vector<32x1xi32>
    %140 = arith.extui %139 : vector<32x1xi1> to vector<32x1xi32>
    %141 = arith.sitofp %140 : vector<32x1xi32> to vector<32x1xf32>
    %142 = arith.subf %131, %141 : vector<32x1xf32>
    %143 = vector.broadcast %142 : vector<32x1xf32> to vector<32x128xf32>
    %144 = vector.broadcast %137 : vector<1x128xf32> to vector<32x128xf32>
    %145 = arith.mulf %143, %144 : vector<32x128xf32>
    %146 = arith.subf %130, %145 : vector<32x128xf32>
    %147 = vector.extract_strided_slice %146 {offsets = [0, 9], sizes = [32, 1], strides = [1, 1]} : vector<32x128xf32> to vector<32x1xf32>
    %148 = vector.extract_strided_slice %146 {offsets = [9, 0], sizes = [1, 128], strides = [1, 1]} : vector<32x128xf32> to vector<1x128xf32>
    %149 = vector.extract_strided_slice %147 {offsets = [9, 0], sizes = [1, 1], strides = [1, 1]} : vector<32x1xf32> to vector<1x1xf32>
    %cst_10 = arith.constant 1.000000e+00 : f32
    %150 = vector.broadcast %cst_10 : f32 to vector<1x1xf32>
    %151 = arith.divf %150, %149 : vector<1x1xf32>
    %152 = vector.broadcast %151 : vector<1x1xf32> to vector<1x128xf32>
    %153 = arith.mulf %148, %152 : vector<1x128xf32>
    %c9_i32 = arith.constant 9 : i32
    %154 = vector.broadcast %c9_i32 : i32 to vector<32x1xi32>
    %155 = arith.cmpi eq, %2, %154 : vector<32x1xi32>
    %156 = arith.extui %155 : vector<32x1xi1> to vector<32x1xi32>
    %157 = arith.sitofp %156 : vector<32x1xi32> to vector<32x1xf32>
    %158 = arith.subf %147, %157 : vector<32x1xf32>
    %159 = vector.broadcast %158 : vector<32x1xf32> to vector<32x128xf32>
    %160 = vector.broadcast %153 : vector<1x128xf32> to vector<32x128xf32>
    %161 = arith.mulf %159, %160 : vector<32x128xf32>
    %162 = arith.subf %146, %161 : vector<32x128xf32>
    %163 = vector.extract_strided_slice %162 {offsets = [0, 10], sizes = [32, 1], strides = [1, 1]} : vector<32x128xf32> to vector<32x1xf32>
    %164 = vector.extract_strided_slice %162 {offsets = [10, 0], sizes = [1, 128], strides = [1, 1]} : vector<32x128xf32> to vector<1x128xf32>
    %165 = vector.extract_strided_slice %163 {offsets = [10, 0], sizes = [1, 1], strides = [1, 1]} : vector<32x1xf32> to vector<1x1xf32>
    %cst_11 = arith.constant 1.000000e+00 : f32
    %166 = vector.broadcast %cst_11 : f32 to vector<1x1xf32>
    %167 = arith.divf %166, %165 : vector<1x1xf32>
    %168 = vector.broadcast %167 : vector<1x1xf32> to vector<1x128xf32>
    %169 = arith.mulf %164, %168 : vector<1x128xf32>
    %c10_i32 = arith.constant 10 : i32
    %170 = vector.broadcast %c10_i32 : i32 to vector<32x1xi32>
    %171 = arith.cmpi eq, %2, %170 : vector<32x1xi32>
    %172 = arith.extui %171 : vector<32x1xi1> to vector<32x1xi32>
    %173 = arith.sitofp %172 : vector<32x1xi32> to vector<32x1xf32>
    %174 = arith.subf %163, %173 : vector<32x1xf32>
    %175 = vector.broadcast %174 : vector<32x1xf32> to vector<32x128xf32>
    %176 = vector.broadcast %169 : vector<1x128xf32> to vector<32x128xf32>
    %177 = arith.mulf %175, %176 : vector<32x128xf32>
    %178 = arith.subf %162, %177 : vector<32x128xf32>
    %179 = vector.extract_strided_slice %178 {offsets = [0, 11], sizes = [32, 1], strides = [1, 1]} : vector<32x128xf32> to vector<32x1xf32>
    %180 = vector.extract_strided_slice %178 {offsets = [11, 0], sizes = [1, 128], strides = [1, 1]} : vector<32x128xf32> to vector<1x128xf32>
    %181 = vector.extract_strided_slice %179 {offsets = [11, 0], sizes = [1, 1], strides = [1, 1]} : vector<32x1xf32> to vector<1x1xf32>
    %cst_12 = arith.constant 1.000000e+00 : f32
    %182 = vector.broadcast %cst_12 : f32 to vector<1x1xf32>
    %183 = arith.divf %182, %181 : vector<1x1xf32>
    %184 = vector.broadcast %183 : vector<1x1xf32> to vector<1x128xf32>
    %185 = arith.mulf %180, %184 : vector<1x128xf32>
    %c11_i32 = arith.constant 11 : i32
    %186 = vector.broadcast %c11_i32 : i32 to vector<32x1xi32>
    %187 = arith.cmpi eq, %2, %186 : vector<32x1xi32>
    %188 = arith.extui %187 : vector<32x1xi1> to vector<32x1xi32>
    %189 = arith.sitofp %188 : vector<32x1xi32> to vector<32x1xf32>
    %190 = arith.subf %179, %189 : vector<32x1xf32>
    %191 = vector.broadcast %190 : vector<32x1xf32> to vector<32x128xf32>
    %192 = vector.broadcast %185 : vector<1x128xf32> to vector<32x128xf32>
    %193 = arith.mulf %191, %192 : vector<32x128xf32>
    %194 = arith.subf %178, %193 : vector<32x128xf32>
    %195 = vector.extract_strided_slice %194 {offsets = [0, 12], sizes = [32, 1], strides = [1, 1]} : vector<32x128xf32> to vector<32x1xf32>
    %196 = vector.extract_strided_slice %194 {offsets = [12, 0], sizes = [1, 128], strides = [1, 1]} : vector<32x128xf32> to vector<1x128xf32>
    %197 = vector.extract_strided_slice %195 {offsets = [12, 0], sizes = [1, 1], strides = [1, 1]} : vector<32x1xf32> to vector<1x1xf32>
    %cst_13 = arith.constant 1.000000e+00 : f32
    %198 = vector.broadcast %cst_13 : f32 to vector<1x1xf32>
    %199 = arith.divf %198, %197 : vector<1x1xf32>
    %200 = vector.broadcast %199 : vector<1x1xf32> to vector<1x128xf32>
    %201 = arith.mulf %196, %200 : vector<1x128xf32>
    %c12_i32 = arith.constant 12 : i32
    %202 = vector.broadcast %c12_i32 : i32 to vector<32x1xi32>
    %203 = arith.cmpi eq, %2, %202 : vector<32x1xi32>
    %204 = arith.extui %203 : vector<32x1xi1> to vector<32x1xi32>
    %205 = arith.sitofp %204 : vector<32x1xi32> to vector<32x1xf32>
    %206 = arith.subf %195, %205 : vector<32x1xf32>
    %207 = vector.broadcast %206 : vector<32x1xf32> to vector<32x128xf32>
    %208 = vector.broadcast %201 : vector<1x128xf32> to vector<32x128xf32>
    %209 = arith.mulf %207, %208 : vector<32x128xf32>
    %210 = arith.subf %194, %209 : vector<32x128xf32>
    %211 = vector.extract_strided_slice %210 {offsets = [0, 13], sizes = [32, 1], strides = [1, 1]} : vector<32x128xf32> to vector<32x1xf32>
    %212 = vector.extract_strided_slice %210 {offsets = [13, 0], sizes = [1, 128], strides = [1, 1]} : vector<32x128xf32> to vector<1x128xf32>
    %213 = vector.extract_strided_slice %211 {offsets = [13, 0], sizes = [1, 1], strides = [1, 1]} : vector<32x1xf32> to vector<1x1xf32>
    %cst_14 = arith.constant 1.000000e+00 : f32
    %214 = vector.broadcast %cst_14 : f32 to vector<1x1xf32>
    %215 = arith.divf %214, %213 : vector<1x1xf32>
    %216 = vector.broadcast %215 : vector<1x1xf32> to vector<1x128xf32>
    %217 = arith.mulf %212, %216 : vector<1x128xf32>
    %c13_i32 = arith.constant 13 : i32
    %218 = vector.broadcast %c13_i32 : i32 to vector<32x1xi32>
    %219 = arith.cmpi eq, %2, %218 : vector<32x1xi32>
    %220 = arith.extui %219 : vector<32x1xi1> to vector<32x1xi32>
    %221 = arith.sitofp %220 : vector<32x1xi32> to vector<32x1xf32>
    %222 = arith.subf %211, %221 : vector<32x1xf32>
    %223 = vector.broadcast %222 : vector<32x1xf32> to vector<32x128xf32>
    %224 = vector.broadcast %217 : vector<1x128xf32> to vector<32x128xf32>
    %225 = arith.mulf %223, %224 : vector<32x128xf32>
    %226 = arith.subf %210, %225 : vector<32x128xf32>
    %227 = vector.extract_strided_slice %226 {offsets = [0, 14], sizes = [32, 1], strides = [1, 1]} : vector<32x128xf32> to vector<32x1xf32>
    %228 = vector.extract_strided_slice %226 {offsets = [14, 0], sizes = [1, 128], strides = [1, 1]} : vector<32x128xf32> to vector<1x128xf32>
    %229 = vector.extract_strided_slice %227 {offsets = [14, 0], sizes = [1, 1], strides = [1, 1]} : vector<32x1xf32> to vector<1x1xf32>
    %cst_15 = arith.constant 1.000000e+00 : f32
    %230 = vector.broadcast %cst_15 : f32 to vector<1x1xf32>
    %231 = arith.divf %230, %229 : vector<1x1xf32>
    %232 = vector.broadcast %231 : vector<1x1xf32> to vector<1x128xf32>
    %233 = arith.mulf %228, %232 : vector<1x128xf32>
    %c14_i32 = arith.constant 14 : i32
    %234 = vector.broadcast %c14_i32 : i32 to vector<32x1xi32>
    %235 = arith.cmpi eq, %2, %234 : vector<32x1xi32>
    %236 = arith.extui %235 : vector<32x1xi1> to vector<32x1xi32>
    %237 = arith.sitofp %236 : vector<32x1xi32> to vector<32x1xf32>
    %238 = arith.subf %227, %237 : vector<32x1xf32>
    %239 = vector.broadcast %238 : vector<32x1xf32> to vector<32x128xf32>
    %240 = vector.broadcast %233 : vector<1x128xf32> to vector<32x128xf32>
    %241 = arith.mulf %239, %240 : vector<32x128xf32>
    %242 = arith.subf %226, %241 : vector<32x128xf32>
    %243 = vector.extract_strided_slice %242 {offsets = [0, 15], sizes = [32, 1], strides = [1, 1]} : vector<32x128xf32> to vector<32x1xf32>
    %244 = vector.extract_strided_slice %242 {offsets = [15, 0], sizes = [1, 128], strides = [1, 1]} : vector<32x128xf32> to vector<1x128xf32>
    %245 = vector.extract_strided_slice %243 {offsets = [15, 0], sizes = [1, 1], strides = [1, 1]} : vector<32x1xf32> to vector<1x1xf32>
    %cst_16 = arith.constant 1.000000e+00 : f32
    %246 = vector.broadcast %cst_16 : f32 to vector<1x1xf32>
    %247 = arith.divf %246, %245 : vector<1x1xf32>
    %248 = vector.broadcast %247 : vector<1x1xf32> to vector<1x128xf32>
    %249 = arith.mulf %244, %248 : vector<1x128xf32>
    %c15_i32 = arith.constant 15 : i32
    %250 = vector.broadcast %c15_i32 : i32 to vector<32x1xi32>
    %251 = arith.cmpi eq, %2, %250 : vector<32x1xi32>
    %252 = arith.extui %251 : vector<32x1xi1> to vector<32x1xi32>
    %253 = arith.sitofp %252 : vector<32x1xi32> to vector<32x1xf32>
    %254 = arith.subf %243, %253 : vector<32x1xf32>
    %255 = vector.broadcast %254 : vector<32x1xf32> to vector<32x128xf32>
    %256 = vector.broadcast %249 : vector<1x128xf32> to vector<32x128xf32>
    %257 = arith.mulf %255, %256 : vector<32x128xf32>
    %258 = arith.subf %242, %257 : vector<32x128xf32>
    %259 = vector.extract_strided_slice %258 {offsets = [0, 16], sizes = [32, 1], strides = [1, 1]} : vector<32x128xf32> to vector<32x1xf32>
    %260 = vector.extract_strided_slice %258 {offsets = [16, 0], sizes = [1, 128], strides = [1, 1]} : vector<32x128xf32> to vector<1x128xf32>
    %261 = vector.extract_strided_slice %259 {offsets = [16, 0], sizes = [1, 1], strides = [1, 1]} : vector<32x1xf32> to vector<1x1xf32>
    %cst_17 = arith.constant 1.000000e+00 : f32
    %262 = vector.broadcast %cst_17 : f32 to vector<1x1xf32>
    %263 = arith.divf %262, %261 : vector<1x1xf32>
    %264 = vector.broadcast %263 : vector<1x1xf32> to vector<1x128xf32>
    %265 = arith.mulf %260, %264 : vector<1x128xf32>
    %c16_i32 = arith.constant 16 : i32
    %266 = vector.broadcast %c16_i32 : i32 to vector<32x1xi32>
    %267 = arith.cmpi eq, %2, %266 : vector<32x1xi32>
    %268 = arith.extui %267 : vector<32x1xi1> to vector<32x1xi32>
    %269 = arith.sitofp %268 : vector<32x1xi32> to vector<32x1xf32>
    %270 = arith.subf %259, %269 : vector<32x1xf32>
    %271 = vector.broadcast %270 : vector<32x1xf32> to vector<32x128xf32>
    %272 = vector.broadcast %265 : vector<1x128xf32> to vector<32x128xf32>
    %273 = arith.mulf %271, %272 : vector<32x128xf32>
    %274 = arith.subf %258, %273 : vector<32x128xf32>
    %275 = vector.extract_strided_slice %274 {offsets = [0, 17], sizes = [32, 1], strides = [1, 1]} : vector<32x128xf32> to vector<32x1xf32>
    %276 = vector.extract_strided_slice %274 {offsets = [17, 0], sizes = [1, 128], strides = [1, 1]} : vector<32x128xf32> to vector<1x128xf32>
    %277 = vector.extract_strided_slice %275 {offsets = [17, 0], sizes = [1, 1], strides = [1, 1]} : vector<32x1xf32> to vector<1x1xf32>
    %cst_18 = arith.constant 1.000000e+00 : f32
    %278 = vector.broadcast %cst_18 : f32 to vector<1x1xf32>
    %279 = arith.divf %278, %277 : vector<1x1xf32>
    %280 = vector.broadcast %279 : vector<1x1xf32> to vector<1x128xf32>
    %281 = arith.mulf %276, %280 : vector<1x128xf32>
    %c17_i32 = arith.constant 17 : i32
    %282 = vector.broadcast %c17_i32 : i32 to vector<32x1xi32>
    %283 = arith.cmpi eq, %2, %282 : vector<32x1xi32>
    %284 = arith.extui %283 : vector<32x1xi1> to vector<32x1xi32>
    %285 = arith.sitofp %284 : vector<32x1xi32> to vector<32x1xf32>
    %286 = arith.subf %275, %285 : vector<32x1xf32>
    %287 = vector.broadcast %286 : vector<32x1xf32> to vector<32x128xf32>
    %288 = vector.broadcast %281 : vector<1x128xf32> to vector<32x128xf32>
    %289 = arith.mulf %287, %288 : vector<32x128xf32>
    %290 = arith.subf %274, %289 : vector<32x128xf32>
    %291 = vector.extract_strided_slice %290 {offsets = [0, 18], sizes = [32, 1], strides = [1, 1]} : vector<32x128xf32> to vector<32x1xf32>
    %292 = vector.extract_strided_slice %290 {offsets = [18, 0], sizes = [1, 128], strides = [1, 1]} : vector<32x128xf32> to vector<1x128xf32>
    %293 = vector.extract_strided_slice %291 {offsets = [18, 0], sizes = [1, 1], strides = [1, 1]} : vector<32x1xf32> to vector<1x1xf32>
    %cst_19 = arith.constant 1.000000e+00 : f32
    %294 = vector.broadcast %cst_19 : f32 to vector<1x1xf32>
    %295 = arith.divf %294, %293 : vector<1x1xf32>
    %296 = vector.broadcast %295 : vector<1x1xf32> to vector<1x128xf32>
    %297 = arith.mulf %292, %296 : vector<1x128xf32>
    %c18_i32 = arith.constant 18 : i32
    %298 = vector.broadcast %c18_i32 : i32 to vector<32x1xi32>
    %299 = arith.cmpi eq, %2, %298 : vector<32x1xi32>
    %300 = arith.extui %299 : vector<32x1xi1> to vector<32x1xi32>
    %301 = arith.sitofp %300 : vector<32x1xi32> to vector<32x1xf32>
    %302 = arith.subf %291, %301 : vector<32x1xf32>
    %303 = vector.broadcast %302 : vector<32x1xf32> to vector<32x128xf32>
    %304 = vector.broadcast %297 : vector<1x128xf32> to vector<32x128xf32>
    %305 = arith.mulf %303, %304 : vector<32x128xf32>
    %306 = arith.subf %290, %305 : vector<32x128xf32>
    %307 = vector.extract_strided_slice %306 {offsets = [0, 19], sizes = [32, 1], strides = [1, 1]} : vector<32x128xf32> to vector<32x1xf32>
    %308 = vector.extract_strided_slice %306 {offsets = [19, 0], sizes = [1, 128], strides = [1, 1]} : vector<32x128xf32> to vector<1x128xf32>
    %309 = vector.extract_strided_slice %307 {offsets = [19, 0], sizes = [1, 1], strides = [1, 1]} : vector<32x1xf32> to vector<1x1xf32>
    %cst_20 = arith.constant 1.000000e+00 : f32
    %310 = vector.broadcast %cst_20 : f32 to vector<1x1xf32>
    %311 = arith.divf %310, %309 : vector<1x1xf32>
    %312 = vector.broadcast %311 : vector<1x1xf32> to vector<1x128xf32>
    %313 = arith.mulf %308, %312 : vector<1x128xf32>
    %c19_i32 = arith.constant 19 : i32
    %314 = vector.broadcast %c19_i32 : i32 to vector<32x1xi32>
    %315 = arith.cmpi eq, %2, %314 : vector<32x1xi32>
    %316 = arith.extui %315 : vector<32x1xi1> to vector<32x1xi32>
    %317 = arith.sitofp %316 : vector<32x1xi32> to vector<32x1xf32>
    %318 = arith.subf %307, %317 : vector<32x1xf32>
    %319 = vector.broadcast %318 : vector<32x1xf32> to vector<32x128xf32>
    %320 = vector.broadcast %313 : vector<1x128xf32> to vector<32x128xf32>
    %321 = arith.mulf %319, %320 : vector<32x128xf32>
    %322 = arith.subf %306, %321 : vector<32x128xf32>
    %323 = vector.extract_strided_slice %322 {offsets = [0, 20], sizes = [32, 1], strides = [1, 1]} : vector<32x128xf32> to vector<32x1xf32>
    %324 = vector.extract_strided_slice %322 {offsets = [20, 0], sizes = [1, 128], strides = [1, 1]} : vector<32x128xf32> to vector<1x128xf32>
    %325 = vector.extract_strided_slice %323 {offsets = [20, 0], sizes = [1, 1], strides = [1, 1]} : vector<32x1xf32> to vector<1x1xf32>
    %cst_21 = arith.constant 1.000000e+00 : f32
    %326 = vector.broadcast %cst_21 : f32 to vector<1x1xf32>
    %327 = arith.divf %326, %325 : vector<1x1xf32>
    %328 = vector.broadcast %327 : vector<1x1xf32> to vector<1x128xf32>
    %329 = arith.mulf %324, %328 : vector<1x128xf32>
    %c20_i32 = arith.constant 20 : i32
    %330 = vector.broadcast %c20_i32 : i32 to vector<32x1xi32>
    %331 = arith.cmpi eq, %2, %330 : vector<32x1xi32>
    %332 = arith.extui %331 : vector<32x1xi1> to vector<32x1xi32>
    %333 = arith.sitofp %332 : vector<32x1xi32> to vector<32x1xf32>
    %334 = arith.subf %323, %333 : vector<32x1xf32>
    %335 = vector.broadcast %334 : vector<32x1xf32> to vector<32x128xf32>
    %336 = vector.broadcast %329 : vector<1x128xf32> to vector<32x128xf32>
    %337 = arith.mulf %335, %336 : vector<32x128xf32>
    %338 = arith.subf %322, %337 : vector<32x128xf32>
    %339 = vector.extract_strided_slice %338 {offsets = [0, 21], sizes = [32, 1], strides = [1, 1]} : vector<32x128xf32> to vector<32x1xf32>
    %340 = vector.extract_strided_slice %338 {offsets = [21, 0], sizes = [1, 128], strides = [1, 1]} : vector<32x128xf32> to vector<1x128xf32>
    %341 = vector.extract_strided_slice %339 {offsets = [21, 0], sizes = [1, 1], strides = [1, 1]} : vector<32x1xf32> to vector<1x1xf32>
    %cst_22 = arith.constant 1.000000e+00 : f32
    %342 = vector.broadcast %cst_22 : f32 to vector<1x1xf32>
    %343 = arith.divf %342, %341 : vector<1x1xf32>
    %344 = vector.broadcast %343 : vector<1x1xf32> to vector<1x128xf32>
    %345 = arith.mulf %340, %344 : vector<1x128xf32>
    %c21_i32 = arith.constant 21 : i32
    %346 = vector.broadcast %c21_i32 : i32 to vector<32x1xi32>
    %347 = arith.cmpi eq, %2, %346 : vector<32x1xi32>
    %348 = arith.extui %347 : vector<32x1xi1> to vector<32x1xi32>
    %349 = arith.sitofp %348 : vector<32x1xi32> to vector<32x1xf32>
    %350 = arith.subf %339, %349 : vector<32x1xf32>
    %351 = vector.broadcast %350 : vector<32x1xf32> to vector<32x128xf32>
    %352 = vector.broadcast %345 : vector<1x128xf32> to vector<32x128xf32>
    %353 = arith.mulf %351, %352 : vector<32x128xf32>
    %354 = arith.subf %338, %353 : vector<32x128xf32>
    %355 = vector.extract_strided_slice %354 {offsets = [0, 22], sizes = [32, 1], strides = [1, 1]} : vector<32x128xf32> to vector<32x1xf32>
    %356 = vector.extract_strided_slice %354 {offsets = [22, 0], sizes = [1, 128], strides = [1, 1]} : vector<32x128xf32> to vector<1x128xf32>
    %357 = vector.extract_strided_slice %355 {offsets = [22, 0], sizes = [1, 1], strides = [1, 1]} : vector<32x1xf32> to vector<1x1xf32>
    %cst_23 = arith.constant 1.000000e+00 : f32
    %358 = vector.broadcast %cst_23 : f32 to vector<1x1xf32>
    %359 = arith.divf %358, %357 : vector<1x1xf32>
    %360 = vector.broadcast %359 : vector<1x1xf32> to vector<1x128xf32>
    %361 = arith.mulf %356, %360 : vector<1x128xf32>
    %c22_i32 = arith.constant 22 : i32
    %362 = vector.broadcast %c22_i32 : i32 to vector<32x1xi32>
    %363 = arith.cmpi eq, %2, %362 : vector<32x1xi32>
    %364 = arith.extui %363 : vector<32x1xi1> to vector<32x1xi32>
    %365 = arith.sitofp %364 : vector<32x1xi32> to vector<32x1xf32>
    %366 = arith.subf %355, %365 : vector<32x1xf32>
    %367 = vector.broadcast %366 : vector<32x1xf32> to vector<32x128xf32>
    %368 = vector.broadcast %361 : vector<1x128xf32> to vector<32x128xf32>
    %369 = arith.mulf %367, %368 : vector<32x128xf32>
    %370 = arith.subf %354, %369 : vector<32x128xf32>
    %371 = vector.extract_strided_slice %370 {offsets = [0, 23], sizes = [32, 1], strides = [1, 1]} : vector<32x128xf32> to vector<32x1xf32>
    %372 = vector.extract_strided_slice %370 {offsets = [23, 0], sizes = [1, 128], strides = [1, 1]} : vector<32x128xf32> to vector<1x128xf32>
    %373 = vector.extract_strided_slice %371 {offsets = [23, 0], sizes = [1, 1], strides = [1, 1]} : vector<32x1xf32> to vector<1x1xf32>
    %cst_24 = arith.constant 1.000000e+00 : f32
    %374 = vector.broadcast %cst_24 : f32 to vector<1x1xf32>
    %375 = arith.divf %374, %373 : vector<1x1xf32>
    %376 = vector.broadcast %375 : vector<1x1xf32> to vector<1x128xf32>
    %377 = arith.mulf %372, %376 : vector<1x128xf32>
    %c23_i32 = arith.constant 23 : i32
    %378 = vector.broadcast %c23_i32 : i32 to vector<32x1xi32>
    %379 = arith.cmpi eq, %2, %378 : vector<32x1xi32>
    %380 = arith.extui %379 : vector<32x1xi1> to vector<32x1xi32>
    %381 = arith.sitofp %380 : vector<32x1xi32> to vector<32x1xf32>
    %382 = arith.subf %371, %381 : vector<32x1xf32>
    %383 = vector.broadcast %382 : vector<32x1xf32> to vector<32x128xf32>
    %384 = vector.broadcast %377 : vector<1x128xf32> to vector<32x128xf32>
    %385 = arith.mulf %383, %384 : vector<32x128xf32>
    %386 = arith.subf %370, %385 : vector<32x128xf32>
    %387 = vector.extract_strided_slice %386 {offsets = [0, 24], sizes = [32, 1], strides = [1, 1]} : vector<32x128xf32> to vector<32x1xf32>
    %388 = vector.extract_strided_slice %386 {offsets = [24, 0], sizes = [1, 128], strides = [1, 1]} : vector<32x128xf32> to vector<1x128xf32>
    %389 = vector.extract_strided_slice %387 {offsets = [24, 0], sizes = [1, 1], strides = [1, 1]} : vector<32x1xf32> to vector<1x1xf32>
    %cst_25 = arith.constant 1.000000e+00 : f32
    %390 = vector.broadcast %cst_25 : f32 to vector<1x1xf32>
    %391 = arith.divf %390, %389 : vector<1x1xf32>
    %392 = vector.broadcast %391 : vector<1x1xf32> to vector<1x128xf32>
    %393 = arith.mulf %388, %392 : vector<1x128xf32>
    %c24_i32 = arith.constant 24 : i32
    %394 = vector.broadcast %c24_i32 : i32 to vector<32x1xi32>
    %395 = arith.cmpi eq, %2, %394 : vector<32x1xi32>
    %396 = arith.extui %395 : vector<32x1xi1> to vector<32x1xi32>
    %397 = arith.sitofp %396 : vector<32x1xi32> to vector<32x1xf32>
    %398 = arith.subf %387, %397 : vector<32x1xf32>
    %399 = vector.broadcast %398 : vector<32x1xf32> to vector<32x128xf32>
    %400 = vector.broadcast %393 : vector<1x128xf32> to vector<32x128xf32>
    %401 = arith.mulf %399, %400 : vector<32x128xf32>
    %402 = arith.subf %386, %401 : vector<32x128xf32>
    %403 = vector.extract_strided_slice %402 {offsets = [0, 25], sizes = [32, 1], strides = [1, 1]} : vector<32x128xf32> to vector<32x1xf32>
    %404 = vector.extract_strided_slice %402 {offsets = [25, 0], sizes = [1, 128], strides = [1, 1]} : vector<32x128xf32> to vector<1x128xf32>
    %405 = vector.extract_strided_slice %403 {offsets = [25, 0], sizes = [1, 1], strides = [1, 1]} : vector<32x1xf32> to vector<1x1xf32>
    %cst_26 = arith.constant 1.000000e+00 : f32
    %406 = vector.broadcast %cst_26 : f32 to vector<1x1xf32>
    %407 = arith.divf %406, %405 : vector<1x1xf32>
    %408 = vector.broadcast %407 : vector<1x1xf32> to vector<1x128xf32>
    %409 = arith.mulf %404, %408 : vector<1x128xf32>
    %c25_i32 = arith.constant 25 : i32
    %410 = vector.broadcast %c25_i32 : i32 to vector<32x1xi32>
    %411 = arith.cmpi eq, %2, %410 : vector<32x1xi32>
    %412 = arith.extui %411 : vector<32x1xi1> to vector<32x1xi32>
    %413 = arith.sitofp %412 : vector<32x1xi32> to vector<32x1xf32>
    %414 = arith.subf %403, %413 : vector<32x1xf32>
    %415 = vector.broadcast %414 : vector<32x1xf32> to vector<32x128xf32>
    %416 = vector.broadcast %409 : vector<1x128xf32> to vector<32x128xf32>
    %417 = arith.mulf %415, %416 : vector<32x128xf32>
    %418 = arith.subf %402, %417 : vector<32x128xf32>
    %419 = vector.extract_strided_slice %418 {offsets = [0, 26], sizes = [32, 1], strides = [1, 1]} : vector<32x128xf32> to vector<32x1xf32>
    %420 = vector.extract_strided_slice %418 {offsets = [26, 0], sizes = [1, 128], strides = [1, 1]} : vector<32x128xf32> to vector<1x128xf32>
    %421 = vector.extract_strided_slice %419 {offsets = [26, 0], sizes = [1, 1], strides = [1, 1]} : vector<32x1xf32> to vector<1x1xf32>
    %cst_27 = arith.constant 1.000000e+00 : f32
    %422 = vector.broadcast %cst_27 : f32 to vector<1x1xf32>
    %423 = arith.divf %422, %421 : vector<1x1xf32>
    %424 = vector.broadcast %423 : vector<1x1xf32> to vector<1x128xf32>
    %425 = arith.mulf %420, %424 : vector<1x128xf32>
    %c26_i32 = arith.constant 26 : i32
    %426 = vector.broadcast %c26_i32 : i32 to vector<32x1xi32>
    %427 = arith.cmpi eq, %2, %426 : vector<32x1xi32>
    %428 = arith.extui %427 : vector<32x1xi1> to vector<32x1xi32>
    %429 = arith.sitofp %428 : vector<32x1xi32> to vector<32x1xf32>
    %430 = arith.subf %419, %429 : vector<32x1xf32>
    %431 = vector.broadcast %430 : vector<32x1xf32> to vector<32x128xf32>
    %432 = vector.broadcast %425 : vector<1x128xf32> to vector<32x128xf32>
    %433 = arith.mulf %431, %432 : vector<32x128xf32>
    %434 = arith.subf %418, %433 : vector<32x128xf32>
    %435 = vector.extract_strided_slice %434 {offsets = [0, 27], sizes = [32, 1], strides = [1, 1]} : vector<32x128xf32> to vector<32x1xf32>
    %436 = vector.extract_strided_slice %434 {offsets = [27, 0], sizes = [1, 128], strides = [1, 1]} : vector<32x128xf32> to vector<1x128xf32>
    %437 = vector.extract_strided_slice %435 {offsets = [27, 0], sizes = [1, 1], strides = [1, 1]} : vector<32x1xf32> to vector<1x1xf32>
    %cst_28 = arith.constant 1.000000e+00 : f32
    %438 = vector.broadcast %cst_28 : f32 to vector<1x1xf32>
    %439 = arith.divf %438, %437 : vector<1x1xf32>
    %440 = vector.broadcast %439 : vector<1x1xf32> to vector<1x128xf32>
    %441 = arith.mulf %436, %440 : vector<1x128xf32>
    %c27_i32 = arith.constant 27 : i32
    %442 = vector.broadcast %c27_i32 : i32 to vector<32x1xi32>
    %443 = arith.cmpi eq, %2, %442 : vector<32x1xi32>
    %444 = arith.extui %443 : vector<32x1xi1> to vector<32x1xi32>
    %445 = arith.sitofp %444 : vector<32x1xi32> to vector<32x1xf32>
    %446 = arith.subf %435, %445 : vector<32x1xf32>
    %447 = vector.broadcast %446 : vector<32x1xf32> to vector<32x128xf32>
    %448 = vector.broadcast %441 : vector<1x128xf32> to vector<32x128xf32>
    %449 = arith.mulf %447, %448 : vector<32x128xf32>
    %450 = arith.subf %434, %449 : vector<32x128xf32>
    %451 = vector.extract_strided_slice %450 {offsets = [0, 28], sizes = [32, 1], strides = [1, 1]} : vector<32x128xf32> to vector<32x1xf32>
    %452 = vector.extract_strided_slice %450 {offsets = [28, 0], sizes = [1, 128], strides = [1, 1]} : vector<32x128xf32> to vector<1x128xf32>
    %453 = vector.extract_strided_slice %451 {offsets = [28, 0], sizes = [1, 1], strides = [1, 1]} : vector<32x1xf32> to vector<1x1xf32>
    %cst_29 = arith.constant 1.000000e+00 : f32
    %454 = vector.broadcast %cst_29 : f32 to vector<1x1xf32>
    %455 = arith.divf %454, %453 : vector<1x1xf32>
    %456 = vector.broadcast %455 : vector<1x1xf32> to vector<1x128xf32>
    %457 = arith.mulf %452, %456 : vector<1x128xf32>
    %c28_i32 = arith.constant 28 : i32
    %458 = vector.broadcast %c28_i32 : i32 to vector<32x1xi32>
    %459 = arith.cmpi eq, %2, %458 : vector<32x1xi32>
    %460 = arith.extui %459 : vector<32x1xi1> to vector<32x1xi32>
    %461 = arith.sitofp %460 : vector<32x1xi32> to vector<32x1xf32>
    %462 = arith.subf %451, %461 : vector<32x1xf32>
    %463 = vector.broadcast %462 : vector<32x1xf32> to vector<32x128xf32>
    %464 = vector.broadcast %457 : vector<1x128xf32> to vector<32x128xf32>
    %465 = arith.mulf %463, %464 : vector<32x128xf32>
    %466 = arith.subf %450, %465 : vector<32x128xf32>
    %467 = vector.extract_strided_slice %466 {offsets = [0, 29], sizes = [32, 1], strides = [1, 1]} : vector<32x128xf32> to vector<32x1xf32>
    %468 = vector.extract_strided_slice %466 {offsets = [29, 0], sizes = [1, 128], strides = [1, 1]} : vector<32x128xf32> to vector<1x128xf32>
    %469 = vector.extract_strided_slice %467 {offsets = [29, 0], sizes = [1, 1], strides = [1, 1]} : vector<32x1xf32> to vector<1x1xf32>
    %cst_30 = arith.constant 1.000000e+00 : f32
    %470 = vector.broadcast %cst_30 : f32 to vector<1x1xf32>
    %471 = arith.divf %470, %469 : vector<1x1xf32>
    %472 = vector.broadcast %471 : vector<1x1xf32> to vector<1x128xf32>
    %473 = arith.mulf %468, %472 : vector<1x128xf32>
    %c29_i32 = arith.constant 29 : i32
    %474 = vector.broadcast %c29_i32 : i32 to vector<32x1xi32>
    %475 = arith.cmpi eq, %2, %474 : vector<32x1xi32>
    %476 = arith.extui %475 : vector<32x1xi1> to vector<32x1xi32>
    %477 = arith.sitofp %476 : vector<32x1xi32> to vector<32x1xf32>
    %478 = arith.subf %467, %477 : vector<32x1xf32>
    %479 = vector.broadcast %478 : vector<32x1xf32> to vector<32x128xf32>
    %480 = vector.broadcast %473 : vector<1x128xf32> to vector<32x128xf32>
    %481 = arith.mulf %479, %480 : vector<32x128xf32>
    %482 = arith.subf %466, %481 : vector<32x128xf32>
    %483 = vector.extract_strided_slice %482 {offsets = [0, 30], sizes = [32, 1], strides = [1, 1]} : vector<32x128xf32> to vector<32x1xf32>
    %484 = vector.extract_strided_slice %482 {offsets = [30, 0], sizes = [1, 128], strides = [1, 1]} : vector<32x128xf32> to vector<1x128xf32>
    %485 = vector.extract_strided_slice %483 {offsets = [30, 0], sizes = [1, 1], strides = [1, 1]} : vector<32x1xf32> to vector<1x1xf32>
    %cst_31 = arith.constant 1.000000e+00 : f32
    %486 = vector.broadcast %cst_31 : f32 to vector<1x1xf32>
    %487 = arith.divf %486, %485 : vector<1x1xf32>
    %488 = vector.broadcast %487 : vector<1x1xf32> to vector<1x128xf32>
    %489 = arith.mulf %484, %488 : vector<1x128xf32>
    %c30_i32 = arith.constant 30 : i32
    %490 = vector.broadcast %c30_i32 : i32 to vector<32x1xi32>
    %491 = arith.cmpi eq, %2, %490 : vector<32x1xi32>
    %492 = arith.extui %491 : vector<32x1xi1> to vector<32x1xi32>
    %493 = arith.sitofp %492 : vector<32x1xi32> to vector<32x1xf32>
    %494 = arith.subf %483, %493 : vector<32x1xf32>
    %495 = vector.broadcast %494 : vector<32x1xf32> to vector<32x128xf32>
    %496 = vector.broadcast %489 : vector<1x128xf32> to vector<32x128xf32>
    %497 = arith.mulf %495, %496 : vector<32x128xf32>
    %498 = arith.subf %482, %497 : vector<32x128xf32>
    %499 = vector.extract_strided_slice %498 {offsets = [0, 31], sizes = [32, 1], strides = [1, 1]} : vector<32x128xf32> to vector<32x1xf32>
    %500 = vector.extract_strided_slice %498 {offsets = [31, 0], sizes = [1, 128], strides = [1, 1]} : vector<32x128xf32> to vector<1x128xf32>
    %501 = vector.extract_strided_slice %499 {offsets = [31, 0], sizes = [1, 1], strides = [1, 1]} : vector<32x1xf32> to vector<1x1xf32>
    %cst_32 = arith.constant 1.000000e+00 : f32
    %502 = vector.broadcast %cst_32 : f32 to vector<1x1xf32>
    %503 = arith.divf %502, %501 : vector<1x1xf32>
    %504 = vector.broadcast %503 : vector<1x1xf32> to vector<1x128xf32>
    %505 = arith.mulf %500, %504 : vector<1x128xf32>
    %c31_i32 = arith.constant 31 : i32
    %506 = vector.broadcast %c31_i32 : i32 to vector<32x1xi32>
    %507 = arith.cmpi eq, %2, %506 : vector<32x1xi32>
    %508 = arith.extui %507 : vector<32x1xi1> to vector<32x1xi32>
    %509 = arith.sitofp %508 : vector<32x1xi32> to vector<32x1xf32>
    %510 = arith.subf %499, %509 : vector<32x1xf32>
    %511 = vector.broadcast %510 : vector<32x1xf32> to vector<32x128xf32>
    %512 = vector.broadcast %505 : vector<1x128xf32> to vector<32x128xf32>
    %513 = arith.mulf %511, %512 : vector<32x128xf32>
    %514 = arith.subf %498, %513 : vector<32x128xf32>
    %c0_33 = arith.constant 0 : index
    %c0_34 = arith.constant 0 : index
    %c0_35 = arith.constant 0 : index
    %515 = vector.load %arg2[%c0_33, %c0_34, %c0_35] : memref<1x32x128xf32, #tpu.memory_space<vmem>>, vector<1x32x128xf32>
    %516 = vector.shape_cast %515 : vector<1x32x128xf32> to vector<32x128xf32>
    %517 = vector.shape_cast %514 : vector<32x128xf32> to vector<1x32x128xf32>
    tpu.vector_store %arg2[%c0_33, %c0_34, %c0_35], %517 {strides = array<i32>} : memref<1x32x128xf32, #tpu.memory_space<vmem>>, vector<1x32x128xf32>,
    return
  }
  func.func @transform_0(%arg0: i32) -> (i32, i32, i32) {
    %c0_i32 = arith.constant 0 : i32
    %c0_i32_0 = arith.constant 0 : i32
    %c0_i32_1 = arith.constant 0 : i32
    return %arg0, %c0_i32, %c0_i32_0 : i32, i32, i32
  }
  func.func @transform_1(%arg0: i32) -> (i32, i32, i32) {
    %c0_i32 = arith.constant 0 : i32
    %c0_i32_0 = arith.constant 0 : i32
    %c0_i32_1 = arith.constant 0 : i32
    return %arg0, %c0_i32, %c0_i32_0 : i32, i32, i32
  }
}

module attributes {stable_mosaic.version = 11 : i64} {
  func.func @kernel(%arg0: i32, %arg1: memref<1x32x128xf32, #tpu.memory_space<vmem>>, %arg2: memref<1x32x128xf32, #tpu.memory_space<vmem>>) attributes {dimension_semantics = [#tpu.dimension_semantics<parallel>], iteration_bounds = array<i64: 1>, scalar_prefetch = 0 : i64, scratch_operands = 0 : i64, tpu.core_type = #tpu.core_type<tc>, window_params = [{transform_indices = @transform_0, window_bounds = array<i64: 1, 32, 128>}, {transform_indices = @transform_1, window_bounds = array<i64: 1, 32, 128>}]} {
    %c0 = arith.constant 0 : index
    %c0_0 = arith.constant 0 : index
    %c0_1 = arith.constant 0 : index
    %0 = vector.load %arg1[%c0, %c0_0, %c0_1] : memref<1x32x128xf32, #tpu.memory_space<vmem>>, vector<1x32x128xf32>
    %1 = vector.shape_cast %0 : vector<1x32x128xf32> to vector<32x128xf32>
    %2 = tpu.iota {dimensions = array<i32: 0>} : vector<32x1xi32>
    %3 = vector.extract_strided_slice %1 {offsets = [0, 0], sizes = [32, 1], strides = [1, 1]} : vector<32x128xf32> to vector<32x1xf32>
    %4 = vector.extract_strided_slice %1 {offsets = [0, 0], sizes = [1, 128], strides = [1, 1]} : vector<32x128xf32> to vector<1x128xf32>
    %5 = vector.extract_strided_slice %3 {offsets = [0, 0], sizes = [1, 1], strides = [1, 1]} : vector<32x1xf32> to vector<1x1xf32>
    %cst = arith.constant 1.000000e+00 : f32
    %6 = vector.broadcast %cst : f32 to vector<1x1xf32>
    %7 = arith.divf %6, %5 : vector<1x1xf32>
    %8 = vector.broadcast %7 : vector<1x1xf32> to vector<1x128xf32>
    %9 = arith.mulf %4, %8 : vector<1x128xf32>
    %c0_i32 = arith.constant 0 : i32
    %10 = vector.broadcast %c0_i32 : i32 to vector<32x1xi32>
    %11 = arith.cmpi eq, %2, %10 : vector<32x1xi32>
    %12 = arith.extui %11 : vector<32x1xi1> to vector<32x1xi32>
    %13 = arith.sitofp %12 : vector<32x1xi32> to vector<32x1xf32>
    %14 = arith.subf %3, %13 : vector<32x1xf32>
    %15 = vector.broadcast %14 : vector<32x1xf32> to vector<32x128xf32>
    %16 = vector.broadcast %9 : vector<1x128xf32> to vector<32x128xf32>
    %17 = arith.mulf %15, %16 : vector<32x128xf32>
    %18 = arith.subf %1, %17 : vector<32x128xf32>
    %19 = vector.extract_strided_slice %18 {offsets = [0, 1], sizes = [32, 1], strides = [1, 1]} : vector<32x128xf32> to vector<32x1xf32>
    %20 = vector.extract_strided_slice %18 {offsets = [1, 0], sizes = [1, 128], strides = [1, 1]} : vector<32x128xf32> to vector<1x128xf32>
    %21 = vector.extract_strided_slice %19 {offsets = [1, 0], sizes = [1, 1], strides = [1, 1]} : vector<32x1xf32> to vector<1x1xf32>
    %cst_2 = arith.constant 1.000000e+00 : f32
    %22 = vector.broadcast %cst_2 : f32 to vector<1x1xf32>
    %23 = arith.divf %22, %21 : vector<1x1xf32>
    %24 = vector.broadcast %23 : vector<1x1xf32> to vector<1x128xf32>
    %25 = arith.mulf %20, %24 : vector<1x128xf32>
    %c1_i32 = arith.constant 1 : i32
    %26 = vector.broadcast %c1_i32 : i32 to vector<32x1xi32>
    %27 = arith.cmpi eq, %2, %26 : vector<32x1xi32>
    %28 = arith.extui %27 : vector<32x1xi1> to vector<32x1xi32>
    %29 = arith.sitofp %28 : vector<32x1xi32> to vector<32x1xf32>
    %30 = arith.subf %19, %29 : vector<32x1xf32>
    %31 = vector.broadcast %30 : vector<32x1xf32> to vector<32x128xf32>
    %32 = vector.broadcast %25 : vector<1x128xf32> to vector<32x128xf32>
    %33 = arith.mulf %31, %32 : vector<32x128xf32>
    %34 = arith.subf %18, %33 : vector<32x128xf32>
    %35 = vector.extract_strided_slice %34 {offsets = [0, 2], sizes = [32, 1], strides = [1, 1]} : vector<32x128xf32> to vector<32x1xf32>
    %36 = vector.extract_strided_slice %34 {offsets = [2, 0], sizes = [1, 128], strides = [1, 1]} : vector<32x128xf32> to vector<1x128xf32>
    %37 = vector.extract_strided_slice %35 {offsets = [2, 0], sizes = [1, 1], strides = [1, 1]} : vector<32x1xf32> to vector<1x1xf32>
    %cst_3 = arith.constant 1.000000e+00 : f32
    %38 = vector.broadcast %cst_3 : f32 to vector<1x1xf32>
    %39 = arith.divf %38, %37 : vector<1x1xf32>
    %40 = vector.broadcast %39 : vector<1x1xf32> to vector<1x128xf32>
    %41 = arith.mulf %36, %40 : vector<1x128xf32>
    %c2_i32 = arith.constant 2 : i32
    %42 = vector.broadcast %c2_i32 : i32 to vector<32x1xi32>
    %43 = arith.cmpi eq, %2, %42 : vector<32x1xi32>
    %44 = arith.extui %43 : vector<32x1xi1> to vector<32x1xi32>
    %45 = arith.sitofp %44 : vector<32x1xi32> to vector<32x1xf32>
    %46 = arith.subf %35, %45 : vector<32x1xf32>
    %47 = vector.broadcast %46 : vector<32x1xf32> to vector<32x128xf32>
    %48 = vector.broadcast %41 : vector<1x128xf32> to vector<32x128xf32>
    %49 = arith.mulf %47, %48 : vector<32x128xf32>
    %50 = arith.subf %34, %49 : vector<32x128xf32>
    %51 = vector.extract_strided_slice %50 {offsets = [0, 3], sizes = [32, 1], strides = [1, 1]} : vector<32x128xf32> to vector<32x1xf32>
    %52 = vector.extract_strided_slice %50 {offsets = [3, 0], sizes = [1, 128], strides = [1, 1]} : vector<32x128xf32> to vector<1x128xf32>
    %53 = vector.extract_strided_slice %51 {offsets = [3, 0], sizes = [1, 1], strides = [1, 1]} : vector<32x1xf32> to vector<1x1xf32>
    %cst_4 = arith.constant 1.000000e+00 : f32
    %54 = vector.broadcast %cst_4 : f32 to vector<1x1xf32>
    %55 = arith.divf %54, %53 : vector<1x1xf32>
    %56 = vector.broadcast %55 : vector<1x1xf32> to vector<1x128xf32>
    %57 = arith.mulf %52, %56 : vector<1x128xf32>
    %c3_i32 = arith.constant 3 : i32
    %58 = vector.broadcast %c3_i32 : i32 to vector<32x1xi32>
    %59 = arith.cmpi eq, %2, %58 : vector<32x1xi32>
    %60 = arith.extui %59 : vector<32x1xi1> to vector<32x1xi32>
    %61 = arith.sitofp %60 : vector<32x1xi32> to vector<32x1xf32>
    %62 = arith.subf %51, %61 : vector<32x1xf32>
    %63 = vector.broadcast %62 : vector<32x1xf32> to vector<32x128xf32>
    %64 = vector.broadcast %57 : vector<1x128xf32> to vector<32x128xf32>
    %65 = arith.mulf %63, %64 : vector<32x128xf32>
    %66 = arith.subf %50, %65 : vector<32x128xf32>
    %67 = vector.extract_strided_slice %66 {offsets = [0, 4], sizes = [32, 1], strides = [1, 1]} : vector<32x128xf32> to vector<32x1xf32>
    %68 = vector.extract_strided_slice %66 {offsets = [4, 0], sizes = [1, 128], strides = [1, 1]} : vector<32x128xf32> to vector<1x128xf32>
    %69 = vector.extract_strided_slice %67 {offsets = [4, 0], sizes = [1, 1], strides = [1, 1]} : vector<32x1xf32> to vector<1x1xf32>
    %cst_5 = arith.constant 1.000000e+00 : f32
    %70 = vector.broadcast %cst_5 : f32 to vector<1x1xf32>
    %71 = arith.divf %70, %69 : vector<1x1xf32>
    %72 = vector.broadcast %71 : vector<1x1xf32> to vector<1x128xf32>
    %73 = arith.mulf %68, %72 : vector<1x128xf32>
    %c4_i32 = arith.constant 4 : i32
    %74 = vector.broadcast %c4_i32 : i32 to vector<32x1xi32>
    %75 = arith.cmpi eq, %2, %74 : vector<32x1xi32>
    %76 = arith.extui %75 : vector<32x1xi1> to vector<32x1xi32>
    %77 = arith.sitofp %76 : vector<32x1xi32> to vector<32x1xf32>
    %78 = arith.subf %67, %77 : vector<32x1xf32>
    %79 = vector.broadcast %78 : vector<32x1xf32> to vector<32x128xf32>
    %80 = vector.broadcast %73 : vector<1x128xf32> to vector<32x128xf32>
    %81 = arith.mulf %79, %80 : vector<32x128xf32>
    %82 = arith.subf %66, %81 : vector<32x128xf32>
    %83 = vector.extract_strided_slice %82 {offsets = [0, 5], sizes = [32, 1], strides = [1, 1]} : vector<32x128xf32> to vector<32x1xf32>
    %84 = vector.extract_strided_slice %82 {offsets = [5, 0], sizes = [1, 128], strides = [1, 1]} : vector<32x128xf32> to vector<1x128xf32>
    %85 = vector.extract_strided_slice %83 {offsets = [5, 0], sizes = [1, 1], strides = [1, 1]} : vector<32x1xf32> to vector<1x1xf32>
    %cst_6 = arith.constant 1.000000e+00 : f32
    %86 = vector.broadcast %cst_6 : f32 to vector<1x1xf32>
    %87 = arith.divf %86, %85 : vector<1x1xf32>
    %88 = vector.broadcast %87 : vector<1x1xf32> to vector<1x128xf32>
    %89 = arith.mulf %84, %88 : vector<1x128xf32>
    %c5_i32 = arith.constant 5 : i32
    %90 = vector.broadcast %c5_i32 : i32 to vector<32x1xi32>
    %91 = arith.cmpi eq, %2, %90 : vector<32x1xi32>
    %92 = arith.extui %91 : vector<32x1xi1> to vector<32x1xi32>
    %93 = arith.sitofp %92 : vector<32x1xi32> to vector<32x1xf32>
    %94 = arith.subf %83, %93 : vector<32x1xf32>
    %95 = vector.broadcast %94 : vector<32x1xf32> to vector<32x128xf32>
    %96 = vector.broadcast %89 : vector<1x128xf32> to vector<32x128xf32>
    %97 = arith.mulf %95, %96 : vector<32x128xf32>
    %98 = arith.subf %82, %97 : vector<32x128xf32>
    %99 = vector.extract_strided_slice %98 {offsets = [0, 6], sizes = [32, 1], strides = [1, 1]} : vector<32x128xf32> to vector<32x1xf32>
    %100 = vector.extract_strided_slice %98 {offsets = [6, 0], sizes = [1, 128], strides = [1, 1]} : vector<32x128xf32> to vector<1x128xf32>
    %101 = vector.extract_strided_slice %99 {offsets = [6, 0], sizes = [1, 1], strides = [1, 1]} : vector<32x1xf32> to vector<1x1xf32>
    %cst_7 = arith.constant 1.000000e+00 : f32
    %102 = vector.broadcast %cst_7 : f32 to vector<1x1xf32>
    %103 = arith.divf %102, %101 : vector<1x1xf32>
    %104 = vector.broadcast %103 : vector<1x1xf32> to vector<1x128xf32>
    %105 = arith.mulf %100, %104 : vector<1x128xf32>
    %c6_i32 = arith.constant 6 : i32
    %106 = vector.broadcast %c6_i32 : i32 to vector<32x1xi32>
    %107 = arith.cmpi eq, %2, %106 : vector<32x1xi32>
    %108 = arith.extui %107 : vector<32x1xi1> to vector<32x1xi32>
    %109 = arith.sitofp %108 : vector<32x1xi32> to vector<32x1xf32>
    %110 = arith.subf %99, %109 : vector<32x1xf32>
    %111 = vector.broadcast %110 : vector<32x1xf32> to vector<32x128xf32>
    %112 = vector.broadcast %105 : vector<1x128xf32> to vector<32x128xf32>
    %113 = arith.mulf %111, %112 : vector<32x128xf32>
    %114 = arith.subf %98, %113 : vector<32x128xf32>
    %115 = vector.extract_strided_slice %114 {offsets = [0, 7], sizes = [32, 1], strides = [1, 1]} : vector<32x128xf32> to vector<32x1xf32>
    %116 = vector.extract_strided_slice %114 {offsets = [7, 0], sizes = [1, 128], strides = [1, 1]} : vector<32x128xf32> to vector<1x128xf32>
    %117 = vector.extract_strided_slice %115 {offsets = [7, 0], sizes = [1, 1], strides = [1, 1]} : vector<32x1xf32> to vector<1x1xf32>
    %cst_8 = arith.constant 1.000000e+00 : f32
    %118 = vector.broadcast %cst_8 : f32 to vector<1x1xf32>
    %119 = arith.divf %118, %117 : vector<1x1xf32>
    %120 = vector.broadcast %119 : vector<1x1xf32> to vector<1x128xf32>
    %121 = arith.mulf %116, %120 : vector<1x128xf32>
    %c7_i32 = arith.constant 7 : i32
    %122 = vector.broadcast %c7_i32 : i32 to vector<32x1xi32>
    %123 = arith.cmpi eq, %2, %122 : vector<32x1xi32>
    %124 = arith.extui %123 : vector<32x1xi1> to vector<32x1xi32>
    %125 = arith.sitofp %124 : vector<32x1xi32> to vector<32x1xf32>
    %126 = arith.subf %115, %125 : vector<32x1xf32>
    %127 = vector.broadcast %126 : vector<32x1xf32> to vector<32x128xf32>
    %128 = vector.broadcast %121 : vector<1x128xf32> to vector<32x128xf32>
    %129 = arith.mulf %127, %128 : vector<32x128xf32>
    %130 = arith.subf %114, %129 : vector<32x128xf32>
    %131 = vector.extract_strided_slice %130 {offsets = [0, 8], sizes = [32, 1], strides = [1, 1]} : vector<32x128xf32> to vector<32x1xf32>
    %132 = vector.extract_strided_slice %130 {offsets = [8, 0], sizes = [1, 128], strides = [1, 1]} : vector<32x128xf32> to vector<1x128xf32>
    %133 = vector.extract_strided_slice %131 {offsets = [8, 0], sizes = [1, 1], strides = [1, 1]} : vector<32x1xf32> to vector<1x1xf32>
    %cst_9 = arith.constant 1.000000e+00 : f32
    %134 = vector.broadcast %cst_9 : f32 to vector<1x1xf32>
    %135 = arith.divf %134, %133 : vector<1x1xf32>
    %136 = vector.broadcast %135 : vector<1x1xf32> to vector<1x128xf32>
    %137 = arith.mulf %132, %136 : vector<1x128xf32>
    %c8_i32 = arith.constant 8 : i32
    %138 = vector.broadcast %c8_i32 : i32 to vector<32x1xi32>
    %139 = arith.cmpi eq, %2, %138 : vector<32x1xi32>
    %140 = arith.extui %139 : vector<32x1xi1> to vector<32x1xi32>
    %141 = arith.sitofp %140 : vector<32x1xi32> to vector<32x1xf32>
    %142 = arith.subf %131, %141 : vector<32x1xf32>
    %143 = vector.broadcast %142 : vector<32x1xf32> to vector<32x128xf32>
    %144 = vector.broadcast %137 : vector<1x128xf32> to vector<32x128xf32>
    %145 = arith.mulf %143, %144 : vector<32x128xf32>
    %146 = arith.subf %130, %145 : vector<32x128xf32>
    %147 = vector.extract_strided_slice %146 {offsets = [0, 9], sizes = [32, 1], strides = [1, 1]} : vector<32x128xf32> to vector<32x1xf32>
    %148 = vector.extract_strided_slice %146 {offsets = [9, 0], sizes = [1, 128], strides = [1, 1]} : vector<32x128xf32> to vector<1x128xf32>
    %149 = vector.extract_strided_slice %147 {offsets = [9, 0], sizes = [1, 1], strides = [1, 1]} : vector<32x1xf32> to vector<1x1xf32>
    %cst_10 = arith.constant 1.000000e+00 : f32
    %150 = vector.broadcast %cst_10 : f32 to vector<1x1xf32>
    %151 = arith.divf %150, %149 : vector<1x1xf32>
    %152 = vector.broadcast %151 : vector<1x1xf32> to vector<1x128xf32>
    %153 = arith.mulf %148, %152 : vector<1x128xf32>
    %c9_i32 = arith.constant 9 : i32
    %154 = vector.broadcast %c9_i32 : i32 to vector<32x1xi32>
    %155 = arith.cmpi eq, %2, %154 : vector<32x1xi32>
    %156 = arith.extui %155 : vector<32x1xi1> to vector<32x1xi32>
    %157 = arith.sitofp %156 : vector<32x1xi32> to vector<32x1xf32>
    %158 = arith.subf %147, %157 : vector<32x1xf32>
    %159 = vector.broadcast %158 : vector<32x1xf32> to vector<32x128xf32>
    %160 = vector.broadcast %153 : vector<1x128xf32> to vector<32x128xf32>
    %161 = arith.mulf %159, %160 : vector<32x128xf32>
    %162 = arith.subf %146, %161 : vector<32x128xf32>
    %163 = vector.extract_strided_slice %162 {offsets = [0, 10], sizes = [32, 1], strides = [1, 1]} : vector<32x128xf32> to vector<32x1xf32>
    %164 = vector.extract_strided_slice %162 {offsets = [10, 0], sizes = [1, 128], strides = [1, 1]} : vector<32x128xf32> to vector<1x128xf32>
    %165 = vector.extract_strided_slice %163 {offsets = [10, 0], sizes = [1, 1], strides = [1, 1]} : vector<32x1xf32> to vector<1x1xf32>
    %cst_11 = arith.constant 1.000000e+00 : f32
    %166 = vector.broadcast %cst_11 : f32 to vector<1x1xf32>
    %167 = arith.divf %166, %165 : vector<1x1xf32>
    %168 = vector.broadcast %167 : vector<1x1xf32> to vector<1x128xf32>
    %169 = arith.mulf %164, %168 : vector<1x128xf32>
    %c10_i32 = arith.constant 10 : i32
    %170 = vector.broadcast %c10_i32 : i32 to vector<32x1xi32>
    %171 = arith.cmpi eq, %2, %170 : vector<32x1xi32>
    %172 = arith.extui %171 : vector<32x1xi1> to vector<32x1xi32>
    %173 = arith.sitofp %172 : vector<32x1xi32> to vector<32x1xf32>
    %174 = arith.subf %163, %173 : vector<32x1xf32>
    %175 = vector.broadcast %174 : vector<32x1xf32> to vector<32x128xf32>
    %176 = vector.broadcast %169 : vector<1x128xf32> to vector<32x128xf32>
    %177 = arith.mulf %175, %176 : vector<32x128xf32>
    %178 = arith.subf %162, %177 : vector<32x128xf32>
    %179 = vector.extract_strided_slice %178 {offsets = [0, 11], sizes = [32, 1], strides = [1, 1]} : vector<32x128xf32> to vector<32x1xf32>
    %180 = vector.extract_strided_slice %178 {offsets = [11, 0], sizes = [1, 128], strides = [1, 1]} : vector<32x128xf32> to vector<1x128xf32>
    %181 = vector.extract_strided_slice %179 {offsets = [11, 0], sizes = [1, 1], strides = [1, 1]} : vector<32x1xf32> to vector<1x1xf32>
    %cst_12 = arith.constant 1.000000e+00 : f32
    %182 = vector.broadcast %cst_12 : f32 to vector<1x1xf32>
    %183 = arith.divf %182, %181 : vector<1x1xf32>
    %184 = vector.broadcast %183 : vector<1x1xf32> to vector<1x128xf32>
    %185 = arith.mulf %180, %184 : vector<1x128xf32>
    %c11_i32 = arith.constant 11 : i32
    %186 = vector.broadcast %c11_i32 : i32 to vector<32x1xi32>
    %187 = arith.cmpi eq, %2, %186 : vector<32x1xi32>
    %188 = arith.extui %187 : vector<32x1xi1> to vector<32x1xi32>
    %189 = arith.sitofp %188 : vector<32x1xi32> to vector<32x1xf32>
    %190 = arith.subf %179, %189 : vector<32x1xf32>
    %191 = vector.broadcast %190 : vector<32x1xf32> to vector<32x128xf32>
    %192 = vector.broadcast %185 : vector<1x128xf32> to vector<32x128xf32>
    %193 = arith.mulf %191, %192 : vector<32x128xf32>
    %194 = arith.subf %178, %193 : vector<32x128xf32>
    %195 = vector.extract_strided_slice %194 {offsets = [0, 12], sizes = [32, 1], strides = [1, 1]} : vector<32x128xf32> to vector<32x1xf32>
    %196 = vector.extract_strided_slice %194 {offsets = [12, 0], sizes = [1, 128], strides = [1, 1]} : vector<32x128xf32> to vector<1x128xf32>
    %197 = vector.extract_strided_slice %195 {offsets = [12, 0], sizes = [1, 1], strides = [1, 1]} : vector<32x1xf32> to vector<1x1xf32>
    %cst_13 = arith.constant 1.000000e+00 : f32
    %198 = vector.broadcast %cst_13 : f32 to vector<1x1xf32>
    %199 = arith.divf %198, %197 : vector<1x1xf32>
    %200 = vector.broadcast %199 : vector<1x1xf32> to vector<1x128xf32>
    %201 = arith.mulf %196, %200 : vector<1x128xf32>
    %c12_i32 = arith.constant 12 : i32
    %202 = vector.broadcast %c12_i32 : i32 to vector<32x1xi32>
    %203 = arith.cmpi eq, %2, %202 : vector<32x1xi32>
    %204 = arith.extui %203 : vector<32x1xi1> to vector<32x1xi32>
    %205 = arith.sitofp %204 : vector<32x1xi32> to vector<32x1xf32>
    %206 = arith.subf %195, %205 : vector<32x1xf32>
    %207 = vector.broadcast %206 : vector<32x1xf32> to vector<32x128xf32>
    %208 = vector.broadcast %201 : vector<1x128xf32> to vector<32x128xf32>
    %209 = arith.mulf %207, %208 : vector<32x128xf32>
    %210 = arith.subf %194, %209 : vector<32x128xf32>
    %211 = vector.extract_strided_slice %210 {offsets = [0, 13], sizes = [32, 1], strides = [1, 1]} : vector<32x128xf32> to vector<32x1xf32>
    %212 = vector.extract_strided_slice %210 {offsets = [13, 0], sizes = [1, 128], strides = [1, 1]} : vector<32x128xf32> to vector<1x128xf32>
    %213 = vector.extract_strided_slice %211 {offsets = [13, 0], sizes = [1, 1], strides = [1, 1]} : vector<32x1xf32> to vector<1x1xf32>
    %cst_14 = arith.constant 1.000000e+00 : f32
    %214 = vector.broadcast %cst_14 : f32 to vector<1x1xf32>
    %215 = arith.divf %214, %213 : vector<1x1xf32>
    %216 = vector.broadcast %215 : vector<1x1xf32> to vector<1x128xf32>
    %217 = arith.mulf %212, %216 : vector<1x128xf32>
    %c13_i32 = arith.constant 13 : i32
    %218 = vector.broadcast %c13_i32 : i32 to vector<32x1xi32>
    %219 = arith.cmpi eq, %2, %218 : vector<32x1xi32>
    %220 = arith.extui %219 : vector<32x1xi1> to vector<32x1xi32>
    %221 = arith.sitofp %220 : vector<32x1xi32> to vector<32x1xf32>
    %222 = arith.subf %211, %221 : vector<32x1xf32>
    %223 = vector.broadcast %222 : vector<32x1xf32> to vector<32x128xf32>
    %224 = vector.broadcast %217 : vector<1x128xf32> to vector<32x128xf32>
    %225 = arith.mulf %223, %224 : vector<32x128xf32>
    %226 = arith.subf %210, %225 : vector<32x128xf32>
    %227 = vector.extract_strided_slice %226 {offsets = [0, 14], sizes = [32, 1], strides = [1, 1]} : vector<32x128xf32> to vector<32x1xf32>
    %228 = vector.extract_strided_slice %226 {offsets = [14, 0], sizes = [1, 128], strides = [1, 1]} : vector<32x128xf32> to vector<1x128xf32>
    %229 = vector.extract_strided_slice %227 {offsets = [14, 0], sizes = [1, 1], strides = [1, 1]} : vector<32x1xf32> to vector<1x1xf32>
    %cst_15 = arith.constant 1.000000e+00 : f32
    %230 = vector.broadcast %cst_15 : f32 to vector<1x1xf32>
    %231 = arith.divf %230, %229 : vector<1x1xf32>
    %232 = vector.broadcast %231 : vector<1x1xf32> to vector<1x128xf32>
    %233 = arith.mulf %228, %232 : vector<1x128xf32>
    %c14_i32 = arith.constant 14 : i32
    %234 = vector.broadcast %c14_i32 : i32 to vector<32x1xi32>
    %235 = arith.cmpi eq, %2, %234 : vector<32x1xi32>
    %236 = arith.extui %235 : vector<32x1xi1> to vector<32x1xi32>
    %237 = arith.sitofp %236 : vector<32x1xi32> to vector<32x1xf32>
    %238 = arith.subf %227, %237 : vector<32x1xf32>
    %239 = vector.broadcast %238 : vector<32x1xf32> to vector<32x128xf32>
    %240 = vector.broadcast %233 : vector<1x128xf32> to vector<32x128xf32>
    %241 = arith.mulf %239, %240 : vector<32x128xf32>
    %242 = arith.subf %226, %241 : vector<32x128xf32>
    %243 = vector.extract_strided_slice %242 {offsets = [0, 15], sizes = [32, 1], strides = [1, 1]} : vector<32x128xf32> to vector<32x1xf32>
    %244 = vector.extract_strided_slice %242 {offsets = [15, 0], sizes = [1, 128], strides = [1, 1]} : vector<32x128xf32> to vector<1x128xf32>
    %245 = vector.extract_strided_slice %243 {offsets = [15, 0], sizes = [1, 1], strides = [1, 1]} : vector<32x1xf32> to vector<1x1xf32>
    %cst_16 = arith.constant 1.000000e+00 : f32
    %246 = vector.broadcast %cst_16 : f32 to vector<1x1xf32>
    %247 = arith.divf %246, %245 : vector<1x1xf32>
    %248 = vector.broadcast %247 : vector<1x1xf32> to vector<1x128xf32>
    %249 = arith.mulf %244, %248 : vector<1x128xf32>
    %c15_i32 = arith.constant 15 : i32
    %250 = vector.broadcast %c15_i32 : i32 to vector<32x1xi32>
    %251 = arith.cmpi eq, %2, %250 : vector<32x1xi32>
    %252 = arith.extui %251 : vector<32x1xi1> to vector<32x1xi32>
    %253 = arith.sitofp %252 : vector<32x1xi32> to vector<32x1xf32>
    %254 = arith.subf %243, %253 : vector<32x1xf32>
    %255 = vector.broadcast %254 : vector<32x1xf32> to vector<32x128xf32>
    %256 = vector.broadcast %249 : vector<1x128xf32> to vector<32x128xf32>
    %257 = arith.mulf %255, %256 : vector<32x128xf32>
    %258 = arith.subf %242, %257 : vector<32x128xf32>
    %259 = vector.extract_strided_slice %258 {offsets = [0, 16], sizes = [32, 1], strides = [1, 1]} : vector<32x128xf32> to vector<32x1xf32>
    %260 = vector.extract_strided_slice %258 {offsets = [16, 0], sizes = [1, 128], strides = [1, 1]} : vector<32x128xf32> to vector<1x128xf32>
    %261 = vector.extract_strided_slice %259 {offsets = [16, 0], sizes = [1, 1], strides = [1, 1]} : vector<32x1xf32> to vector<1x1xf32>
    %cst_17 = arith.constant 1.000000e+00 : f32
    %262 = vector.broadcast %cst_17 : f32 to vector<1x1xf32>
    %263 = arith.divf %262, %261 : vector<1x1xf32>
    %264 = vector.broadcast %263 : vector<1x1xf32> to vector<1x128xf32>
    %265 = arith.mulf %260, %264 : vector<1x128xf32>
    %c16_i32 = arith.constant 16 : i32
    %266 = vector.broadcast %c16_i32 : i32 to vector<32x1xi32>
    %267 = arith.cmpi eq, %2, %266 : vector<32x1xi32>
    %268 = arith.extui %267 : vector<32x1xi1> to vector<32x1xi32>
    %269 = arith.sitofp %268 : vector<32x1xi32> to vector<32x1xf32>
    %270 = arith.subf %259, %269 : vector<32x1xf32>
    %271 = vector.broadcast %270 : vector<32x1xf32> to vector<32x128xf32>
    %272 = vector.broadcast %265 : vector<1x128xf32> to vector<32x128xf32>
    %273 = arith.mulf %271, %272 : vector<32x128xf32>
    %274 = arith.subf %258, %273 : vector<32x128xf32>
    %275 = vector.extract_strided_slice %274 {offsets = [0, 17], sizes = [32, 1], strides = [1, 1]} : vector<32x128xf32> to vector<32x1xf32>
    %276 = vector.extract_strided_slice %274 {offsets = [17, 0], sizes = [1, 128], strides = [1, 1]} : vector<32x128xf32> to vector<1x128xf32>
    %277 = vector.extract_strided_slice %275 {offsets = [17, 0], sizes = [1, 1], strides = [1, 1]} : vector<32x1xf32> to vector<1x1xf32>
    %cst_18 = arith.constant 1.000000e+00 : f32
    %278 = vector.broadcast %cst_18 : f32 to vector<1x1xf32>
    %279 = arith.divf %278, %277 : vector<1x1xf32>
    %280 = vector.broadcast %279 : vector<1x1xf32> to vector<1x128xf32>
    %281 = arith.mulf %276, %280 : vector<1x128xf32>
    %c17_i32 = arith.constant 17 : i32
    %282 = vector.broadcast %c17_i32 : i32 to vector<32x1xi32>
    %283 = arith.cmpi eq, %2, %282 : vector<32x1xi32>
    %284 = arith.extui %283 : vector<32x1xi1> to vector<32x1xi32>
    %285 = arith.sitofp %284 : vector<32x1xi32> to vector<32x1xf32>
    %286 = arith.subf %275, %285 : vector<32x1xf32>
    %287 = vector.broadcast %286 : vector<32x1xf32> to vector<32x128xf32>
    %288 = vector.broadcast %281 : vector<1x128xf32> to vector<32x128xf32>
    %289 = arith.mulf %287, %288 : vector<32x128xf32>
    %290 = arith.subf %274, %289 : vector<32x128xf32>
    %291 = vector.extract_strided_slice %290 {offsets = [0, 18], sizes = [32, 1], strides = [1, 1]} : vector<32x128xf32> to vector<32x1xf32>
    %292 = vector.extract_strided_slice %290 {offsets = [18, 0], sizes = [1, 128], strides = [1, 1]} : vector<32x128xf32> to vector<1x128xf32>
    %293 = vector.extract_strided_slice %291 {offsets = [18, 0], sizes = [1, 1], strides = [1, 1]} : vector<32x1xf32> to vector<1x1xf32>
    %cst_19 = arith.constant 1.000000e+00 : f32
    %294 = vector.broadcast %cst_19 : f32 to vector<1x1xf32>
    %295 = arith.divf %294, %293 : vector<1x1xf32>
    %296 = vector.broadcast %295 : vector<1x1xf32> to vector<1x128xf32>
    %297 = arith.mulf %292, %296 : vector<1x128xf32>
    %c18_i32 = arith.constant 18 : i32
    %298 = vector.broadcast %c18_i32 : i32 to vector<32x1xi32>
    %299 = arith.cmpi eq, %2, %298 : vector<32x1xi32>
    %300 = arith.extui %299 : vector<32x1xi1> to vector<32x1xi32>
    %301 = arith.sitofp %300 : vector<32x1xi32> to vector<32x1xf32>
    %302 = arith.subf %291, %301 : vector<32x1xf32>
    %303 = vector.broadcast %302 : vector<32x1xf32> to vector<32x128xf32>
    %304 = vector.broadcast %297 : vector<1x128xf32> to vector<32x128xf32>
    %305 = arith.mulf %303, %304 : vector<32x128xf32>
    %306 = arith.subf %290, %305 : vector<32x128xf32>
    %307 = vector.extract_strided_slice %306 {offsets = [0, 19], sizes = [32, 1], strides = [1, 1]} : vector<32x128xf32> to vector<32x1xf32>
    %308 = vector.extract_strided_slice %306 {offsets = [19, 0], sizes = [1, 128], strides = [1, 1]} : vector<32x128xf32> to vector<1x128xf32>
    %309 = vector.extract_strided_slice %307 {offsets = [19, 0], sizes = [1, 1], strides = [1, 1]} : vector<32x1xf32> to vector<1x1xf32>
    %cst_20 = arith.constant 1.000000e+00 : f32
    %310 = vector.broadcast %cst_20 : f32 to vector<1x1xf32>
    %311 = arith.divf %310, %309 : vector<1x1xf32>
    %312 = vector.broadcast %311 : vector<1x1xf32> to vector<1x128xf32>
    %313 = arith.mulf %308, %312 : vector<1x128xf32>
    %c19_i32 = arith.constant 19 : i32
    %314 = vector.broadcast %c19_i32 : i32 to vector<32x1xi32>
    %315 = arith.cmpi eq, %2, %314 : vector<32x1xi32>
    %316 = arith.extui %315 : vector<32x1xi1> to vector<32x1xi32>
    %317 = arith.sitofp %316 : vector<32x1xi32> to vector<32x1xf32>
    %318 = arith.subf %307, %317 : vector<32x1xf32>
    %319 = vector.broadcast %318 : vector<32x1xf32> to vector<32x128xf32>
    %320 = vector.broadcast %313 : vector<1x128xf32> to vector<32x128xf32>
    %321 = arith.mulf %319, %320 : vector<32x128xf32>
    %322 = arith.subf %306, %321 : vector<32x128xf32>
    %323 = vector.extract_strided_slice %322 {offsets = [0, 20], sizes = [32, 1], strides = [1, 1]} : vector<32x128xf32> to vector<32x1xf32>
    %324 = vector.extract_strided_slice %322 {offsets = [20, 0], sizes = [1, 128], strides = [1, 1]} : vector<32x128xf32> to vector<1x128xf32>
    %325 = vector.extract_strided_slice %323 {offsets = [20, 0], sizes = [1, 1], strides = [1, 1]} : vector<32x1xf32> to vector<1x1xf32>
    %cst_21 = arith.constant 1.000000e+00 : f32
    %326 = vector.broadcast %cst_21 : f32 to vector<1x1xf32>
    %327 = arith.divf %326, %325 : vector<1x1xf32>
    %328 = vector.broadcast %327 : vector<1x1xf32> to vector<1x128xf32>
    %329 = arith.mulf %324, %328 : vector<1x128xf32>
    %c20_i32 = arith.constant 20 : i32
    %330 = vector.broadcast %c20_i32 : i32 to vector<32x1xi32>
    %331 = arith.cmpi eq, %2, %330 : vector<32x1xi32>
    %332 = arith.extui %331 : vector<32x1xi1> to vector<32x1xi32>
    %333 = arith.sitofp %332 : vector<32x1xi32> to vector<32x1xf32>
    %334 = arith.subf %323, %333 : vector<32x1xf32>
    %335 = vector.broadcast %334 : vector<32x1xf32> to vector<32x128xf32>
    %336 = vector.broadcast %329 : vector<1x128xf32> to vector<32x128xf32>
    %337 = arith.mulf %335, %336 : vector<32x128xf32>
    %338 = arith.subf %322, %337 : vector<32x128xf32>
    %339 = vector.extract_strided_slice %338 {offsets = [0, 21], sizes = [32, 1], strides = [1, 1]} : vector<32x128xf32> to vector<32x1xf32>
    %340 = vector.extract_strided_slice %338 {offsets = [21, 0], sizes = [1, 128], strides = [1, 1]} : vector<32x128xf32> to vector<1x128xf32>
    %341 = vector.extract_strided_slice %339 {offsets = [21, 0], sizes = [1, 1], strides = [1, 1]} : vector<32x1xf32> to vector<1x1xf32>
    %cst_22 = arith.constant 1.000000e+00 : f32
    %342 = vector.broadcast %cst_22 : f32 to vector<1x1xf32>
    %343 = arith.divf %342, %341 : vector<1x1xf32>
    %344 = vector.broadcast %343 : vector<1x1xf32> to vector<1x128xf32>
    %345 = arith.mulf %340, %344 : vector<1x128xf32>
    %c21_i32 = arith.constant 21 : i32
    %346 = vector.broadcast %c21_i32 : i32 to vector<32x1xi32>
    %347 = arith.cmpi eq, %2, %346 : vector<32x1xi32>
    %348 = arith.extui %347 : vector<32x1xi1> to vector<32x1xi32>
    %349 = arith.sitofp %348 : vector<32x1xi32> to vector<32x1xf32>
    %350 = arith.subf %339, %349 : vector<32x1xf32>
    %351 = vector.broadcast %350 : vector<32x1xf32> to vector<32x128xf32>
    %352 = vector.broadcast %345 : vector<1x128xf32> to vector<32x128xf32>
    %353 = arith.mulf %351, %352 : vector<32x128xf32>
    %354 = arith.subf %338, %353 : vector<32x128xf32>
    %355 = vector.extract_strided_slice %354 {offsets = [0, 22], sizes = [32, 1], strides = [1, 1]} : vector<32x128xf32> to vector<32x1xf32>
    %356 = vector.extract_strided_slice %354 {offsets = [22, 0], sizes = [1, 128], strides = [1, 1]} : vector<32x128xf32> to vector<1x128xf32>
    %357 = vector.extract_strided_slice %355 {offsets = [22, 0], sizes = [1, 1], strides = [1, 1]} : vector<32x1xf32> to vector<1x1xf32>
    %cst_23 = arith.constant 1.000000e+00 : f32
    %358 = vector.broadcast %cst_23 : f32 to vector<1x1xf32>
    %359 = arith.divf %358, %357 : vector<1x1xf32>
    %360 = vector.broadcast %359 : vector<1x1xf32> to vector<1x128xf32>
    %361 = arith.mulf %356, %360 : vector<1x128xf32>
    %c22_i32 = arith.constant 22 : i32
    %362 = vector.broadcast %c22_i32 : i32 to vector<32x1xi32>
    %363 = arith.cmpi eq, %2, %362 : vector<32x1xi32>
    %364 = arith.extui %363 : vector<32x1xi1> to vector<32x1xi32>
    %365 = arith.sitofp %364 : vector<32x1xi32> to vector<32x1xf32>
    %366 = arith.subf %355, %365 : vector<32x1xf32>
    %367 = vector.broadcast %366 : vector<32x1xf32> to vector<32x128xf32>
    %368 = vector.broadcast %361 : vector<1x128xf32> to vector<32x128xf32>
    %369 = arith.mulf %367, %368 : vector<32x128xf32>
    %370 = arith.subf %354, %369 : vector<32x128xf32>
    %371 = vector.extract_strided_slice %370 {offsets = [0, 23], sizes = [32, 1], strides = [1, 1]} : vector<32x128xf32> to vector<32x1xf32>
    %372 = vector.extract_strided_slice %370 {offsets = [23, 0], sizes = [1, 128], strides = [1, 1]} : vector<32x128xf32> to vector<1x128xf32>
    %373 = vector.extract_strided_slice %371 {offsets = [23, 0], sizes = [1, 1], strides = [1, 1]} : vector<32x1xf32> to vector<1x1xf32>
    %cst_24 = arith.constant 1.000000e+00 : f32
    %374 = vector.broadcast %cst_24 : f32 to vector<1x1xf32>
    %375 = arith.divf %374, %373 : vector<1x1xf32>
    %376 = vector.broadcast %375 : vector<1x1xf32> to vector<1x128xf32>
    %377 = arith.mulf %372, %376 : vector<1x128xf32>
    %c23_i32 = arith.constant 23 : i32
    %378 = vector.broadcast %c23_i32 : i32 to vector<32x1xi32>
    %379 = arith.cmpi eq, %2, %378 : vector<32x1xi32>
    %380 = arith.extui %379 : vector<32x1xi1> to vector<32x1xi32>
    %381 = arith.sitofp %380 : vector<32x1xi32> to vector<32x1xf32>
    %382 = arith.subf %371, %381 : vector<32x1xf32>
    %383 = vector.broadcast %382 : vector<32x1xf32> to vector<32x128xf32>
    %384 = vector.broadcast %377 : vector<1x128xf32> to vector<32x128xf32>
    %385 = arith.mulf %383, %384 : vector<32x128xf32>
    %386 = arith.subf %370, %385 : vector<32x128xf32>
    %387 = vector.extract_strided_slice %386 {offsets = [0, 24], sizes = [32, 1], strides = [1, 1]} : vector<32x128xf32> to vector<32x1xf32>
    %388 = vector.extract_strided_slice %386 {offsets = [24, 0], sizes = [1, 128], strides = [1, 1]} : vector<32x128xf32> to vector<1x128xf32>
    %389 = vector.extract_strided_slice %387 {offsets = [24, 0], sizes = [1, 1], strides = [1, 1]} : vector<32x1xf32> to vector<1x1xf32>
    %cst_25 = arith.constant 1.000000e+00 : f32
    %390 = vector.broadcast %cst_25 : f32 to vector<1x1xf32>
    %391 = arith.divf %390, %389 : vector<1x1xf32>
    %392 = vector.broadcast %391 : vector<1x1xf32> to vector<1x128xf32>
    %393 = arith.mulf %388, %392 : vector<1x128xf32>
    %c24_i32 = arith.constant 24 : i32
    %394 = vector.broadcast %c24_i32 : i32 to vector<32x1xi32>
    %395 = arith.cmpi eq, %2, %394 : vector<32x1xi32>
    %396 = arith.extui %395 : vector<32x1xi1> to vector<32x1xi32>
    %397 = arith.sitofp %396 : vector<32x1xi32> to vector<32x1xf32>
    %398 = arith.subf %387, %397 : vector<32x1xf32>
    %399 = vector.broadcast %398 : vector<32x1xf32> to vector<32x128xf32>
    %400 = vector.broadcast %393 : vector<1x128xf32> to vector<32x128xf32>
    %401 = arith.mulf %399, %400 : vector<32x128xf32>
    %402 = arith.subf %386, %401 : vector<32x128xf32>
    %403 = vector.extract_strided_slice %402 {offsets = [0, 25], sizes = [32, 1], strides = [1, 1]} : vector<32x128xf32> to vector<32x1xf32>
    %404 = vector.extract_strided_slice %402 {offsets = [25, 0], sizes = [1, 128], strides = [1, 1]} : vector<32x128xf32> to vector<1x128xf32>
    %405 = vector.extract_strided_slice %403 {offsets = [25, 0], sizes = [1, 1], strides = [1, 1]} : vector<32x1xf32> to vector<1x1xf32>
    %cst_26 = arith.constant 1.000000e+00 : f32
    %406 = vector.broadcast %cst_26 : f32 to vector<1x1xf32>
    %407 = arith.divf %406, %405 : vector<1x1xf32>
    %408 = vector.broadcast %407 : vector<1x1xf32> to vector<1x128xf32>
    %409 = arith.mulf %404, %408 : vector<1x128xf32>
    %c25_i32 = arith.constant 25 : i32
    %410 = vector.broadcast %c25_i32 : i32 to vector<32x1xi32>
    %411 = arith.cmpi eq, %2, %410 : vector<32x1xi32>
    %412 = arith.extui %411 : vector<32x1xi1> to vector<32x1xi32>
    %413 = arith.sitofp %412 : vector<32x1xi32> to vector<32x1xf32>
    %414 = arith.subf %403, %413 : vector<32x1xf32>
    %415 = vector.broadcast %414 : vector<32x1xf32> to vector<32x128xf32>
    %416 = vector.broadcast %409 : vector<1x128xf32> to vector<32x128xf32>
    %417 = arith.mulf %415, %416 : vector<32x128xf32>
    %418 = arith.subf %402, %417 : vector<32x128xf32>
    %419 = vector.extract_strided_slice %418 {offsets = [0, 26], sizes = [32, 1], strides = [1, 1]} : vector<32x128xf32> to vector<32x1xf32>
    %420 = vector.extract_strided_slice %418 {offsets = [26, 0], sizes = [1, 128], strides = [1, 1]} : vector<32x128xf32> to vector<1x128xf32>
    %421 = vector.extract_strided_slice %419 {offsets = [26, 0], sizes = [1, 1], strides = [1, 1]} : vector<32x1xf32> to vector<1x1xf32>
    %cst_27 = arith.constant 1.000000e+00 : f32
    %422 = vector.broadcast %cst_27 : f32 to vector<1x1xf32>
    %423 = arith.divf %422, %421 : vector<1x1xf32>
    %424 = vector.broadcast %423 : vector<1x1xf32> to vector<1x128xf32>
    %425 = arith.mulf %420, %424 : vector<1x128xf32>
    %c26_i32 = arith.constant 26 : i32
    %426 = vector.broadcast %c26_i32 : i32 to vector<32x1xi32>
    %427 = arith.cmpi eq, %2, %426 : vector<32x1xi32>
    %428 = arith.extui %427 : vector<32x1xi1> to vector<32x1xi32>
    %429 = arith.sitofp %428 : vector<32x1xi32> to vector<32x1xf32>
    %430 = arith.subf %419, %429 : vector<32x1xf32>
    %431 = vector.broadcast %430 : vector<32x1xf32> to vector<32x128xf32>
    %432 = vector.broadcast %425 : vector<1x128xf32> to vector<32x128xf32>
    %433 = arith.mulf %431, %432 : vector<32x128xf32>
    %434 = arith.subf %418, %433 : vector<32x128xf32>
    %435 = vector.extract_strided_slice %434 {offsets = [0, 27], sizes = [32, 1], strides = [1, 1]} : vector<32x128xf32> to vector<32x1xf32>
    %436 = vector.extract_strided_slice %434 {offsets = [27, 0], sizes = [1, 128], strides = [1, 1]} : vector<32x128xf32> to vector<1x128xf32>
    %437 = vector.extract_strided_slice %435 {offsets = [27, 0], sizes = [1, 1], strides = [1, 1]} : vector<32x1xf32> to vector<1x1xf32>
    %cst_28 = arith.constant 1.000000e+00 : f32
    %438 = vector.broadcast %cst_28 : f32 to vector<1x1xf32>
    %439 = arith.divf %438, %437 : vector<1x1xf32>
    %440 = vector.broadcast %439 : vector<1x1xf32> to vector<1x128xf32>
    %441 = arith.mulf %436, %440 : vector<1x128xf32>
    %c27_i32 = arith.constant 27 : i32
    %442 = vector.broadcast %c27_i32 : i32 to vector<32x1xi32>
    %443 = arith.cmpi eq, %2, %442 : vector<32x1xi32>
    %444 = arith.extui %443 : vector<32x1xi1> to vector<32x1xi32>
    %445 = arith.sitofp %444 : vector<32x1xi32> to vector<32x1xf32>
    %446 = arith.subf %435, %445 : vector<32x1xf32>
    %447 = vector.broadcast %446 : vector<32x1xf32> to vector<32x128xf32>
    %448 = vector.broadcast %441 : vector<1x128xf32> to vector<32x128xf32>
    %449 = arith.mulf %447, %448 : vector<32x128xf32>
    %450 = arith.subf %434, %449 : vector<32x128xf32>
    %451 = vector.extract_strided_slice %450 {offsets = [0, 28], sizes = [32, 1], strides = [1, 1]} : vector<32x128xf32> to vector<32x1xf32>
    %452 = vector.extract_strided_slice %450 {offsets = [28, 0], sizes = [1, 128], strides = [1, 1]} : vector<32x128xf32> to vector<1x128xf32>
    %453 = vector.extract_strided_slice %451 {offsets = [28, 0], sizes = [1, 1], strides = [1, 1]} : vector<32x1xf32> to vector<1x1xf32>
    %cst_29 = arith.constant 1.000000e+00 : f32
    %454 = vector.broadcast %cst_29 : f32 to vector<1x1xf32>
    %455 = arith.divf %454, %453 : vector<1x1xf32>
    %456 = vector.broadcast %455 : vector<1x1xf32> to vector<1x128xf32>
    %457 = arith.mulf %452, %456 : vector<1x128xf32>
    %c28_i32 = arith.constant 28 : i32
    %458 = vector.broadcast %c28_i32 : i32 to vector<32x1xi32>
    %459 = arith.cmpi eq, %2, %458 : vector<32x1xi32>
    %460 = arith.extui %459 : vector<32x1xi1> to vector<32x1xi32>
    %461 = arith.sitofp %460 : vector<32x1xi32> to vector<32x1xf32>
    %462 = arith.subf %451, %461 : vector<32x1xf32>
    %463 = vector.broadcast %462 : vector<32x1xf32> to vector<32x128xf32>
    %464 = vector.broadcast %457 : vector<1x128xf32> to vector<32x128xf32>
    %465 = arith.mulf %463, %464 : vector<32x128xf32>
    %466 = arith.subf %450, %465 : vector<32x128xf32>
    %467 = vector.extract_strided_slice %466 {offsets = [0, 29], sizes = [32, 1], strides = [1, 1]} : vector<32x128xf32> to vector<32x1xf32>
    %468 = vector.extract_strided_slice %466 {offsets = [29, 0], sizes = [1, 128], strides = [1, 1]} : vector<32x128xf32> to vector<1x128xf32>
    %469 = vector.extract_strided_slice %467 {offsets = [29, 0], sizes = [1, 1], strides = [1, 1]} : vector<32x1xf32> to vector<1x1xf32>
    %cst_30 = arith.constant 1.000000e+00 : f32
    %470 = vector.broadcast %cst_30 : f32 to vector<1x1xf32>
    %471 = arith.divf %470, %469 : vector<1x1xf32>
    %472 = vector.broadcast %471 : vector<1x1xf32> to vector<1x128xf32>
    %473 = arith.mulf %468, %472 : vector<1x128xf32>
    %c29_i32 = arith.constant 29 : i32
    %474 = vector.broadcast %c29_i32 : i32 to vector<32x1xi32>
    %475 = arith.cmpi eq, %2, %474 : vector<32x1xi32>
    %476 = arith.extui %475 : vector<32x1xi1> to vector<32x1xi32>
    %477 = arith.sitofp %476 : vector<32x1xi32> to vector<32x1xf32>
    %478 = arith.subf %467, %477 : vector<32x1xf32>
    %479 = vector.broadcast %478 : vector<32x1xf32> to vector<32x128xf32>
    %480 = vector.broadcast %473 : vector<1x128xf32> to vector<32x128xf32>
    %481 = arith.mulf %479, %480 : vector<32x128xf32>
    %482 = arith.subf %466, %481 : vector<32x128xf32>
    %483 = vector.extract_strided_slice %482 {offsets = [0, 30], sizes = [32, 1], strides = [1, 1]} : vector<32x128xf32> to vector<32x1xf32>
    %484 = vector.extract_strided_slice %482 {offsets = [30, 0], sizes = [1, 128], strides = [1, 1]} : vector<32x128xf32> to vector<1x128xf32>
    %485 = vector.extract_strided_slice %483 {offsets = [30, 0], sizes = [1, 1], strides = [1, 1]} : vector<32x1xf32> to vector<1x1xf32>
    %cst_31 = arith.constant 1.000000e+00 : f32
    %486 = vector.broadcast %cst_31 : f32 to vector<1x1xf32>
    %487 = arith.divf %486, %485 : vector<1x1xf32>
    %488 = vector.broadcast %487 : vector<1x1xf32> to vector<1x128xf32>
    %489 = arith.mulf %484, %488 : vector<1x128xf32>
    %c30_i32 = arith.constant 30 : i32
    %490 = vector.broadcast %c30_i32 : i32 to vector<32x1xi32>
    %491 = arith.cmpi eq, %2, %490 : vector<32x1xi32>
    %492 = arith.extui %491 : vector<32x1xi1> to vector<32x1xi32>
    %493 = arith.sitofp %492 : vector<32x1xi32> to vector<32x1xf32>
    %494 = arith.subf %483, %493 : vector<32x1xf32>
    %495 = vector.broadcast %494 : vector<32x1xf32> to vector<32x128xf32>
    %496 = vector.broadcast %489 : vector<1x128xf32> to vector<32x128xf32>
    %497 = arith.mulf %495, %496 : vector<32x128xf32>
    %498 = arith.subf %482, %497 : vector<32x128xf32>
    %499 = vector.extract_strided_slice %498 {offsets = [0, 31], sizes = [32, 1], strides = [1, 1]} : vector<32x128xf32> to vector<32x1xf32>
    %500 = vector.extract_strided_slice %498 {offsets = [31, 0], sizes = [1, 128], strides = [1, 1]} : vector<32x128xf32> to vector<1x128xf32>
    %501 = vector.extract_strided_slice %499 {offsets = [31, 0], sizes = [1, 1], strides = [1, 1]} : vector<32x1xf32> to vector<1x1xf32>
    %cst_32 = arith.constant 1.000000e+00 : f32
    %502 = vector.broadcast %cst_32 : f32 to vector<1x1xf32>
    %503 = arith.divf %502, %501 : vector<1x1xf32>
    %504 = vector.broadcast %503 : vector<1x1xf32> to vector<1x128xf32>
    %505 = arith.mulf %500, %504 : vector<1x128xf32>
    %c31_i32 = arith.constant 31 : i32
    %506 = vector.broadcast %c31_i32 : i32 to vector<32x1xi32>
    %507 = arith.cmpi eq, %2, %506 : vector<32x1xi32>
    %508 = arith.extui %507 : vector<32x1xi1> to vector<32x1xi32>
    %509 = arith.sitofp %508 : vector<32x1xi32> to vector<32x1xf32>
    %510 = arith.subf %499, %509 : vector<32x1xf32>
    %511 = vector.broadcast %510 : vector<32x1xf32> to vector<32x128xf32>
    %512 = vector.broadcast %505 : vector<1x128xf32> to vector<32x128xf32>
    %513 = arith.mulf %511, %512 : vector<32x128xf32>
    %514 = arith.subf %498, %513 : vector<32x128xf32>
    %c0_33 = arith.constant 0 : index
    %c0_34 = arith.constant 0 : index
    %c0_35 = arith.constant 0 : index
    %515 = vector.load %arg2[%c0_33, %c0_34, %c0_35] : memref<1x32x128xf32, #tpu.memory_space<vmem>>, vector<1x32x128xf32>
    %516 = vector.shape_cast %515 : vector<1x32x128xf32> to vector<32x128xf32>
    %517 = vector.shape_cast %514 : vector<32x128xf32> to vector<1x32x128xf32>
    tpu.vector_store %arg2[%c0_33, %c0_34, %c0_35], %517 {strides = array<i32>} : memref<1x32x128xf32, #tpu.memory_space<vmem>>, vector<1x32x128xf32>,
    return
  }
  func.func @transform_0(%arg0: i32) -> (i32, i32, i32) {
    %c0_i32 = arith.constant 0 : i32
    %c0_i32_0 = arith.constant 0 : i32
    %c0_i32_1 = arith.constant 0 : i32
    return %arg0, %c0_i32, %c0_i32_0 : i32, i32, i32
  }
  func.func @transform_1(%arg0: i32) -> (i32, i32, i32) {
    %c0_i32 = arith.constant 0 : i32
    %c0_i32_0 = arith.constant 0 : i32
    %c0_i32_1 = arith.constant 0 : i32
    return %arg0, %c0_i32, %c0_i32_0 : i32, i32, i32
  }
}

</mosaic_0001>

<bundles_post_ra>
// kernel: neg.230
= control target key start
LH: loop header
LB: loop body
LE: loop exit
PB: predicated region body
PF: predicated region fallthrough
CT: control target
= control target key end

     0   :  { %s24_s0 = inlined_call_operand.vmem [shape: f32[19,6], index: 0, kind: input, shape index: {}]   ;;  %s25_s1 = inlined_call_operand.vmem [shape: f32[19,6], index: 1, kind: output, shape index: {}]  }
   0x1   :  { %v2_v0 = vld [vmem:[%s24_s0] sm:$0x3f] }
   0x2   :  { %v5_v1 = vxor.u32 2147483648, %v2_v0 }
   0x4   :  { %7 = vst [vmem:[%s25_s1] sm:$0xff] %v5_v1 }

// kernel: neg.224
= control target key start
LH: loop header
LB: loop body
LE: loop exit
PB: predicated region body
PF: predicated region fallthrough
CT: control target
= control target key end

     0   :  { %s24_s0 = inlined_call_operand.vmem [shape: f32[4,6], index: 0, kind: input, shape index: {}]   ;;  %s25_s1 = inlined_call_operand.vmem [shape: f32[4,6], index: 1, kind: output, shape index: {}]  }
   0x1   :  { %v2_v0 = vld [vmem:[%s24_s0] sm:$0xf] }
   0x2   :  { %v5_v1 = vxor.u32 2147483648, %v2_v0 }
   0x4   :  { %7 = vst [vmem:[%s25_s1] sm:$0xf] %v5_v1 }

// kernel: closed_call.30
= control target key start
LH: loop header
LB: loop body
LE: loop exit
PB: predicated region body
PF: predicated region fallthrough
CT: control target
= control target key end

     0   :  { %s2298_s6 = smov 0   ;;  %s2681_s0 = inlined_call_operand.vmem [shape: f32[19,32,128], index: 0, kind: input, shape index: {}]   ;;  %s2682_s1 = inlined_call_operand.vmem [shape: f32[19,32,128], index: 1, kind: output, shape index: {}]  }
   0x1 LB: > { %s1977_s7 = sadd.s32 4294967295, %s2253_s6   ;;  %p1981_p0 = scmp.ge.s32.totalorder %s2253_s6, 1  ;;  %s2253_s6 = sphi %s2298_s6, %s11_s6  }
   0x2   : > { %p87_p1 = scmp.lt.s32.totalorder %s2253_s6, 20 }
   0x4   : > { %p88_p2 = pnand %p1981_p0, %p87_p1 }
   0x5   : > { %p107_p3 = scmp.lt.s32.totalorder (!%p88_p2), %s1977_s7, 18  ;;  %v2255_v0 = vmov (!%p88_p2), 0   ;;  %v121_v1 = vlaneseq (!%p88_p2)  ;;  %v2256_v4 = vmov (!%p88_p2), 0.0   ;;  %v2257_v9 = vmov (!%p88_p2), 1  }
   0x6   : > { %91 = sbr.rel (%p88_p2) target bundleno = 5032 (0x13a8), region = 24  ;;  %2063 = vset.pattern.permute.xlu0 (!%p88_p2), %v2255_v0  ;;  %2064 = vset.pattern.permute.xlu1 (!%p88_p2), %v2257_v9  ;;  %v2258_v20 = vmov (!%p88_p2), 2   ;;  %v2259_v35 = vmov (!%p88_p2), 3   ;;  %v2260_v52 = vmov (!%p88_p2), 4  }
   0x7   : > { %v2318_v3 = vshrl.u32 (!%p88_p2), %v121_v1, 7 }
   0x9   : > { %vm134_vm0 = vcmp.eq.s32.totalorder (!%p88_p2), %v2318_v3, 0  ;;  %v2325_v10 = vsub.s32 (!%p88_p2), 0, %v2318_v3  ;;  %vm190_vm1 = vcmp.eq.s32.totalorder (!%p88_p2), %v2318_v3, 1  ;;  %v2336_v21 = vsub.s32 (!%p88_p2), 1, %v2318_v3 }
   0xa   : > { %v1986_v5 = vsel (!%p88_p2), %vm134_vm0, 1.0, %v2256_v4  ;;  %v1987_v18 = vsel (!%p88_p2), %vm190_vm1, 1.0, %v2256_v4  ;;  %vm246_vm2 = vcmp.eq.s32.totalorder (!%p88_p2), %v2318_v3, 2  ;;  %v2350_v36 = vsub.s32 (!%p88_p2), 2, %v2318_v3 }
   0xb   : > { %v1988_v27 = vsel (!%p88_p2), %vm246_vm2, 1.0, %v2256_v4  ;;  %vm302_vm3 = vcmp.eq.s32.totalorder (!%p88_p2), %v2318_v3, 3  ;;  %v2366_v56 = vsub.s32 (!%p88_p2), 3, %v2318_v3  ;;  %vm358_vm4 = vcmp.eq.s32.totalorder (!%p88_p2), %v2318_v3, 4 }
   0xc   : > { %v1989_v46 = vsel (!%p88_p2), %vm302_vm3, 1.0, %v2256_v4  ;;  %v1990_v62 = vsel (!%p88_p2), %vm358_vm4, 1.0, %v2256_v4  ;;  %vm414_vm5 = vcmp.eq.s32.totalorder (!%p88_p2), %v2318_v3, 5  ;;  %vm470_vm6 = vcmp.eq.s32.totalorder (!%p88_p2), %v2318_v3, 6 }
   0xd   : > { %s2684_s7 = smov (!%p107_p3, %s1977_s7), 18  ;;  %vm526_vm11 = vcmp.eq.s32.totalorder %v2318_v3, 7 }
   0xe   : > { %s2020_s8 = sshll.u32 %s2684_s7, 5 }
   0xf   : > { %s2315_s11 = scalar_lea.vmem %s2681_s0, %s2020_s8  ;;  %s116_s14 = scalar_lea.vmem %s2682_s1, %s2020_s8 }
  0x10   : > { %v117_v2 = vld [vmem:[%s2315_s11] sm:$0xff]  ;;  %v118_v8 = vld [vmem:[%s2315_s11 + $0x8] sm:$0xff]  ;;  %v119_v34 = vld [vmem:[%s2315_s11 + $0x10] sm:$0xff] }
  0x11   : > { %2183 = vrcp.f32 %v117_v2  ;;  %v146_v7 = vsub.f32 %v117_v2, %v1986_v5 }
  0x1b   : > { %v2184_v6 = vpop.eup %2183 }
  0x1c   : > { %130 = vperm.xlu0 %2063, %v2184_v6  }
  0x20   : > { %152 = vperm.xlu0 %2063, %v146_v7  }
  0x24   : > { %157 = vperm.xlu0 %2063, %v118_v8  }
  0x28   : > { %2066 = vset.pattern.permute.xlu0 %v2258_v20 }
  0x9b   : > { %v131_v11 = vpop.permute.xlu0 %130 }
  0x9c   : > { %v133_v12 = vmul.f32 %v131_v11, %v117_v2  ;;  %v2261_v11 = vmov 5  }
  0x9e   : > { %v2328_v13 = vrot.slane %v133_v12, %v2325_v10 }
  0x9f   : > { %v153_v14 = vpop.permute.xlu0 %152 }
  0xa0   : > { %v174_v15 = vmul.f32 %v2328_v13, %v153_v14 }
  0xa2   : > { %v178_v16 = vsub.f32 %v117_v2, %v174_v15  ;;  %v120_v2 = vld [vmem:[%s2315_s11 + $0x18] sm:$0xff] }
  0xa3   : > { %v158_v30 = vpop.permute.xlu0 %157 }
  0xa4   : > { %2185 = vrcp.f32 %v178_v16  ;;  %v202_v19 = vsub.f32 %v178_v16, %v1987_v18  ;;  %v175_v32 = vmul.f32 %v2328_v13, %v158_v30 }
  0xa6   : > { %v179_v33 = vsub.f32 %v118_v8, %v175_v32 }
  0xae   : > { %v2186_v17 = vpop.eup %2185 }
  0xaf   : > { %186 = vperm.xlu1 %2064, %v2186_v17  }
  0xb3   : > { %208 = vperm.xlu1 %2064, %v202_v19   ;;  %v2385_v19 = vsub.s32 4, %v2318_v3 }
  0xb7   : > { %2065 = vset.pattern.permute.xlu1 %v2258_v20 }
 0x12e   : > { %v187_v22 = vpop.permute.xlu1 %186 }
 0x12f   : > { %v189_v23 = vmul.f32 %v187_v22, %v178_v16 }
 0x131   : > { %v2339_v24 = vrot.slane %v189_v23, %v2336_v21 }
 0x132   : > { %v209_v25 = vpop.permute.xlu1 %208 }
 0x133   : > { %v230_v26 = vmul.f32 %v2339_v24, %v209_v25 }
 0x135   : > { %v234_v28 = vsub.f32 %v178_v16, %v230_v26 }
 0x137   : > { %2187 = vrcp.f32 %v234_v28  ;;  %v258_v29 = vsub.f32 %v234_v28, %v1988_v27 }
 0x139   : > { %264 = vperm.xlu0 %2066, %v258_v29  }
 0x141   : > { %v2188_v31 = vpop.eup %2187 }
 0x142   : > { %242 = vperm.xlu1 %2065, %v2188_v31  }
 0x146   : > { %2067 = vset.pattern.permute.xlu1 %v2257_v9 }
 0x147   : > { %213 = vperm.xlu1 %2067, %v179_v33  }
 0x14b   : > { %2068 = vset.pattern.permute.xlu1 %v2255_v0 }
 0x14c   : > { %162 = vperm.xlu1 %2068, %v119_v34  }
 0x150   : > { %2069 = vset.pattern.permute.xlu1 %v2259_v35 }
 0x1b8   : > { %v265_v40 = vpop.permute.xlu0 %264 }
 0x1c1   : > { %v243_v37 = vpop.permute.xlu1 %242 }
 0x1c2   : > { %v245_v38 = vmul.f32 %v243_v37, %v234_v28  ;;  %v2262_v37 = vmov 6  }
 0x1c4   : > { %v2353_v39 = vrot.slane %v245_v38, %v2350_v36 }
 0x1c6   : > { %v286_v41 = vmul.f32 %v2353_v39, %v265_v40  ;;  %v214_v42 = vpop.permute.xlu1 %213 }
 0x1c7   : > { %v231_v43 = vmul.f32 %v2339_v24, %v214_v42 }
 0x1c8   : > { %v290_v44 = vsub.f32 %v234_v28, %v286_v41 }
 0x1c9   : > { %v235_v45 = vsub.f32 %v179_v33, %v231_v43 }
 0x1ca   : > { %2189 = vrcp.f32 %v290_v44  ;;  %v314_v47 = vsub.f32 %v290_v44, %v1989_v46 }
 0x1cb   : > { %269 = vperm.xlu0 %2066, %v235_v45   ;;  %v163_v48 = vpop.permute.xlu1 %162 }
 0x1cc   : > { %v176_v50 = vmul.f32 %v2328_v13, %v163_v48 }
 0x1ce   : > { %v180_v51 = vsub.f32 %v119_v34, %v176_v50 }
 0x1cf   : > { %2070 = vset.pattern.permute.xlu0 %v2259_v35 }
 0x1d0   : > { %320 = vperm.xlu0 %2070, %v314_v47  }
 0x1d4   : > { %v2190_v49 = vpop.eup %2189  ;;  %2073 = vset.pattern.permute.xlu0 %v2260_v52 }
 0x1d5   : > { %298 = vperm.xlu1 %2069, %v2190_v49   ;;  %v1992_v49 = vsel %vm470_vm6, 1.0, %v2256_v4 }
 0x1d9   : > { %2071 = vset.pattern.permute.xlu1 %v2257_v9 }
 0x1da   : > { %218 = vperm.xlu1 %2071, %v180_v51  }
 0x1de   : > { %2072 = vset.pattern.permute.xlu1 %v2259_v35 }
 0x24a   : > { %v270_v53 = vpop.permute.xlu0 %269 }
 0x24b   : > { %v287_v54 = vmul.f32 %v2353_v39, %v270_v53 }
 0x24d   : > { %v291_v55 = vsub.f32 %v235_v45, %v287_v54  ;;  %v2403_v45 = vsub.s32 5, %v2318_v3 }
 0x24f   : > { %325 = vperm.xlu1 %2072, %v291_v55   ;;  %v321_v60 = vpop.permute.xlu0 %320 }
 0x253   : > { %2074 = vset.pattern.permute.xlu1 %v2260_v52 }
 0x254   : > { %v299_v57 = vpop.permute.xlu1 %298 }
 0x255   : > { %v301_v58 = vmul.f32 %v299_v57, %v290_v44 }
 0x257   : > { %v2370_v59 = vrot.slane %v301_v58, %v2366_v56 }
 0x259   : > { %v342_v61 = vmul.f32 %v2370_v59, %v321_v60  ;;  %v219_v5 = vpop.permute.xlu1 %218 }
 0x25a   : > { %v232_v7 = vmul.f32 %v2339_v24, %v219_v5 }
 0x25b   : > { %v346_v63 = vsub.f32 %v290_v44, %v342_v61 }
 0x25c   : > { %v236_v8 = vsub.f32 %v180_v51, %v232_v7 }
 0x25d   : > { %v370_v1 = vsub.f32 %v346_v63, %v1990_v62  ;;  %2191 = vrcp.f32 %v346_v63  ;;  %v2263_v62 = vmov 7  }
 0x25f   : > { %376 = vperm.xlu1 %2074, %v370_v1  }
 0x263   : > { %2075 = vset.pattern.permute.xlu1 %v2255_v0 }
 0x264   : > { %167 = vperm.xlu1 %2075, %v120_v2  }
 0x267   : > { %v2192_v6 = vpop.eup %2191 }
 0x268   : > { %354 = vperm.xlu0 %2073, %v2192_v6   ;;  %2077 = vset.pattern.permute.xlu1 %v2260_v52 }
 0x26c   : > { %2076 = vset.pattern.permute.xlu0 %v2258_v20 }
 0x26d   : > { %274 = vperm.xlu0 %2076, %v236_v8  }
 0x271   : > { %2079 = vset.pattern.permute.xlu0 %v2261_v11 }
 0x2ce   : > { %v326_v12 = vpop.permute.xlu1 %325 }
 0x2cf   : > { %v343_v14 = vmul.f32 %v2370_v59, %v326_v12 }
 0x2d1   : > { %v347_v15 = vsub.f32 %v291_v55, %v343_v14 }
 0x2d3   : > { %381 = vperm.xlu1 %2077, %v347_v15  }
 0x2d7   : > { %2078 = vset.pattern.permute.xlu1 %v2257_v9  ;;  %v1991_v9 = vsel %vm414_vm5, 1.0, %v2256_v4 }
 0x2de   : > { %v377_v0 = vpop.permute.xlu1 %376 }
 0x2e3   : > { %v168_v16 = vpop.permute.xlu1 %167 }
 0x2e4   : > { %v177_v17 = vmul.f32 %v2328_v13, %v168_v16 }
 0x2e6   : > { %v181_v18 = vsub.f32 %v120_v2, %v177_v17  ;;  %v2420_v2 = vsub.s32 6, %v2318_v3 }
 0x2e7   : > { %v355_v22 = vpop.permute.xlu0 %354 }
 0x2e8   : > { %v357_v23 = vmul.f32 %v355_v22, %v346_v63  ;;  %223 = vperm.xlu1 %2078, %v181_v18   ;;  %v2264_v22 = vmov 8  }
 0x2ea   : > { %v2388_v25 = vrot.slane %v357_v23, %v2385_v19 }
 0x2ec   : > { %v398_v26 = vmul.f32 %v2388_v25, %v377_v0  ;;  %2080 = vset.pattern.permute.xlu1 %v2261_v11  ;;  %v275_v27 = vpop.permute.xlu0 %274 }
 0x2ed   : > { %v288_v29 = vmul.f32 %v2353_v39, %v275_v27 }
 0x2ee   : > { %v402_v13 = vsub.f32 %v346_v63, %v398_v26 }
 0x2ef   : > { %v292_v30 = vsub.f32 %v236_v8, %v288_v29 }
 0x2f0   : > { %v426_v28 = vsub.f32 %v402_v13, %v1991_v9  ;;  %2193 = vrcp.f32 %v402_v13 }
 0x2f2   : > { %432 = vperm.xlu1 %2080, %v426_v28  }
 0x2f6   : > { %2081 = vset.pattern.permute.xlu1 %v2259_v35 }
 0x2f7   : > { %330 = vperm.xlu1 %2081, %v292_v30  }
 0x2fa   : > { %v2194_v31 = vpop.eup %2193 }
 0x2fb   : > { %410 = vperm.xlu0 %2079, %v2194_v31   ;;  %2082 = vset.pattern.permute.xlu1 %v2258_v20 }
 0x352   : > { %v382_v32 = vpop.permute.xlu1 %381 }
 0x353   : > { %v399_v33 = vmul.f32 %v2388_v25, %v382_v32 }
 0x355   : > { %v403_v34 = vsub.f32 %v347_v15, %v399_v33 }
 0x357   : > { %437 = vperm.xlu0 %2079, %v403_v34  }
 0x35b   : > { %2083 = vset.pattern.permute.xlu0 %v2262_v37 }
 0x367   : > { %v224_v38 = vpop.permute.xlu1 %223 }
 0x368   : > { %v233_v40 = vmul.f32 %v2339_v24, %v224_v38 }
 0x36a   : > { %v237_v41 = vsub.f32 %v181_v18, %v233_v40 }
 0x36c   : > { %279 = vperm.xlu1 %2082, %v237_v41  }
 0x370   : > { %2084 = vset.pattern.permute.xlu1 %v2260_v52 }
 0x371   : > { %v433_v42 = vpop.permute.xlu1 %432 }
 0x376   : > { %v331_v43 = vpop.permute.xlu1 %330 }
 0x377   : > { %v344_v44 = vmul.f32 %v2370_v59, %v331_v43 }
 0x379   : > { %v348_v20 = vsub.f32 %v292_v30, %v344_v44 }
 0x37a   : > { %v411_v46 = vpop.permute.xlu0 %410 }
 0x37b   : > { %v413_v47 = vmul.f32 %v411_v46, %v402_v13  ;;  %386 = vperm.xlu1 %2084, %v348_v20  }
 0x37d   : > { %v2406_v48 = vrot.slane %v413_v47, %v2403_v45 }
 0x37f   : > { %v454_v24 = vmul.f32 %v2406_v48, %v433_v42  ;;  %2085 = vset.pattern.permute.xlu1 %v2262_v37 }
 0x381   : > { %v458_v50 = vsub.f32 %v402_v13, %v454_v24  ;;  %v2436_v13 = vsub.s32 7, %v2318_v3 }
 0x383   : > { %v482_v51 = vsub.f32 %v458_v50, %v1992_v49  ;;  %2195 = vrcp.f32 %v458_v50 }
 0x385   : > { %488 = vperm.xlu1 %2085, %v482_v51  }
 0x389   : > { %2086 = vset.pattern.permute.xlu1 %v2259_v35 }
 0x38d   : > { %v2196_v53 = vpop.eup %2195 }
 0x38e   : > { %466 = vperm.xlu0 %2083, %v2196_v53  }
 0x3d6   : > { %v438_v54 = vpop.permute.xlu0 %437 }
 0x3d7   : > { %v455_v55 = vmul.f32 %v2406_v48, %v438_v54 }
 0x3d9   : > { %v459_v57 = vsub.f32 %v403_v34, %v455_v55 }
 0x3db   : > { %493 = vperm.xlu0 %2083, %v459_v57  }
 0x3df   : > { %2087 = vset.pattern.permute.xlu0 %v2261_v11 }
 0x3eb   : > { %v280_v58 = vpop.permute.xlu1 %279 }
 0x3ec   : > { %v289_v60 = vmul.f32 %v2353_v39, %v280_v58 }
 0x3ee   : > { %v293_v61 = vsub.f32 %v237_v41, %v289_v60  ;;  %v2265_v41 = vmov 9  }
 0x3f0   : > { %335 = vperm.xlu1 %2086, %v293_v61  }
 0x3f4   : > { %2088 = vset.pattern.permute.xlu1 %v2263_v62 }
 0x3fa   : > { %v387_v63 = vpop.permute.xlu1 %386 }
 0x3fb   : > { %v400_v35 = vmul.f32 %v2388_v25, %v387_v63 }
 0x3fd   : > { %v404_v1 = vsub.f32 %v348_v20, %v400_v35  ;;  %v2266_v35 = vmov 10  }
 0x3ff   : > { %442 = vperm.xlu0 %2087, %v404_v1  }
 0x403   : > { %2089 = vset.pattern.permute.xlu0 %v2260_v52 }
 0x404   : > { %v489_v39 = vpop.permute.xlu1 %488 }
 0x40d   : > { %v467_v5 = vpop.permute.xlu0 %466 }
 0x40e   : > { %v469_v6 = vmul.f32 %v467_v5, %v458_v50 }
 0x410   : > { %v2423_v7 = vrot.slane %v469_v6, %v2420_v2 }
 0x412   : > { %v510_v8 = vmul.f32 %v2423_v7, %v489_v39 }
 0x414   : > { %v2426_v12 = vsub.f32 %v458_v50, %v510_v8 }
 0x416   : > { %2197 = vrcp.f32 %v2426_v12 }
 0x420   : > { %v2198_v14 = vpop.eup %2197 }
 0x421   : > { %522 = vperm.xlu1 %2088, %v2198_v14  }
 0x45a   : > { %v494_v15 = vpop.permute.xlu0 %493 }
 0x45b   : > { %v511_v52 = vmul.f32 %v2423_v7, %v494_v15 }
 0x45d   : > { %v515_v0 = vsub.f32 %v459_v57, %v511_v52 }
 0x45f   : > { %549 = vperm.xlu1 %2088, %v515_v0  }
 0x463   : > { %2090 = vset.pattern.permute.xlu1 %v2262_v37 }
 0x46f   : > { %v336_v16 = vpop.permute.xlu1 %335 }
 0x470   : > { %v345_v17 = vmul.f32 %v2370_v59, %v336_v16  ;;  %v2440_v59 = vadd.s32 8, %v2318_v3 }
 0x472   : > { %v349_v18 = vsub.f32 %v293_v61, %v345_v17  ;;  %vm583_vm7 = vcmp.eq.s32.totalorder %v2440_v59, 8  ;;  %vm639_vm8 = vcmp.eq.s32.totalorder %v2440_v59, 9  ;;  %vm695_vm9 = vcmp.eq.s32.totalorder %v2440_v59, 10 }
 0x473   : > { %v1994_v32 = vsel %vm583_vm7, 1.0, %v2256_v4  ;;  %v1995_v50 = vsel %vm639_vm8, 1.0, %v2256_v4  ;;  %v1996_v15 = vsel %vm695_vm9, 1.0, %v2256_v4  ;;  %vm751_vm10 = vcmp.eq.s32.totalorder %v2440_v59, 11 }
 0x474   : > { %391 = vperm.xlu0 %2089, %v349_v18   ;;  %vm807_vm12 = vcmp.eq.s32.totalorder %v2440_v59, 12  ;;  %vm863_vm13 = vcmp.eq.s32.totalorder %v2440_v59, 13  ;;  %vm919_vm14 = vcmp.eq.s32.totalorder %v2440_v59, 14  ;;  %vm975_vm1 = vcmp.eq.s32.totalorder %v2440_v59, 15 }
 0x478   : > { %2092 = vset.pattern.permute.xlu0 %v2264_v22 }
 0x47e   : > { %v443_v23 = vpop.permute.xlu0 %442 }
 0x47f   : > { %v456_v26 = vmul.f32 %v2406_v48, %v443_v23 }
 0x481   : > { %v460_v9 = vsub.f32 %v404_v1, %v456_v26 }
 0x483   : > { %498 = vperm.xlu1 %2090, %v460_v9  }
 0x487   : > { %2091 = vset.pattern.permute.xlu1 %v2264_v22 }
 0x4a0   : > { %v523_v27 = vpop.permute.xlu1 %522 }
 0x4a1   : > { %v525_v28 = vmul.f32 %v523_v27, %v2426_v12  ;;  %v2267_v27 = vmov 11  }
 0x4a3   : > { %v2443_v29 = vrot.slane %v525_v28, %v2436_v13 }
 0x4de   : > { %v550_v30 = vpop.permute.xlu1 %549 }
 0x4df   : > { %v567_v31 = vmul.f32 %v2443_v29, %v550_v30 }
 0x4e1   : > { %v571_v33 = vsub.f32 %v515_v0, %v567_v31 }
 0x4e3   : > { %2199 = vrcp.f32 %v571_v33  ;;  %v595_v34 = vsub.f32 %v571_v33, %v1994_v32 }
 0x4e5   : > { %605 = vperm.xlu0 %2092, %v595_v34  }
 0x4e9   : > { %2095 = vset.pattern.permute.xlu0 %v2265_v41 }
 0x4ed   : > { %v2200_v38 = vpop.eup %2199 }
 0x4ee   : > { %578 = vperm.xlu1 %2091, %v2200_v38  }
 0x4f2   : > { %2093 = vset.pattern.permute.xlu1 %v2261_v11 }
 0x4f3   : > { %v392_v40 = vpop.permute.xlu0 %391 }
 0x4f4   : > { %v401_v42 = vmul.f32 %v2388_v25, %v392_v40 }
 0x4f6   : > { %v405_v43 = vsub.f32 %v349_v18, %v401_v42 }
 0x4f8   : > { %447 = vperm.xlu1 %2093, %v405_v43  }
 0x4fc   : > { %2094 = vset.pattern.permute.xlu1 %v2263_v62 }
 0x502   : > { %v499_v44 = vpop.permute.xlu1 %498 }
 0x503   : > { %v512_v20 = vmul.f32 %v2423_v7, %v499_v44 }
 0x505   : > { %v516_v46 = vsub.f32 %v460_v9, %v512_v20 }
 0x507   : > { %554 = vperm.xlu1 %2094, %v516_v46  }
 0x50b   : > { %2096 = vset.pattern.permute.xlu1 %v2265_v41 }
 0x564   : > { %v606_v49 = vpop.permute.xlu0 %605 }
 0x56d   : > { %v579_v47 = vpop.permute.xlu1 %578 }
 0x56e   : > { %v581_v24 = vmul.f32 %v579_v47, %v571_v33 }
 0x570   : > { %v2455_v11 = vrot.slane %v581_v24, %v2325_v10 }
 0x572   : > { %v623_v25 = vmul.f32 %v2455_v11, %v606_v49 }
 0x574   : > { %v627_v51 = vsub.f32 %v571_v33, %v623_v25 }
 0x576   : > { %v651_v53 = vsub.f32 %v627_v51, %v1995_v50  ;;  %2201 = vrcp.f32 %v627_v51  ;;  %v2268_v50 = vmov 12  }
 0x577   : > { %v448_v54 = vpop.permute.xlu1 %447 }
 0x578   : > { %v457_v55 = vmul.f32 %v2406_v48, %v448_v54  ;;  %661 = vperm.xlu1 %2096, %v651_v53  }
 0x57a   : > { %v461_v57 = vsub.f32 %v405_v43, %v457_v55  ;;  %v1997_v43 = vsel %vm751_vm10, 1.0, %v2256_v4 }
 0x57c   : > { %2097 = vset.pattern.permute.xlu1 %v2262_v37 }
 0x57d   : > { %503 = vperm.xlu1 %2097, %v461_v57  }
 0x580   : > { %v2202_v58 = vpop.eup %2201 }
 0x581   : > { %634 = vperm.xlu0 %2095, %v2202_v58   ;;  %2099 = vset.pattern.permute.xlu1 %v2263_v62 }
 0x585   : > { %2098 = vset.pattern.permute.xlu0 %v2264_v22 }
 0x586   : > { %v555_v60 = vpop.permute.xlu1 %554 }
 0x587   : > { %v568_v61 = vmul.f32 %v2443_v29, %v555_v60 }
 0x589   : > { %v572_v63 = vsub.f32 %v516_v46, %v568_v61  ;;  %v1993_v46 = vsel %vm526_vm11, 1.0, %v2256_v4  ;;  %v1998_v61 = vsel %vm807_vm12, 1.0, %v2256_v4 }
 0x58a   : > { %v538_v47 = vsub.f32 %v2426_v12, %v1993_v46 }
 0x58b   : > { %610 = vperm.xlu0 %2098, %v572_v63  }
 0x58f   : > { %2101 = vset.pattern.permute.xlu0 %v2266_v35 }
 0x5f7   : > { %v662_v48 = vpop.permute.xlu1 %661 }
 0x5fc   : > { %v504_v1 = vpop.permute.xlu1 %503 }
 0x5fd   : > { %v513_v5 = vmul.f32 %v2423_v7, %v504_v1 }
 0x5ff   : > { %v517_v37 = vsub.f32 %v461_v57, %v513_v5 }
 0x600   : > { %v635_v6 = vpop.permute.xlu0 %634 }
 0x601   : > { %v637_v39 = vmul.f32 %v635_v6, %v627_v51  ;;  %559 = vperm.xlu1 %2099, %v517_v37  }
 0x603   : > { %v2468_v8 = vrot.slane %v637_v39, %v2336_v21 }
 0x605   : > { %v679_v14 = vmul.f32 %v2468_v8, %v662_v48  ;;  %2100 = vset.pattern.permute.xlu1 %v2266_v35 }
 0x607   : > { %v683_v52 = vsub.f32 %v627_v51, %v679_v14 }
 0x609   : > { %v707_v0 = vsub.f32 %v683_v52, %v1996_v15  ;;  %2203 = vrcp.f32 %v683_v52 }
 0x60a   : > { %v611_v7 = vpop.permute.xlu0 %610 }
 0x60b   : > { %717 = vperm.xlu0 %2101, %v707_v0   ;;  %v624_v17 = vmul.f32 %v2455_v11, %v611_v7 }
 0x60d   : > { %v628_v18 = vsub.f32 %v572_v63, %v624_v17 }
 0x613   : > { %v2204_v16 = vpop.eup %2203 }
 0x614   : > { %690 = vperm.xlu1 %2100, %v2204_v16  }
 0x618   : > { %2102 = vset.pattern.permute.xlu1 %v2265_v41 }
 0x619   : > { %666 = vperm.xlu1 %2102, %v628_v18  }
 0x61d   : > { %2103 = vset.pattern.permute.xlu1 %v2264_v22 }
 0x680   : > { %v560_v23 = vpop.permute.xlu1 %559 }
 0x681   : > { %v569_v26 = vmul.f32 %v2443_v29, %v560_v23 }
 0x683   : > { %v573_v9 = vsub.f32 %v517_v37, %v569_v26 }
 0x685   : > { %615 = vperm.xlu1 %2103, %v573_v9  }
 0x689   : > { %2104 = vset.pattern.permute.xlu1 %v2267_v27 }
 0x68a   : > { %v718_v32 = vpop.permute.xlu0 %717 }
 0x693   : > { %v691_v28 = vpop.permute.xlu1 %690 }
 0x694   : > { %v693_v30 = vmul.f32 %v691_v28, %v683_v52  ;;  %v1999_v28 = vsel %vm863_vm13, 1.0, %v2256_v4 }
 0x696   : > { %v2480_v31 = vrot.slane %v693_v30, %v2350_v36 }
 0x698   : > { %v735_v33 = vmul.f32 %v2480_v31, %v718_v32  ;;  %v667_v34 = vpop.permute.xlu1 %666 }
 0x699   : > { %v680_v38 = vmul.f32 %v2468_v8, %v667_v34 }
 0x69a   : > { %v739_v40 = vsub.f32 %v683_v52, %v735_v33 }
 0x69b   : > { %v684_v42 = vsub.f32 %v628_v18, %v680_v38 }
 0x69c   : > { %2205 = vrcp.f32 %v739_v40  ;;  %v763_v44 = vsub.f32 %v739_v40, %v1997_v43  ;;  %v2270_v43 = vmov 14  }
 0x69d   : > { %722 = vperm.xlu0 %2101, %v684_v42  }
 0x6a1   : > { %2105 = vset.pattern.permute.xlu0 %v2267_v27 }
 0x6a2   : > { %773 = vperm.xlu0 %2105, %v763_v44  }
 0x6a6   : > { %v2206_v20 = vpop.eup %2205 }
 0x6a7   : > { %746 = vperm.xlu1 %2104, %v2206_v20  }
 0x6ab   : > { %2106 = vset.pattern.permute.xlu1 %v2263_v62 }
 0x6ac   : > { %544 = vperm.xlu1 %2106, %v538_v47  }
 0x6b0   : > { %2107 = vset.pattern.permute.xlu1 %v2265_v41 }
 0x704   : > { %v616_v24 = vpop.permute.xlu1 %615 }
 0x705   : > { %v625_v49 = vmul.f32 %v2455_v11, %v616_v24 }
 0x707   : > { %v629_v25 = vsub.f32 %v573_v9, %v625_v49 }
 0x709   : > { %671 = vperm.xlu1 %2107, %v629_v25  }
 0x70d   : > { %2108 = vset.pattern.permute.xlu1 %v2268_v50 }
 0x71c   : > { %v723_v51 = vpop.permute.xlu0 %722 }
 0x71d   : > { %v736_v53 = vmul.f32 %v2480_v31, %v723_v51 }
 0x71f   : > { %v740_v54 = vsub.f32 %v684_v42, %v736_v53 }
 0x721   : > { %778 = vperm.xlu0 %2105, %v740_v54   ;;  %v774_v58 = vpop.permute.xlu0 %773 }
 0x725   : > { %2109 = vset.pattern.permute.xlu0 %v2268_v50 }
 0x726   : > { %v747_v55 = vpop.permute.xlu1 %746 }
 0x727   : > { %v749_v62 = vmul.f32 %v747_v55, %v739_v40 }
 0x729   : > { %v2497_v57 = vrot.slane %v749_v62, %v2366_v56  ;;  %v2000_v62 = vsel %vm919_vm14, 1.0, %v2256_v4 }
 0x72b   : > { %v791_v60 = vmul.f32 %v2497_v57, %v774_v58  ;;  %v545_v1 = vpop.permute.xlu1 %544 }
 0x72c   : > { %v566_v37 = vmul.f32 %v2443_v29, %v545_v1  ;;  %v2269_v29 = vmov 13  }
 0x72d   : > { %v795_v63 = vsub.f32 %v739_v40, %v791_v60 }
 0x72e   : > { %v570_v6 = vsub.f32 %v2426_v12, %v566_v37  ;;  %v2271_v37 = vmov 15  }
 0x72f   : > { %v819_v48 = vsub.f32 %v795_v63, %v1998_v61  ;;  %2207 = vrcp.f32 %v795_v63 }
 0x731   : > { %829 = vperm.xlu0 %2109, %v819_v48  }
 0x739   : > { %v2208_v5 = vpop.eup %2207 }
 0x73a   : > { %802 = vperm.xlu1 %2108, %v2208_v5  }
 0x73e   : > { %2110 = vset.pattern.permute.xlu1 %v2264_v22 }
 0x73f   : > { %600 = vperm.xlu1 %2110, %v570_v6  }
 0x743   : > { %2111 = vset.pattern.permute.xlu1 %v2266_v35 }
 0x788   : > { %v672_v39 = vpop.permute.xlu1 %671 }
 0x789   : > { %v681_v14 = vmul.f32 %v2468_v8, %v672_v39 }
 0x78b   : > { %v685_v15 = vsub.f32 %v629_v25, %v681_v14 }
 0x78d   : > { %727 = vperm.xlu1 %2111, %v685_v15  }
 0x791   : > { %2112 = vset.pattern.permute.xlu1 %v2265_v41 }
 0x7a0   : > { %v779_v52 = vpop.permute.xlu0 %778 }
 0x7a1   : > { %v792_v0 = vmul.f32 %v2497_v57, %v779_v52 }
 0x7a3   : > { %v796_v7 = vsub.f32 %v740_v54, %v792_v0 }
 0x7a5   : > { %834 = vperm.xlu0 %2109, %v796_v7  }
 0x7a9   : > { %2113 = vset.pattern.permute.xlu0 %v2269_v29 }
 0x7b0   : > { %v830_v17 = vpop.permute.xlu0 %829 }
 0x7b9   : > { %v803_v12 = vpop.permute.xlu1 %802 }
 0x7ba   : > { %v805_v22 = vmul.f32 %v803_v12, %v795_v63 }
 0x7bc   : > { %v2511_v16 = vrot.slane %v805_v22, %v2385_v19 }
 0x7be   : > { %v847_v18 = vmul.f32 %v2511_v16, %v830_v17  ;;  %v601_v23 = vpop.permute.xlu1 %600 }
 0x7bf   : > { %v622_v26 = vmul.f32 %v2455_v11, %v601_v23 }
 0x7c0   : > { %v851_v41 = vsub.f32 %v795_v63, %v847_v18 }
 0x7c1   : > { %v626_v9 = vsub.f32 %v570_v6, %v622_v26 }
 0x7c2   : > { %2209 = vrcp.f32 %v851_v41  ;;  %v875_v30 = vsub.f32 %v851_v41, %v1999_v28 }
 0x7c3   : > { %656 = vperm.xlu1 %2112, %v626_v9  }
 0x7c7   : > { %2114 = vset.pattern.permute.xlu1 %v2269_v29 }
 0x7c8   : > { %885 = vperm.xlu1 %2114, %v875_v30  }
 0x7cc   : > { %v2210_v32 = vpop.eup %2209  ;;  %2115 = vset.pattern.permute.xlu1 %v2267_v27 }
 0x7cd   : > { %858 = vperm.xlu0 %2113, %v2210_v32  }
 0x80c   : > { %v728_v33 = vpop.permute.xlu1 %727 }
 0x80d   : > { %v737_v34 = vmul.f32 %v2480_v31, %v728_v33 }
 0x80f   : > { %v741_v11 = vsub.f32 %v685_v15, %v737_v34  ;;  %v2555_v34 = vadd.s32 16, %v2318_v3 }
 0x811   : > { %783 = vperm.xlu1 %2115, %v741_v11   ;;  %vm1032_vm15 = vcmp.eq.s32.totalorder %v2555_v34, 16  ;;  %vm1088_vm0 = vcmp.eq.s32.totalorder %v2555_v34, 17  ;;  %vm1144_vm2 = vcmp.eq.s32.totalorder %v2555_v34, 18  ;;  %vm1200_vm3 = vcmp.eq.s32.totalorder %v2555_v34, 19 }
 0x812   : > { %vm1256_vm4 = vcmp.eq.s32.totalorder %v2555_v34, 20  ;;  %vm1312_vm5 = vcmp.eq.s32.totalorder %v2555_v34, 21  ;;  %vm1368_vm6 = vcmp.eq.s32.totalorder %v2555_v34, 22  ;;  %vm1424_vm8 = vcmp.eq.s32.totalorder %v2555_v34, 23 }
 0x815   : > { %2116 = vset.pattern.permute.xlu1 %v2266_v35 }
 0x824   : > { %v835_v38 = vpop.permute.xlu0 %834 }
 0x825   : > { %v848_v40 = vmul.f32 %v2511_v16, %v835_v38 }
 0x827   : > { %v852_v42 = vsub.f32 %v796_v7, %v848_v40  ;;  %v2002_v40 = vsel %vm1032_vm15, 1.0, %v2256_v4 }
 0x829   : > { %890 = vperm.xlu0 %2113, %v852_v42  }
 0x82d   : > { %2117 = vset.pattern.permute.xlu0 %v2270_v43 }
 0x842   : > { %v657_v44 = vpop.permute.xlu1 %656 }
 0x843   : > { %v678_v20 = vmul.f32 %v2468_v8, %v657_v44 }
 0x845   : > { %v682_v46 = vsub.f32 %v626_v9, %v678_v20  ;;  %v2272_v9 = vmov 16  }
 0x847   : > { %712 = vperm.xlu1 %2116, %v682_v46   ;;  %v886_v35 = vpop.permute.xlu1 %885 }
 0x84b   : > { %2118 = vset.pattern.permute.xlu1 %v2268_v50 }
 0x84c   : > { %v859_v47 = vpop.permute.xlu0 %858 }
 0x84d   : > { %v861_v24 = vmul.f32 %v859_v47, %v851_v41 }
 0x84f   : > { %v2526_v49 = vrot.slane %v861_v24, %v2403_v45 }
 0x851   : > { %v903_v25 = vmul.f32 %v2526_v49, %v886_v35 }
 0x853   : > { %v907_v51 = vsub.f32 %v851_v41, %v903_v25 }
 0x855   : > { %2211 = vrcp.f32 %v907_v51  ;;  %v931_v58 = vsub.f32 %v907_v51, %v2000_v62  ;;  %v2003_v62 = vsel %vm1088_vm0, 1.0, %v2256_v4 }
 0x85f   : > { %v2212_v53 = vpop.eup %2211 }
 0x860   : > { %914 = vperm.xlu0 %2117, %v2212_v53  }
 0x890   : > { %v784_v54 = vpop.permute.xlu1 %783 }
 0x891   : > { %v793_v55 = vmul.f32 %v2497_v57, %v784_v54 }
 0x893   : > { %v797_v8 = vsub.f32 %v741_v11, %v793_v55 }
 0x895   : > { %839 = vperm.xlu1 %2118, %v797_v8  }
 0x899   : > { %2119 = vset.pattern.permute.xlu1 %v2270_v43 }
 0x89a   : > { %941 = vperm.xlu1 %2119, %v931_v58  }
 0x89e   : > { %2120 = vset.pattern.permute.xlu1 %v2267_v27 }
 0x8a8   : > { %v891_v60 = vpop.permute.xlu0 %890 }
 0x8a9   : > { %v904_v61 = vmul.f32 %v2526_v49, %v891_v60 }
 0x8ab   : > { %v908_v63 = vsub.f32 %v852_v42, %v904_v61 }
 0x8ad   : > { %946 = vperm.xlu0 %2117, %v908_v63  }
 0x8b1   : > { %2121 = vset.pattern.permute.xlu0 %v2269_v29 }
 0x8c6   : > { %v713_v48 = vpop.permute.xlu1 %712 }
 0x8c7   : > { %v734_v1 = vmul.f32 %v2480_v31, %v713_v48 }
 0x8c9   : > { %v738_v5 = vsub.f32 %v682_v46, %v734_v1  ;;  %v2273_v46 = vmov 17  }
 0x8cb   : > { %768 = vperm.xlu1 %2120, %v738_v5  }
 0x8cf   : > { %2122 = vset.pattern.permute.xlu1 %v2271_v37 }
 0x8df   : > { %v915_v6 = vpop.permute.xlu0 %914 }
 0x8e0   : > { %v917_v39 = vmul.f32 %v915_v6, %v907_v51 }
 0x8e2   : > { %v2540_v52 = vrot.slane %v917_v39, %v2420_v2 }
 0x914   : > { %v840_v14 = vpop.permute.xlu1 %839 }
 0x915   : > { %v849_v27 = vmul.f32 %v2511_v16, %v840_v14  ;;  %v2274_v14 = vmov 18  }
 0x917   : > { %v853_v15 = vsub.f32 %v797_v8, %v849_v27 }
 0x919   : > { %v942_v0 = vpop.permute.xlu1 %941  ;;  %895 = vperm.xlu0 %2121, %v853_v15  }
 0x91a   : > { %v959_v7 = vmul.f32 %v2540_v52, %v942_v0 }
 0x91c   : > { %v2543_v12 = vsub.f32 %v907_v51, %v959_v7 }
 0x91d   : > { %2123 = vset.pattern.permute.xlu0 %v2268_v50 }
 0x91e   : > { %2213 = vrcp.f32 %v2543_v12 }
 0x928   : > { %v2214_v31 = vpop.eup %2213 }
 0x929   : > { %970 = vperm.xlu1 %2122, %v2214_v31  }
 0x92c   : > { %v947_v22 = vpop.permute.xlu0 %946 }
 0x92d   : > { %v960_v17 = vmul.f32 %v2540_v52, %v947_v22 }
 0x92f   : > { %v964_v18 = vsub.f32 %v908_v63, %v960_v17  ;;  %v2001_v17 = vsel %vm975_vm1, 1.0, %v2256_v4 }
 0x931   : > { %1002 = vperm.xlu1 %2122, %v964_v18  }
 0x935   : > { %2124 = vset.pattern.permute.xlu1 %v2270_v43 }
 0x94a   : > { %v769_v23 = vpop.permute.xlu1 %768 }
 0x94b   : > { %v790_v26 = vmul.f32 %v2497_v57, %v769_v23  ;;  %v2004_v23 = vsel %vm1144_vm2, 1.0, %v2256_v4 }
 0x94d   : > { %v794_v41 = vsub.f32 %v738_v5, %v790_v26 }
 0x94f   : > { %824 = vperm.xlu0 %2123, %v794_v41  }
 0x953   : > { %2126 = vset.pattern.permute.xlu0 %v2272_v9 }
 0x998   : > { %v896_v50 = vpop.permute.xlu0 %895 }
 0x999   : > { %v905_v28 = vmul.f32 %v2526_v49, %v896_v50 }
 0x99b   : > { %v909_v30 = vsub.f32 %v853_v15, %v905_v28 }
 0x99d   : > { %951 = vperm.xlu1 %2124, %v909_v30  }
 0x9a1   : > { %2125 = vset.pattern.permute.xlu1 %v2272_v9 }
 0x9a8   : > { %v971_v32 = vpop.permute.xlu1 %970 }
 0x9a9   : > { %v973_v33 = vmul.f32 %v971_v32, %v2543_v12 }
 0x9ab   : > { %v2558_v57 = vrot.slane %v973_v33, %v2436_v13 }
 0x9b0   : > { %v1003_v11 = vpop.permute.xlu1 %1002 }
 0x9b1   : > { %v1016_v38 = vmul.f32 %v2558_v57, %v1003_v11 }
 0x9b3   : > { %v1020_v42 = vsub.f32 %v964_v18, %v1016_v38  ;;  %v987_v18 = vsub.f32 %v2543_v12, %v2001_v17 }
 0x9b5   : > { %2215 = vrcp.f32 %v1020_v42  ;;  %v1044_v44 = vsub.f32 %v1020_v42, %v2002_v40  ;;  %v2275_v40 = vmov 19  }
 0x9b7   : > { %1058 = vperm.xlu0 %2126, %v1044_v44  }
 0x9bb   : > { %2129 = vset.pattern.permute.xlu0 %v2273_v46 }
 0x9bf   : > { %v2216_v20 = vpop.eup %2215 }
 0x9c0   : > { %1026 = vperm.xlu1 %2125, %v2216_v20  }
 0x9c4   : > { %2127 = vset.pattern.permute.xlu1 %v2269_v29 }
 0x9ce   : > { %v825_v47 = vpop.permute.xlu0 %824 }
 0x9cf   : > { %v846_v24 = vmul.f32 %v2511_v16, %v825_v47 }
 0x9d1   : > { %v850_v35 = vsub.f32 %v794_v41, %v846_v24 }
 0x9d3   : > { %880 = vperm.xlu1 %2127, %v850_v35  }
 0x9d7   : > { %2128 = vset.pattern.permute.xlu1 %v2271_v37 }
 0xa1c   : > { %v952_v25 = vpop.permute.xlu1 %951 }
 0xa1d   : > { %v961_v51 = vmul.f32 %v2540_v52, %v952_v25 }
 0xa1f   : > { %v965_v53 = vsub.f32 %v909_v30, %v961_v51  ;;  %v2005_v51 = vsel %vm1200_vm3, 1.0, %v2256_v4 }
 0xa21   : > { %1007 = vperm.xlu1 %2128, %v965_v53  }
 0xa25   : > { %2130 = vset.pattern.permute.xlu1 %v2273_v46 }
 0xa36   : > { %v1059_v8 = vpop.permute.xlu0 %1058 }
 0xa3f   : > { %v1027_v54 = vpop.permute.xlu1 %1026 }
 0xa40   : > { %v1029_v55 = vmul.f32 %v1027_v54, %v1020_v42 }
 0xa42   : > { %v2570_v29 = vrot.slane %v1029_v55, %v2325_v10 }
 0xa44   : > { %v1072_v16 = vmul.f32 %v2570_v29, %v1059_v8 }
 0xa46   : > { %v1076_v58 = vsub.f32 %v1020_v42, %v1072_v16 }
 0xa48   : > { %2217 = vrcp.f32 %v1076_v58  ;;  %v1100_v60 = vsub.f32 %v1076_v58, %v2003_v62 }
 0xa4a   : > { %1114 = vperm.xlu1 %2130, %v1100_v60   ;;  %v2276_v60 = vmov 20  }
 0xa4e   : > { %2131 = vset.pattern.permute.xlu1 %v2270_v43 }
 0xa52   : > { %v2218_v61 = vpop.eup %2217  ;;  %v881_v63 = vpop.permute.xlu1 %880 }
 0xa53   : > { %v902_v48 = vmul.f32 %v2526_v49, %v881_v63  ;;  %1082 = vperm.xlu0 %2129, %v2218_v61  }
 0xa55   : > { %v906_v1 = vsub.f32 %v850_v35, %v902_v48 }
 0xa57   : > { %936 = vperm.xlu1 %2131, %v906_v1   ;;  %2132 = vset.pattern.permute.xlu0 %v2272_v9 }
 0xa5b   : > { %2133 = vset.pattern.permute.xlu1 %v2271_v37 }
 0xaa0   : > { %v1008_v5 = vpop.permute.xlu1 %1007 }
 0xaa1   : > { %v1017_v6 = vmul.f32 %v2558_v57, %v1008_v5 }
 0xaa3   : > { %v1021_v39 = vsub.f32 %v965_v53, %v1017_v6 }
 0xaa5   : > { %1063 = vperm.xlu0 %2132, %v1021_v39  }
 0xaa9   : > { %2134 = vset.pattern.permute.xlu0 %v2274_v14 }
 0xac9   : > { %v1115_v43 = vpop.permute.xlu1 %1114 }
 0xad2   : > { %v1083_v27 = vpop.permute.xlu0 %1082 }
 0xad3   : > { %v1085_v15 = vmul.f32 %v1083_v27, %v1076_v58 }
 0xad5   : > { %v2582_v49 = vrot.slane %v1085_v15, %v2336_v21 }
 0xad6   : > { %v937_v0 = vpop.permute.xlu1 %936 }
 0xad7   : > { %v1128_v7 = vmul.f32 %v2582_v49, %v1115_v43  ;;  %v958_v31 = vmul.f32 %v2540_v52, %v937_v0 }
 0xad9   : > { %v1132_v37 = vsub.f32 %v1076_v58, %v1128_v7  ;;  %v962_v22 = vsub.f32 %v906_v1, %v958_v31 }
 0xadb   : > { %2219 = vrcp.f32 %v1132_v37  ;;  %992 = vperm.xlu1 %2133, %v962_v22   ;;  %v1156_v26 = vsub.f32 %v1132_v37, %v2004_v23 }
 0xadf   : > { %997 = vperm.xlu1 %2133, %v987_v18   ;;  %v2277_v18 = vmov 21  }
 0xae3   : > { %2135 = vset.pattern.permute.xlu1 %v2274_v14 }
 0xae4   : > { %1170 = vperm.xlu1 %2135, %v1156_v26  }
 0xae5   : > { %v2220_v52 = vpop.eup %2219 }
 0xae6   : > { %1138 = vperm.xlu0 %2134, %v2220_v52  }
 0xae8   : > { %2136 = vset.pattern.permute.xlu1 %v2273_v46 }
 0xaea   : > { %2137 = vset.pattern.permute.xlu0 %v2272_v9 }
 0xb24   : > { %v1064_v59 = vpop.permute.xlu0 %1063 }
 0xb25   : > { %v1073_v41 = vmul.f32 %v2570_v29, %v1064_v59 }
 0xb27   : > { %v1077_v50 = vsub.f32 %v1021_v39, %v1073_v41  ;;  %v2006_v39 = vsel %vm1256_vm4, 1.0, %v2256_v4 }
 0xb29   : > { %1119 = vperm.xlu1 %2136, %v1077_v50  }
 0xb2d   : > { %2138 = vset.pattern.permute.xlu1 %v2272_v9 }
 0xb5a   : > { %v993_v28 = vpop.permute.xlu1 %992 }
 0xb5b   : > { %v1014_v30 = vmul.f32 %v2558_v57, %v993_v28 }
 0xb5d   : > { %v1018_v32 = vsub.f32 %v962_v22, %v1014_v30 }
 0xb5e   : > { %v998_v33 = vpop.permute.xlu1 %997 }
 0xb5f   : > { %v1015_v11 = vmul.f32 %v2558_v57, %v998_v33  ;;  %1048 = vperm.xlu0 %2137, %v1018_v32  }
 0xb61   : > { %v1019_v38 = vsub.f32 %v2543_v12, %v1015_v11 }
 0xb63   : > { %1053 = vperm.xlu1 %2138, %v1019_v38   ;;  %2140 = vset.pattern.permute.xlu0 %v2275_v40  ;;  %v1171_v20 = vpop.permute.xlu1 %1170 }
 0xb65   : > { %v1139_v42 = vpop.permute.xlu0 %1138 }
 0xb66   : > { %v1141_v44 = vmul.f32 %v1139_v42, %v1132_v37 }
 0xb67   : > { %2139 = vset.pattern.permute.xlu1 %v2274_v14 }
 0xb68   : > { %v2602_v9 = vrot.slane %v1141_v44, %v2350_v36 }
 0xb6a   : > { %v1184_v47 = vmul.f32 %v2602_v9, %v1171_v20 }
 0xb6c   : > { %v1188_v24 = vsub.f32 %v1132_v37, %v1184_v47 }
 0xb6e   : > { %2221 = vrcp.f32 %v1188_v24  ;;  %v1212_v53 = vsub.f32 %v1188_v24, %v2005_v51 }
 0xb78   : > { %v2222_v57 = vpop.eup %2221 }
 0xb79   : > { %1194 = vperm.xlu0 %2140, %v2222_v57  }
 0xb7d   : > { %2143 = vset.pattern.permute.xlu0 %v2273_v46 }
 0xba8   : > { %v1120_v12 = vpop.permute.xlu1 %1119 }
 0xba9   : > { %v1129_v35 = vmul.f32 %v2582_v49, %v1120_v12 }
 0xbab   : > { %v1133_v25 = vsub.f32 %v1077_v50, %v1129_v35 }
 0xbad   : > { %1175 = vperm.xlu1 %2139, %v1133_v25  }
 0xbb1   : > { %2141 = vset.pattern.permute.xlu1 %v2275_v40 }
 0xbb2   : > { %1226 = vperm.xlu1 %2141, %v1212_v53  }
 0xbb6   : > { %2142 = vset.pattern.permute.xlu1 %v2273_v46 }
 0xbde   : > { %v1049_v54 = vpop.permute.xlu0 %1048 }
 0xbdf   : > { %v1070_v55 = vmul.f32 %v2570_v29, %v1049_v54 }
 0xbe1   : > { %v1074_v8 = vsub.f32 %v1018_v32, %v1070_v55 }
 0xbe2   : > { %v1054_v16 = vpop.permute.xlu1 %1053 }
 0xbe3   : > { %v1071_v62 = vmul.f32 %v2570_v29, %v1054_v16  ;;  %1104 = vperm.xlu1 %2142, %v1074_v8  }
 0xbe5   : > { %v1075_v58 = vsub.f32 %v1019_v38, %v1071_v62 }
 0xbe7   : > { %1109 = vperm.xlu0 %2143, %v1075_v58   ;;  %2144 = vset.pattern.permute.xlu1 %v2275_v40 }
 0xbeb   : > { %2146 = vset.pattern.permute.xlu0 %v2276_v60 }
 0xbf8   : > { %v1195_v61 = vpop.permute.xlu0 %1194 }
 0xbf9   : > { %v1197_v63 = vmul.f32 %v1195_v61, %v1188_v24  ;;  %v2278_v61 = vmov 22  }
 0xbfb   : > { %v2616_v5 = vrot.slane %v1197_v63, %v2366_v56  ;;  %v2008_v63 = vsel %vm1368_vm6, 1.0, %v2256_v4 }
 0xc2c   : > { %v1176_v48 = vpop.permute.xlu1 %1175 }
 0xc2d   : > { %v1185_v1 = vmul.f32 %v2602_v9, %v1176_v48 }
 0xc2f   : > { %v1189_v46 = vsub.f32 %v1133_v25, %v1185_v1 }
 0xc31   : > { %v1227_v6 = vpop.permute.xlu1 %1226  ;;  %1231 = vperm.xlu1 %2144, %v1189_v46  }
 0xc32   : > { %v1240_v29 = vmul.f32 %v2616_v5, %v1227_v6 }
 0xc34   : > { %v1244_v43 = vsub.f32 %v1188_v24, %v1240_v29 }
 0xc35   : > { %2145 = vset.pattern.permute.xlu1 %v2276_v60 }
 0xc36   : > { %2223 = vrcp.f32 %v1244_v43  ;;  %v1268_v27 = vsub.f32 %v1244_v43, %v2006_v39 }
 0xc38   : > { %1282 = vperm.xlu0 %2146, %v1268_v27  }
 0xc40   : > { %v2224_v15 = vpop.eup %2223 }
 0xc41   : > { %1250 = vperm.xlu1 %2145, %v2224_v15  }
 0xc45   : > { %2147 = vset.pattern.permute.xlu1 %v2274_v14 }
 0xc62   : > { %v1105_v0 = vpop.permute.xlu1 %1104 }
 0xc63   : > { %v1126_v7 = vmul.f32 %v2582_v49, %v1105_v0 }
 0xc65   : > { %v1130_v31 = vsub.f32 %v1074_v8, %v1126_v7 }
 0xc66   : > { %v1110_v37 = vpop.permute.xlu0 %1109 }
 0xc67   : > { %v1127_v22 = vmul.f32 %v2582_v49, %v1110_v37  ;;  %1160 = vperm.xlu1 %2147, %v1130_v31   ;;  %v2007_v49 = vsel %vm1312_vm5, 1.0, %v2256_v4 }
 0xc69   : > { %v1131_v17 = vsub.f32 %v1075_v58, %v1127_v22 }
 0xc6b   : > { %1165 = vperm.xlu1 %2147, %v1131_v17  }
 0xc6f   : > { %2148 = vset.pattern.permute.xlu1 %v2277_v18 }
 0xcb0   : > { %v1232_v23 = vpop.permute.xlu1 %1231 }
 0xcb1   : > { %v1241_v26 = vmul.f32 %v2616_v5, %v1232_v23 }
 0xcb3   : > { %v1245_v52 = vsub.f32 %v1189_v46, %v1241_v26 }
 0xcb5   : > { %1287 = vperm.xlu0 %2146, %v1245_v52  }
 0xcb7   : > { %v1283_v50 = vpop.permute.xlu0 %1282 }
 0xcb9   : > { %2149 = vset.pattern.permute.xlu0 %v2277_v18 }
 0xcc0   : > { %v1251_v59 = vpop.permute.xlu1 %1250 }
 0xcc1   : > { %v1253_v14 = vmul.f32 %v1251_v59, %v1244_v43 }
 0xcc3   : > { %v1293_v41 = vrot.slane %v1253_v14, %v2385_v19 }
 0xcc5   : > { %v1296_v28 = vmul.f32 %v1293_v41, %v1283_v50 }
 0xcc7   : > { %v1300_v30 = vsub.f32 %v1244_v43, %v1296_v28 }
 0xcc9   : > { %v1324_v32 = vsub.f32 %v1300_v30, %v2007_v49  ;;  %2225 = vrcp.f32 %v1300_v30 }
 0xccb   : > { %1338 = vperm.xlu0 %2149, %v1324_v32   ;;  %v2280_v32 = vmov 24  }
 0xcd3   : > { %v2226_v33 = vpop.eup %2225 }
 0xcd4   : > { %1306 = vperm.xlu1 %2148, %v2226_v33  }
 0xcd8   : > { %2150 = vset.pattern.permute.xlu1 %v2275_v40 }
 0xce6   : > { %v1161_v11 = vpop.permute.xlu1 %1160 }
 0xce7   : > { %v1182_v38 = vmul.f32 %v2602_v9, %v1161_v11 }
 0xce9   : > { %v1186_v42 = vsub.f32 %v1130_v31, %v1182_v38 }
 0xcea   : > { %v1166_v44 = vpop.permute.xlu1 %1165 }
 0xceb   : > { %v1183_v20 = vmul.f32 %v2602_v9, %v1166_v44  ;;  %1216 = vperm.xlu1 %2150, %v1186_v42  }
 0xced   : > { %v1187_v47 = vsub.f32 %v1131_v17, %v1183_v20 }
 0xcef   : > { %1221 = vperm.xlu1 %2150, %v1187_v47  }
 0xcf3   : > { %2152 = vset.pattern.permute.xlu1 %v2276_v60 }
 0xd34   : > { %v1288_v24 = vpop.permute.xlu0 %1287 }
 0xd35   : > { %v1297_v57 = vmul.f32 %v1293_v41, %v1288_v24 }
 0xd37   : > { %v1301_v12 = vsub.f32 %v1245_v52, %v1297_v57 }
 0xd39   : > { %1343 = vperm.xlu0 %2149, %v1301_v12  }
 0xd3d   : > { %2151 = vset.pattern.permute.xlu0 %v2276_v60 }
 0xd4a   : > { %v1339_v51 = vpop.permute.xlu0 %1338 }
 0xd53   : > { %v1307_v35 = vpop.permute.xlu1 %1306 }
 0xd54   : > { %v1309_v25 = vmul.f32 %v1307_v35, %v1300_v30 }
 0xd56   : > { %v1349_v40 = vrot.slane %v1309_v25, %v2403_v45 }
 0xd58   : > { %v1352_v53 = vmul.f32 %v1349_v40, %v1339_v51 }
 0xd5a   : > { %v1356_v54 = vsub.f32 %v1300_v30, %v1352_v53 }
 0xd5c   : > { %2227 = vrcp.f32 %v1356_v54  ;;  %v1380_v48 = vsub.f32 %v1356_v54, %v2008_v63 }
 0xd66   : > { %v2228_v60 = vpop.eup %2227 }
 0xd6a   : > { %v1217_v55 = vpop.permute.xlu1 %1216 }
 0xd6b   : > { %v1238_v8 = vmul.f32 %v2616_v5, %v1217_v55  ;;  %v2281_v55 = vmov 25  }
 0xd6d   : > { %v1242_v9 = vsub.f32 %v1186_v42, %v1238_v8 }
 0xd6e   : > { %v1222_v16 = vpop.permute.xlu1 %1221 }
 0xd6f   : > { %v1239_v62 = vmul.f32 %v2616_v5, %v1222_v16  ;;  %1272 = vperm.xlu0 %2151, %v1242_v9   ;;  %v2279_v5 = vmov 23  }
 0xd71   : > { %v1243_v58 = vsub.f32 %v1187_v47, %v1239_v62  ;;  %v2643_v47 = vadd.s32 24, %v2318_v3  ;;  %v2009_v3 = vsel %vm1424_vm8, 1.0, %v2256_v4 }
 0xd73   : > { %1277 = vperm.xlu1 %2152, %v1243_v58   ;;  %2154 = vset.pattern.permute.xlu0 %v2278_v61  ;;  %vm1481_vm7 = vcmp.eq.s32.totalorder %v2643_v47, 24  ;;  %vm1537_vm9 = vcmp.eq.s32.totalorder %v2643_v47, 25  ;;  %vm1593_vm10 = vcmp.eq.s32.totalorder %v2643_v47, 26  ;;  %vm1649_vm11 = vcmp.eq.s32.totalorder %v2643_v47, 27 }
 0xd74   : > { %v2010_v57 = vsel %vm1481_vm7, 1.0, %v2256_v4  ;;  %v2011_v34 = vsel %vm1537_vm9, 1.0, %v2256_v4  ;;  %vm1705_vm12 = vcmp.eq.s32.totalorder %v2643_v47, 28  ;;  %vm1761_vm13 = vcmp.eq.s32.totalorder %v2643_v47, 29 }
 0xd75   : > { %vm1817_vm14 = vcmp.eq.s32.totalorder %v2643_v47, 30  ;;  %vm1873_vm15 = vcmp.eq.s32.totalorder %v2643_v47, 31 }
 0xd77   : > { %2153 = vset.pattern.permute.xlu1 %v2278_v61 }
 0xd78   : > { %1362 = vperm.xlu1 %2153, %v2228_v60  }
 0xd7c   : > { %1394 = vperm.xlu1 %2153, %v1380_v48  }
 0xd80   : > { %2155 = vset.pattern.permute.xlu1 %v2277_v18 }
 0xdb8   : > { %v1344_v1 = vpop.permute.xlu0 %1343 }
 0xdb9   : > { %v1353_v46 = vmul.f32 %v1349_v40, %v1344_v1 }
 0xdbb   : > { %v1357_v6 = vsub.f32 %v1301_v12, %v1353_v46 }
 0xdbd   : > { %1399 = vperm.xlu0 %2154, %v1357_v6  }
 0xdc1   : > { %2156 = vset.pattern.permute.xlu0 %v2279_v5 }
 0xdee   : > { %v1273_v29 = vpop.permute.xlu0 %1272 }
 0xdef   : > { %v1294_v39 = vmul.f32 %v1293_v41, %v1273_v29 }
 0xdf1   : > { %v1298_v43 = vsub.f32 %v1242_v9, %v1294_v39 }
 0xdf2   : > { %v1278_v27 = vpop.permute.xlu1 %1277 }
 0xdf3   : > { %v1295_v15 = vmul.f32 %v1293_v41, %v1278_v27  ;;  %1328 = vperm.xlu1 %2155, %v1298_v43  }
 0xdf5   : > { %v1299_v0 = vsub.f32 %v1243_v58, %v1295_v15  ;;  %v2282_v15 = vmov 26  }
 0xdf7   : > { %v1363_v7 = vpop.permute.xlu1 %1362  ;;  %1333 = vperm.xlu1 %2155, %v1299_v0  }
 0xdf8   : > { %v1365_v31 = vmul.f32 %v1363_v7, %v1356_v54 }
 0xdfa   : > { %v1405_v37 = vrot.slane %v1365_v31, %v2420_v2 }
 0xdfb   : > { %v1395_v22 = vpop.permute.xlu1 %1394  ;;  %2157 = vset.pattern.permute.xlu1 %v2279_v5 }
 0xdfc   : > { %v1408_v17 = vmul.f32 %v1405_v37, %v1395_v22 }
 0xdfe   : > { %v2637_v18 = vsub.f32 %v1356_v54, %v1408_v17  ;;  %v2012_v17 = vsel %vm1593_vm10, 1.0, %v2256_v4 }
 0xe00   : > { %2229 = vrcp.f32 %v2637_v18  ;;  %v1436_v8 = vsub.f32 %v2637_v18, %v2009_v3  ;;  %v2283_v3 = vmov 27  }
 0xe0a   : > { %v2230_v23 = vpop.eup %2229 }
 0xe0b   : > { %1418 = vperm.xlu0 %2156, %v2230_v23  }
 0xe0f   : > { %2159 = vset.pattern.permute.xlu0 %v2278_v61 }
 0xe3c   : > { %v1400_v26 = vpop.permute.xlu0 %1399 }
 0xe3d   : > { %v1409_v52 = vmul.f32 %v1405_v37, %v1400_v26 }
 0xe3f   : > { %v1413_v59 = vsub.f32 %v1357_v6, %v1409_v52 }
 0xe41   : > { %1455 = vperm.xlu1 %2157, %v1413_v59  }
 0xe45   : > { %2158 = vset.pattern.permute.xlu1 %v2278_v61 }
 0xe72   : > { %v1329_v14 = vpop.permute.xlu1 %1328 }
 0xe73   : > { %v1350_v41 = vmul.f32 %v1349_v40, %v1329_v14 }
 0xe75   : > { %v1354_v50 = vsub.f32 %v1298_v43, %v1350_v41 }
 0xe76   : > { %v1334_v28 = vpop.permute.xlu1 %1333 }
 0xe77   : > { %v1351_v49 = vmul.f32 %v1349_v40, %v1334_v28  ;;  %1384 = vperm.xlu1 %2158, %v1354_v50  }
 0xe79   : > { %v1355_v30 = vsub.f32 %v1299_v0, %v1351_v49 }
 0xe7b   : > { %1389 = vperm.xlu0 %2159, %v1355_v30   ;;  %2160 = vset.pattern.permute.xlu1 %v2280_v32 }
 0xe7f   : > { %2161 = vset.pattern.permute.xlu0 %v2279_v5 }
 0xe8a   : > { %v1419_v33 = vpop.permute.xlu0 %1418 }
 0xe8b   : > { %v1421_v11 = vmul.f32 %v1419_v33, %v2637_v18 }
 0xe8d   : > { %v1461_v38 = vrot.slane %v1421_v11, %v2436_v13 }
 0xec0   : > { %v1456_v42 = vpop.permute.xlu1 %1455 }
 0xec1   : > { %v1465_v44 = vmul.f32 %v1461_v38, %v1456_v42 }
 0xec3   : > { %v1469_v20 = vsub.f32 %v1413_v59, %v1465_v44 }
 0xec5   : > { %2231 = vrcp.f32 %v1469_v20  ;;  %v1493_v12 = vsub.f32 %v1469_v20, %v2010_v57 }
 0xecf   : > { %v2232_v24 = vpop.eup %2231 }
 0xed0   : > { %1474 = vperm.xlu1 %2160, %v2232_v24  }
 0xed4   : > { %1511 = vperm.xlu1 %2160, %v1493_v12  }
 0xed8   : > { %2162 = vset.pattern.permute.xlu1 %v2279_v5 }
 0xef6   : > { %v1385_v35 = vpop.permute.xlu1 %1384 }
 0xef7   : > { %v1406_v25 = vmul.f32 %v1405_v37, %v1385_v35 }
 0xef9   : > { %v1410_v40 = vsub.f32 %v1354_v50, %v1406_v25 }
 0xefa   : > { %v1390_v51 = vpop.permute.xlu0 %1389 }
 0xefb   : > { %v1407_v53 = vmul.f32 %v1405_v37, %v1390_v51  ;;  %1440 = vperm.xlu0 %2161, %v1410_v40  }
 0xefd   : > { %v1411_v54 = vsub.f32 %v1355_v30, %v1407_v53 }
 0xeff   : > { %1445 = vperm.xlu1 %2162, %v1411_v54   ;;  %2163 = vset.pattern.permute.xlu0 %v2281_v55 }
 0xf03   : > { %1450 = vperm.xlu1 %2162, %v1436_v8  }
 0xf07   : > { %2164 = vset.pattern.permute.xlu1 %v2281_v55 }
 0xf4f   : > { %v1475_v9 = vpop.permute.xlu1 %1474 }
 0xf50   : > { %v1477_v16 = vmul.f32 %v1475_v9, %v1469_v20 }
 0xf52   : > { %v1517_v62 = vrot.slane %v1477_v16, %v2325_v10 }
 0xf53   : > { %v1512_v58 = vpop.permute.xlu1 %1511 }
 0xf54   : > { %v1521_v61 = vmul.f32 %v1517_v62, %v1512_v58 }
 0xf56   : > { %v1525_v60 = vsub.f32 %v1469_v20, %v1521_v61 }
 0xf58   : > { %2233 = vrcp.f32 %v1525_v60  ;;  %v1549_v63 = vsub.f32 %v1525_v60, %v2011_v34 }
 0xf5a   : > { %1567 = vperm.xlu1 %2164, %v1549_v63  }
 0xf5e   : > { %2165 = vset.pattern.permute.xlu1 %v2280_v32 }
 0xf62   : > { %v2234_v48 = vpop.eup %2233 }
 0xf63   : > { %1530 = vperm.xlu0 %2163, %v2234_v48   ;;  %v2284_v48 = vmov 28  }
 0xf67   : > { %2166 = vset.pattern.permute.xlu0 %v2280_v32 }
 0xf7a   : > { %v1441_v1 = vpop.permute.xlu0 %1440 }
 0xf7b   : > { %v1462_v46 = vmul.f32 %v1461_v38, %v1441_v1 }
 0xf7d   : > { %v1466_v6 = vsub.f32 %v1410_v40, %v1462_v46 }
 0xf7e   : > { %v1446_v5 = vpop.permute.xlu1 %1445 }
 0xf7f   : > { %v1463_v29 = vmul.f32 %v1461_v38, %v1446_v5  ;;  %1496 = vperm.xlu1 %2165, %v1466_v6  }
 0xf81   : > { %v1467_v10 = vsub.f32 %v1411_v54, %v1463_v29 }
 0xf82   : > { %v1451_v39 = vpop.permute.xlu1 %1450 }
 0xf83   : > { %v1464_v43 = vmul.f32 %v1461_v38, %v1451_v39  ;;  %1501 = vperm.xlu0 %2166, %v1467_v10  }
 0xf85   : > { %v1468_v27 = vsub.f32 %v2637_v18, %v1464_v43 }
 0xf87   : > { %1506 = vperm.xlu1 %2165, %v1468_v27   ;;  %2168 = vset.pattern.permute.xlu0 %v2282_v15 }
 0xf8b   : > { %2167 = vset.pattern.permute.xlu1 %v2282_v15 }
 0xfd9   : > { %v1568_v37 = vpop.permute.xlu1 %1567 }
 0xfe2   : > { %v1531_v0 = vpop.permute.xlu0 %1530 }
 0xfe3   : > { %v1533_v7 = vmul.f32 %v1531_v0, %v1525_v60 }
 0xfe5   : > { %v1573_v31 = vrot.slane %v1533_v7, %v2336_v21 }
 0xfe7   : > { %v1577_v22 = vmul.f32 %v1573_v31, %v1568_v37 }
 0xfe9   : > { %v1581_v23 = vsub.f32 %v1525_v60, %v1577_v22 }
 0xfeb   : > { %v1605_v26 = vsub.f32 %v1581_v23, %v2012_v17  ;;  %2235 = vrcp.f32 %v1581_v23 }
 0xfed   : > { %1623 = vperm.xlu0 %2168, %v1605_v26   ;;  %v2285_v26 = vmov 29  }
 0xff1   : > { %2170 = vset.pattern.permute.xlu0 %v2281_v55 }
 0xff5   : > { %v2236_v18 = vpop.eup %2235 }
 0xff6   : > { %1586 = vperm.xlu1 %2167, %v2236_v18  }
 0xffa   : > { %2169 = vset.pattern.permute.xlu1 %v2281_v55 }
 0xffe   : > { %v1497_v52 = vpop.permute.xlu1 %1496 }
 0xfff   : > { %v1518_v59 = vmul.f32 %v1517_v62, %v1497_v52 }
0x1001   : > { %v1522_v14 = vsub.f32 %v1466_v6, %v1518_v59 }
0x1002   : > { %v1502_v41 = vpop.permute.xlu0 %1501 }
0x1003   : > { %v1519_v50 = vmul.f32 %v1517_v62, %v1502_v41  ;;  %1552 = vperm.xlu1 %2169, %v1522_v14  }
0x1005   : > { %v1523_v21 = vsub.f32 %v1467_v10, %v1519_v50  ;;  %v2014_v10 = vsel %vm1705_vm12, 1.0, %v2256_v4  ;;  %v2015_v50 = vsel %vm1761_vm13, 1.0, %v2256_v4 }
0x1006   : > { %v1507_v28 = vpop.permute.xlu1 %1506 }
0x1007   : > { %v1520_v49 = vmul.f32 %v1517_v62, %v1507_v28  ;;  %1557 = vperm.xlu1 %2169, %v1523_v21  }
0x1009   : > { %v1524_v30 = vsub.f32 %v1468_v27, %v1520_v49 }
0x100b   : > { %1562 = vperm.xlu0 %2170, %v1524_v30   ;;  %2171 = vset.pattern.permute.xlu1 %v2282_v15 }
0x100f   : > { %2172 = vset.pattern.permute.xlu0 %v2282_v15 }
0x106c   : > { %v1624_v38 = vpop.permute.xlu0 %1623 }
0x1075   : > { %v1587_v32 = vpop.permute.xlu1 %1586 }
0x1076   : > { %v1589_v33 = vmul.f32 %v1587_v32, %v1581_v23 }
0x1078   : > { %v1629_v11 = vrot.slane %v1589_v33, %v2350_v36  ;;  %v2013_v36 = vsel %vm1649_vm11, 1.0, %v2256_v4 }
0x107a   : > { %v1633_v42 = vmul.f32 %v1629_v11, %v1624_v38 }
0x107c   : > { %v1637_v44 = vsub.f32 %v1581_v23, %v1633_v42 }
0x107e   : > { %2237 = vrcp.f32 %v1637_v44  ;;  %v1661_v55 = vsub.f32 %v1637_v44, %v2013_v36 }
0x1082   : > { %v1553_v20 = vpop.permute.xlu1 %1552 }
0x1083   : > { %v1574_v24 = vmul.f32 %v1573_v31, %v1553_v20 }
0x1085   : > { %v1578_v57 = vsub.f32 %v1522_v14, %v1574_v24  ;;  %v2286_v24 = vmov 30  }
0x1086   : > { %v1558_v12 = vpop.permute.xlu1 %1557 }
0x1087   : > { %v1575_v35 = vmul.f32 %v1573_v31, %v1558_v12  ;;  %1608 = vperm.xlu1 %2171, %v1578_v57  }
0x1088   : > { %v2238_v54 = vpop.eup %2237 }
0x1089   : > { %v1579_v25 = vsub.f32 %v1523_v21, %v1575_v35 }
0x108a   : > { %v1563_v40 = vpop.permute.xlu0 %1562 }
0x108b   : > { %v1576_v51 = vmul.f32 %v1573_v31, %v1563_v40  ;;  %1613 = vperm.xlu1 %2171, %v1579_v25  }
0x108d   : > { %v1580_v53 = vsub.f32 %v1524_v30, %v1576_v51  ;;  %v2016_v51 = vsel %vm1817_vm14, 1.0, %v2256_v4 }
0x108f   : > { %2173 = vset.pattern.permute.xlu1 %v2283_v3  ;;  %1618 = vperm.xlu0 %2172, %v1580_v53  }
0x1090   : > { %1642 = vperm.xlu1 %2173, %v2238_v54  }
0x1093   : > { %2174 = vset.pattern.permute.xlu0 %v2283_v3 }
0x1094   : > { %1679 = vperm.xlu1 %2173, %v1661_v55  }
0x1106   : > { %v1609_v8 = vpop.permute.xlu1 %1608 }
0x1107   : > { %v1630_v9 = vmul.f32 %v1629_v11, %v1609_v8 }
0x1109   : > { %v1634_v16 = vsub.f32 %v1578_v57, %v1630_v9 }
0x110a   : > { %v1614_v62 = vpop.permute.xlu1 %1613 }
0x110b   : > { %v1631_v58 = vmul.f32 %v1629_v11, %v1614_v62  ;;  %1664 = vperm.xlu0 %2174, %v1634_v16  }
0x110d   : > { %v1635_v61 = vsub.f32 %v1579_v25, %v1631_v58 }
0x110e   : > { %v1619_v34 = vpop.permute.xlu0 %1618 }
0x110f   : > { %v1632_v60 = vmul.f32 %v1629_v11, %v1619_v34  ;;  %1669 = vperm.xlu1 %2173, %v1635_v61   ;;  %v1643_v63 = vpop.permute.xlu1 %1642  ;;  %2175 = vset.pattern.permute.xlu0 %v2284_v48  ;;  %v2287_v34 = vmov 31  }
0x1110   : > { %v1645_v1 = vmul.f32 %v1643_v63, %v1637_v44 }
0x1111   : > { %v1636_v46 = vsub.f32 %v1580_v53, %v1632_v60 }
0x1112   : > { %v1685_v6 = vrot.slane %v1645_v1, %v2366_v56 }
0x1113   : > { %v1680_v5 = vpop.permute.xlu1 %1679  ;;  %1674 = vperm.xlu1 %2173, %v1636_v46  }
0x1114   : > { %v1689_v29 = vmul.f32 %v1685_v6, %v1680_v5 }
0x1116   : > { %v1693_v39 = vsub.f32 %v1637_v44, %v1689_v29 }
0x1117   : > { %2176 = vset.pattern.permute.xlu1 %v2284_v48 }
0x1118   : > { %2239 = vrcp.f32 %v1693_v39  ;;  %v1717_v43 = vsub.f32 %v1693_v39, %v2014_v10 }
0x111a   : > { %1735 = vperm.xlu1 %2176, %v1717_v43  }
0x1122   : > { %v2240_v27 = vpop.eup %2239 }
0x1123   : > { %1698 = vperm.xlu0 %2175, %v2240_v27  }
0x118a   : > { %v1665_v15 = vpop.permute.xlu0 %1664 }
0x118b   : > { %v1686_v0 = vmul.f32 %v1685_v6, %v1665_v15 }
0x118d   : > { %v1690_v7 = vsub.f32 %v1634_v16, %v1686_v0 }
0x118e   : > { %v1670_v31 = vpop.permute.xlu1 %1669 }
0x118f   : > { %v1687_v37 = vmul.f32 %v1685_v6, %v1670_v31  ;;  %1720 = vperm.xlu1 %2176, %v1690_v7  }
0x1191   : > { %v1691_v56 = vsub.f32 %v1635_v61, %v1687_v37 }
0x1192   : > { %v1675_v22 = vpop.permute.xlu1 %1674 }
0x1193   : > { %v1688_v17 = vmul.f32 %v1685_v6, %v1675_v22  ;;  %1725 = vperm.xlu0 %2175, %v1691_v56  }
0x1195   : > { %v1692_v23 = vsub.f32 %v1636_v46, %v1688_v17 }
0x1197   : > { %1730 = vperm.xlu1 %2176, %v1692_v23   ;;  %2177 = vset.pattern.permute.xlu0 %v2285_v26 }
0x1199   : > { %v1736_v14 = vpop.permute.xlu1 %1735 }
0x119b   : > { %2178 = vset.pattern.permute.xlu1 %v2285_v26 }
0x11a2   : > { %v1699_v18 = vpop.permute.xlu0 %1698 }
0x11a3   : > { %v1701_v52 = vmul.f32 %v1699_v18, %v1693_v39 }
0x11a5   : > { %v1741_v59 = vrot.slane %v1701_v52, %v2385_v19 }
0x11a7   : > { %v1745_v41 = vmul.f32 %v1741_v59, %v1736_v14 }
0x11a9   : > { %v1749_v21 = vsub.f32 %v1693_v39, %v1745_v41 }
0x11ab   : > { %2241 = vrcp.f32 %v1749_v21  ;;  %v1773_v28 = vsub.f32 %v1749_v21, %v2015_v50 }
0x11ad   : > { %1791 = vperm.xlu1 %2178, %v1773_v28  }
0x11b5   : > { %v2242_v49 = vpop.eup %2241 }
0x11b6   : > { %1754 = vperm.xlu0 %2177, %v2242_v49  }
0x120e   : > { %v1721_v30 = vpop.permute.xlu1 %1720 }
0x120f   : > { %v1742_v32 = vmul.f32 %v1741_v59, %v1721_v30 }
0x1211   : > { %v1746_v33 = vsub.f32 %v1690_v7, %v1742_v32  ;;  %v2017_v7 = vsel %vm1873_vm15, 1.0, %v2256_v4 }
0x1212   : > { %v1726_v11 = vpop.permute.xlu0 %1725 }
0x1213   : > { %v1743_v38 = vmul.f32 %v1741_v59, %v1726_v11  ;;  %1776 = vperm.xlu1 %2178, %v1746_v33  }
0x1215   : > { %v1747_v42 = vsub.f32 %v1691_v56, %v1743_v38 }
0x1216   : > { %v1731_v19 = vpop.permute.xlu1 %1730 }
0x1217   : > { %v1744_v44 = vmul.f32 %v1741_v59, %v1731_v19  ;;  %1781 = vperm.xlu0 %2177, %v1747_v42  }
0x1219   : > { %v1748_v20 = vsub.f32 %v1692_v23, %v1744_v44 }
0x121b   : > { %1786 = vperm.xlu1 %2178, %v1748_v20   ;;  %2179 = vset.pattern.permute.xlu0 %v2286_v24 }
0x121f   : > { %2180 = vset.pattern.permute.xlu1 %v2286_v24 }
0x122c   : > { %v1792_v25 = vpop.permute.xlu1 %1791 }
0x1235   : > { %v1755_v57 = vpop.permute.xlu0 %1754 }
0x1236   : > { %v1757_v12 = vmul.f32 %v1755_v57, %v1749_v21 }
0x1238   : > { %v1797_v35 = vrot.slane %v1757_v12, %v2403_v45 }
0x123a   : > { %v1801_v40 = vmul.f32 %v1797_v35, %v1792_v25 }
0x123c   : > { %v1805_v53 = vsub.f32 %v1749_v21, %v1801_v40 }
0x123e   : > { %2243 = vrcp.f32 %v1805_v53  ;;  %v1829_v54 = vsub.f32 %v1805_v53, %v2016_v51 }
0x1240   : > { %1847 = vperm.xlu1 %2180, %v1829_v54  }
0x1248   : > { %v2244_v3 = vpop.eup %2243 }
0x1249   : > { %1810 = vperm.xlu0 %2179, %v2244_v3  }
0x1292   : > { %v1777_v36 = vpop.permute.xlu1 %1776 }
0x1293   : > { %v1798_v55 = vmul.f32 %v1797_v35, %v1777_v36 }
0x1295   : > { %v1802_v8 = vsub.f32 %v1746_v33, %v1798_v55 }
0x1296   : > { %v1782_v9 = vpop.permute.xlu0 %1781 }
0x1297   : > { %v1799_v16 = vmul.f32 %v1797_v35, %v1782_v9  ;;  %1832 = vperm.xlu1 %2180, %v1802_v8  }
0x1299   : > { %v1803_v62 = vsub.f32 %v1747_v42, %v1799_v16 }
0x129a   : > { %v1787_v45 = vpop.permute.xlu1 %1786 }
0x129b   : > { %v1800_v58 = vmul.f32 %v1797_v35, %v1787_v45  ;;  %1837 = vperm.xlu0 %2179, %v1803_v62  }
0x129d   : > { %v1804_v61 = vsub.f32 %v1748_v20, %v1800_v58 }
0x129f   : > { %1842 = vperm.xlu1 %2180, %v1804_v61   ;;  %2182 = vset.pattern.permute.xlu0 %v2287_v34 }
0x12a3   : > { %2181 = vset.pattern.permute.xlu1 %v2287_v34 }
0x12bf   : > { %v1848_v1 = vpop.permute.xlu1 %1847 }
0x12c8   : > { %v1811_v60 = vpop.permute.xlu0 %1810 }
0x12c9   : > { %v1813_v63 = vmul.f32 %v1811_v60, %v1805_v53 }
0x12cb   : > { %v1853_v48 = vrot.slane %v1813_v63, %v2420_v2 }
0x12cd   : > { %v1857_v46 = vmul.f32 %v1853_v48, %v1848_v1 }
0x12cf   : > { %v1861_v6 = vsub.f32 %v1805_v53, %v1857_v46 }
0x12d1   : > { %2245 = vrcp.f32 %v1861_v6  ;;  %v1885_v37 = vsub.f32 %v1861_v6, %v2017_v7 }
0x12db   : > { %v2246_v5 = vpop.eup %2245 }
0x12dc   : > { %1866 = vperm.xlu0 %2182, %v2246_v5  }
0x1316   : > { %v1833_v29 = vpop.permute.xlu1 %1832 }
0x1317   : > { %v1854_v10 = vmul.f32 %v1853_v48, %v1833_v29 }
0x1319   : > { %v1858_v39 = vsub.f32 %v1802_v8, %v1854_v10 }
0x131a   : > { %v1838_v43 = vpop.permute.xlu0 %1837 }
0x131b   : > { %v1855_v27 = vmul.f32 %v1853_v48, %v1838_v43  ;;  %1888 = vperm.xlu1 %2181, %v1858_v39  }
0x131d   : > { %v1859_v15 = vsub.f32 %v1803_v62, %v1855_v27 }
0x131e   : > { %v1843_v0 = vpop.permute.xlu1 %1842 }
0x131f   : > { %v1856_v2 = vmul.f32 %v1853_v48, %v1843_v0  ;;  %1893 = vperm.xlu1 %2181, %v1859_v15  }
0x1321   : > { %v1860_v31 = vsub.f32 %v1804_v61, %v1856_v2 }
0x1323   : > { %1898 = vperm.xlu0 %2182, %v1860_v31   ;;  %1903 = vperm.xlu1 %2181, %v1885_v37  }
0x135b   : > { %v1867_v56 = vpop.permute.xlu0 %1866 }
0x135c   : > { %v1869_v22 = vmul.f32 %v1867_v56, %v1861_v6 }
0x135e   : > { %v1909_v17 = vrot.slane %v1869_v22, %v2436_v13 }
0x139a   : > { %v1889_v23 = vpop.permute.xlu1 %1888 }
0x139b   : > { %v1910_v26 = vmul.f32 %v1909_v17, %v1889_v23 }
0x139d   : > { %v1914_v47 = vsub.f32 %v1858_v39, %v1910_v26 }
0x139e   : > { %v1894_v18 = vpop.permute.xlu1 %1893 }
0x139f   : > { %1918 = vst [vmem:[%s116_s14] sm:$0xff] %v1914_v47  ;;  %v1911_v4 = vmul.f32 %v1909_v17, %v1894_v18 }
0x13a1   : > { %v1915_v52 = vsub.f32 %v1859_v15, %v1911_v4 }
0x13a2   : > { %v1904_v59 = vpop.permute.xlu1 %1903  ;;  %v1899_v14 = vpop.permute.xlu0 %1898 }
0x13a3   : > { %1919 = vst [vmem:[%s116_s14 + $0x8] sm:$0xff] %v1915_v52  ;;  %v1913_v41 = vmul.f32 %v1909_v17, %v1904_v59  ;;  %v1912_v50 = vmul.f32 %v1909_v17, %v1899_v14 }
0x13a5   : > { %v1917_v21 = vsub.f32 %v1861_v6, %v1913_v41  ;;  %v1916_v28 = vsub.f32 %v1860_v31, %v1912_v50 }
0x13a7   : > { %1921 = vst [vmem:[%s116_s14 + $0x18] sm:$0xff] %v1917_v21  ;;  %1920 = vst [vmem:[%s116_s14 + $0x10] sm:$0xff] %v1916_v28 }
0x13a8 PF: > { %s11_s6 = sadd.s32 1, %s2253_s6  }
0x13a9   : > { %p8_p4 = scmp.ge.s32.totalorder %s11_s6, 21  }
0x13ab   :  { %10 = sbr.rel (!%p8_p4) target bundleno = 1 (0x1), region = 54 }

// kernel: closed_call.29
= control target key start
LH: loop header
LB: loop body
LE: loop exit
PB: predicated region body
PF: predicated region fallthrough
CT: control target
= control target key end

     0   :  { %s2298_s6 = smov 0   ;;  %s2681_s0 = inlined_call_operand.vmem [shape: f32[4,32,128], index: 0, kind: input, shape index: {}]   ;;  %s2682_s1 = inlined_call_operand.vmem [shape: f32[4,32,128], index: 1, kind: output, shape index: {}]  }
   0x1 LB: > { %s1977_s7 = sadd.s32 4294967295, %s2253_s6   ;;  %p1981_p0 = scmp.ge.s32.totalorder %s2253_s6, 1  ;;  %s2253_s6 = sphi %s2298_s6, %s11_s6  }
   0x2   : > { %p87_p1 = scmp.lt.s32.totalorder %s2253_s6, 5 }
   0x4   : > { %p88_p2 = pnand %p1981_p0, %p87_p1 }
   0x5   : > { %p107_p3 = scmp.lt.s32.totalorder (!%p88_p2), %s1977_s7, 3  ;;  %v2255_v0 = vmov (!%p88_p2), 0   ;;  %v121_v1 = vlaneseq (!%p88_p2)  ;;  %v2256_v4 = vmov (!%p88_p2), 0.0   ;;  %v2257_v9 = vmov (!%p88_p2), 1  }
   0x6   : > { %91 = sbr.rel (%p88_p2) target bundleno = 5032 (0x13a8), region = 24  ;;  %2063 = vset.pattern.permute.xlu0 (!%p88_p2), %v2255_v0  ;;  %2064 = vset.pattern.permute.xlu1 (!%p88_p2), %v2257_v9  ;;  %v2258_v20 = vmov (!%p88_p2), 2   ;;  %v2259_v35 = vmov (!%p88_p2), 3   ;;  %v2260_v52 = vmov (!%p88_p2), 4  }
   0x7   : > { %v2318_v3 = vshrl.u32 (!%p88_p2), %v121_v1, 7 }
   0x9   : > { %vm134_vm0 = vcmp.eq.s32.totalorder (!%p88_p2), %v2318_v3, 0  ;;  %v2325_v10 = vsub.s32 (!%p88_p2), 0, %v2318_v3  ;;  %vm190_vm1 = vcmp.eq.s32.totalorder (!%p88_p2), %v2318_v3, 1  ;;  %v2336_v21 = vsub.s32 (!%p88_p2), 1, %v2318_v3 }
   0xa   : > { %v1986_v5 = vsel (!%p88_p2), %vm134_vm0, 1.0, %v2256_v4  ;;  %v1987_v18 = vsel (!%p88_p2), %vm190_vm1, 1.0, %v2256_v4  ;;  %vm246_vm2 = vcmp.eq.s32.totalorder (!%p88_p2), %v2318_v3, 2  ;;  %v2350_v36 = vsub.s32 (!%p88_p2), 2, %v2318_v3 }
   0xb   : > { %v1988_v27 = vsel (!%p88_p2), %vm246_vm2, 1.0, %v2256_v4  ;;  %vm302_vm3 = vcmp.eq.s32.totalorder (!%p88_p2), %v2318_v3, 3  ;;  %v2366_v56 = vsub.s32 (!%p88_p2), 3, %v2318_v3  ;;  %vm358_vm4 = vcmp.eq.s32.totalorder (!%p88_p2), %v2318_v3, 4 }
   0xc   : > { %v1989_v46 = vsel (!%p88_p2), %vm302_vm3, 1.0, %v2256_v4  ;;  %v1990_v62 = vsel (!%p88_p2), %vm358_vm4, 1.0, %v2256_v4  ;;  %vm414_vm5 = vcmp.eq.s32.totalorder (!%p88_p2), %v2318_v3, 5  ;;  %vm470_vm6 = vcmp.eq.s32.totalorder (!%p88_p2), %v2318_v3, 6 }
   0xd   : > { %s2684_s7 = smov (!%p107_p3, %s1977_s7), 3  ;;  %vm526_vm11 = vcmp.eq.s32.totalorder %v2318_v3, 7 }
   0xe   : > { %s2020_s8 = sshll.u32 %s2684_s7, 5 }
   0xf   : > { %s2315_s11 = scalar_lea.vmem %s2681_s0, %s2020_s8  ;;  %s116_s14 = scalar_lea.vmem %s2682_s1, %s2020_s8 }
  0x10   : > { %v117_v2 = vld [vmem:[%s2315_s11] sm:$0xff]  ;;  %v118_v8 = vld [vmem:[%s2315_s11 + $0x8] sm:$0xff]  ;;  %v119_v34 = vld [vmem:[%s2315_s11 + $0x10] sm:$0xff] }
  0x11   : > { %2183 = vrcp.f32 %v117_v2  ;;  %v146_v7 = vsub.f32 %v117_v2, %v1986_v5 }
  0x1b   : > { %v2184_v6 = vpop.eup %2183 }
  0x1c   : > { %130 = vperm.xlu0 %2063, %v2184_v6  }
  0x20   : > { %152 = vperm.xlu0 %2063, %v146_v7  }
  0x24   : > { %157 = vperm.xlu0 %2063, %v118_v8  }
  0x28   : > { %2066 = vset.pattern.permute.xlu0 %v2258_v20 }
  0x9b   : > { %v131_v11 = vpop.permute.xlu0 %130 }
  0x9c   : > { %v133_v12 = vmul.f32 %v131_v11, %v117_v2  ;;  %v2261_v11 = vmov 5  }
  0x9e   : > { %v2328_v13 = vrot.slane %v133_v12, %v2325_v10 }
  0x9f   : > { %v153_v14 = vpop.permute.xlu0 %152 }
  0xa0   : > { %v174_v15 = vmul.f32 %v2328_v13, %v153_v14 }
  0xa2   : > { %v178_v16 = vsub.f32 %v117_v2, %v174_v15  ;;  %v120_v2 = vld [vmem:[%s2315_s11 + $0x18] sm:$0xff] }
  0xa3   : > { %v158_v30 = vpop.permute.xlu0 %157 }
  0xa4   : > { %2185 = vrcp.f32 %v178_v16  ;;  %v202_v19 = vsub.f32 %v178_v16, %v1987_v18  ;;  %v175_v32 = vmul.f32 %v2328_v13, %v158_v30 }
  0xa6   : > { %v179_v33 = vsub.f32 %v118_v8, %v175_v32 }
  0xae   : > { %v2186_v17 = vpop.eup %2185 }
  0xaf   : > { %186 = vperm.xlu1 %2064, %v2186_v17  }
  0xb3   : > { %208 = vperm.xlu1 %2064, %v202_v19   ;;  %v2385_v19 = vsub.s32 4, %v2318_v3 }
  0xb7   : > { %2065 = vset.pattern.permute.xlu1 %v2258_v20 }
 0x12e   : > { %v187_v22 = vpop.permute.xlu1 %186 }
 0x12f   : > { %v189_v23 = vmul.f32 %v187_v22, %v178_v16 }
 0x131   : > { %v2339_v24 = vrot.slane %v189_v23, %v2336_v21 }
 0x132   : > { %v209_v25 = vpop.permute.xlu1 %208 }
 0x133   : > { %v230_v26 = vmul.f32 %v2339_v24, %v209_v25 }
 0x135   : > { %v234_v28 = vsub.f32 %v178_v16, %v230_v26 }
 0x137   : > { %2187 = vrcp.f32 %v234_v28  ;;  %v258_v29 = vsub.f32 %v234_v28, %v1988_v27 }
 0x139   : > { %264 = vperm.xlu0 %2066, %v258_v29  }
 0x141   : > { %v2188_v31 = vpop.eup %2187 }
 0x142   : > { %242 = vperm.xlu1 %2065, %v2188_v31  }
 0x146   : > { %2067 = vset.pattern.permute.xlu1 %v2257_v9 }
 0x147   : > { %213 = vperm.xlu1 %2067, %v179_v33  }
 0x14b   : > { %2068 = vset.pattern.permute.xlu1 %v2255_v0 }
 0x14c   : > { %162 = vperm.xlu1 %2068, %v119_v34  }
 0x150   : > { %2069 = vset.pattern.permute.xlu1 %v2259_v35 }
 0x1b8   : > { %v265_v40 = vpop.permute.xlu0 %264 }
 0x1c1   : > { %v243_v37 = vpop.permute.xlu1 %242 }
 0x1c2   : > { %v245_v38 = vmul.f32 %v243_v37, %v234_v28  ;;  %v2262_v37 = vmov 6  }
 0x1c4   : > { %v2353_v39 = vrot.slane %v245_v38, %v2350_v36 }
 0x1c6   : > { %v286_v41 = vmul.f32 %v2353_v39, %v265_v40  ;;  %v214_v42 = vpop.permute.xlu1 %213 }
 0x1c7   : > { %v231_v43 = vmul.f32 %v2339_v24, %v214_v42 }
 0x1c8   : > { %v290_v44 = vsub.f32 %v234_v28, %v286_v41 }
 0x1c9   : > { %v235_v45 = vsub.f32 %v179_v33, %v231_v43 }
 0x1ca   : > { %2189 = vrcp.f32 %v290_v44  ;;  %v314_v47 = vsub.f32 %v290_v44, %v1989_v46 }
 0x1cb   : > { %269 = vperm.xlu0 %2066, %v235_v45   ;;  %v163_v48 = vpop.permute.xlu1 %162 }
 0x1cc   : > { %v176_v50 = vmul.f32 %v2328_v13, %v163_v48 }
 0x1ce   : > { %v180_v51 = vsub.f32 %v119_v34, %v176_v50 }
 0x1cf   : > { %2070 = vset.pattern.permute.xlu0 %v2259_v35 }
 0x1d0   : > { %320 = vperm.xlu0 %2070, %v314_v47  }
 0x1d4   : > { %v2190_v49 = vpop.eup %2189  ;;  %2073 = vset.pattern.permute.xlu0 %v2260_v52 }
 0x1d5   : > { %298 = vperm.xlu1 %2069, %v2190_v49   ;;  %v1992_v49 = vsel %vm470_vm6, 1.0, %v2256_v4 }
 0x1d9   : > { %2071 = vset.pattern.permute.xlu1 %v2257_v9 }
 0x1da   : > { %218 = vperm.xlu1 %2071, %v180_v51  }
 0x1de   : > { %2072 = vset.pattern.permute.xlu1 %v2259_v35 }
 0x24a   : > { %v270_v53 = vpop.permute.xlu0 %269 }
 0x24b   : > { %v287_v54 = vmul.f32 %v2353_v39, %v270_v53 }
 0x24d   : > { %v291_v55 = vsub.f32 %v235_v45, %v287_v54  ;;  %v2403_v45 = vsub.s32 5, %v2318_v3 }
 0x24f   : > { %325 = vperm.xlu1 %2072, %v291_v55   ;;  %v321_v60 = vpop.permute.xlu0 %320 }
 0x253   : > { %2074 = vset.pattern.permute.xlu1 %v2260_v52 }
 0x254   : > { %v299_v57 = vpop.permute.xlu1 %298 }
 0x255   : > { %v301_v58 = vmul.f32 %v299_v57, %v290_v44 }
 0x257   : > { %v2370_v59 = vrot.slane %v301_v58, %v2366_v56 }
 0x259   : > { %v342_v61 = vmul.f32 %v2370_v59, %v321_v60  ;;  %v219_v5 = vpop.permute.xlu1 %218 }
 0x25a   : > { %v232_v7 = vmul.f32 %v2339_v24, %v219_v5 }
 0x25b   : > { %v346_v63 = vsub.f32 %v290_v44, %v342_v61 }
 0x25c   : > { %v236_v8 = vsub.f32 %v180_v51, %v232_v7 }
 0x25d   : > { %v370_v1 = vsub.f32 %v346_v63, %v1990_v62  ;;  %2191 = vrcp.f32 %v346_v63  ;;  %v2263_v62 = vmov 7  }
 0x25f   : > { %376 = vperm.xlu1 %2074, %v370_v1  }
 0x263   : > { %2075 = vset.pattern.permute.xlu1 %v2255_v0 }
 0x264   : > { %167 = vperm.xlu1 %2075, %v120_v2  }
 0x267   : > { %v2192_v6 = vpop.eup %2191 }
 0x268   : > { %354 = vperm.xlu0 %2073, %v2192_v6   ;;  %2077 = vset.pattern.permute.xlu1 %v2260_v52 }
 0x26c   : > { %2076 = vset.pattern.permute.xlu0 %v2258_v20 }
 0x26d   : > { %274 = vperm.xlu0 %2076, %v236_v8  }
 0x271   : > { %2079 = vset.pattern.permute.xlu0 %v2261_v11 }
 0x2ce   : > { %v326_v12 = vpop.permute.xlu1 %325 }
 0x2cf   : > { %v343_v14 = vmul.f32 %v2370_v59, %v326_v12 }
 0x2d1   : > { %v347_v15 = vsub.f32 %v291_v55, %v343_v14 }
 0x2d3   : > { %381 = vperm.xlu1 %2077, %v347_v15  }
 0x2d7   : > { %2078 = vset.pattern.permute.xlu1 %v2257_v9  ;;  %v1991_v9 = vsel %vm414_vm5, 1.0, %v2256_v4 }
 0x2de   : > { %v377_v0 = vpop.permute.xlu1 %376 }
 0x2e3   : > { %v168_v16 = vpop.permute.xlu1 %167 }
 0x2e4   : > { %v177_v17 = vmul.f32 %v2328_v13, %v168_v16 }
 0x2e6   : > { %v181_v18 = vsub.f32 %v120_v2, %v177_v17  ;;  %v2420_v2 = vsub.s32 6, %v2318_v3 }
 0x2e7   : > { %v355_v22 = vpop.permute.xlu0 %354 }
 0x2e8   : > { %v357_v23 = vmul.f32 %v355_v22, %v346_v63  ;;  %223 = vperm.xlu1 %2078, %v181_v18   ;;  %v2264_v22 = vmov 8  }
 0x2ea   : > { %v2388_v25 = vrot.slane %v357_v23, %v2385_v19 }
 0x2ec   : > { %v398_v26 = vmul.f32 %v2388_v25, %v377_v0  ;;  %2080 = vset.pattern.permute.xlu1 %v2261_v11  ;;  %v275_v27 = vpop.permute.xlu0 %274 }
 0x2ed   : > { %v288_v29 = vmul.f32 %v2353_v39, %v275_v27 }
 0x2ee   : > { %v402_v13 = vsub.f32 %v346_v63, %v398_v26 }
 0x2ef   : > { %v292_v30 = vsub.f32 %v236_v8, %v288_v29 }
 0x2f0   : > { %v426_v28 = vsub.f32 %v402_v13, %v1991_v9  ;;  %2193 = vrcp.f32 %v402_v13 }
 0x2f2   : > { %432 = vperm.xlu1 %2080, %v426_v28  }
 0x2f6   : > { %2081 = vset.pattern.permute.xlu1 %v2259_v35 }
 0x2f7   : > { %330 = vperm.xlu1 %2081, %v292_v30  }
 0x2fa   : > { %v2194_v31 = vpop.eup %2193 }
 0x2fb   : > { %410 = vperm.xlu0 %2079, %v2194_v31   ;;  %2082 = vset.pattern.permute.xlu1 %v2258_v20 }
 0x352   : > { %v382_v32 = vpop.permute.xlu1 %381 }
 0x353   : > { %v399_v33 = vmul.f32 %v2388_v25, %v382_v32 }
 0x355   : > { %v403_v34 = vsub.f32 %v347_v15, %v399_v33 }
 0x357   : > { %437 = vperm.xlu0 %2079, %v403_v34  }
 0x35b   : > { %2083 = vset.pattern.permute.xlu0 %v2262_v37 }
 0x367   : > { %v224_v38 = vpop.permute.xlu1 %223 }
 0x368   : > { %v233_v40 = vmul.f32 %v2339_v24, %v224_v38 }
 0x36a   : > { %v237_v41 = vsub.f32 %v181_v18, %v233_v40 }
 0x36c   : > { %279 = vperm.xlu1 %2082, %v237_v41  }
 0x370   : > { %2084 = vset.pattern.permute.xlu1 %v2260_v52 }
 0x371   : > { %v433_v42 = vpop.permute.xlu1 %432 }
 0x376   : > { %v331_v43 = vpop.permute.xlu1 %330 }
 0x377   : > { %v344_v44 = vmul.f32 %v2370_v59, %v331_v43 }
 0x379   : > { %v348_v20 = vsub.f32 %v292_v30, %v344_v44 }
 0x37a   : > { %v411_v46 = vpop.permute.xlu0 %410 }
 0x37b   : > { %v413_v47 = vmul.f32 %v411_v46, %v402_v13  ;;  %386 = vperm.xlu1 %2084, %v348_v20  }
 0x37d   : > { %v2406_v48 = vrot.slane %v413_v47, %v2403_v45 }
 0x37f   : > { %v454_v24 = vmul.f32 %v2406_v48, %v433_v42  ;;  %2085 = vset.pattern.permute.xlu1 %v2262_v37 }
 0x381   : > { %v458_v50 = vsub.f32 %v402_v13, %v454_v24  ;;  %v2436_v13 = vsub.s32 7, %v2318_v3 }
 0x383   : > { %v482_v51 = vsub.f32 %v458_v50, %v1992_v49  ;;  %2195 = vrcp.f32 %v458_v50 }
 0x385   : > { %488 = vperm.xlu1 %2085, %v482_v51  }
 0x389   : > { %2086 = vset.pattern.permute.xlu1 %v2259_v35 }
 0x38d   : > { %v2196_v53 = vpop.eup %2195 }
 0x38e   : > { %466 = vperm.xlu0 %2083, %v2196_v53  }
 0x3d6   : > { %v438_v54 = vpop.permute.xlu0 %437 }
 0x3d7   : > { %v455_v55 = vmul.f32 %v2406_v48, %v438_v54 }
 0x3d9   : > { %v459_v57 = vsub.f32 %v403_v34, %v455_v55 }
 0x3db   : > { %493 = vperm.xlu0 %2083, %v459_v57  }
 0x3df   : > { %2087 = vset.pattern.permute.xlu0 %v2261_v11 }
 0x3eb   : > { %v280_v58 = vpop.permute.xlu1 %279 }
 0x3ec   : > { %v289_v60 = vmul.f32 %v2353_v39, %v280_v58 }
 0x3ee   : > { %v293_v61 = vsub.f32 %v237_v41, %v289_v60  ;;  %v2265_v41 = vmov 9  }
 0x3f0   : > { %335 = vperm.xlu1 %2086, %v293_v61  }
 0x3f4   : > { %2088 = vset.pattern.permute.xlu1 %v2263_v62 }
 0x3fa   : > { %v387_v63 = vpop.permute.xlu1 %386 }
 0x3fb   : > { %v400_v35 = vmul.f32 %v2388_v25, %v387_v63 }
 0x3fd   : > { %v404_v1 = vsub.f32 %v348_v20, %v400_v35  ;;  %v2266_v35 = vmov 10  }
 0x3ff   : > { %442 = vperm.xlu0 %2087, %v404_v1  }
 0x403   : > { %2089 = vset.pattern.permute.xlu0 %v2260_v52 }
 0x404   : > { %v489_v39 = vpop.permute.xlu1 %488 }
 0x40d   : > { %v467_v5 = vpop.permute.xlu0 %466 }
 0x40e   : > { %v469_v6 = vmul.f32 %v467_v5, %v458_v50 }
 0x410   : > { %v2423_v7 = vrot.slane %v469_v6, %v2420_v2 }
 0x412   : > { %v510_v8 = vmul.f32 %v2423_v7, %v489_v39 }
 0x414   : > { %v2426_v12 = vsub.f32 %v458_v50, %v510_v8 }
 0x416   : > { %2197 = vrcp.f32 %v2426_v12 }
 0x420   : > { %v2198_v14 = vpop.eup %2197 }
 0x421   : > { %522 = vperm.xlu1 %2088, %v2198_v14  }
 0x45a   : > { %v494_v15 = vpop.permute.xlu0 %493 }
 0x45b   : > { %v511_v52 = vmul.f32 %v2423_v7, %v494_v15 }
 0x45d   : > { %v515_v0 = vsub.f32 %v459_v57, %v511_v52 }
 0x45f   : > { %549 = vperm.xlu1 %2088, %v515_v0  }
 0x463   : > { %2090 = vset.pattern.permute.xlu1 %v2262_v37 }
 0x46f   : > { %v336_v16 = vpop.permute.xlu1 %335 }
 0x470   : > { %v345_v17 = vmul.f32 %v2370_v59, %v336_v16  ;;  %v2440_v59 = vadd.s32 8, %v2318_v3 }
 0x472   : > { %v349_v18 = vsub.f32 %v293_v61, %v345_v17  ;;  %vm583_vm7 = vcmp.eq.s32.totalorder %v2440_v59, 8  ;;  %vm639_vm8 = vcmp.eq.s32.totalorder %v2440_v59, 9  ;;  %vm695_vm9 = vcmp.eq.s32.totalorder %v2440_v59, 10 }
 0x473   : > { %v1994_v32 = vsel %vm583_vm7, 1.0, %v2256_v4  ;;  %v1995_v50 = vsel %vm639_vm8, 1.0, %v2256_v4  ;;  %v1996_v15 = vsel %vm695_vm9, 1.0, %v2256_v4  ;;  %vm751_vm10 = vcmp.eq.s32.totalorder %v2440_v59, 11 }
 0x474   : > { %391 = vperm.xlu0 %2089, %v349_v18   ;;  %vm807_vm12 = vcmp.eq.s32.totalorder %v2440_v59, 12  ;;  %vm863_vm13 = vcmp.eq.s32.totalorder %v2440_v59, 13  ;;  %vm919_vm14 = vcmp.eq.s32.totalorder %v2440_v59, 14  ;;  %vm975_vm1 = vcmp.eq.s32.totalorder %v2440_v59, 15 }
 0x478   : > { %2092 = vset.pattern.permute.xlu0 %v2264_v22 }
 0x47e   : > { %v443_v23 = vpop.permute.xlu0 %442 }
 0x47f   : > { %v456_v26 = vmul.f32 %v2406_v48, %v443_v23 }
 0x481   : > { %v460_v9 = vsub.f32 %v404_v1, %v456_v26 }
 0x483   : > { %498 = vperm.xlu1 %2090, %v460_v9  }
 0x487   : > { %2091 = vset.pattern.permute.xlu1 %v2264_v22 }
 0x4a0   : > { %v523_v27 = vpop.permute.xlu1 %522 }
 0x4a1   : > { %v525_v28 = vmul.f32 %v523_v27, %v2426_v12  ;;  %v2267_v27 = vmov 11  }
 0x4a3   : > { %v2443_v29 = vrot.slane %v525_v28, %v2436_v13 }
 0x4de   : > { %v550_v30 = vpop.permute.xlu1 %549 }
 0x4df   : > { %v567_v31 = vmul.f32 %v2443_v29, %v550_v30 }
 0x4e1   : > { %v571_v33 = vsub.f32 %v515_v0, %v567_v31 }
 0x4e3   : > { %2199 = vrcp.f32 %v571_v33  ;;  %v595_v34 = vsub.f32 %v571_v33, %v1994_v32 }
 0x4e5   : > { %605 = vperm.xlu0 %2092, %v595_v34  }
 0x4e9   : > { %2095 = vset.pattern.permute.xlu0 %v2265_v41 }
 0x4ed   : > { %v2200_v38 = vpop.eup %2199 }
 0x4ee   : > { %578 = vperm.xlu1 %2091, %v2200_v38  }
 0x4f2   : > { %2093 = vset.pattern.permute.xlu1 %v2261_v11 }
 0x4f3   : > { %v392_v40 = vpop.permute.xlu0 %391 }
 0x4f4   : > { %v401_v42 = vmul.f32 %v2388_v25, %v392_v40 }
 0x4f6   : > { %v405_v43 = vsub.f32 %v349_v18, %v401_v42 }
 0x4f8   : > { %447 = vperm.xlu1 %2093, %v405_v43  }
 0x4fc   : > { %2094 = vset.pattern.permute.xlu1 %v2263_v62 }
 0x502   : > { %v499_v44 = vpop.permute.xlu1 %498 }
 0x503   : > { %v512_v20 = vmul.f32 %v2423_v7, %v499_v44 }
 0x505   : > { %v516_v46 = vsub.f32 %v460_v9, %v512_v20 }
 0x507   : > { %554 = vperm.xlu1 %2094, %v516_v46  }
 0x50b   : > { %2096 = vset.pattern.permute.xlu1 %v2265_v41 }
 0x564   : > { %v606_v49 = vpop.permute.xlu0 %605 }
 0x56d   : > { %v579_v47 = vpop.permute.xlu1 %578 }
 0x56e   : > { %v581_v24 = vmul.f32 %v579_v47, %v571_v33 }
 0x570   : > { %v2455_v11 = vrot.slane %v581_v24, %v2325_v10 }
 0x572   : > { %v623_v25 = vmul.f32 %v2455_v11, %v606_v49 }
 0x574   : > { %v627_v51 = vsub.f32 %v571_v33, %v623_v25 }
 0x576   : > { %v651_v53 = vsub.f32 %v627_v51, %v1995_v50  ;;  %2201 = vrcp.f32 %v627_v51  ;;  %v2268_v50 = vmov 12  }
 0x577   : > { %v448_v54 = vpop.permute.xlu1 %447 }
 0x578   : > { %v457_v55 = vmul.f32 %v2406_v48, %v448_v54  ;;  %661 = vperm.xlu1 %2096, %v651_v53  }
 0x57a   : > { %v461_v57 = vsub.f32 %v405_v43, %v457_v55  ;;  %v1997_v43 = vsel %vm751_vm10, 1.0, %v2256_v4 }
 0x57c   : > { %2097 = vset.pattern.permute.xlu1 %v2262_v37 }
 0x57d   : > { %503 = vperm.xlu1 %2097, %v461_v57  }
 0x580   : > { %v2202_v58 = vpop.eup %2201 }
 0x581   : > { %634 = vperm.xlu0 %2095, %v2202_v58   ;;  %2099 = vset.pattern.permute.xlu1 %v2263_v62 }
 0x585   : > { %2098 = vset.pattern.permute.xlu0 %v2264_v22 }
 0x586   : > { %v555_v60 = vpop.permute.xlu1 %554 }
 0x587   : > { %v568_v61 = vmul.f32 %v2443_v29, %v555_v60 }
 0x589   : > { %v572_v63 = vsub.f32 %v516_v46, %v568_v61  ;;  %v1993_v46 = vsel %vm526_vm11, 1.0, %v2256_v4  ;;  %v1998_v61 = vsel %vm807_vm12, 1.0, %v2256_v4 }
 0x58a   : > { %v538_v47 = vsub.f32 %v2426_v12, %v1993_v46 }
 0x58b   : > { %610 = vperm.xlu0 %2098, %v572_v63  }
 0x58f   : > { %2101 = vset.pattern.permute.xlu0 %v2266_v35 }
 0x5f7   : > { %v662_v48 = vpop.permute.xlu1 %661 }
 0x5fc   : > { %v504_v1 = vpop.permute.xlu1 %503 }
 0x5fd   : > { %v513_v5 = vmul.f32 %v2423_v7, %v504_v1 }
 0x5ff   : > { %v517_v37 = vsub.f32 %v461_v57, %v513_v5 }
 0x600   : > { %v635_v6 = vpop.permute.xlu0 %634 }
 0x601   : > { %v637_v39 = vmul.f32 %v635_v6, %v627_v51  ;;  %559 = vperm.xlu1 %2099, %v517_v37  }
 0x603   : > { %v2468_v8 = vrot.slane %v637_v39, %v2336_v21 }
 0x605   : > { %v679_v14 = vmul.f32 %v2468_v8, %v662_v48  ;;  %2100 = vset.pattern.permute.xlu1 %v2266_v35 }
 0x607   : > { %v683_v52 = vsub.f32 %v627_v51, %v679_v14 }
 0x609   : > { %v707_v0 = vsub.f32 %v683_v52, %v1996_v15  ;;  %2203 = vrcp.f32 %v683_v52 }
 0x60a   : > { %v611_v7 = vpop.permute.xlu0 %610 }
 0x60b   : > { %717 = vperm.xlu0 %2101, %v707_v0   ;;  %v624_v17 = vmul.f32 %v2455_v11, %v611_v7 }
 0x60d   : > { %v628_v18 = vsub.f32 %v572_v63, %v624_v17 }
 0x613   : > { %v2204_v16 = vpop.eup %2203 }
 0x614   : > { %690 = vperm.xlu1 %2100, %v2204_v16  }
 0x618   : > { %2102 = vset.pattern.permute.xlu1 %v2265_v41 }
 0x619   : > { %666 = vperm.xlu1 %2102, %v628_v18  }
 0x61d   : > { %2103 = vset.pattern.permute.xlu1 %v2264_v22 }
 0x680   : > { %v560_v23 = vpop.permute.xlu1 %559 }
 0x681   : > { %v569_v26 = vmul.f32 %v2443_v29, %v560_v23 }
 0x683   : > { %v573_v9 = vsub.f32 %v517_v37, %v569_v26 }
 0x685   : > { %615 = vperm.xlu1 %2103, %v573_v9  }
 0x689   : > { %2104 = vset.pattern.permute.xlu1 %v2267_v27 }
 0x68a   : > { %v718_v32 = vpop.permute.xlu0 %717 }
 0x693   : > { %v691_v28 = vpop.permute.xlu1 %690 }
 0x694   : > { %v693_v30 = vmul.f32 %v691_v28, %v683_v52  ;;  %v1999_v28 = vsel %vm863_vm13, 1.0, %v2256_v4 }
 0x696   : > { %v2480_v31 = vrot.slane %v693_v30, %v2350_v36 }
 0x698   : > { %v735_v33 = vmul.f32 %v2480_v31, %v718_v32  ;;  %v667_v34 = vpop.permute.xlu1 %666 }
 0x699   : > { %v680_v38 = vmul.f32 %v2468_v8, %v667_v34 }
 0x69a   : > { %v739_v40 = vsub.f32 %v683_v52, %v735_v33 }
 0x69b   : > { %v684_v42 = vsub.f32 %v628_v18, %v680_v38 }
 0x69c   : > { %2205 = vrcp.f32 %v739_v40  ;;  %v763_v44 = vsub.f32 %v739_v40, %v1997_v43  ;;  %v2270_v43 = vmov 14  }
 0x69d   : > { %722 = vperm.xlu0 %2101, %v684_v42  }
 0x6a1   : > { %2105 = vset.pattern.permute.xlu0 %v2267_v27 }
 0x6a2   : > { %773 = vperm.xlu0 %2105, %v763_v44  }
 0x6a6   : > { %v2206_v20 = vpop.eup %2205 }
 0x6a7   : > { %746 = vperm.xlu1 %2104, %v2206_v20  }
 0x6ab   : > { %2106 = vset.pattern.permute.xlu1 %v2263_v62 }
 0x6ac   : > { %544 = vperm.xlu1 %2106, %v538_v47  }
 0x6b0   : > { %2107 = vset.pattern.permute.xlu1 %v2265_v41 }
 0x704   : > { %v616_v24 = vpop.permute.xlu1 %615 }
 0x705   : > { %v625_v49 = vmul.f32 %v2455_v11, %v616_v24 }
 0x707   : > { %v629_v25 = vsub.f32 %v573_v9, %v625_v49 }
 0x709   : > { %671 = vperm.xlu1 %2107, %v629_v25  }
 0x70d   : > { %2108 = vset.pattern.permute.xlu1 %v2268_v50 }
 0x71c   : > { %v723_v51 = vpop.permute.xlu0 %722 }
 0x71d   : > { %v736_v53 = vmul.f32 %v2480_v31, %v723_v51 }
 0x71f   : > { %v740_v54 = vsub.f32 %v684_v42, %v736_v53 }
 0x721   : > { %778 = vperm.xlu0 %2105, %v740_v54   ;;  %v774_v58 = vpop.permute.xlu0 %773 }
 0x725   : > { %2109 = vset.pattern.permute.xlu0 %v2268_v50 }
 0x726   : > { %v747_v55 = vpop.permute.xlu1 %746 }
 0x727   : > { %v749_v62 = vmul.f32 %v747_v55, %v739_v40 }
 0x729   : > { %v2497_v57 = vrot.slane %v749_v62, %v2366_v56  ;;  %v2000_v62 = vsel %vm919_vm14, 1.0, %v2256_v4 }
 0x72b   : > { %v791_v60 = vmul.f32 %v2497_v57, %v774_v58  ;;  %v545_v1 = vpop.permute.xlu1 %544 }
 0x72c   : > { %v566_v37 = vmul.f32 %v2443_v29, %v545_v1  ;;  %v2269_v29 = vmov 13  }
 0x72d   : > { %v795_v63 = vsub.f32 %v739_v40, %v791_v60 }
 0x72e   : > { %v570_v6 = vsub.f32 %v2426_v12, %v566_v37  ;;  %v2271_v37 = vmov 15  }
 0x72f   : > { %v819_v48 = vsub.f32 %v795_v63, %v1998_v61  ;;  %2207 = vrcp.f32 %v795_v63 }
 0x731   : > { %829 = vperm.xlu0 %2109, %v819_v48  }
 0x739   : > { %v2208_v5 = vpop.eup %2207 }
 0x73a   : > { %802 = vperm.xlu1 %2108, %v2208_v5  }
 0x73e   : > { %2110 = vset.pattern.permute.xlu1 %v2264_v22 }
 0x73f   : > { %600 = vperm.xlu1 %2110, %v570_v6  }
 0x743   : > { %2111 = vset.pattern.permute.xlu1 %v2266_v35 }
 0x788   : > { %v672_v39 = vpop.permute.xlu1 %671 }
 0x789   : > { %v681_v14 = vmul.f32 %v2468_v8, %v672_v39 }
 0x78b   : > { %v685_v15 = vsub.f32 %v629_v25, %v681_v14 }
 0x78d   : > { %727 = vperm.xlu1 %2111, %v685_v15  }
 0x791   : > { %2112 = vset.pattern.permute.xlu1 %v2265_v41 }
 0x7a0   : > { %v779_v52 = vpop.permute.xlu0 %778 }
 0x7a1   : > { %v792_v0 = vmul.f32 %v2497_v57, %v779_v52 }
 0x7a3   : > { %v796_v7 = vsub.f32 %v740_v54, %v792_v0 }
 0x7a5   : > { %834 = vperm.xlu0 %2109, %v796_v7  }
 0x7a9   : > { %2113 = vset.pattern.permute.xlu0 %v2269_v29 }
 0x7b0   : > { %v830_v17 = vpop.permute.xlu0 %829 }
 0x7b9   : > { %v803_v12 = vpop.permute.xlu1 %802 }
 0x7ba   : > { %v805_v22 = vmul.f32 %v803_v12, %v795_v63 }
 0x7bc   : > { %v2511_v16 = vrot.slane %v805_v22, %v2385_v19 }
 0x7be   : > { %v847_v18 = vmul.f32 %v2511_v16, %v830_v17  ;;  %v601_v23 = vpop.permute.xlu1 %600 }
 0x7bf   : > { %v622_v26 = vmul.f32 %v2455_v11, %v601_v23 }
 0x7c0   : > { %v851_v41 = vsub.f32 %v795_v63, %v847_v18 }
 0x7c1   : > { %v626_v9 = vsub.f32 %v570_v6, %v622_v26 }
 0x7c2   : > { %2209 = vrcp.f32 %v851_v41  ;;  %v875_v30 = vsub.f32 %v851_v41, %v1999_v28 }
 0x7c3   : > { %656 = vperm.xlu1 %2112, %v626_v9  }
 0x7c7   : > { %2114 = vset.pattern.permute.xlu1 %v2269_v29 }
 0x7c8   : > { %885 = vperm.xlu1 %2114, %v875_v30  }
 0x7cc   : > { %v2210_v32 = vpop.eup %2209  ;;  %2115 = vset.pattern.permute.xlu1 %v2267_v27 }
 0x7cd   : > { %858 = vperm.xlu0 %2113, %v2210_v32  }
 0x80c   : > { %v728_v33 = vpop.permute.xlu1 %727 }
 0x80d   : > { %v737_v34 = vmul.f32 %v2480_v31, %v728_v33 }
 0x80f   : > { %v741_v11 = vsub.f32 %v685_v15, %v737_v34  ;;  %v2555_v34 = vadd.s32 16, %v2318_v3 }
 0x811   : > { %783 = vperm.xlu1 %2115, %v741_v11   ;;  %vm1032_vm15 = vcmp.eq.s32.totalorder %v2555_v34, 16  ;;  %vm1088_vm0 = vcmp.eq.s32.totalorder %v2555_v34, 17  ;;  %vm1144_vm2 = vcmp.eq.s32.totalorder %v2555_v34, 18  ;;  %vm1200_vm3 = vcmp.eq.s32.totalorder %v2555_v34, 19 }
 0x812   : > { %vm1256_vm4 = vcmp.eq.s32.totalorder %v2555_v34, 20  ;;  %vm1312_vm5 = vcmp.eq.s32.totalorder %v2555_v34, 21  ;;  %vm1368_vm6 = vcmp.eq.s32.totalorder %v2555_v34, 22  ;;  %vm1424_vm8 = vcmp.eq.s32.totalorder %v2555_v34, 23 }
 0x815   : > { %2116 = vset.pattern.permute.xlu1 %v2266_v35 }
 0x824   : > { %v835_v38 = vpop.permute.xlu0 %834 }
 0x825   : > { %v848_v40 = vmul.f32 %v2511_v16, %v835_v38 }
 0x827   : > { %v852_v42 = vsub.f32 %v796_v7, %v848_v40  ;;  %v2002_v40 = vsel %vm1032_vm15, 1.0, %v2256_v4 }
 0x829   : > { %890 = vperm.xlu0 %2113, %v852_v42  }
 0x82d   : > { %2117 = vset.pattern.permute.xlu0 %v2270_v43 }
 0x842   : > { %v657_v44 = vpop.permute.xlu1 %656 }
 0x843   : > { %v678_v20 = vmul.f32 %v2468_v8, %v657_v44 }
 0x845   : > { %v682_v46 = vsub.f32 %v626_v9, %v678_v20  ;;  %v2272_v9 = vmov 16  }
 0x847   : > { %712 = vperm.xlu1 %2116, %v682_v46   ;;  %v886_v35 = vpop.permute.xlu1 %885 }
 0x84b   : > { %2118 = vset.pattern.permute.xlu1 %v2268_v50 }
 0x84c   : > { %v859_v47 = vpop.permute.xlu0 %858 }
 0x84d   : > { %v861_v24 = vmul.f32 %v859_v47, %v851_v41 }
 0x84f   : > { %v2526_v49 = vrot.slane %v861_v24, %v2403_v45 }
 0x851   : > { %v903_v25 = vmul.f32 %v2526_v49, %v886_v35 }
 0x853   : > { %v907_v51 = vsub.f32 %v851_v41, %v903_v25 }
 0x855   : > { %2211 = vrcp.f32 %v907_v51  ;;  %v931_v58 = vsub.f32 %v907_v51, %v2000_v62  ;;  %v2003_v62 = vsel %vm1088_vm0, 1.0, %v2256_v4 }
 0x85f   : > { %v2212_v53 = vpop.eup %2211 }
 0x860   : > { %914 = vperm.xlu0 %2117, %v2212_v53  }
 0x890   : > { %v784_v54 = vpop.permute.xlu1 %783 }
 0x891   : > { %v793_v55 = vmul.f32 %v2497_v57, %v784_v54 }
 0x893   : > { %v797_v8 = vsub.f32 %v741_v11, %v793_v55 }
 0x895   : > { %839 = vperm.xlu1 %2118, %v797_v8  }
 0x899   : > { %2119 = vset.pattern.permute.xlu1 %v2270_v43 }
 0x89a   : > { %941 = vperm.xlu1 %2119, %v931_v58  }
 0x89e   : > { %2120 = vset.pattern.permute.xlu1 %v2267_v27 }
 0x8a8   : > { %v891_v60 = vpop.permute.xlu0 %890 }
 0x8a9   : > { %v904_v61 = vmul.f32 %v2526_v49, %v891_v60 }
 0x8ab   : > { %v908_v63 = vsub.f32 %v852_v42, %v904_v61 }
 0x8ad   : > { %946 = vperm.xlu0 %2117, %v908_v63  }
 0x8b1   : > { %2121 = vset.pattern.permute.xlu0 %v2269_v29 }
 0x8c6   : > { %v713_v48 = vpop.permute.xlu1 %712 }
 0x8c7   : > { %v734_v1 = vmul.f32 %v2480_v31, %v713_v48 }
 0x8c9   : > { %v738_v5 = vsub.f32 %v682_v46, %v734_v1  ;;  %v2273_v46 = vmov 17  }
 0x8cb   : > { %768 = vperm.xlu1 %2120, %v738_v5  }
 0x8cf   : > { %2122 = vset.pattern.permute.xlu1 %v2271_v37 }
 0x8df   : > { %v915_v6 = vpop.permute.xlu0 %914 }
 0x8e0   : > { %v917_v39 = vmul.f32 %v915_v6, %v907_v51 }
 0x8e2   : > { %v2540_v52 = vrot.slane %v917_v39, %v2420_v2 }
 0x914   : > { %v840_v14 = vpop.permute.xlu1 %839 }
 0x915   : > { %v849_v27 = vmul.f32 %v2511_v16, %v840_v14  ;;  %v2274_v14 = vmov 18  }
 0x917   : > { %v853_v15 = vsub.f32 %v797_v8, %v849_v27 }
 0x919   : > { %v942_v0 = vpop.permute.xlu1 %941  ;;  %895 = vperm.xlu0 %2121, %v853_v15  }
 0x91a   : > { %v959_v7 = vmul.f32 %v2540_v52, %v942_v0 }
 0x91c   : > { %v2543_v12 = vsub.f32 %v907_v51, %v959_v7 }
 0x91d   : > { %2123 = vset.pattern.permute.xlu0 %v2268_v50 }
 0x91e   : > { %2213 = vrcp.f32 %v2543_v12 }
 0x928   : > { %v2214_v31 = vpop.eup %2213 }
 0x929   : > { %970 = vperm.xlu1 %2122, %v2214_v31  }
 0x92c   : > { %v947_v22 = vpop.permute.xlu0 %946 }
 0x92d   : > { %v960_v17 = vmul.f32 %v2540_v52, %v947_v22 }
 0x92f   : > { %v964_v18 = vsub.f32 %v908_v63, %v960_v17  ;;  %v2001_v17 = vsel %vm975_vm1, 1.0, %v2256_v4 }
 0x931   : > { %1002 = vperm.xlu1 %2122, %v964_v18  }
 0x935   : > { %2124 = vset.pattern.permute.xlu1 %v2270_v43 }
 0x94a   : > { %v769_v23 = vpop.permute.xlu1 %768 }
 0x94b   : > { %v790_v26 = vmul.f32 %v2497_v57, %v769_v23  ;;  %v2004_v23 = vsel %vm1144_vm2, 1.0, %v2256_v4 }
 0x94d   : > { %v794_v41 = vsub.f32 %v738_v5, %v790_v26 }
 0x94f   : > { %824 = vperm.xlu0 %2123, %v794_v41  }
 0x953   : > { %2126 = vset.pattern.permute.xlu0 %v2272_v9 }
 0x998   : > { %v896_v50 = vpop.permute.xlu0 %895 }
 0x999   : > { %v905_v28 = vmul.f32 %v2526_v49, %v896_v50 }
 0x99b   : > { %v909_v30 = vsub.f32 %v853_v15, %v905_v28 }
 0x99d   : > { %951 = vperm.xlu1 %2124, %v909_v30  }
 0x9a1   : > { %2125 = vset.pattern.permute.xlu1 %v2272_v9 }
 0x9a8   : > { %v971_v32 = vpop.permute.xlu1 %970 }
 0x9a9   : > { %v973_v33 = vmul.f32 %v971_v32, %v2543_v12 }
 0x9ab   : > { %v2558_v57 = vrot.slane %v973_v33, %v2436_v13 }
 0x9b0   : > { %v1003_v11 = vpop.permute.xlu1 %1002 }
 0x9b1   : > { %v1016_v38 = vmul.f32 %v2558_v57, %v1003_v11 }
 0x9b3   : > { %v1020_v42 = vsub.f32 %v964_v18, %v1016_v38  ;;  %v987_v18 = vsub.f32 %v2543_v12, %v2001_v17 }
 0x9b5   : > { %2215 = vrcp.f32 %v1020_v42  ;;  %v1044_v44 = vsub.f32 %v1020_v42, %v2002_v40  ;;  %v2275_v40 = vmov 19  }
 0x9b7   : > { %1058 = vperm.xlu0 %2126, %v1044_v44  }
 0x9bb   : > { %2129 = vset.pattern.permute.xlu0 %v2273_v46 }
 0x9bf   : > { %v2216_v20 = vpop.eup %2215 }
 0x9c0   : > { %1026 = vperm.xlu1 %2125, %v2216_v20  }
 0x9c4   : > { %2127 = vset.pattern.permute.xlu1 %v2269_v29 }
 0x9ce   : > { %v825_v47 = vpop.permute.xlu0 %824 }
 0x9cf   : > { %v846_v24 = vmul.f32 %v2511_v16, %v825_v47 }
 0x9d1   : > { %v850_v35 = vsub.f32 %v794_v41, %v846_v24 }
 0x9d3   : > { %880 = vperm.xlu1 %2127, %v850_v35  }
 0x9d7   : > { %2128 = vset.pattern.permute.xlu1 %v2271_v37 }
 0xa1c   : > { %v952_v25 = vpop.permute.xlu1 %951 }
 0xa1d   : > { %v961_v51 = vmul.f32 %v2540_v52, %v952_v25 }
 0xa1f   : > { %v965_v53 = vsub.f32 %v909_v30, %v961_v51  ;;  %v2005_v51 = vsel %vm1200_vm3, 1.0, %v2256_v4 }
 0xa21   : > { %1007 = vperm.xlu1 %2128, %v965_v53  }
 0xa25   : > { %2130 = vset.pattern.permute.xlu1 %v2273_v46 }
 0xa36   : > { %v1059_v8 = vpop.permute.xlu0 %1058 }
 0xa3f   : > { %v1027_v54 = vpop.permute.xlu1 %1026 }
 0xa40   : > { %v1029_v55 = vmul.f32 %v1027_v54, %v1020_v42 }
 0xa42   : > { %v2570_v29 = vrot.slane %v1029_v55, %v2325_v10 }
 0xa44   : > { %v1072_v16 = vmul.f32 %v2570_v29, %v1059_v8 }
 0xa46   : > { %v1076_v58 = vsub.f32 %v1020_v42, %v1072_v16 }
 0xa48   : > { %2217 = vrcp.f32 %v1076_v58  ;;  %v1100_v60 = vsub.f32 %v1076_v58, %v2003_v62 }
 0xa4a   : > { %1114 = vperm.xlu1 %2130, %v1100_v60   ;;  %v2276_v60 = vmov 20  }
 0xa4e   : > { %2131 = vset.pattern.permute.xlu1 %v2270_v43 }
 0xa52   : > { %v2218_v61 = vpop.eup %2217  ;;  %v881_v63 = vpop.permute.xlu1 %880 }
 0xa53   : > { %v902_v48 = vmul.f32 %v2526_v49, %v881_v63  ;;  %1082 = vperm.xlu0 %2129, %v2218_v61  }
 0xa55   : > { %v906_v1 = vsub.f32 %v850_v35, %v902_v48 }
 0xa57   : > { %936 = vperm.xlu1 %2131, %v906_v1   ;;  %2132 = vset.pattern.permute.xlu0 %v2272_v9 }
 0xa5b   : > { %2133 = vset.pattern.permute.xlu1 %v2271_v37 }
 0xaa0   : > { %v1008_v5 = vpop.permute.xlu1 %1007 }
 0xaa1   : > { %v1017_v6 = vmul.f32 %v2558_v57, %v1008_v5 }
 0xaa3   : > { %v1021_v39 = vsub.f32 %v965_v53, %v1017_v6 }
 0xaa5   : > { %1063 = vperm.xlu0 %2132, %v1021_v39  }
 0xaa9   : > { %2134 = vset.pattern.permute.xlu0 %v2274_v14 }
 0xac9   : > { %v1115_v43 = vpop.permute.xlu1 %1114 }
 0xad2   : > { %v1083_v27 = vpop.permute.xlu0 %1082 }
 0xad3   : > { %v1085_v15 = vmul.f32 %v1083_v27, %v1076_v58 }
 0xad5   : > { %v2582_v49 = vrot.slane %v1085_v15, %v2336_v21 }
 0xad6   : > { %v937_v0 = vpop.permute.xlu1 %936 }
 0xad7   : > { %v1128_v7 = vmul.f32 %v2582_v49, %v1115_v43  ;;  %v958_v31 = vmul.f32 %v2540_v52, %v937_v0 }
 0xad9   : > { %v1132_v37 = vsub.f32 %v1076_v58, %v1128_v7  ;;  %v962_v22 = vsub.f32 %v906_v1, %v958_v31 }
 0xadb   : > { %2219 = vrcp.f32 %v1132_v37  ;;  %992 = vperm.xlu1 %2133, %v962_v22   ;;  %v1156_v26 = vsub.f32 %v1132_v37, %v2004_v23 }
 0xadf   : > { %997 = vperm.xlu1 %2133, %v987_v18   ;;  %v2277_v18 = vmov 21  }
 0xae3   : > { %2135 = vset.pattern.permute.xlu1 %v2274_v14 }
 0xae4   : > { %1170 = vperm.xlu1 %2135, %v1156_v26  }
 0xae5   : > { %v2220_v52 = vpop.eup %2219 }
 0xae6   : > { %1138 = vperm.xlu0 %2134, %v2220_v52  }
 0xae8   : > { %2136 = vset.pattern.permute.xlu1 %v2273_v46 }
 0xaea   : > { %2137 = vset.pattern.permute.xlu0 %v2272_v9 }
 0xb24   : > { %v1064_v59 = vpop.permute.xlu0 %1063 }
 0xb25   : > { %v1073_v41 = vmul.f32 %v2570_v29, %v1064_v59 }
 0xb27   : > { %v1077_v50 = vsub.f32 %v1021_v39, %v1073_v41  ;;  %v2006_v39 = vsel %vm1256_vm4, 1.0, %v2256_v4 }
 0xb29   : > { %1119 = vperm.xlu1 %2136, %v1077_v50  }
 0xb2d   : > { %2138 = vset.pattern.permute.xlu1 %v2272_v9 }
 0xb5a   : > { %v993_v28 = vpop.permute.xlu1 %992 }
 0xb5b   : > { %v1014_v30 = vmul.f32 %v2558_v57, %v993_v28 }
 0xb5d   : > { %v1018_v32 = vsub.f32 %v962_v22, %v1014_v30 }
 0xb5e   : > { %v998_v33 = vpop.permute.xlu1 %997 }
 0xb5f   : > { %v1015_v11 = vmul.f32 %v2558_v57, %v998_v33  ;;  %1048 = vperm.xlu0 %2137, %v1018_v32  }
 0xb61   : > { %v1019_v38 = vsub.f32 %v2543_v12, %v1015_v11 }
 0xb63   : > { %1053 = vperm.xlu1 %2138, %v1019_v38   ;;  %2140 = vset.pattern.permute.xlu0 %v2275_v40  ;;  %v1171_v20 = vpop.permute.xlu1 %1170 }
 0xb65   : > { %v1139_v42 = vpop.permute.xlu0 %1138 }
 0xb66   : > { %v1141_v44 = vmul.f32 %v1139_v42, %v1132_v37 }
 0xb67   : > { %2139 = vset.pattern.permute.xlu1 %v2274_v14 }
 0xb68   : > { %v2602_v9 = vrot.slane %v1141_v44, %v2350_v36 }
 0xb6a   : > { %v1184_v47 = vmul.f32 %v2602_v9, %v1171_v20 }
 0xb6c   : > { %v1188_v24 = vsub.f32 %v1132_v37, %v1184_v47 }
 0xb6e   : > { %2221 = vrcp.f32 %v1188_v24  ;;  %v1212_v53 = vsub.f32 %v1188_v24, %v2005_v51 }
 0xb78   : > { %v2222_v57 = vpop.eup %2221 }
 0xb79   : > { %1194 = vperm.xlu0 %2140, %v2222_v57  }
 0xb7d   : > { %2143 = vset.pattern.permute.xlu0 %v2273_v46 }
 0xba8   : > { %v1120_v12 = vpop.permute.xlu1 %1119 }
 0xba9   : > { %v1129_v35 = vmul.f32 %v2582_v49, %v1120_v12 }
 0xbab   : > { %v1133_v25 = vsub.f32 %v1077_v50, %v1129_v35 }
 0xbad   : > { %1175 = vperm.xlu1 %2139, %v1133_v25  }
 0xbb1   : > { %2141 = vset.pattern.permute.xlu1 %v2275_v40 }
 0xbb2   : > { %1226 = vperm.xlu1 %2141, %v1212_v53  }
 0xbb6   : > { %2142 = vset.pattern.permute.xlu1 %v2273_v46 }
 0xbde   : > { %v1049_v54 = vpop.permute.xlu0 %1048 }
 0xbdf   : > { %v1070_v55 = vmul.f32 %v2570_v29, %v1049_v54 }
 0xbe1   : > { %v1074_v8 = vsub.f32 %v1018_v32, %v1070_v55 }
 0xbe2   : > { %v1054_v16 = vpop.permute.xlu1 %1053 }
 0xbe3   : > { %v1071_v62 = vmul.f32 %v2570_v29, %v1054_v16  ;;  %1104 = vperm.xlu1 %2142, %v1074_v8  }
 0xbe5   : > { %v1075_v58 = vsub.f32 %v1019_v38, %v1071_v62 }
 0xbe7   : > { %1109 = vperm.xlu0 %2143, %v1075_v58   ;;  %2144 = vset.pattern.permute.xlu1 %v2275_v40 }
 0xbeb   : > { %2146 = vset.pattern.permute.xlu0 %v2276_v60 }
 0xbf8   : > { %v1195_v61 = vpop.permute.xlu0 %1194 }
 0xbf9   : > { %v1197_v63 = vmul.f32 %v1195_v61, %v1188_v24  ;;  %v2278_v61 = vmov 22  }
 0xbfb   : > { %v2616_v5 = vrot.slane %v1197_v63, %v2366_v56  ;;  %v2008_v63 = vsel %vm1368_vm6, 1.0, %v2256_v4 }
 0xc2c   : > { %v1176_v48 = vpop.permute.xlu1 %1175 }
 0xc2d   : > { %v1185_v1 = vmul.f32 %v2602_v9, %v1176_v48 }
 0xc2f   : > { %v1189_v46 = vsub.f32 %v1133_v25, %v1185_v1 }
 0xc31   : > { %v1227_v6 = vpop.permute.xlu1 %1226  ;;  %1231 = vperm.xlu1 %2144, %v1189_v46  }
 0xc32   : > { %v1240_v29 = vmul.f32 %v2616_v5, %v1227_v6 }
 0xc34   : > { %v1244_v43 = vsub.f32 %v1188_v24, %v1240_v29 }
 0xc35   : > { %2145 = vset.pattern.permute.xlu1 %v2276_v60 }
 0xc36   : > { %2223 = vrcp.f32 %v1244_v43  ;;  %v1268_v27 = vsub.f32 %v1244_v43, %v2006_v39 }
 0xc38   : > { %1282 = vperm.xlu0 %2146, %v1268_v27  }
 0xc40   : > { %v2224_v15 = vpop.eup %2223 }
 0xc41   : > { %1250 = vperm.xlu1 %2145, %v2224_v15  }
 0xc45   : > { %2147 = vset.pattern.permute.xlu1 %v2274_v14 }
 0xc62   : > { %v1105_v0 = vpop.permute.xlu1 %1104 }
 0xc63   : > { %v1126_v7 = vmul.f32 %v2582_v49, %v1105_v0 }
 0xc65   : > { %v1130_v31 = vsub.f32 %v1074_v8, %v1126_v7 }
 0xc66   : > { %v1110_v37 = vpop.permute.xlu0 %1109 }
 0xc67   : > { %v1127_v22 = vmul.f32 %v2582_v49, %v1110_v37  ;;  %1160 = vperm.xlu1 %2147, %v1130_v31   ;;  %v2007_v49 = vsel %vm1312_vm5, 1.0, %v2256_v4 }
 0xc69   : > { %v1131_v17 = vsub.f32 %v1075_v58, %v1127_v22 }
 0xc6b   : > { %1165 = vperm.xlu1 %2147, %v1131_v17  }
 0xc6f   : > { %2148 = vset.pattern.permute.xlu1 %v2277_v18 }
 0xcb0   : > { %v1232_v23 = vpop.permute.xlu1 %1231 }
 0xcb1   : > { %v1241_v26 = vmul.f32 %v2616_v5, %v1232_v23 }
 0xcb3   : > { %v1245_v52 = vsub.f32 %v1189_v46, %v1241_v26 }
 0xcb5   : > { %1287 = vperm.xlu0 %2146, %v1245_v52  }
 0xcb7   : > { %v1283_v50 = vpop.permute.xlu0 %1282 }
 0xcb9   : > { %2149 = vset.pattern.permute.xlu0 %v2277_v18 }
 0xcc0   : > { %v1251_v59 = vpop.permute.xlu1 %1250 }
 0xcc1   : > { %v1253_v14 = vmul.f32 %v1251_v59, %v1244_v43 }
 0xcc3   : > { %v1293_v41 = vrot.slane %v1253_v14, %v2385_v19 }
 0xcc5   : > { %v1296_v28 = vmul.f32 %v1293_v41, %v1283_v50 }
 0xcc7   : > { %v1300_v30 = vsub.f32 %v1244_v43, %v1296_v28 }
 0xcc9   : > { %v1324_v32 = vsub.f32 %v1300_v30, %v2007_v49  ;;  %2225 = vrcp.f32 %v1300_v30 }
 0xccb   : > { %1338 = vperm.xlu0 %2149, %v1324_v32   ;;  %v2280_v32 = vmov 24  }
 0xcd3   : > { %v2226_v33 = vpop.eup %2225 }
 0xcd4   : > { %1306 = vperm.xlu1 %2148, %v2226_v33  }
 0xcd8   : > { %2150 = vset.pattern.permute.xlu1 %v2275_v40 }
 0xce6   : > { %v1161_v11 = vpop.permute.xlu1 %1160 }
 0xce7   : > { %v1182_v38 = vmul.f32 %v2602_v9, %v1161_v11 }
 0xce9   : > { %v1186_v42 = vsub.f32 %v1130_v31, %v1182_v38 }
 0xcea   : > { %v1166_v44 = vpop.permute.xlu1 %1165 }
 0xceb   : > { %v1183_v20 = vmul.f32 %v2602_v9, %v1166_v44  ;;  %1216 = vperm.xlu1 %2150, %v1186_v42  }
 0xced   : > { %v1187_v47 = vsub.f32 %v1131_v17, %v1183_v20 }
 0xcef   : > { %1221 = vperm.xlu1 %2150, %v1187_v47  }
 0xcf3   : > { %2152 = vset.pattern.permute.xlu1 %v2276_v60 }
 0xd34   : > { %v1288_v24 = vpop.permute.xlu0 %1287 }
 0xd35   : > { %v1297_v57 = vmul.f32 %v1293_v41, %v1288_v24 }
 0xd37   : > { %v1301_v12 = vsub.f32 %v1245_v52, %v1297_v57 }
 0xd39   : > { %1343 = vperm.xlu0 %2149, %v1301_v12  }
 0xd3d   : > { %2151 = vset.pattern.permute.xlu0 %v2276_v60 }
 0xd4a   : > { %v1339_v51 = vpop.permute.xlu0 %1338 }
 0xd53   : > { %v1307_v35 = vpop.permute.xlu1 %1306 }
 0xd54   : > { %v1309_v25 = vmul.f32 %v1307_v35, %v1300_v30 }
 0xd56   : > { %v1349_v40 = vrot.slane %v1309_v25, %v2403_v45 }
 0xd58   : > { %v1352_v53 = vmul.f32 %v1349_v40, %v1339_v51 }
 0xd5a   : > { %v1356_v54 = vsub.f32 %v1300_v30, %v1352_v53 }
 0xd5c   : > { %2227 = vrcp.f32 %v1356_v54  ;;  %v1380_v48 = vsub.f32 %v1356_v54, %v2008_v63 }
 0xd66   : > { %v2228_v60 = vpop.eup %2227 }
 0xd6a   : > { %v1217_v55 = vpop.permute.xlu1 %1216 }
 0xd6b   : > { %v1238_v8 = vmul.f32 %v2616_v5, %v1217_v55  ;;  %v2281_v55 = vmov 25  }
 0xd6d   : > { %v1242_v9 = vsub.f32 %v1186_v42, %v1238_v8 }
 0xd6e   : > { %v1222_v16 = vpop.permute.xlu1 %1221 }
 0xd6f   : > { %v1239_v62 = vmul.f32 %v2616_v5, %v1222_v16  ;;  %1272 = vperm.xlu0 %2151, %v1242_v9   ;;  %v2279_v5 = vmov 23  }
 0xd71   : > { %v1243_v58 = vsub.f32 %v1187_v47, %v1239_v62  ;;  %v2643_v47 = vadd.s32 24, %v2318_v3  ;;  %v2009_v3 = vsel %vm1424_vm8, 1.0, %v2256_v4 }
 0xd73   : > { %1277 = vperm.xlu1 %2152, %v1243_v58   ;;  %2154 = vset.pattern.permute.xlu0 %v2278_v61  ;;  %vm1481_vm7 = vcmp.eq.s32.totalorder %v2643_v47, 24  ;;  %vm1537_vm9 = vcmp.eq.s32.totalorder %v2643_v47, 25  ;;  %vm1593_vm10 = vcmp.eq.s32.totalorder %v2643_v47, 26  ;;  %vm1649_vm11 = vcmp.eq.s32.totalorder %v2643_v47, 27 }
 0xd74   : > { %v2010_v57 = vsel %vm1481_vm7, 1.0, %v2256_v4  ;;  %v2011_v34 = vsel %vm1537_vm9, 1.0, %v2256_v4  ;;  %vm1705_vm12 = vcmp.eq.s32.totalorder %v2643_v47, 28  ;;  %vm1761_vm13 = vcmp.eq.s32.totalorder %v2643_v47, 29 }
 0xd75   : > { %vm1817_vm14 = vcmp.eq.s32.totalorder %v2643_v47, 30  ;;  %vm1873_vm15 = vcmp.eq.s32.totalorder %v2643_v47, 31 }
 0xd77   : > { %2153 = vset.pattern.permute.xlu1 %v2278_v61 }
 0xd78   : > { %1362 = vperm.xlu1 %2153, %v2228_v60  }
 0xd7c   : > { %1394 = vperm.xlu1 %2153, %v1380_v48  }
 0xd80   : > { %2155 = vset.pattern.permute.xlu1 %v2277_v18 }
 0xdb8   : > { %v1344_v1 = vpop.permute.xlu0 %1343 }
 0xdb9   : > { %v1353_v46 = vmul.f32 %v1349_v40, %v1344_v1 }
 0xdbb   : > { %v1357_v6 = vsub.f32 %v1301_v12, %v1353_v46 }
 0xdbd   : > { %1399 = vperm.xlu0 %2154, %v1357_v6  }
 0xdc1   : > { %2156 = vset.pattern.permute.xlu0 %v2279_v5 }
 0xdee   : > { %v1273_v29 = vpop.permute.xlu0 %1272 }
 0xdef   : > { %v1294_v39 = vmul.f32 %v1293_v41, %v1273_v29 }
 0xdf1   : > { %v1298_v43 = vsub.f32 %v1242_v9, %v1294_v39 }
 0xdf2   : > { %v1278_v27 = vpop.permute.xlu1 %1277 }
 0xdf3   : > { %v1295_v15 = vmul.f32 %v1293_v41, %v1278_v27  ;;  %1328 = vperm.xlu1 %2155, %v1298_v43  }
 0xdf5   : > { %v1299_v0 = vsub.f32 %v1243_v58, %v1295_v15  ;;  %v2282_v15 = vmov 26  }
 0xdf7   : > { %v1363_v7 = vpop.permute.xlu1 %1362  ;;  %1333 = vperm.xlu1 %2155, %v1299_v0  }
 0xdf8   : > { %v1365_v31 = vmul.f32 %v1363_v7, %v1356_v54 }
 0xdfa   : > { %v1405_v37 = vrot.slane %v1365_v31, %v2420_v2 }
 0xdfb   : > { %v1395_v22 = vpop.permute.xlu1 %1394  ;;  %2157 = vset.pattern.permute.xlu1 %v2279_v5 }
 0xdfc   : > { %v1408_v17 = vmul.f32 %v1405_v37, %v1395_v22 }
 0xdfe   : > { %v2637_v18 = vsub.f32 %v1356_v54, %v1408_v17  ;;  %v2012_v17 = vsel %vm1593_vm10, 1.0, %v2256_v4 }
 0xe00   : > { %2229 = vrcp.f32 %v2637_v18  ;;  %v1436_v8 = vsub.f32 %v2637_v18, %v2009_v3  ;;  %v2283_v3 = vmov 27  }
 0xe0a   : > { %v2230_v23 = vpop.eup %2229 }
 0xe0b   : > { %1418 = vperm.xlu0 %2156, %v2230_v23  }
 0xe0f   : > { %2159 = vset.pattern.permute.xlu0 %v2278_v61 }
 0xe3c   : > { %v1400_v26 = vpop.permute.xlu0 %1399 }
 0xe3d   : > { %v1409_v52 = vmul.f32 %v1405_v37, %v1400_v26 }
 0xe3f   : > { %v1413_v59 = vsub.f32 %v1357_v6, %v1409_v52 }
 0xe41   : > { %1455 = vperm.xlu1 %2157, %v1413_v59  }
 0xe45   : > { %2158 = vset.pattern.permute.xlu1 %v2278_v61 }
 0xe72   : > { %v1329_v14 = vpop.permute.xlu1 %1328 }
 0xe73   : > { %v1350_v41 = vmul.f32 %v1349_v40, %v1329_v14 }
 0xe75   : > { %v1354_v50 = vsub.f32 %v1298_v43, %v1350_v41 }
 0xe76   : > { %v1334_v28 = vpop.permute.xlu1 %1333 }
 0xe77   : > { %v1351_v49 = vmul.f32 %v1349_v40, %v1334_v28  ;;  %1384 = vperm.xlu1 %2158, %v1354_v50  }
 0xe79   : > { %v1355_v30 = vsub.f32 %v1299_v0, %v1351_v49 }
 0xe7b   : > { %1389 = vperm.xlu0 %2159, %v1355_v30   ;;  %2160 = vset.pattern.permute.xlu1 %v2280_v32 }
 0xe7f   : > { %2161 = vset.pattern.permute.xlu0 %v2279_v5 }
 0xe8a   : > { %v1419_v33 = vpop.permute.xlu0 %1418 }
 0xe8b   : > { %v1421_v11 = vmul.f32 %v1419_v33, %v2637_v18 }
 0xe8d   : > { %v1461_v38 = vrot.slane %v1421_v11, %v2436_v13 }
 0xec0   : > { %v1456_v42 = vpop.permute.xlu1 %1455 }
 0xec1   : > { %v1465_v44 = vmul.f32 %v1461_v38, %v1456_v42 }
 0xec3   : > { %v1469_v20 = vsub.f32 %v1413_v59, %v1465_v44 }
 0xec5   : > { %2231 = vrcp.f32 %v1469_v20  ;;  %v1493_v12 = vsub.f32 %v1469_v20, %v2010_v57 }
 0xecf   : > { %v2232_v24 = vpop.eup %2231 }
 0xed0   : > { %1474 = vperm.xlu1 %2160, %v2232_v24  }
 0xed4   : > { %1511 = vperm.xlu1 %2160, %v1493_v12  }
 0xed8   : > { %2162 = vset.pattern.permute.xlu1 %v2279_v5 }
 0xef6   : > { %v1385_v35 = vpop.permute.xlu1 %1384 }
 0xef7   : > { %v1406_v25 = vmul.f32 %v1405_v37, %v1385_v35 }
 0xef9   : > { %v1410_v40 = vsub.f32 %v1354_v50, %v1406_v25 }
 0xefa   : > { %v1390_v51 = vpop.permute.xlu0 %1389 }
 0xefb   : > { %v1407_v53 = vmul.f32 %v1405_v37, %v1390_v51  ;;  %1440 = vperm.xlu0 %2161, %v1410_v40  }
 0xefd   : > { %v1411_v54 = vsub.f32 %v1355_v30, %v1407_v53 }
 0xeff   : > { %1445 = vperm.xlu1 %2162, %v1411_v54   ;;  %2163 = vset.pattern.permute.xlu0 %v2281_v55 }
 0xf03   : > { %1450 = vperm.xlu1 %2162, %v1436_v8  }
 0xf07   : > { %2164 = vset.pattern.permute.xlu1 %v2281_v55 }
 0xf4f   : > { %v1475_v9 = vpop.permute.xlu1 %1474 }
 0xf50   : > { %v1477_v16 = vmul.f32 %v1475_v9, %v1469_v20 }
 0xf52   : > { %v1517_v62 = vrot.slane %v1477_v16, %v2325_v10 }
 0xf53   : > { %v1512_v58 = vpop.permute.xlu1 %1511 }
 0xf54   : > { %v1521_v61 = vmul.f32 %v1517_v62, %v1512_v58 }
 0xf56   : > { %v1525_v60 = vsub.f32 %v1469_v20, %v1521_v61 }
 0xf58   : > { %2233 = vrcp.f32 %v1525_v60  ;;  %v1549_v63 = vsub.f32 %v1525_v60, %v2011_v34 }
 0xf5a   : > { %1567 = vperm.xlu1 %2164, %v1549_v63  }
 0xf5e   : > { %2165 = vset.pattern.permute.xlu1 %v2280_v32 }
 0xf62   : > { %v2234_v48 = vpop.eup %2233 }
 0xf63   : > { %1530 = vperm.xlu0 %2163, %v2234_v48   ;;  %v2284_v48 = vmov 28  }
 0xf67   : > { %2166 = vset.pattern.permute.xlu0 %v2280_v32 }
 0xf7a   : > { %v1441_v1 = vpop.permute.xlu0 %1440 }
 0xf7b   : > { %v1462_v46 = vmul.f32 %v1461_v38, %v1441_v1 }
 0xf7d   : > { %v1466_v6 = vsub.f32 %v1410_v40, %v1462_v46 }
 0xf7e   : > { %v1446_v5 = vpop.permute.xlu1 %1445 }
 0xf7f   : > { %v1463_v29 = vmul.f32 %v1461_v38, %v1446_v5  ;;  %1496 = vperm.xlu1 %2165, %v1466_v6  }
 0xf81   : > { %v1467_v10 = vsub.f32 %v1411_v54, %v1463_v29 }
 0xf82   : > { %v1451_v39 = vpop.permute.xlu1 %1450 }
 0xf83   : > { %v1464_v43 = vmul.f32 %v1461_v38, %v1451_v39  ;;  %1501 = vperm.xlu0 %2166, %v1467_v10  }
 0xf85   : > { %v1468_v27 = vsub.f32 %v2637_v18, %v1464_v43 }
 0xf87   : > { %1506 = vperm.xlu1 %2165, %v1468_v27   ;;  %2168 = vset.pattern.permute.xlu0 %v2282_v15 }
 0xf8b   : > { %2167 = vset.pattern.permute.xlu1 %v2282_v15 }
 0xfd9   : > { %v1568_v37 = vpop.permute.xlu1 %1567 }
 0xfe2   : > { %v1531_v0 = vpop.permute.xlu0 %1530 }
 0xfe3   : > { %v1533_v7 = vmul.f32 %v1531_v0, %v1525_v60 }
 0xfe5   : > { %v1573_v31 = vrot.slane %v1533_v7, %v2336_v21 }
 0xfe7   : > { %v1577_v22 = vmul.f32 %v1573_v31, %v1568_v37 }
 0xfe9   : > { %v1581_v23 = vsub.f32 %v1525_v60, %v1577_v22 }
 0xfeb   : > { %v1605_v26 = vsub.f32 %v1581_v23, %v2012_v17  ;;  %2235 = vrcp.f32 %v1581_v23 }
 0xfed   : > { %1623 = vperm.xlu0 %2168, %v1605_v26   ;;  %v2285_v26 = vmov 29  }
 0xff1   : > { %2170 = vset.pattern.permute.xlu0 %v2281_v55 }
 0xff5   : > { %v2236_v18 = vpop.eup %2235 }
 0xff6   : > { %1586 = vperm.xlu1 %2167, %v2236_v18  }
 0xffa   : > { %2169 = vset.pattern.permute.xlu1 %v2281_v55 }
 0xffe   : > { %v1497_v52 = vpop.permute.xlu1 %1496 }
 0xfff   : > { %v1518_v59 = vmul.f32 %v1517_v62, %v1497_v52 }
0x1001   : > { %v1522_v14 = vsub.f32 %v1466_v6, %v1518_v59 }
0x1002   : > { %v1502_v41 = vpop.permute.xlu0 %1501 }
0x1003   : > { %v1519_v50 = vmul.f32 %v1517_v62, %v1502_v41  ;;  %1552 = vperm.xlu1 %2169, %v1522_v14  }
0x1005   : > { %v1523_v21 = vsub.f32 %v1467_v10, %v1519_v50  ;;  %v2014_v10 = vsel %vm1705_vm12, 1.0, %v2256_v4  ;;  %v2015_v50 = vsel %vm1761_vm13, 1.0, %v2256_v4 }
0x1006   : > { %v1507_v28 = vpop.permute.xlu1 %1506 }
0x1007   : > { %v1520_v49 = vmul.f32 %v1517_v62, %v1507_v28  ;;  %1557 = vperm.xlu1 %2169, %v1523_v21  }
0x1009   : > { %v1524_v30 = vsub.f32 %v1468_v27, %v1520_v49 }
0x100b   : > { %1562 = vperm.xlu0 %2170, %v1524_v30   ;;  %2171 = vset.pattern.permute.xlu1 %v2282_v15 }
0x100f   : > { %2172 = vset.pattern.permute.xlu0 %v2282_v15 }
0x106c   : > { %v1624_v38 = vpop.permute.xlu0 %1623 }
0x1075   : > { %v1587_v32 = vpop.permute.xlu1 %1586 }
0x1076   : > { %v1589_v33 = vmul.f32 %v1587_v32, %v1581_v23 }
0x1078   : > { %v1629_v11 = vrot.slane %v1589_v33, %v2350_v36  ;;  %v2013_v36 = vsel %vm1649_vm11, 1.0, %v2256_v4 }
0x107a   : > { %v1633_v42 = vmul.f32 %v1629_v11, %v1624_v38 }
0x107c   : > { %v1637_v44 = vsub.f32 %v1581_v23, %v1633_v42 }
0x107e   : > { %2237 = vrcp.f32 %v1637_v44  ;;  %v1661_v55 = vsub.f32 %v1637_v44, %v2013_v36 }
0x1082   : > { %v1553_v20 = vpop.permute.xlu1 %1552 }
0x1083   : > { %v1574_v24 = vmul.f32 %v1573_v31, %v1553_v20 }
0x1085   : > { %v1578_v57 = vsub.f32 %v1522_v14, %v1574_v24  ;;  %v2286_v24 = vmov 30  }
0x1086   : > { %v1558_v12 = vpop.permute.xlu1 %1557 }
0x1087   : > { %v1575_v35 = vmul.f32 %v1573_v31, %v1558_v12  ;;  %1608 = vperm.xlu1 %2171, %v1578_v57  }
0x1088   : > { %v2238_v54 = vpop.eup %2237 }
0x1089   : > { %v1579_v25 = vsub.f32 %v1523_v21, %v1575_v35 }
0x108a   : > { %v1563_v40 = vpop.permute.xlu0 %1562 }
0x108b   : > { %v1576_v51 = vmul.f32 %v1573_v31, %v1563_v40  ;;  %1613 = vperm.xlu1 %2171, %v1579_v25  }
0x108d   : > { %v1580_v53 = vsub.f32 %v1524_v30, %v1576_v51  ;;  %v2016_v51 = vsel %vm1817_vm14, 1.0, %v2256_v4 }
0x108f   : > { %2173 = vset.pattern.permute.xlu1 %v2283_v3  ;;  %1618 = vperm.xlu0 %2172, %v1580_v53  }
0x1090   : > { %1642 = vperm.xlu1 %2173, %v2238_v54  }
0x1093   : > { %2174 = vset.pattern.permute.xlu0 %v2283_v3 }
0x1094   : > { %1679 = vperm.xlu1 %2173, %v1661_v55  }
0x1106   : > { %v1609_v8 = vpop.permute.xlu1 %1608 }
0x1107   : > { %v1630_v9 = vmul.f32 %v1629_v11, %v1609_v8 }
0x1109   : > { %v1634_v16 = vsub.f32 %v1578_v57, %v1630_v9 }
0x110a   : > { %v1614_v62 = vpop.permute.xlu1 %1613 }
0x110b   : > { %v1631_v58 = vmul.f32 %v1629_v11, %v1614_v62  ;;  %1664 = vperm.xlu0 %2174, %v1634_v16  }
0x110d   : > { %v1635_v61 = vsub.f32 %v1579_v25, %v1631_v58 }
0x110e   : > { %v1619_v34 = vpop.permute.xlu0 %1618 }
0x110f   : > { %v1632_v60 = vmul.f32 %v1629_v11, %v1619_v34  ;;  %1669 = vperm.xlu1 %2173, %v1635_v61   ;;  %v1643_v63 = vpop.permute.xlu1 %1642  ;;  %2175 = vset.pattern.permute.xlu0 %v2284_v48  ;;  %v2287_v34 = vmov 31  }
0x1110   : > { %v1645_v1 = vmul.f32 %v1643_v63, %v1637_v44 }
0x1111   : > { %v1636_v46 = vsub.f32 %v1580_v53, %v1632_v60 }
0x1112   : > { %v1685_v6 = vrot.slane %v1645_v1, %v2366_v56 }
0x1113   : > { %v1680_v5 = vpop.permute.xlu1 %1679  ;;  %1674 = vperm.xlu1 %2173, %v1636_v46  }
0x1114   : > { %v1689_v29 = vmul.f32 %v1685_v6, %v1680_v5 }
0x1116   : > { %v1693_v39 = vsub.f32 %v1637_v44, %v1689_v29 }
0x1117   : > { %2176 = vset.pattern.permute.xlu1 %v2284_v48 }
0x1118   : > { %2239 = vrcp.f32 %v1693_v39  ;;  %v1717_v43 = vsub.f32 %v1693_v39, %v2014_v10 }
0x111a   : > { %1735 = vperm.xlu1 %2176, %v1717_v43  }
0x1122   : > { %v2240_v27 = vpop.eup %2239 }
0x1123   : > { %1698 = vperm.xlu0 %2175, %v2240_v27  }
0x118a   : > { %v1665_v15 = vpop.permute.xlu0 %1664 }
0x118b   : > { %v1686_v0 = vmul.f32 %v1685_v6, %v1665_v15 }
0x118d   : > { %v1690_v7 = vsub.f32 %v1634_v16, %v1686_v0 }
0x118e   : > { %v1670_v31 = vpop.permute.xlu1 %1669 }
0x118f   : > { %v1687_v37 = vmul.f32 %v1685_v6, %v1670_v31  ;;  %1720 = vperm.xlu1 %2176, %v1690_v7  }
0x1191   : > { %v1691_v56 = vsub.f32 %v1635_v61, %v1687_v37 }
0x1192   : > { %v1675_v22 = vpop.permute.xlu1 %1674 }
0x1193   : > { %v1688_v17 = vmul.f32 %v1685_v6, %v1675_v22  ;;  %1725 = vperm.xlu0 %2175, %v1691_v56  }
0x1195   : > { %v1692_v23 = vsub.f32 %v1636_v46, %v1688_v17 }
0x1197   : > { %1730 = vperm.xlu1 %2176, %v1692_v23   ;;  %2177 = vset.pattern.permute.xlu0 %v2285_v26 }
0x1199   : > { %v1736_v14 = vpop.permute.xlu1 %1735 }
0x119b   : > { %2178 = vset.pattern.permute.xlu1 %v2285_v26 }
0x11a2   : > { %v1699_v18 = vpop.permute.xlu0 %1698 }
0x11a3   : > { %v1701_v52 = vmul.f32 %v1699_v18, %v1693_v39 }
0x11a5   : > { %v1741_v59 = vrot.slane %v1701_v52, %v2385_v19 }
0x11a7   : > { %v1745_v41 = vmul.f32 %v1741_v59, %v1736_v14 }
0x11a9   : > { %v1749_v21 = vsub.f32 %v1693_v39, %v1745_v41 }
0x11ab   : > { %2241 = vrcp.f32 %v1749_v21  ;;  %v1773_v28 = vsub.f32 %v1749_v21, %v2015_v50 }
0x11ad   : > { %1791 = vperm.xlu1 %2178, %v1773_v28  }
0x11b5   : > { %v2242_v49 = vpop.eup %2241 }
0x11b6   : > { %1754 = vperm.xlu0 %2177, %v2242_v49  }
0x120e   : > { %v1721_v30 = vpop.permute.xlu1 %1720 }
0x120f   : > { %v1742_v32 = vmul.f32 %v1741_v59, %v1721_v30 }
0x1211   : > { %v1746_v33 = vsub.f32 %v1690_v7, %v1742_v32  ;;  %v2017_v7 = vsel %vm1873_vm15, 1.0, %v2256_v4 }
0x1212   : > { %v1726_v11 = vpop.permute.xlu0 %1725 }
0x1213   : > { %v1743_v38 = vmul.f32 %v1741_v59, %v1726_v11  ;;  %1776 = vperm.xlu1 %2178, %v1746_v33  }
0x1215   : > { %v1747_v42 = vsub.f32 %v1691_v56, %v1743_v38 }
0x1216   : > { %v1731_v19 = vpop.permute.xlu1 %1730 }
0x1217   : > { %v1744_v44 = vmul.f32 %v1741_v59, %v1731_v19  ;;  %1781 = vperm.xlu0 %2177, %v1747_v42  }
0x1219   : > { %v1748_v20 = vsub.f32 %v1692_v23, %v1744_v44 }
0x121b   : > { %1786 = vperm.xlu1 %2178, %v1748_v20   ;;  %2179 = vset.pattern.permute.xlu0 %v2286_v24 }
0x121f   : > { %2180 = vset.pattern.permute.xlu1 %v2286_v24 }
0x122c   : > { %v1792_v25 = vpop.permute.xlu1 %1791 }
0x1235   : > { %v1755_v57 = vpop.permute.xlu0 %1754 }
0x1236   : > { %v1757_v12 = vmul.f32 %v1755_v57, %v1749_v21 }
0x1238   : > { %v1797_v35 = vrot.slane %v1757_v12, %v2403_v45 }
0x123a   : > { %v1801_v40 = vmul.f32 %v1797_v35, %v1792_v25 }
0x123c   : > { %v1805_v53 = vsub.f32 %v1749_v21, %v1801_v40 }
0x123e   : > { %2243 = vrcp.f32 %v1805_v53  ;;  %v1829_v54 = vsub.f32 %v1805_v53, %v2016_v51 }
0x1240   : > { %1847 = vperm.xlu1 %2180, %v1829_v54  }
0x1248   : > { %v2244_v3 = vpop.eup %2243 }
0x1249   : > { %1810 = vperm.xlu0 %2179, %v2244_v3  }
0x1292   : > { %v1777_v36 = vpop.permute.xlu1 %1776 }
0x1293   : > { %v1798_v55 = vmul.f32 %v1797_v35, %v1777_v36 }
0x1295   : > { %v1802_v8 = vsub.f32 %v1746_v33, %v1798_v55 }
0x1296   : > { %v1782_v9 = vpop.permute.xlu0 %1781 }
0x1297   : > { %v1799_v16 = vmul.f32 %v1797_v35, %v1782_v9  ;;  %1832 = vperm.xlu1 %2180, %v1802_v8  }
0x1299   : > { %v1803_v62 = vsub.f32 %v1747_v42, %v1799_v16 }
0x129a   : > { %v1787_v45 = vpop.permute.xlu1 %1786 }
0x129b   : > { %v1800_v58 = vmul.f32 %v1797_v35, %v1787_v45  ;;  %1837 = vperm.xlu0 %2179, %v1803_v62  }
0x129d   : > { %v1804_v61 = vsub.f32 %v1748_v20, %v1800_v58 }
0x129f   : > { %1842 = vperm.xlu1 %2180, %v1804_v61   ;;  %2182 = vset.pattern.permute.xlu0 %v2287_v34 }
0x12a3   : > { %2181 = vset.pattern.permute.xlu1 %v2287_v34 }
0x12bf   : > { %v1848_v1 = vpop.permute.xlu1 %1847 }
0x12c8   : > { %v1811_v60 = vpop.permute.xlu0 %1810 }
0x12c9   : > { %v1813_v63 = vmul.f32 %v1811_v60, %v1805_v53 }
0x12cb   : > { %v1853_v48 = vrot.slane %v1813_v63, %v2420_v2 }
0x12cd   : > { %v1857_v46 = vmul.f32 %v1853_v48, %v1848_v1 }
0x12cf   : > { %v1861_v6 = vsub.f32 %v1805_v53, %v1857_v46 }
0x12d1   : > { %2245 = vrcp.f32 %v1861_v6  ;;  %v1885_v37 = vsub.f32 %v1861_v6, %v2017_v7 }
0x12db   : > { %v2246_v5 = vpop.eup %2245 }
0x12dc   : > { %1866 = vperm.xlu0 %2182, %v2246_v5  }
0x1316   : > { %v1833_v29 = vpop.permute.xlu1 %1832 }
0x1317   : > { %v1854_v10 = vmul.f32 %v1853_v48, %v1833_v29 }
0x1319   : > { %v1858_v39 = vsub.f32 %v1802_v8, %v1854_v10 }
0x131a   : > { %v1838_v43 = vpop.permute.xlu0 %1837 }
0x131b   : > { %v1855_v27 = vmul.f32 %v1853_v48, %v1838_v43  ;;  %1888 = vperm.xlu1 %2181, %v1858_v39  }
0x131d   : > { %v1859_v15 = vsub.f32 %v1803_v62, %v1855_v27 }
0x131e   : > { %v1843_v0 = vpop.permute.xlu1 %1842 }
0x131f   : > { %v1856_v2 = vmul.f32 %v1853_v48, %v1843_v0  ;;  %1893 = vperm.xlu1 %2181, %v1859_v15  }
0x1321   : > { %v1860_v31 = vsub.f32 %v1804_v61, %v1856_v2 }
0x1323   : > { %1898 = vperm.xlu0 %2182, %v1860_v31   ;;  %1903 = vperm.xlu1 %2181, %v1885_v37  }
0x135b   : > { %v1867_v56 = vpop.permute.xlu0 %1866 }
0x135c   : > { %v1869_v22 = vmul.f32 %v1867_v56, %v1861_v6 }
0x135e   : > { %v1909_v17 = vrot.slane %v1869_v22, %v2436_v13 }
0x139a   : > { %v1889_v23 = vpop.permute.xlu1 %1888 }
0x139b   : > { %v1910_v26 = vmul.f32 %v1909_v17, %v1889_v23 }
0x139d   : > { %v1914_v47 = vsub.f32 %v1858_v39, %v1910_v26 }
0x139e   : > { %v1894_v18 = vpop.permute.xlu1 %1893 }
0x139f   : > { %1918 = vst [vmem:[%s116_s14] sm:$0xff] %v1914_v47  ;;  %v1911_v4 = vmul.f32 %v1909_v17, %v1894_v18 }
0x13a1   : > { %v1915_v52 = vsub.f32 %v1859_v15, %v1911_v4 }
0x13a2   : > { %v1904_v59 = vpop.permute.xlu1 %1903  ;;  %v1899_v14 = vpop.permute.xlu0 %1898 }
0x13a3   : > { %1919 = vst [vmem:[%s116_s14 + $0x8] sm:$0xff] %v1915_v52  ;;  %v1913_v41 = vmul.f32 %v1909_v17, %v1904_v59  ;;  %v1912_v50 = vmul.f32 %v1909_v17, %v1899_v14 }
0x13a5   : > { %v1917_v21 = vsub.f32 %v1861_v6, %v1913_v41  ;;  %v1916_v28 = vsub.f32 %v1860_v31, %v1912_v50 }
0x13a7   : > { %1921 = vst [vmem:[%s116_s14 + $0x18] sm:$0xff] %v1917_v21  ;;  %1920 = vst [vmem:[%s116_s14 + $0x10] sm:$0xff] %v1916_v28 }
0x13a8 PF: > { %s11_s6 = sadd.s32 1, %s2253_s6  }
0x13a9   : > { %p8_p4 = scmp.ge.s32.totalorder %s11_s6, 6  }
0x13ab   :  { %10 = sbr.rel (!%p8_p4) target bundleno = 1 (0x1), region = 54 }

// kernel: neg.192
= control target key start
LH: loop header
LB: loop body
LE: loop exit
PB: predicated region body
PF: predicated region fallthrough
CT: control target
= control target key end

     0   :  { %s24_s0 = inlined_call_operand.vmem [shape: f32[1,6], index: 0, kind: input, shape index: {}]   ;;  %s25_s1 = inlined_call_operand.vmem [shape: f32[1,6], index: 1, kind: output, shape index: {}]  }
   0x1   :  { %v2_v0 = vld [vmem:[%s24_s0] sm:$0x1] }
   0x2   :  { %v5_v1 = vxor.u32 2147483648, %v2_v0 }
   0x4   :  { %7 = vst [vmem:[%s25_s1] sm:$0x1] %v5_v1 }

// kernel: squeeze.250
= control target key start
LH: loop header
LB: loop body
LE: loop exit
PB: predicated region body
PF: predicated region fallthrough
CT: control target
= control target key end

     0   :  { %s93_s0 = inlined_call_operand.vmem [shape: f32[18], index: 0, kind: input, shape index: {}]   ;;  %s94_s1 = inlined_call_operand.hbm [shape: f32[3,6], index: 1, kind: output, shape index: {}]  }
   0x1   :  { %v5_v0 = vld [vmem:[%s93_s0] sm:$0x1] }
   0x2   :  { %6 = vst [vmem:[#allocation3] sm:$0x1] %v5_v0 }
   0x3   :  { %2 = vsyncpa [#allocation1], 0  ;;  %vm8_vm0 = vcmask 48128   ;;  %s65_s0 = smov 122   ;;  %s66_s8 = smov 116  }
   0x4   :  { %s67_s9 = smov [#allocation0]  }
   0x5   :  { %s32_s10 = sshll.u32 %s67_s9, 4  ;;  %s33_s10 = int_to_ptr.vmem [resolvable:$true] %s32_s10 }
   0x6   :  { %s41_s11 = scalar_lea.vmem %s33_s10, 64  ;;  %p46_p1 = scmp.lt.s32.totalorder %s33_s10, %s33_s10 }
   0x7   :  { %p42_p0 = scmp.ne.s32.totalorder %s33_s10, %s41_s11  ;;  %p47_p2 = scmp.lt.s32.totalorder %s41_s11, %s41_s11 }
   0x9   :  { %v10_v1 = vld [vmem:[#allocation3] sm:$0x1]   ;;  %p48_p3 = por %p47_p2, %p46_p1 }
   0xa   :  { %v7_v2 = vld [vmem:[#allocation3] sm:$0x1]   ;;  %11 = vrot.lane.b32.xlu0 %v10_v1, %s65_s0 }
   0xb   :  { %9 = vst.msk [vmem:[#allocation2] sm:$0x1] %vm8_vm0, %v7_v2   ;;  %v16_v3 = vld [vmem:[#allocation3] sm:$0x1]   ;;  %p49_p4 = pnand %p48_p3, %p42_p0 }
   0xe   :  { %17 = vrot.lane.b32.xlu0 %v16_v3, %s66_s8 }
  0x7c   :  { %v12_v4 = vpop.permute.xlu0 %11  }
  0x7d   :  { %15 = vst.msk [vmem:[#allocation2 + $0x1] sm:$0x1] %vm8_vm0, %v12_v4  }
  0x80   :  { %v18_v5 = vpop.permute.xlu0 %17  }
  0x81   :  { %21 = vst.msk [vmem:[#allocation2 + $0x2] sm:$0x1] %vm8_vm0, %v18_v5  }
  0x88   :  { %v25_v6 = vld [vmem:[#allocation2] sm:$0xf] }
  0x89   :  { %27 = vst [vmem:[#allocation0] sm:$0xf] %v25_v6 }
  0x8a   :  { %52 = shalt.err (!%p49_p4)
}
  0x8b   :  { %s53_s14 = scalar_lea.hbm %s94_s1, 64 }
  0x8c   :  { %p54_p5 = scmp.ne.s32.totalorder %s94_s1, %s53_s14  ;;  %p57_p6 = scmp.lt.u32.totalorder %s53_s14, %s94_s1 }
  0x8e   :  { %p59_p7 = pnand %p57_p6, %p54_p5 }
  0x90   :  { %62 = shalt.err (!%p59_p7)
}
  0x91   :  { %35 = dma.vmem_to_hbm [thread:$0]  %s33_s10, 64, %s94_s1, [#allocation1]  }
  0x92   :  { %63 = dma.done.wait [#allocation1], 64  }
  0x93   :  { %64 = vsyncadd [#allocation1], 4294967232 }
  0x94   :  { %37 = vsyncpa [#allocation1], 1 }

// kernel: a_call__.1
= control target key start
LH: loop header
LB: loop body
LE: loop exit
PB: predicated region body
PF: predicated region fallthrough
CT: control target
= control target key end

     0   :  { %v12_v0 = vlaneseq  ;;  %v2066_v1 = vmov 0   ;;  %v2067_v4 = vmov 0.0   ;;  %v2068_v9 = vmov 1   ;;  %s2486_s0 = inlined_call_operand.vmem [shape: f32[1,32,128], index: 0, kind: input, shape index: {}]   ;;  %s2487_s1 = inlined_call_operand.vmem [shape: f32[1,32,128], index: 1, kind: output, shape index: {}]  }
   0x1   :  { %1882 = vset.pattern.permute.xlu0 %v2066_v1  ;;  %v8_v2 = vld [vmem:[%s2486_s0] sm:$0xff]  ;;  %v9_v8 = vld [vmem:[%s2486_s0 + $0x8] sm:$0xff]  ;;  %1883 = vset.pattern.permute.xlu1 %v2068_v9  ;;  %v2069_v20 = vmov 2   ;;  %v10_v34 = vld [vmem:[%s2486_s0 + $0x10] sm:$0xff]  ;;  %v2070_v35 = vmov 3   ;;  %v2071_v52 = vmov 4  }
   0x2   :  { %2002 = vrcp.f32 %v8_v2  ;;  %v2113_v3 = vshrl.u32 %v12_v0, 7 }
   0x4   :  { %vm25_vm0 = vcmp.eq.s32.totalorder %v2113_v3, 0  ;;  %v2122_v10 = vsub.s32 0, %v2113_v3  ;;  %vm81_vm1 = vcmp.eq.s32.totalorder %v2113_v3, 1  ;;  %v2133_v21 = vsub.s32 1, %v2113_v3 }
   0x5   :  { %v1817_v5 = vsel %vm25_vm0, 1.0, %v2067_v4  ;;  %v1818_v18 = vsel %vm81_vm1, 1.0, %v2067_v4  ;;  %vm137_vm2 = vcmp.eq.s32.totalorder %v2113_v3, 2  ;;  %v2149_v36 = vsub.s32 2, %v2113_v3 }
   0x6   :  { %v37_v7 = vsub.f32 %v8_v2, %v1817_v5  ;;  %v1819_v27 = vsel %vm137_vm2, 1.0, %v2067_v4  ;;  %vm193_vm3 = vcmp.eq.s32.totalorder %v2113_v3, 3  ;;  %v2165_v56 = vsub.s32 3, %v2113_v3 }
   0x7   :  { %v1820_v46 = vsel %vm193_vm3, 1.0, %v2067_v4  ;;  %vm249_vm4 = vcmp.eq.s32.totalorder %v2113_v3, 4  ;;  %vm305_vm5 = vcmp.eq.s32.totalorder %v2113_v3, 5  ;;  %vm361_vm6 = vcmp.eq.s32.totalorder %v2113_v3, 6 }
   0x8   :  { %v1821_v62 = vsel %vm249_vm4, 1.0, %v2067_v4  ;;  %vm417_vm11 = vcmp.eq.s32.totalorder %v2113_v3, 7 }
   0xc   :  { %v2003_v6 = vpop.eup %2002 }
   0xd   :  { %21 = vperm.xlu0 %1882, %v2003_v6  }
  0x11   :  { %43 = vperm.xlu0 %1882, %v37_v7  }
  0x15   :  { %48 = vperm.xlu0 %1882, %v9_v8  }
  0x19   :  { %1885 = vset.pattern.permute.xlu0 %v2069_v20 }
  0x8c   :  { %v22_v11 = vpop.permute.xlu0 %21 }
  0x8d   :  { %v24_v12 = vmul.f32 %v22_v11, %v8_v2  ;;  %v2072_v11 = vmov 5  }
  0x8f   :  { %v2125_v13 = vrot.slane %v24_v12, %v2122_v10 }
  0x90   :  { %v44_v14 = vpop.permute.xlu0 %43 }
  0x91   :  { %v65_v15 = vmul.f32 %v2125_v13, %v44_v14 }
  0x93   :  { %v69_v16 = vsub.f32 %v8_v2, %v65_v15  ;;  %v11_v2 = vld [vmem:[%s2486_s0 + $0x18] sm:$0xff] }
  0x94   :  { %v49_v30 = vpop.permute.xlu0 %48 }
  0x95   :  { %2004 = vrcp.f32 %v69_v16  ;;  %v93_v19 = vsub.f32 %v69_v16, %v1818_v18  ;;  %v66_v32 = vmul.f32 %v2125_v13, %v49_v30 }
  0x97   :  { %v70_v33 = vsub.f32 %v9_v8, %v66_v32 }
  0x9f   :  { %v2005_v17 = vpop.eup %2004 }
  0xa0   :  { %77 = vperm.xlu1 %1883, %v2005_v17  }
  0xa4   :  { %99 = vperm.xlu1 %1883, %v93_v19   ;;  %v2186_v19 = vsub.s32 4, %v2113_v3 }
  0xa8   :  { %1884 = vset.pattern.permute.xlu1 %v2069_v20 }
 0x11f   :  { %v78_v22 = vpop.permute.xlu1 %77 }
 0x120   :  { %v80_v23 = vmul.f32 %v78_v22, %v69_v16 }
 0x122   :  { %v2136_v24 = vrot.slane %v80_v23, %v2133_v21 }
 0x123   :  { %v100_v25 = vpop.permute.xlu1 %99 }
 0x124   :  { %v121_v26 = vmul.f32 %v2136_v24, %v100_v25 }
 0x126   :  { %v125_v28 = vsub.f32 %v69_v16, %v121_v26 }
 0x128   :  { %2006 = vrcp.f32 %v125_v28  ;;  %v149_v29 = vsub.f32 %v125_v28, %v1819_v27 }
 0x12a   :  { %155 = vperm.xlu0 %1885, %v149_v29  }
 0x132   :  { %v2007_v31 = vpop.eup %2006 }
 0x133   :  { %133 = vperm.xlu1 %1884, %v2007_v31  }
 0x137   :  { %1886 = vset.pattern.permute.xlu1 %v2068_v9 }
 0x138   :  { %104 = vperm.xlu1 %1886, %v70_v33  }
 0x13c   :  { %1887 = vset.pattern.permute.xlu1 %v2066_v1 }
 0x13d   :  { %53 = vperm.xlu1 %1887, %v10_v34  }
 0x141   :  { %1888 = vset.pattern.permute.xlu1 %v2070_v35 }
 0x1a9   :  { %v156_v40 = vpop.permute.xlu0 %155 }
 0x1b2   :  { %v134_v37 = vpop.permute.xlu1 %133 }
 0x1b3   :  { %v136_v38 = vmul.f32 %v134_v37, %v125_v28  ;;  %v2073_v37 = vmov 6  }
 0x1b5   :  { %v2152_v39 = vrot.slane %v136_v38, %v2149_v36 }
 0x1b7   :  { %v177_v41 = vmul.f32 %v2152_v39, %v156_v40  ;;  %v105_v42 = vpop.permute.xlu1 %104 }
 0x1b8   :  { %v122_v43 = vmul.f32 %v2136_v24, %v105_v42 }
 0x1b9   :  { %v181_v44 = vsub.f32 %v125_v28, %v177_v41 }
 0x1ba   :  { %v126_v45 = vsub.f32 %v70_v33, %v122_v43 }
 0x1bb   :  { %2008 = vrcp.f32 %v181_v44  ;;  %v205_v47 = vsub.f32 %v181_v44, %v1820_v46 }
 0x1bc   :  { %160 = vperm.xlu0 %1885, %v126_v45   ;;  %v54_v48 = vpop.permute.xlu1 %53 }
 0x1bd   :  { %v67_v50 = vmul.f32 %v2125_v13, %v54_v48 }
 0x1bf   :  { %v71_v51 = vsub.f32 %v10_v34, %v67_v50 }
 0x1c0   :  { %1889 = vset.pattern.permute.xlu0 %v2070_v35 }
 0x1c1   :  { %211 = vperm.xlu0 %1889, %v205_v47  }
 0x1c5   :  { %v2009_v49 = vpop.eup %2008  ;;  %1892 = vset.pattern.permute.xlu0 %v2071_v52 }
 0x1c6   :  { %189 = vperm.xlu1 %1888, %v2009_v49   ;;  %v1823_v49 = vsel %vm361_vm6, 1.0, %v2067_v4 }
 0x1ca   :  { %1890 = vset.pattern.permute.xlu1 %v2068_v9 }
 0x1cb   :  { %109 = vperm.xlu1 %1890, %v71_v51  }
 0x1cf   :  { %1891 = vset.pattern.permute.xlu1 %v2070_v35 }
 0x23b   :  { %v161_v53 = vpop.permute.xlu0 %160 }
 0x23c   :  { %v178_v54 = vmul.f32 %v2152_v39, %v161_v53 }
 0x23e   :  { %v182_v55 = vsub.f32 %v126_v45, %v178_v54  ;;  %v2204_v45 = vsub.s32 5, %v2113_v3 }
 0x240   :  { %216 = vperm.xlu1 %1891, %v182_v55   ;;  %v212_v60 = vpop.permute.xlu0 %211 }
 0x244   :  { %1893 = vset.pattern.permute.xlu1 %v2071_v52 }
 0x245   :  { %v190_v57 = vpop.permute.xlu1 %189 }
 0x246   :  { %v192_v58 = vmul.f32 %v190_v57, %v181_v44 }
 0x248   :  { %v2169_v59 = vrot.slane %v192_v58, %v2165_v56 }
 0x24a   :  { %v233_v61 = vmul.f32 %v2169_v59, %v212_v60  ;;  %v110_v5 = vpop.permute.xlu1 %109 }
 0x24b   :  { %v123_v7 = vmul.f32 %v2136_v24, %v110_v5 }
 0x24c   :  { %v237_v63 = vsub.f32 %v181_v44, %v233_v61 }
 0x24d   :  { %v127_v8 = vsub.f32 %v71_v51, %v123_v7 }
 0x24e   :  { %v261_v0 = vsub.f32 %v237_v63, %v1821_v62  ;;  %2010 = vrcp.f32 %v237_v63  ;;  %v2074_v62 = vmov 7  }
 0x250   :  { %267 = vperm.xlu1 %1893, %v261_v0  }
 0x254   :  { %1894 = vset.pattern.permute.xlu1 %v2066_v1 }
 0x255   :  { %58 = vperm.xlu1 %1894, %v11_v2  }
 0x258   :  { %v2011_v6 = vpop.eup %2010 }
 0x259   :  { %245 = vperm.xlu0 %1892, %v2011_v6   ;;  %1896 = vset.pattern.permute.xlu1 %v2071_v52 }
 0x25d   :  { %1895 = vset.pattern.permute.xlu0 %v2069_v20 }
 0x25e   :  { %165 = vperm.xlu0 %1895, %v127_v8  }
 0x262   :  { %1898 = vset.pattern.permute.xlu0 %v2072_v11 }
 0x2bf   :  { %v217_v12 = vpop.permute.xlu1 %216 }
 0x2c0   :  { %v234_v14 = vmul.f32 %v2169_v59, %v217_v12 }
 0x2c2   :  { %v238_v15 = vsub.f32 %v182_v55, %v234_v14 }
 0x2c4   :  { %272 = vperm.xlu1 %1896, %v238_v15  }
 0x2c8   :  { %1897 = vset.pattern.permute.xlu1 %v2068_v9  ;;  %v1822_v9 = vsel %vm305_vm5, 1.0, %v2067_v4 }
 0x2cf   :  { %v268_v1 = vpop.permute.xlu1 %267 }
 0x2d4   :  { %v59_v16 = vpop.permute.xlu1 %58 }
 0x2d5   :  { %v68_v17 = vmul.f32 %v2125_v13, %v59_v16 }
 0x2d7   :  { %v72_v18 = vsub.f32 %v11_v2, %v68_v17  ;;  %v2221_v2 = vsub.s32 6, %v2113_v3 }
 0x2d8   :  { %v246_v22 = vpop.permute.xlu0 %245 }
 0x2d9   :  { %v248_v23 = vmul.f32 %v246_v22, %v237_v63  ;;  %114 = vperm.xlu1 %1897, %v72_v18   ;;  %v2075_v22 = vmov 8  }
 0x2db   :  { %v2189_v25 = vrot.slane %v248_v23, %v2186_v19 }
 0x2dd   :  { %v289_v26 = vmul.f32 %v2189_v25, %v268_v1  ;;  %1899 = vset.pattern.permute.xlu1 %v2072_v11  ;;  %v166_v27 = vpop.permute.xlu0 %165 }
 0x2de   :  { %v179_v29 = vmul.f32 %v2152_v39, %v166_v27 }
 0x2df   :  { %v293_v13 = vsub.f32 %v237_v63, %v289_v26 }
 0x2e0   :  { %v183_v30 = vsub.f32 %v127_v8, %v179_v29 }
 0x2e1   :  { %v317_v28 = vsub.f32 %v293_v13, %v1822_v9  ;;  %2012 = vrcp.f32 %v293_v13 }
 0x2e3   :  { %323 = vperm.xlu1 %1899, %v317_v28  }
 0x2e7   :  { %1900 = vset.pattern.permute.xlu1 %v2070_v35 }
 0x2e8   :  { %221 = vperm.xlu1 %1900, %v183_v30  }
 0x2eb   :  { %v2013_v31 = vpop.eup %2012 }
 0x2ec   :  { %301 = vperm.xlu0 %1898, %v2013_v31   ;;  %1901 = vset.pattern.permute.xlu1 %v2069_v20 }
 0x343   :  { %v273_v32 = vpop.permute.xlu1 %272 }
 0x344   :  { %v290_v33 = vmul.f32 %v2189_v25, %v273_v32 }
 0x346   :  { %v294_v34 = vsub.f32 %v238_v15, %v290_v33 }
 0x348   :  { %328 = vperm.xlu0 %1898, %v294_v34  }
 0x34c   :  { %1902 = vset.pattern.permute.xlu0 %v2073_v37 }
 0x358   :  { %v115_v38 = vpop.permute.xlu1 %114 }
 0x359   :  { %v124_v40 = vmul.f32 %v2136_v24, %v115_v38 }
 0x35b   :  { %v128_v41 = vsub.f32 %v72_v18, %v124_v40 }
 0x35d   :  { %170 = vperm.xlu1 %1901, %v128_v41  }
 0x361   :  { %1903 = vset.pattern.permute.xlu1 %v2071_v52 }
 0x362   :  { %v324_v42 = vpop.permute.xlu1 %323 }
 0x367   :  { %v222_v43 = vpop.permute.xlu1 %221 }
 0x368   :  { %v235_v44 = vmul.f32 %v2169_v59, %v222_v43 }
 0x36a   :  { %v239_v20 = vsub.f32 %v183_v30, %v235_v44 }
 0x36b   :  { %v302_v46 = vpop.permute.xlu0 %301 }
 0x36c   :  { %v304_v47 = vmul.f32 %v302_v46, %v293_v13  ;;  %277 = vperm.xlu1 %1903, %v239_v20  }
 0x36e   :  { %v2207_v48 = vrot.slane %v304_v47, %v2204_v45 }
 0x370   :  { %v345_v24 = vmul.f32 %v2207_v48, %v324_v42  ;;  %1904 = vset.pattern.permute.xlu1 %v2073_v37 }
 0x372   :  { %v349_v50 = vsub.f32 %v293_v13, %v345_v24  ;;  %v2237_v13 = vsub.s32 7, %v2113_v3 }
 0x374   :  { %v373_v51 = vsub.f32 %v349_v50, %v1823_v49  ;;  %2014 = vrcp.f32 %v349_v50 }
 0x376   :  { %379 = vperm.xlu1 %1904, %v373_v51  }
 0x37a   :  { %1905 = vset.pattern.permute.xlu1 %v2070_v35 }
 0x37e   :  { %v2015_v53 = vpop.eup %2014 }
 0x37f   :  { %357 = vperm.xlu0 %1902, %v2015_v53  }
 0x3c7   :  { %v329_v54 = vpop.permute.xlu0 %328 }
 0x3c8   :  { %v346_v55 = vmul.f32 %v2207_v48, %v329_v54 }
 0x3ca   :  { %v350_v57 = vsub.f32 %v294_v34, %v346_v55 }
 0x3cc   :  { %384 = vperm.xlu0 %1902, %v350_v57  }
 0x3d0   :  { %1906 = vset.pattern.permute.xlu0 %v2072_v11 }
 0x3dc   :  { %v171_v58 = vpop.permute.xlu1 %170 }
 0x3dd   :  { %v180_v60 = vmul.f32 %v2152_v39, %v171_v58 }
 0x3df   :  { %v184_v61 = vsub.f32 %v128_v41, %v180_v60  ;;  %v2076_v41 = vmov 9  }
 0x3e1   :  { %226 = vperm.xlu1 %1905, %v184_v61  }
 0x3e5   :  { %1907 = vset.pattern.permute.xlu1 %v2074_v62 }
 0x3eb   :  { %v278_v63 = vpop.permute.xlu1 %277 }
 0x3ec   :  { %v291_v35 = vmul.f32 %v2189_v25, %v278_v63 }
 0x3ee   :  { %v295_v0 = vsub.f32 %v239_v20, %v291_v35  ;;  %v2077_v35 = vmov 10  }
 0x3f0   :  { %333 = vperm.xlu0 %1906, %v295_v0  }
 0x3f4   :  { %1908 = vset.pattern.permute.xlu0 %v2071_v52 }
 0x3f5   :  { %v380_v39 = vpop.permute.xlu1 %379 }
 0x3fe   :  { %v358_v5 = vpop.permute.xlu0 %357 }
 0x3ff   :  { %v360_v6 = vmul.f32 %v358_v5, %v349_v50 }
 0x401   :  { %v2224_v7 = vrot.slane %v360_v6, %v2221_v2 }
 0x403   :  { %v401_v8 = vmul.f32 %v2224_v7, %v380_v39 }
 0x405   :  { %v2227_v12 = vsub.f32 %v349_v50, %v401_v8 }
 0x407   :  { %2016 = vrcp.f32 %v2227_v12 }
 0x411   :  { %v2017_v14 = vpop.eup %2016 }
 0x412   :  { %413 = vperm.xlu1 %1907, %v2017_v14  }
 0x44b   :  { %v385_v15 = vpop.permute.xlu0 %384 }
 0x44c   :  { %v402_v52 = vmul.f32 %v2224_v7, %v385_v15 }
 0x44e   :  { %v406_v1 = vsub.f32 %v350_v57, %v402_v52 }
 0x450   :  { %440 = vperm.xlu1 %1907, %v406_v1  }
 0x454   :  { %1909 = vset.pattern.permute.xlu1 %v2073_v37 }
 0x460   :  { %v227_v16 = vpop.permute.xlu1 %226 }
 0x461   :  { %v236_v17 = vmul.f32 %v2169_v59, %v227_v16  ;;  %v2241_v59 = vadd.s32 8, %v2113_v3 }
 0x463   :  { %v240_v18 = vsub.f32 %v184_v61, %v236_v17  ;;  %vm474_vm7 = vcmp.eq.s32.totalorder %v2241_v59, 8  ;;  %vm530_vm8 = vcmp.eq.s32.totalorder %v2241_v59, 9  ;;  %vm586_vm9 = vcmp.eq.s32.totalorder %v2241_v59, 10 }
 0x464   :  { %v1825_v32 = vsel %vm474_vm7, 1.0, %v2067_v4  ;;  %v1826_v50 = vsel %vm530_vm8, 1.0, %v2067_v4  ;;  %v1827_v15 = vsel %vm586_vm9, 1.0, %v2067_v4  ;;  %vm642_vm10 = vcmp.eq.s32.totalorder %v2241_v59, 11 }
 0x465   :  { %282 = vperm.xlu0 %1908, %v240_v18   ;;  %vm698_vm12 = vcmp.eq.s32.totalorder %v2241_v59, 12  ;;  %vm754_vm13 = vcmp.eq.s32.totalorder %v2241_v59, 13  ;;  %vm810_vm14 = vcmp.eq.s32.totalorder %v2241_v59, 14  ;;  %vm866_vm1 = vcmp.eq.s32.totalorder %v2241_v59, 15 }
 0x469   :  { %1911 = vset.pattern.permute.xlu0 %v2075_v22 }
 0x46f   :  { %v334_v23 = vpop.permute.xlu0 %333 }
 0x470   :  { %v347_v26 = vmul.f32 %v2207_v48, %v334_v23 }
 0x472   :  { %v351_v9 = vsub.f32 %v295_v0, %v347_v26 }
 0x474   :  { %389 = vperm.xlu1 %1909, %v351_v9  }
 0x478   :  { %1910 = vset.pattern.permute.xlu1 %v2075_v22 }
 0x491   :  { %v414_v27 = vpop.permute.xlu1 %413 }
 0x492   :  { %v416_v28 = vmul.f32 %v414_v27, %v2227_v12  ;;  %v2078_v27 = vmov 11  }
 0x494   :  { %v2244_v29 = vrot.slane %v416_v28, %v2237_v13 }
 0x4cf   :  { %v441_v30 = vpop.permute.xlu1 %440 }
 0x4d0   :  { %v458_v31 = vmul.f32 %v2244_v29, %v441_v30 }
 0x4d2   :  { %v462_v33 = vsub.f32 %v406_v1, %v458_v31 }
 0x4d4   :  { %2018 = vrcp.f32 %v462_v33  ;;  %v486_v34 = vsub.f32 %v462_v33, %v1825_v32 }
 0x4d6   :  { %496 = vperm.xlu0 %1911, %v486_v34  }
 0x4da   :  { %1914 = vset.pattern.permute.xlu0 %v2076_v41 }
 0x4de   :  { %v2019_v38 = vpop.eup %2018 }
 0x4df   :  { %469 = vperm.xlu1 %1910, %v2019_v38  }
 0x4e3   :  { %1912 = vset.pattern.permute.xlu1 %v2072_v11 }
 0x4e4   :  { %v283_v40 = vpop.permute.xlu0 %282 }
 0x4e5   :  { %v292_v42 = vmul.f32 %v2189_v25, %v283_v40 }
 0x4e7   :  { %v296_v43 = vsub.f32 %v240_v18, %v292_v42 }
 0x4e9   :  { %338 = vperm.xlu1 %1912, %v296_v43  }
 0x4ed   :  { %1913 = vset.pattern.permute.xlu1 %v2074_v62 }
 0x4f3   :  { %v390_v44 = vpop.permute.xlu1 %389 }
 0x4f4   :  { %v403_v20 = vmul.f32 %v2224_v7, %v390_v44 }
 0x4f6   :  { %v407_v46 = vsub.f32 %v351_v9, %v403_v20 }
 0x4f8   :  { %445 = vperm.xlu1 %1913, %v407_v46  }
 0x4fc   :  { %1915 = vset.pattern.permute.xlu1 %v2076_v41 }
 0x555   :  { %v497_v49 = vpop.permute.xlu0 %496 }
 0x55e   :  { %v470_v47 = vpop.permute.xlu1 %469 }
 0x55f   :  { %v472_v24 = vmul.f32 %v470_v47, %v462_v33 }
 0x561   :  { %v2256_v11 = vrot.slane %v472_v24, %v2122_v10 }
 0x563   :  { %v514_v25 = vmul.f32 %v2256_v11, %v497_v49 }
 0x565   :  { %v518_v51 = vsub.f32 %v462_v33, %v514_v25 }
 0x567   :  { %v542_v53 = vsub.f32 %v518_v51, %v1826_v50  ;;  %2020 = vrcp.f32 %v518_v51  ;;  %v2079_v50 = vmov 12  }
 0x568   :  { %v339_v54 = vpop.permute.xlu1 %338 }
 0x569   :  { %v348_v55 = vmul.f32 %v2207_v48, %v339_v54  ;;  %552 = vperm.xlu1 %1915, %v542_v53  }
 0x56b   :  { %v352_v57 = vsub.f32 %v296_v43, %v348_v55  ;;  %v1828_v43 = vsel %vm642_vm10, 1.0, %v2067_v4 }
 0x56d   :  { %1916 = vset.pattern.permute.xlu1 %v2073_v37 }
 0x56e   :  { %394 = vperm.xlu1 %1916, %v352_v57  }
 0x571   :  { %v2021_v58 = vpop.eup %2020 }
 0x572   :  { %525 = vperm.xlu0 %1914, %v2021_v58   ;;  %1918 = vset.pattern.permute.xlu1 %v2074_v62 }
 0x576   :  { %1917 = vset.pattern.permute.xlu0 %v2075_v22 }
 0x577   :  { %v446_v60 = vpop.permute.xlu1 %445 }
 0x578   :  { %v459_v61 = vmul.f32 %v2244_v29, %v446_v60 }
 0x57a   :  { %v463_v63 = vsub.f32 %v407_v46, %v459_v61  ;;  %v1824_v46 = vsel %vm417_vm11, 1.0, %v2067_v4  ;;  %v1829_v61 = vsel %vm698_vm12, 1.0, %v2067_v4 }
 0x57b   :  { %v429_v47 = vsub.f32 %v2227_v12, %v1824_v46 }
 0x57c   :  { %501 = vperm.xlu0 %1917, %v463_v63  }
 0x580   :  { %1920 = vset.pattern.permute.xlu0 %v2077_v35 }
 0x5e8   :  { %v553_v48 = vpop.permute.xlu1 %552 }
 0x5ed   :  { %v395_v0 = vpop.permute.xlu1 %394 }
 0x5ee   :  { %v404_v5 = vmul.f32 %v2224_v7, %v395_v0 }
 0x5f0   :  { %v408_v37 = vsub.f32 %v352_v57, %v404_v5 }
 0x5f1   :  { %v526_v6 = vpop.permute.xlu0 %525 }
 0x5f2   :  { %v528_v39 = vmul.f32 %v526_v6, %v518_v51  ;;  %450 = vperm.xlu1 %1918, %v408_v37  }
 0x5f4   :  { %v2269_v8 = vrot.slane %v528_v39, %v2133_v21 }
 0x5f6   :  { %v570_v14 = vmul.f32 %v2269_v8, %v553_v48  ;;  %1919 = vset.pattern.permute.xlu1 %v2077_v35 }
 0x5f8   :  { %v574_v52 = vsub.f32 %v518_v51, %v570_v14 }
 0x5fa   :  { %v598_v1 = vsub.f32 %v574_v52, %v1827_v15  ;;  %2022 = vrcp.f32 %v574_v52 }
 0x5fb   :  { %v502_v7 = vpop.permute.xlu0 %501 }
 0x5fc   :  { %608 = vperm.xlu0 %1920, %v598_v1   ;;  %v515_v17 = vmul.f32 %v2256_v11, %v502_v7 }
 0x5fe   :  { %v519_v18 = vsub.f32 %v463_v63, %v515_v17 }
 0x604   :  { %v2023_v16 = vpop.eup %2022 }
 0x605   :  { %581 = vperm.xlu1 %1919, %v2023_v16  }
 0x609   :  { %1921 = vset.pattern.permute.xlu1 %v2076_v41 }
 0x60a   :  { %557 = vperm.xlu1 %1921, %v519_v18  }
 0x60e   :  { %1922 = vset.pattern.permute.xlu1 %v2075_v22 }
 0x671   :  { %v451_v23 = vpop.permute.xlu1 %450 }
 0x672   :  { %v460_v26 = vmul.f32 %v2244_v29, %v451_v23 }
 0x674   :  { %v464_v9 = vsub.f32 %v408_v37, %v460_v26 }
 0x676   :  { %506 = vperm.xlu1 %1922, %v464_v9  }
 0x67a   :  { %1923 = vset.pattern.permute.xlu1 %v2078_v27 }
 0x67b   :  { %v609_v32 = vpop.permute.xlu0 %608 }
 0x684   :  { %v582_v28 = vpop.permute.xlu1 %581 }
 0x685   :  { %v584_v30 = vmul.f32 %v582_v28, %v574_v52  ;;  %v1830_v28 = vsel %vm754_vm13, 1.0, %v2067_v4 }
 0x687   :  { %v2281_v31 = vrot.slane %v584_v30, %v2149_v36 }
 0x689   :  { %v626_v33 = vmul.f32 %v2281_v31, %v609_v32  ;;  %v558_v34 = vpop.permute.xlu1 %557 }
 0x68a   :  { %v571_v38 = vmul.f32 %v2269_v8, %v558_v34 }
 0x68b   :  { %v630_v40 = vsub.f32 %v574_v52, %v626_v33 }
 0x68c   :  { %v575_v42 = vsub.f32 %v519_v18, %v571_v38 }
 0x68d   :  { %2024 = vrcp.f32 %v630_v40  ;;  %v654_v44 = vsub.f32 %v630_v40, %v1828_v43  ;;  %v2081_v43 = vmov 14  }
 0x68e   :  { %613 = vperm.xlu0 %1920, %v575_v42  }
 0x692   :  { %1924 = vset.pattern.permute.xlu0 %v2078_v27 }
 0x693   :  { %664 = vperm.xlu0 %1924, %v654_v44  }
 0x697   :  { %v2025_v20 = vpop.eup %2024 }
 0x698   :  { %637 = vperm.xlu1 %1923, %v2025_v20  }
 0x69c   :  { %1925 = vset.pattern.permute.xlu1 %v2074_v62 }
 0x69d   :  { %435 = vperm.xlu1 %1925, %v429_v47  }
 0x6a1   :  { %1926 = vset.pattern.permute.xlu1 %v2076_v41 }
 0x6f5   :  { %v507_v24 = vpop.permute.xlu1 %506 }
 0x6f6   :  { %v516_v49 = vmul.f32 %v2256_v11, %v507_v24 }
 0x6f8   :  { %v520_v25 = vsub.f32 %v464_v9, %v516_v49 }
 0x6fa   :  { %562 = vperm.xlu1 %1926, %v520_v25  }
 0x6fe   :  { %1927 = vset.pattern.permute.xlu1 %v2079_v50 }
 0x70d   :  { %v614_v51 = vpop.permute.xlu0 %613 }
 0x70e   :  { %v627_v53 = vmul.f32 %v2281_v31, %v614_v51 }
 0x710   :  { %v631_v54 = vsub.f32 %v575_v42, %v627_v53 }
 0x712   :  { %669 = vperm.xlu0 %1924, %v631_v54   ;;  %v665_v58 = vpop.permute.xlu0 %664 }
 0x716   :  { %1928 = vset.pattern.permute.xlu0 %v2079_v50 }
 0x717   :  { %v638_v55 = vpop.permute.xlu1 %637 }
 0x718   :  { %v640_v62 = vmul.f32 %v638_v55, %v630_v40 }
 0x71a   :  { %v2298_v57 = vrot.slane %v640_v62, %v2165_v56  ;;  %v1831_v62 = vsel %vm810_vm14, 1.0, %v2067_v4 }
 0x71c   :  { %v682_v60 = vmul.f32 %v2298_v57, %v665_v58  ;;  %v436_v0 = vpop.permute.xlu1 %435 }
 0x71d   :  { %v457_v37 = vmul.f32 %v2244_v29, %v436_v0  ;;  %v2080_v29 = vmov 13  }
 0x71e   :  { %v686_v63 = vsub.f32 %v630_v40, %v682_v60 }
 0x71f   :  { %v461_v6 = vsub.f32 %v2227_v12, %v457_v37  ;;  %v2082_v37 = vmov 15  }
 0x720   :  { %v710_v48 = vsub.f32 %v686_v63, %v1829_v61  ;;  %2026 = vrcp.f32 %v686_v63 }
 0x722   :  { %720 = vperm.xlu0 %1928, %v710_v48  }
 0x72a   :  { %v2027_v5 = vpop.eup %2026 }
 0x72b   :  { %693 = vperm.xlu1 %1927, %v2027_v5  }
 0x72f   :  { %1929 = vset.pattern.permute.xlu1 %v2075_v22 }
 0x730   :  { %491 = vperm.xlu1 %1929, %v461_v6  }
 0x734   :  { %1930 = vset.pattern.permute.xlu1 %v2077_v35 }
 0x779   :  { %v563_v39 = vpop.permute.xlu1 %562 }
 0x77a   :  { %v572_v14 = vmul.f32 %v2269_v8, %v563_v39 }
 0x77c   :  { %v576_v15 = vsub.f32 %v520_v25, %v572_v14 }
 0x77e   :  { %618 = vperm.xlu1 %1930, %v576_v15  }
 0x782   :  { %1931 = vset.pattern.permute.xlu1 %v2076_v41 }
 0x791   :  { %v670_v52 = vpop.permute.xlu0 %669 }
 0x792   :  { %v683_v1 = vmul.f32 %v2298_v57, %v670_v52 }
 0x794   :  { %v687_v7 = vsub.f32 %v631_v54, %v683_v1 }
 0x796   :  { %725 = vperm.xlu0 %1928, %v687_v7  }
 0x79a   :  { %1932 = vset.pattern.permute.xlu0 %v2080_v29 }
 0x7a1   :  { %v721_v17 = vpop.permute.xlu0 %720 }
 0x7aa   :  { %v694_v12 = vpop.permute.xlu1 %693 }
 0x7ab   :  { %v696_v22 = vmul.f32 %v694_v12, %v686_v63 }
 0x7ad   :  { %v2312_v16 = vrot.slane %v696_v22, %v2186_v19 }
 0x7af   :  { %v738_v18 = vmul.f32 %v2312_v16, %v721_v17  ;;  %v492_v23 = vpop.permute.xlu1 %491 }
 0x7b0   :  { %v513_v26 = vmul.f32 %v2256_v11, %v492_v23 }
 0x7b1   :  { %v742_v41 = vsub.f32 %v686_v63, %v738_v18 }
 0x7b2   :  { %v517_v9 = vsub.f32 %v461_v6, %v513_v26 }
 0x7b3   :  { %2028 = vrcp.f32 %v742_v41  ;;  %v766_v30 = vsub.f32 %v742_v41, %v1830_v28 }
 0x7b4   :  { %547 = vperm.xlu1 %1931, %v517_v9  }
 0x7b8   :  { %1933 = vset.pattern.permute.xlu1 %v2080_v29 }
 0x7b9   :  { %776 = vperm.xlu1 %1933, %v766_v30  }
 0x7bd   :  { %v2029_v32 = vpop.eup %2028  ;;  %1934 = vset.pattern.permute.xlu1 %v2078_v27 }
 0x7be   :  { %749 = vperm.xlu0 %1932, %v2029_v32  }
 0x7fd   :  { %v619_v33 = vpop.permute.xlu1 %618 }
 0x7fe   :  { %v628_v34 = vmul.f32 %v2281_v31, %v619_v33 }
 0x800   :  { %v632_v11 = vsub.f32 %v576_v15, %v628_v34  ;;  %v2356_v34 = vadd.s32 16, %v2113_v3 }
 0x802   :  { %674 = vperm.xlu1 %1934, %v632_v11   ;;  %vm923_vm15 = vcmp.eq.s32.totalorder %v2356_v34, 16  ;;  %vm979_vm0 = vcmp.eq.s32.totalorder %v2356_v34, 17  ;;  %vm1035_vm2 = vcmp.eq.s32.totalorder %v2356_v34, 18  ;;  %vm1091_vm3 = vcmp.eq.s32.totalorder %v2356_v34, 19 }
 0x803   :  { %vm1147_vm4 = vcmp.eq.s32.totalorder %v2356_v34, 20  ;;  %vm1203_vm5 = vcmp.eq.s32.totalorder %v2356_v34, 21  ;;  %vm1259_vm6 = vcmp.eq.s32.totalorder %v2356_v34, 22  ;;  %vm1315_vm8 = vcmp.eq.s32.totalorder %v2356_v34, 23 }
 0x806   :  { %1935 = vset.pattern.permute.xlu1 %v2077_v35 }
 0x815   :  { %v726_v38 = vpop.permute.xlu0 %725 }
 0x816   :  { %v739_v40 = vmul.f32 %v2312_v16, %v726_v38 }
 0x818   :  { %v743_v42 = vsub.f32 %v687_v7, %v739_v40  ;;  %v1833_v40 = vsel %vm923_vm15, 1.0, %v2067_v4 }
 0x81a   :  { %781 = vperm.xlu0 %1932, %v743_v42  }
 0x81e   :  { %1936 = vset.pattern.permute.xlu0 %v2081_v43 }
 0x833   :  { %v548_v44 = vpop.permute.xlu1 %547 }
 0x834   :  { %v569_v20 = vmul.f32 %v2269_v8, %v548_v44 }
 0x836   :  { %v573_v46 = vsub.f32 %v517_v9, %v569_v20  ;;  %v2083_v9 = vmov 16  }
 0x838   :  { %603 = vperm.xlu1 %1935, %v573_v46   ;;  %v777_v35 = vpop.permute.xlu1 %776 }
 0x83c   :  { %1937 = vset.pattern.permute.xlu1 %v2079_v50 }
 0x83d   :  { %v750_v47 = vpop.permute.xlu0 %749 }
 0x83e   :  { %v752_v24 = vmul.f32 %v750_v47, %v742_v41 }
 0x840   :  { %v2327_v49 = vrot.slane %v752_v24, %v2204_v45 }
 0x842   :  { %v794_v25 = vmul.f32 %v2327_v49, %v777_v35 }
 0x844   :  { %v798_v51 = vsub.f32 %v742_v41, %v794_v25 }
 0x846   :  { %2030 = vrcp.f32 %v798_v51  ;;  %v822_v58 = vsub.f32 %v798_v51, %v1831_v62  ;;  %v1834_v62 = vsel %vm979_vm0, 1.0, %v2067_v4 }
 0x850   :  { %v2031_v53 = vpop.eup %2030 }
 0x851   :  { %805 = vperm.xlu0 %1936, %v2031_v53  }
 0x881   :  { %v675_v54 = vpop.permute.xlu1 %674 }
 0x882   :  { %v684_v55 = vmul.f32 %v2298_v57, %v675_v54 }
 0x884   :  { %v688_v8 = vsub.f32 %v632_v11, %v684_v55 }
 0x886   :  { %730 = vperm.xlu1 %1937, %v688_v8  }
 0x88a   :  { %1938 = vset.pattern.permute.xlu1 %v2081_v43 }
 0x88b   :  { %832 = vperm.xlu1 %1938, %v822_v58  }
 0x88f   :  { %1939 = vset.pattern.permute.xlu1 %v2078_v27 }
 0x899   :  { %v782_v60 = vpop.permute.xlu0 %781 }
 0x89a   :  { %v795_v61 = vmul.f32 %v2327_v49, %v782_v60 }
 0x89c   :  { %v799_v63 = vsub.f32 %v743_v42, %v795_v61 }
 0x89e   :  { %837 = vperm.xlu0 %1936, %v799_v63  }
 0x8a2   :  { %1940 = vset.pattern.permute.xlu0 %v2080_v29 }
 0x8b7   :  { %v604_v48 = vpop.permute.xlu1 %603 }
 0x8b8   :  { %v625_v0 = vmul.f32 %v2281_v31, %v604_v48 }
 0x8ba   :  { %v629_v5 = vsub.f32 %v573_v46, %v625_v0  ;;  %v2084_v46 = vmov 17  }
 0x8bc   :  { %659 = vperm.xlu1 %1939, %v629_v5  }
 0x8c0   :  { %1941 = vset.pattern.permute.xlu1 %v2082_v37 }
 0x8d0   :  { %v806_v6 = vpop.permute.xlu0 %805 }
 0x8d1   :  { %v808_v39 = vmul.f32 %v806_v6, %v798_v51 }
 0x8d3   :  { %v2341_v52 = vrot.slane %v808_v39, %v2221_v2 }
 0x905   :  { %v731_v14 = vpop.permute.xlu1 %730 }
 0x906   :  { %v740_v27 = vmul.f32 %v2312_v16, %v731_v14  ;;  %v2085_v14 = vmov 18  }
 0x908   :  { %v744_v15 = vsub.f32 %v688_v8, %v740_v27 }
 0x90a   :  { %v833_v1 = vpop.permute.xlu1 %832  ;;  %786 = vperm.xlu0 %1940, %v744_v15  }
 0x90b   :  { %v850_v7 = vmul.f32 %v2341_v52, %v833_v1 }
 0x90d   :  { %v2344_v12 = vsub.f32 %v798_v51, %v850_v7 }
 0x90e   :  { %1942 = vset.pattern.permute.xlu0 %v2079_v50 }
 0x90f   :  { %2032 = vrcp.f32 %v2344_v12 }
 0x919   :  { %v2033_v31 = vpop.eup %2032 }
 0x91a   :  { %861 = vperm.xlu1 %1941, %v2033_v31  }
 0x91d   :  { %v838_v22 = vpop.permute.xlu0 %837 }
 0x91e   :  { %v851_v17 = vmul.f32 %v2341_v52, %v838_v22 }
 0x920   :  { %v855_v18 = vsub.f32 %v799_v63, %v851_v17  ;;  %v1832_v17 = vsel %vm866_vm1, 1.0, %v2067_v4 }
 0x922   :  { %893 = vperm.xlu1 %1941, %v855_v18  }
 0x926   :  { %1943 = vset.pattern.permute.xlu1 %v2081_v43 }
 0x93b   :  { %v660_v23 = vpop.permute.xlu1 %659 }
 0x93c   :  { %v681_v26 = vmul.f32 %v2298_v57, %v660_v23  ;;  %v1835_v23 = vsel %vm1035_vm2, 1.0, %v2067_v4 }
 0x93e   :  { %v685_v41 = vsub.f32 %v629_v5, %v681_v26 }
 0x940   :  { %715 = vperm.xlu0 %1942, %v685_v41  }
 0x944   :  { %1945 = vset.pattern.permute.xlu0 %v2083_v9 }
 0x989   :  { %v787_v50 = vpop.permute.xlu0 %786 }
 0x98a   :  { %v796_v28 = vmul.f32 %v2327_v49, %v787_v50 }
 0x98c   :  { %v800_v30 = vsub.f32 %v744_v15, %v796_v28 }
 0x98e   :  { %842 = vperm.xlu1 %1943, %v800_v30  }
 0x992   :  { %1944 = vset.pattern.permute.xlu1 %v2083_v9 }
 0x999   :  { %v862_v32 = vpop.permute.xlu1 %861 }
 0x99a   :  { %v864_v33 = vmul.f32 %v862_v32, %v2344_v12 }
 0x99c   :  { %v2359_v57 = vrot.slane %v864_v33, %v2237_v13 }
 0x9a1   :  { %v894_v11 = vpop.permute.xlu1 %893 }
 0x9a2   :  { %v907_v38 = vmul.f32 %v2359_v57, %v894_v11 }
 0x9a4   :  { %v911_v42 = vsub.f32 %v855_v18, %v907_v38  ;;  %v878_v18 = vsub.f32 %v2344_v12, %v1832_v17 }
 0x9a6   :  { %2034 = vrcp.f32 %v911_v42  ;;  %v935_v44 = vsub.f32 %v911_v42, %v1833_v40  ;;  %v2086_v40 = vmov 19  }
 0x9a8   :  { %949 = vperm.xlu0 %1945, %v935_v44  }
 0x9ac   :  { %1948 = vset.pattern.permute.xlu0 %v2084_v46 }
 0x9b0   :  { %v2035_v20 = vpop.eup %2034 }
 0x9b1   :  { %917 = vperm.xlu1 %1944, %v2035_v20  }
 0x9b5   :  { %1946 = vset.pattern.permute.xlu1 %v2080_v29 }
 0x9bf   :  { %v716_v47 = vpop.permute.xlu0 %715 }
 0x9c0   :  { %v737_v24 = vmul.f32 %v2312_v16, %v716_v47 }
 0x9c2   :  { %v741_v35 = vsub.f32 %v685_v41, %v737_v24 }
 0x9c4   :  { %771 = vperm.xlu1 %1946, %v741_v35  }
 0x9c8   :  { %1947 = vset.pattern.permute.xlu1 %v2082_v37 }
 0xa0d   :  { %v843_v25 = vpop.permute.xlu1 %842 }
 0xa0e   :  { %v852_v51 = vmul.f32 %v2341_v52, %v843_v25 }
 0xa10   :  { %v856_v53 = vsub.f32 %v800_v30, %v852_v51  ;;  %v1836_v51 = vsel %vm1091_vm3, 1.0, %v2067_v4 }
 0xa12   :  { %898 = vperm.xlu1 %1947, %v856_v53  }
 0xa16   :  { %1949 = vset.pattern.permute.xlu1 %v2084_v46 }
 0xa27   :  { %v950_v8 = vpop.permute.xlu0 %949 }
 0xa30   :  { %v918_v54 = vpop.permute.xlu1 %917 }
 0xa31   :  { %v920_v55 = vmul.f32 %v918_v54, %v911_v42 }
 0xa33   :  { %v2371_v29 = vrot.slane %v920_v55, %v2122_v10 }
 0xa35   :  { %v963_v16 = vmul.f32 %v2371_v29, %v950_v8 }
 0xa37   :  { %v967_v58 = vsub.f32 %v911_v42, %v963_v16 }
 0xa39   :  { %2036 = vrcp.f32 %v967_v58  ;;  %v991_v60 = vsub.f32 %v967_v58, %v1834_v62 }
 0xa3b   :  { %1005 = vperm.xlu1 %1949, %v991_v60   ;;  %v2087_v60 = vmov 20  }
 0xa3f   :  { %1950 = vset.pattern.permute.xlu1 %v2081_v43 }
 0xa43   :  { %v2037_v61 = vpop.eup %2036  ;;  %v772_v63 = vpop.permute.xlu1 %771 }
 0xa44   :  { %v793_v48 = vmul.f32 %v2327_v49, %v772_v63  ;;  %973 = vperm.xlu0 %1948, %v2037_v61  }
 0xa46   :  { %v797_v0 = vsub.f32 %v741_v35, %v793_v48 }
 0xa48   :  { %827 = vperm.xlu1 %1950, %v797_v0   ;;  %1951 = vset.pattern.permute.xlu0 %v2083_v9 }
 0xa4c   :  { %1952 = vset.pattern.permute.xlu1 %v2082_v37 }
 0xa91   :  { %v899_v5 = vpop.permute.xlu1 %898 }
 0xa92   :  { %v908_v6 = vmul.f32 %v2359_v57, %v899_v5 }
 0xa94   :  { %v912_v39 = vsub.f32 %v856_v53, %v908_v6 }
 0xa96   :  { %954 = vperm.xlu0 %1951, %v912_v39  }
 0xa9a   :  { %1953 = vset.pattern.permute.xlu0 %v2085_v14 }
 0xaba   :  { %v1006_v43 = vpop.permute.xlu1 %1005 }
 0xac3   :  { %v974_v27 = vpop.permute.xlu0 %973 }
 0xac4   :  { %v976_v15 = vmul.f32 %v974_v27, %v967_v58 }
 0xac6   :  { %v2383_v49 = vrot.slane %v976_v15, %v2133_v21 }
 0xac7   :  { %v828_v1 = vpop.permute.xlu1 %827 }
 0xac8   :  { %v1019_v7 = vmul.f32 %v2383_v49, %v1006_v43  ;;  %v849_v31 = vmul.f32 %v2341_v52, %v828_v1 }
 0xaca   :  { %v1023_v37 = vsub.f32 %v967_v58, %v1019_v7  ;;  %v853_v22 = vsub.f32 %v797_v0, %v849_v31 }
 0xacc   :  { %2038 = vrcp.f32 %v1023_v37  ;;  %883 = vperm.xlu1 %1952, %v853_v22   ;;  %v1047_v26 = vsub.f32 %v1023_v37, %v1835_v23 }
 0xad0   :  { %888 = vperm.xlu1 %1952, %v878_v18   ;;  %v2088_v18 = vmov 21  }
 0xad4   :  { %1954 = vset.pattern.permute.xlu1 %v2085_v14 }
 0xad5   :  { %1061 = vperm.xlu1 %1954, %v1047_v26  }
 0xad6   :  { %v2039_v52 = vpop.eup %2038 }
 0xad7   :  { %1029 = vperm.xlu0 %1953, %v2039_v52  }
 0xad9   :  { %1955 = vset.pattern.permute.xlu1 %v2084_v46 }
 0xadb   :  { %1956 = vset.pattern.permute.xlu0 %v2083_v9 }
 0xb15   :  { %v955_v59 = vpop.permute.xlu0 %954 }
 0xb16   :  { %v964_v41 = vmul.f32 %v2371_v29, %v955_v59 }
 0xb18   :  { %v968_v50 = vsub.f32 %v912_v39, %v964_v41  ;;  %v1837_v39 = vsel %vm1147_vm4, 1.0, %v2067_v4 }
 0xb1a   :  { %1010 = vperm.xlu1 %1955, %v968_v50  }
 0xb1e   :  { %1957 = vset.pattern.permute.xlu1 %v2083_v9 }
 0xb4b   :  { %v884_v28 = vpop.permute.xlu1 %883 }
 0xb4c   :  { %v905_v30 = vmul.f32 %v2359_v57, %v884_v28 }
 0xb4e   :  { %v909_v32 = vsub.f32 %v853_v22, %v905_v30 }
 0xb4f   :  { %v889_v33 = vpop.permute.xlu1 %888 }
 0xb50   :  { %v906_v11 = vmul.f32 %v2359_v57, %v889_v33  ;;  %939 = vperm.xlu0 %1956, %v909_v32  }
 0xb52   :  { %v910_v38 = vsub.f32 %v2344_v12, %v906_v11 }
 0xb54   :  { %944 = vperm.xlu1 %1957, %v910_v38   ;;  %1959 = vset.pattern.permute.xlu0 %v2086_v40  ;;  %v1062_v20 = vpop.permute.xlu1 %1061 }
 0xb56   :  { %v1030_v42 = vpop.permute.xlu0 %1029 }
 0xb57   :  { %v1032_v44 = vmul.f32 %v1030_v42, %v1023_v37 }
 0xb58   :  { %1958 = vset.pattern.permute.xlu1 %v2085_v14 }
 0xb59   :  { %v2403_v9 = vrot.slane %v1032_v44, %v2149_v36 }
 0xb5b   :  { %v1075_v47 = vmul.f32 %v2403_v9, %v1062_v20 }
 0xb5d   :  { %v1079_v24 = vsub.f32 %v1023_v37, %v1075_v47 }
 0xb5f   :  { %2040 = vrcp.f32 %v1079_v24  ;;  %v1103_v53 = vsub.f32 %v1079_v24, %v1836_v51 }
 0xb69   :  { %v2041_v57 = vpop.eup %2040 }
 0xb6a   :  { %1085 = vperm.xlu0 %1959, %v2041_v57  }
 0xb6e   :  { %1962 = vset.pattern.permute.xlu0 %v2084_v46 }
 0xb99   :  { %v1011_v12 = vpop.permute.xlu1 %1010 }
 0xb9a   :  { %v1020_v35 = vmul.f32 %v2383_v49, %v1011_v12 }
 0xb9c   :  { %v1024_v25 = vsub.f32 %v968_v50, %v1020_v35 }
 0xb9e   :  { %1066 = vperm.xlu1 %1958, %v1024_v25  }
 0xba2   :  { %1960 = vset.pattern.permute.xlu1 %v2086_v40 }
 0xba3   :  { %1117 = vperm.xlu1 %1960, %v1103_v53  }
 0xba7   :  { %1961 = vset.pattern.permute.xlu1 %v2084_v46 }
 0xbcf   :  { %v940_v54 = vpop.permute.xlu0 %939 }
 0xbd0   :  { %v961_v55 = vmul.f32 %v2371_v29, %v940_v54 }
 0xbd2   :  { %v965_v8 = vsub.f32 %v909_v32, %v961_v55 }
 0xbd3   :  { %v945_v16 = vpop.permute.xlu1 %944 }
 0xbd4   :  { %v962_v62 = vmul.f32 %v2371_v29, %v945_v16  ;;  %995 = vperm.xlu1 %1961, %v965_v8  }
 0xbd6   :  { %v966_v58 = vsub.f32 %v910_v38, %v962_v62 }
 0xbd8   :  { %1000 = vperm.xlu0 %1962, %v966_v58   ;;  %1963 = vset.pattern.permute.xlu1 %v2086_v40 }
 0xbdc   :  { %1965 = vset.pattern.permute.xlu0 %v2087_v60 }
 0xbe9   :  { %v1086_v61 = vpop.permute.xlu0 %1085 }
 0xbea   :  { %v1088_v63 = vmul.f32 %v1086_v61, %v1079_v24  ;;  %v2089_v61 = vmov 22  }
 0xbec   :  { %v2417_v5 = vrot.slane %v1088_v63, %v2165_v56  ;;  %v1839_v63 = vsel %vm1259_vm6, 1.0, %v2067_v4 }
 0xc1d   :  { %v1067_v48 = vpop.permute.xlu1 %1066 }
 0xc1e   :  { %v1076_v0 = vmul.f32 %v2403_v9, %v1067_v48 }
 0xc20   :  { %v1080_v46 = vsub.f32 %v1024_v25, %v1076_v0 }
 0xc22   :  { %v1118_v6 = vpop.permute.xlu1 %1117  ;;  %1122 = vperm.xlu1 %1963, %v1080_v46  }
 0xc23   :  { %v1131_v29 = vmul.f32 %v2417_v5, %v1118_v6 }
 0xc25   :  { %v1135_v43 = vsub.f32 %v1079_v24, %v1131_v29 }
 0xc26   :  { %1964 = vset.pattern.permute.xlu1 %v2087_v60 }
 0xc27   :  { %2042 = vrcp.f32 %v1135_v43  ;;  %v1159_v27 = vsub.f32 %v1135_v43, %v1837_v39 }
 0xc29   :  { %1173 = vperm.xlu0 %1965, %v1159_v27  }
 0xc31   :  { %v2043_v15 = vpop.eup %2042 }
 0xc32   :  { %1141 = vperm.xlu1 %1964, %v2043_v15  }
 0xc36   :  { %1966 = vset.pattern.permute.xlu1 %v2085_v14 }
 0xc53   :  { %v996_v1 = vpop.permute.xlu1 %995 }
 0xc54   :  { %v1017_v7 = vmul.f32 %v2383_v49, %v996_v1 }
 0xc56   :  { %v1021_v31 = vsub.f32 %v965_v8, %v1017_v7 }
 0xc57   :  { %v1001_v37 = vpop.permute.xlu0 %1000 }
 0xc58   :  { %v1018_v22 = vmul.f32 %v2383_v49, %v1001_v37  ;;  %1051 = vperm.xlu1 %1966, %v1021_v31   ;;  %v1838_v49 = vsel %vm1203_vm5, 1.0, %v2067_v4 }
 0xc5a   :  { %v1022_v17 = vsub.f32 %v966_v58, %v1018_v22 }
 0xc5c   :  { %1056 = vperm.xlu1 %1966, %v1022_v17  }
 0xc60   :  { %1967 = vset.pattern.permute.xlu1 %v2088_v18 }
 0xca1   :  { %v1123_v23 = vpop.permute.xlu1 %1122 }
 0xca2   :  { %v1132_v26 = vmul.f32 %v2417_v5, %v1123_v23 }
 0xca4   :  { %v1136_v52 = vsub.f32 %v1080_v46, %v1132_v26 }
 0xca6   :  { %1178 = vperm.xlu0 %1965, %v1136_v52  }
 0xca8   :  { %v1174_v50 = vpop.permute.xlu0 %1173 }
 0xcaa   :  { %1968 = vset.pattern.permute.xlu0 %v2088_v18 }
 0xcb1   :  { %v1142_v59 = vpop.permute.xlu1 %1141 }
 0xcb2   :  { %v1144_v14 = vmul.f32 %v1142_v59, %v1135_v43 }
 0xcb4   :  { %v1184_v41 = vrot.slane %v1144_v14, %v2186_v19 }
 0xcb6   :  { %v1187_v28 = vmul.f32 %v1184_v41, %v1174_v50 }
 0xcb8   :  { %v1191_v30 = vsub.f32 %v1135_v43, %v1187_v28 }
 0xcba   :  { %v1215_v32 = vsub.f32 %v1191_v30, %v1838_v49  ;;  %2044 = vrcp.f32 %v1191_v30 }
 0xcbc   :  { %1229 = vperm.xlu0 %1968, %v1215_v32   ;;  %v2091_v32 = vmov 24  }
 0xcc4   :  { %v2045_v33 = vpop.eup %2044 }
 0xcc5   :  { %1197 = vperm.xlu1 %1967, %v2045_v33  }
 0xcc9   :  { %1969 = vset.pattern.permute.xlu1 %v2086_v40 }
 0xcd7   :  { %v1052_v11 = vpop.permute.xlu1 %1051 }
 0xcd8   :  { %v1073_v38 = vmul.f32 %v2403_v9, %v1052_v11 }
 0xcda   :  { %v1077_v42 = vsub.f32 %v1021_v31, %v1073_v38 }
 0xcdb   :  { %v1057_v44 = vpop.permute.xlu1 %1056 }
 0xcdc   :  { %v1074_v20 = vmul.f32 %v2403_v9, %v1057_v44  ;;  %1107 = vperm.xlu1 %1969, %v1077_v42  }
 0xcde   :  { %v1078_v47 = vsub.f32 %v1022_v17, %v1074_v20 }
 0xce0   :  { %1112 = vperm.xlu1 %1969, %v1078_v47  }
 0xce4   :  { %1971 = vset.pattern.permute.xlu1 %v2087_v60 }
 0xd25   :  { %v1179_v24 = vpop.permute.xlu0 %1178 }
 0xd26   :  { %v1188_v57 = vmul.f32 %v1184_v41, %v1179_v24 }
 0xd28   :  { %v1192_v12 = vsub.f32 %v1136_v52, %v1188_v57 }
 0xd2a   :  { %1234 = vperm.xlu0 %1968, %v1192_v12  }
 0xd2e   :  { %1970 = vset.pattern.permute.xlu0 %v2087_v60 }
 0xd3b   :  { %v1230_v51 = vpop.permute.xlu0 %1229 }
 0xd44   :  { %v1198_v35 = vpop.permute.xlu1 %1197 }
 0xd45   :  { %v1200_v25 = vmul.f32 %v1198_v35, %v1191_v30 }
 0xd47   :  { %v1240_v40 = vrot.slane %v1200_v25, %v2204_v45 }
 0xd49   :  { %v1243_v53 = vmul.f32 %v1240_v40, %v1230_v51 }
 0xd4b   :  { %v1247_v54 = vsub.f32 %v1191_v30, %v1243_v53 }
 0xd4d   :  { %2046 = vrcp.f32 %v1247_v54  ;;  %v1271_v48 = vsub.f32 %v1247_v54, %v1839_v63 }
 0xd57   :  { %v2047_v60 = vpop.eup %2046 }
 0xd5b   :  { %v1108_v55 = vpop.permute.xlu1 %1107 }
 0xd5c   :  { %v1129_v8 = vmul.f32 %v2417_v5, %v1108_v55  ;;  %v2092_v55 = vmov 25  }
 0xd5e   :  { %v1133_v9 = vsub.f32 %v1077_v42, %v1129_v8 }
 0xd5f   :  { %v1113_v16 = vpop.permute.xlu1 %1112 }
 0xd60   :  { %v1130_v62 = vmul.f32 %v2417_v5, %v1113_v16  ;;  %1163 = vperm.xlu0 %1970, %v1133_v9   ;;  %v2090_v5 = vmov 23  }
 0xd62   :  { %v1134_v58 = vsub.f32 %v1078_v47, %v1130_v62  ;;  %v2444_v47 = vadd.s32 24, %v2113_v3  ;;  %v1840_v3 = vsel %vm1315_vm8, 1.0, %v2067_v4 }
 0xd64   :  { %1168 = vperm.xlu1 %1971, %v1134_v58   ;;  %1973 = vset.pattern.permute.xlu0 %v2089_v61  ;;  %vm1372_vm7 = vcmp.eq.s32.totalorder %v2444_v47, 24  ;;  %vm1428_vm9 = vcmp.eq.s32.totalorder %v2444_v47, 25  ;;  %vm1484_vm10 = vcmp.eq.s32.totalorder %v2444_v47, 26  ;;  %vm1540_vm11 = vcmp.eq.s32.totalorder %v2444_v47, 27 }
 0xd65   :  { %v1841_v57 = vsel %vm1372_vm7, 1.0, %v2067_v4  ;;  %v1842_v34 = vsel %vm1428_vm9, 1.0, %v2067_v4  ;;  %vm1596_vm12 = vcmp.eq.s32.totalorder %v2444_v47, 28  ;;  %vm1652_vm13 = vcmp.eq.s32.totalorder %v2444_v47, 29 }
 0xd66   :  { %vm1708_vm14 = vcmp.eq.s32.totalorder %v2444_v47, 30  ;;  %vm1764_vm15 = vcmp.eq.s32.totalorder %v2444_v47, 31 }
 0xd68   :  { %1972 = vset.pattern.permute.xlu1 %v2089_v61 }
 0xd69   :  { %1253 = vperm.xlu1 %1972, %v2047_v60  }
 0xd6d   :  { %1285 = vperm.xlu1 %1972, %v1271_v48  }
 0xd71   :  { %1974 = vset.pattern.permute.xlu1 %v2088_v18 }
 0xda9   :  { %v1235_v0 = vpop.permute.xlu0 %1234 }
 0xdaa   :  { %v1244_v46 = vmul.f32 %v1240_v40, %v1235_v0 }
 0xdac   :  { %v1248_v6 = vsub.f32 %v1192_v12, %v1244_v46 }
 0xdae   :  { %1290 = vperm.xlu0 %1973, %v1248_v6  }
 0xdb2   :  { %1975 = vset.pattern.permute.xlu0 %v2090_v5 }
 0xddf   :  { %v1164_v29 = vpop.permute.xlu0 %1163 }
 0xde0   :  { %v1185_v39 = vmul.f32 %v1184_v41, %v1164_v29 }
 0xde2   :  { %v1189_v43 = vsub.f32 %v1133_v9, %v1185_v39 }
 0xde3   :  { %v1169_v27 = vpop.permute.xlu1 %1168 }
 0xde4   :  { %v1186_v15 = vmul.f32 %v1184_v41, %v1169_v27  ;;  %1219 = vperm.xlu1 %1974, %v1189_v43  }
 0xde6   :  { %v1190_v1 = vsub.f32 %v1134_v58, %v1186_v15  ;;  %v2093_v15 = vmov 26  }
 0xde8   :  { %v1254_v7 = vpop.permute.xlu1 %1253  ;;  %1224 = vperm.xlu1 %1974, %v1190_v1  }
 0xde9   :  { %v1256_v31 = vmul.f32 %v1254_v7, %v1247_v54 }
 0xdeb   :  { %v1296_v37 = vrot.slane %v1256_v31, %v2221_v2 }
 0xdec   :  { %v1286_v22 = vpop.permute.xlu1 %1285  ;;  %1976 = vset.pattern.permute.xlu1 %v2090_v5 }
 0xded   :  { %v1299_v17 = vmul.f32 %v1296_v37, %v1286_v22 }
 0xdef   :  { %v2438_v18 = vsub.f32 %v1247_v54, %v1299_v17  ;;  %v1843_v17 = vsel %vm1484_vm10, 1.0, %v2067_v4 }
 0xdf1   :  { %2048 = vrcp.f32 %v2438_v18  ;;  %v1327_v8 = vsub.f32 %v2438_v18, %v1840_v3  ;;  %v2094_v3 = vmov 27  }
 0xdfb   :  { %v2049_v23 = vpop.eup %2048 }
 0xdfc   :  { %1309 = vperm.xlu0 %1975, %v2049_v23  }
 0xe00   :  { %1978 = vset.pattern.permute.xlu0 %v2089_v61 }
 0xe2d   :  { %v1291_v26 = vpop.permute.xlu0 %1290 }
 0xe2e   :  { %v1300_v52 = vmul.f32 %v1296_v37, %v1291_v26 }
 0xe30   :  { %v1304_v59 = vsub.f32 %v1248_v6, %v1300_v52 }
 0xe32   :  { %1346 = vperm.xlu1 %1976, %v1304_v59  }
 0xe36   :  { %1977 = vset.pattern.permute.xlu1 %v2089_v61 }
 0xe63   :  { %v1220_v14 = vpop.permute.xlu1 %1219 }
 0xe64   :  { %v1241_v41 = vmul.f32 %v1240_v40, %v1220_v14 }
 0xe66   :  { %v1245_v50 = vsub.f32 %v1189_v43, %v1241_v41 }
 0xe67   :  { %v1225_v28 = vpop.permute.xlu1 %1224 }
 0xe68   :  { %v1242_v49 = vmul.f32 %v1240_v40, %v1225_v28  ;;  %1275 = vperm.xlu1 %1977, %v1245_v50  }
 0xe6a   :  { %v1246_v30 = vsub.f32 %v1190_v1, %v1242_v49 }
 0xe6c   :  { %1280 = vperm.xlu0 %1978, %v1246_v30   ;;  %1979 = vset.pattern.permute.xlu1 %v2091_v32 }
 0xe70   :  { %1980 = vset.pattern.permute.xlu0 %v2090_v5 }
 0xe7b   :  { %v1310_v33 = vpop.permute.xlu0 %1309 }
 0xe7c   :  { %v1312_v11 = vmul.f32 %v1310_v33, %v2438_v18 }
 0xe7e   :  { %v1352_v38 = vrot.slane %v1312_v11, %v2237_v13 }
 0xeb1   :  { %v1347_v42 = vpop.permute.xlu1 %1346 }
 0xeb2   :  { %v1356_v44 = vmul.f32 %v1352_v38, %v1347_v42 }
 0xeb4   :  { %v1360_v20 = vsub.f32 %v1304_v59, %v1356_v44 }
 0xeb6   :  { %2050 = vrcp.f32 %v1360_v20  ;;  %v1384_v12 = vsub.f32 %v1360_v20, %v1841_v57 }
 0xec0   :  { %v2051_v24 = vpop.eup %2050 }
 0xec1   :  { %1365 = vperm.xlu1 %1979, %v2051_v24  }
 0xec5   :  { %1402 = vperm.xlu1 %1979, %v1384_v12  }
 0xec9   :  { %1981 = vset.pattern.permute.xlu1 %v2090_v5 }
 0xee7   :  { %v1276_v35 = vpop.permute.xlu1 %1275 }
 0xee8   :  { %v1297_v25 = vmul.f32 %v1296_v37, %v1276_v35 }
 0xeea   :  { %v1301_v40 = vsub.f32 %v1245_v50, %v1297_v25 }
 0xeeb   :  { %v1281_v51 = vpop.permute.xlu0 %1280 }
 0xeec   :  { %v1298_v53 = vmul.f32 %v1296_v37, %v1281_v51  ;;  %1331 = vperm.xlu0 %1980, %v1301_v40  }
 0xeee   :  { %v1302_v54 = vsub.f32 %v1246_v30, %v1298_v53 }
 0xef0   :  { %1336 = vperm.xlu1 %1981, %v1302_v54   ;;  %1982 = vset.pattern.permute.xlu0 %v2092_v55 }
 0xef4   :  { %1341 = vperm.xlu1 %1981, %v1327_v8  }
 0xef8   :  { %1983 = vset.pattern.permute.xlu1 %v2092_v55 }
 0xf40   :  { %v1366_v9 = vpop.permute.xlu1 %1365 }
 0xf41   :  { %v1368_v16 = vmul.f32 %v1366_v9, %v1360_v20 }
 0xf43   :  { %v1408_v62 = vrot.slane %v1368_v16, %v2122_v10 }
 0xf44   :  { %v1403_v58 = vpop.permute.xlu1 %1402 }
 0xf45   :  { %v1412_v61 = vmul.f32 %v1408_v62, %v1403_v58 }
 0xf47   :  { %v1416_v60 = vsub.f32 %v1360_v20, %v1412_v61 }
 0xf49   :  { %2052 = vrcp.f32 %v1416_v60  ;;  %v1440_v63 = vsub.f32 %v1416_v60, %v1842_v34 }
 0xf4b   :  { %1458 = vperm.xlu1 %1983, %v1440_v63  }
 0xf4f   :  { %1984 = vset.pattern.permute.xlu1 %v2091_v32 }
 0xf53   :  { %v2053_v48 = vpop.eup %2052 }
 0xf54   :  { %1421 = vperm.xlu0 %1982, %v2053_v48   ;;  %v2095_v48 = vmov 28  }
 0xf58   :  { %1985 = vset.pattern.permute.xlu0 %v2091_v32 }
 0xf6b   :  { %v1332_v0 = vpop.permute.xlu0 %1331 }
 0xf6c   :  { %v1353_v46 = vmul.f32 %v1352_v38, %v1332_v0 }
 0xf6e   :  { %v1357_v6 = vsub.f32 %v1301_v40, %v1353_v46 }
 0xf6f   :  { %v1337_v5 = vpop.permute.xlu1 %1336 }
 0xf70   :  { %v1354_v29 = vmul.f32 %v1352_v38, %v1337_v5  ;;  %1387 = vperm.xlu1 %1984, %v1357_v6  }
 0xf72   :  { %v1358_v10 = vsub.f32 %v1302_v54, %v1354_v29 }
 0xf73   :  { %v1342_v39 = vpop.permute.xlu1 %1341 }
 0xf74   :  { %v1355_v43 = vmul.f32 %v1352_v38, %v1342_v39  ;;  %1392 = vperm.xlu0 %1985, %v1358_v10  }
 0xf76   :  { %v1359_v27 = vsub.f32 %v2438_v18, %v1355_v43 }
 0xf78   :  { %1397 = vperm.xlu1 %1984, %v1359_v27   ;;  %1987 = vset.pattern.permute.xlu0 %v2093_v15 }
 0xf7c   :  { %1986 = vset.pattern.permute.xlu1 %v2093_v15 }
 0xfca   :  { %v1459_v37 = vpop.permute.xlu1 %1458 }
 0xfd3   :  { %v1422_v1 = vpop.permute.xlu0 %1421 }
 0xfd4   :  { %v1424_v7 = vmul.f32 %v1422_v1, %v1416_v60 }
 0xfd6   :  { %v1464_v31 = vrot.slane %v1424_v7, %v2133_v21 }
 0xfd8   :  { %v1468_v22 = vmul.f32 %v1464_v31, %v1459_v37 }
 0xfda   :  { %v1472_v23 = vsub.f32 %v1416_v60, %v1468_v22 }
 0xfdc   :  { %v1496_v26 = vsub.f32 %v1472_v23, %v1843_v17  ;;  %2054 = vrcp.f32 %v1472_v23 }
 0xfde   :  { %1514 = vperm.xlu0 %1987, %v1496_v26   ;;  %v2096_v26 = vmov 29  }
 0xfe2   :  { %1989 = vset.pattern.permute.xlu0 %v2092_v55 }
 0xfe6   :  { %v2055_v18 = vpop.eup %2054 }
 0xfe7   :  { %1477 = vperm.xlu1 %1986, %v2055_v18  }
 0xfeb   :  { %1988 = vset.pattern.permute.xlu1 %v2092_v55 }
 0xfef   :  { %v1388_v52 = vpop.permute.xlu1 %1387 }
 0xff0   :  { %v1409_v59 = vmul.f32 %v1408_v62, %v1388_v52 }
 0xff2   :  { %v1413_v14 = vsub.f32 %v1357_v6, %v1409_v59 }
 0xff3   :  { %v1393_v41 = vpop.permute.xlu0 %1392 }
 0xff4   :  { %v1410_v50 = vmul.f32 %v1408_v62, %v1393_v41  ;;  %1443 = vperm.xlu1 %1988, %v1413_v14  }
 0xff6   :  { %v1414_v21 = vsub.f32 %v1358_v10, %v1410_v50  ;;  %v1845_v10 = vsel %vm1596_vm12, 1.0, %v2067_v4  ;;  %v1846_v50 = vsel %vm1652_vm13, 1.0, %v2067_v4 }
 0xff7   :  { %v1398_v28 = vpop.permute.xlu1 %1397 }
 0xff8   :  { %v1411_v49 = vmul.f32 %v1408_v62, %v1398_v28  ;;  %1448 = vperm.xlu1 %1988, %v1414_v21  }
 0xffa   :  { %v1415_v30 = vsub.f32 %v1359_v27, %v1411_v49 }
 0xffc   :  { %1453 = vperm.xlu0 %1989, %v1415_v30   ;;  %1990 = vset.pattern.permute.xlu1 %v2093_v15 }
0x1000   :  { %1991 = vset.pattern.permute.xlu0 %v2093_v15 }
0x105d   :  { %v1515_v38 = vpop.permute.xlu0 %1514 }
0x1066   :  { %v1478_v32 = vpop.permute.xlu1 %1477 }
0x1067   :  { %v1480_v33 = vmul.f32 %v1478_v32, %v1472_v23 }
0x1069   :  { %v1520_v11 = vrot.slane %v1480_v33, %v2149_v36  ;;  %v1844_v36 = vsel %vm1540_vm11, 1.0, %v2067_v4 }
0x106b   :  { %v1524_v42 = vmul.f32 %v1520_v11, %v1515_v38 }
0x106d   :  { %v1528_v44 = vsub.f32 %v1472_v23, %v1524_v42 }
0x106f   :  { %2056 = vrcp.f32 %v1528_v44  ;;  %v1552_v55 = vsub.f32 %v1528_v44, %v1844_v36 }
0x1073   :  { %v1444_v20 = vpop.permute.xlu1 %1443 }
0x1074   :  { %v1465_v24 = vmul.f32 %v1464_v31, %v1444_v20 }
0x1076   :  { %v1469_v57 = vsub.f32 %v1413_v14, %v1465_v24  ;;  %v2097_v24 = vmov 30  }
0x1077   :  { %v1449_v12 = vpop.permute.xlu1 %1448 }
0x1078   :  { %v1466_v35 = vmul.f32 %v1464_v31, %v1449_v12  ;;  %1499 = vperm.xlu1 %1990, %v1469_v57  }
0x1079   :  { %v2057_v54 = vpop.eup %2056 }
0x107a   :  { %v1470_v25 = vsub.f32 %v1414_v21, %v1466_v35 }
0x107b   :  { %v1454_v40 = vpop.permute.xlu0 %1453 }
0x107c   :  { %v1467_v51 = vmul.f32 %v1464_v31, %v1454_v40  ;;  %1504 = vperm.xlu1 %1990, %v1470_v25  }
0x107e   :  { %v1471_v53 = vsub.f32 %v1415_v30, %v1467_v51  ;;  %v1847_v51 = vsel %vm1708_vm14, 1.0, %v2067_v4 }
0x1080   :  { %1992 = vset.pattern.permute.xlu1 %v2094_v3  ;;  %1509 = vperm.xlu0 %1991, %v1471_v53  }
0x1081   :  { %1533 = vperm.xlu1 %1992, %v2057_v54  }
0x1084   :  { %1993 = vset.pattern.permute.xlu0 %v2094_v3 }
0x1085   :  { %1570 = vperm.xlu1 %1992, %v1552_v55  }
0x10f7   :  { %v1500_v8 = vpop.permute.xlu1 %1499 }
0x10f8   :  { %v1521_v9 = vmul.f32 %v1520_v11, %v1500_v8 }
0x10fa   :  { %v1525_v16 = vsub.f32 %v1469_v57, %v1521_v9 }
0x10fb   :  { %v1505_v62 = vpop.permute.xlu1 %1504 }
0x10fc   :  { %v1522_v58 = vmul.f32 %v1520_v11, %v1505_v62  ;;  %1555 = vperm.xlu0 %1993, %v1525_v16  }
0x10fe   :  { %v1526_v61 = vsub.f32 %v1470_v25, %v1522_v58 }
0x10ff   :  { %v1510_v34 = vpop.permute.xlu0 %1509 }
0x1100   :  { %v1523_v60 = vmul.f32 %v1520_v11, %v1510_v34  ;;  %1560 = vperm.xlu1 %1992, %v1526_v61   ;;  %v1534_v63 = vpop.permute.xlu1 %1533  ;;  %1994 = vset.pattern.permute.xlu0 %v2095_v48  ;;  %v2098_v34 = vmov 31  }
0x1101   :  { %v1536_v0 = vmul.f32 %v1534_v63, %v1528_v44 }
0x1102   :  { %v1527_v46 = vsub.f32 %v1471_v53, %v1523_v60 }
0x1103   :  { %v1576_v6 = vrot.slane %v1536_v0, %v2165_v56 }
0x1104   :  { %v1571_v5 = vpop.permute.xlu1 %1570  ;;  %1565 = vperm.xlu1 %1992, %v1527_v46  }
0x1105   :  { %v1580_v29 = vmul.f32 %v1576_v6, %v1571_v5 }
0x1107   :  { %v1584_v39 = vsub.f32 %v1528_v44, %v1580_v29 }
0x1108   :  { %1995 = vset.pattern.permute.xlu1 %v2095_v48 }
0x1109   :  { %2058 = vrcp.f32 %v1584_v39  ;;  %v1608_v43 = vsub.f32 %v1584_v39, %v1845_v10 }
0x110b   :  { %1626 = vperm.xlu1 %1995, %v1608_v43  }
0x1113   :  { %v2059_v27 = vpop.eup %2058 }
0x1114   :  { %1589 = vperm.xlu0 %1994, %v2059_v27  }
0x117b   :  { %v1556_v15 = vpop.permute.xlu0 %1555 }
0x117c   :  { %v1577_v1 = vmul.f32 %v1576_v6, %v1556_v15 }
0x117e   :  { %v1581_v7 = vsub.f32 %v1525_v16, %v1577_v1 }
0x117f   :  { %v1561_v31 = vpop.permute.xlu1 %1560 }
0x1180   :  { %v1578_v37 = vmul.f32 %v1576_v6, %v1561_v31  ;;  %1611 = vperm.xlu1 %1995, %v1581_v7  }
0x1182   :  { %v1582_v56 = vsub.f32 %v1526_v61, %v1578_v37 }
0x1183   :  { %v1566_v22 = vpop.permute.xlu1 %1565 }
0x1184   :  { %v1579_v17 = vmul.f32 %v1576_v6, %v1566_v22  ;;  %1616 = vperm.xlu0 %1994, %v1582_v56  }
0x1186   :  { %v1583_v23 = vsub.f32 %v1527_v46, %v1579_v17 }
0x1188   :  { %1621 = vperm.xlu1 %1995, %v1583_v23   ;;  %1996 = vset.pattern.permute.xlu0 %v2096_v26 }
0x118a   :  { %v1627_v14 = vpop.permute.xlu1 %1626 }
0x118c   :  { %1997 = vset.pattern.permute.xlu1 %v2096_v26 }
0x1193   :  { %v1590_v18 = vpop.permute.xlu0 %1589 }
0x1194   :  { %v1592_v52 = vmul.f32 %v1590_v18, %v1584_v39 }
0x1196   :  { %v1632_v59 = vrot.slane %v1592_v52, %v2186_v19 }
0x1198   :  { %v1636_v41 = vmul.f32 %v1632_v59, %v1627_v14 }
0x119a   :  { %v1640_v21 = vsub.f32 %v1584_v39, %v1636_v41 }
0x119c   :  { %2060 = vrcp.f32 %v1640_v21  ;;  %v1664_v28 = vsub.f32 %v1640_v21, %v1846_v50 }
0x119e   :  { %1682 = vperm.xlu1 %1997, %v1664_v28  }
0x11a6   :  { %v2061_v49 = vpop.eup %2060 }
0x11a7   :  { %1645 = vperm.xlu0 %1996, %v2061_v49  }
0x11ff   :  { %v1612_v30 = vpop.permute.xlu1 %1611 }
0x1200   :  { %v1633_v32 = vmul.f32 %v1632_v59, %v1612_v30 }
0x1202   :  { %v1637_v33 = vsub.f32 %v1581_v7, %v1633_v32  ;;  %v1848_v7 = vsel %vm1764_vm15, 1.0, %v2067_v4 }
0x1203   :  { %v1617_v11 = vpop.permute.xlu0 %1616 }
0x1204   :  { %v1634_v38 = vmul.f32 %v1632_v59, %v1617_v11  ;;  %1667 = vperm.xlu1 %1997, %v1637_v33  }
0x1206   :  { %v1638_v42 = vsub.f32 %v1582_v56, %v1634_v38 }
0x1207   :  { %v1622_v19 = vpop.permute.xlu1 %1621 }
0x1208   :  { %v1635_v44 = vmul.f32 %v1632_v59, %v1622_v19  ;;  %1672 = vperm.xlu0 %1996, %v1638_v42  }
0x120a   :  { %v1639_v20 = vsub.f32 %v1583_v23, %v1635_v44 }
0x120c   :  { %1677 = vperm.xlu1 %1997, %v1639_v20   ;;  %1998 = vset.pattern.permute.xlu0 %v2097_v24 }
0x1210   :  { %1999 = vset.pattern.permute.xlu1 %v2097_v24 }
0x121d   :  { %v1683_v25 = vpop.permute.xlu1 %1682 }
0x1226   :  { %v1646_v57 = vpop.permute.xlu0 %1645 }
0x1227   :  { %v1648_v12 = vmul.f32 %v1646_v57, %v1640_v21 }
0x1229   :  { %v1688_v35 = vrot.slane %v1648_v12, %v2204_v45 }
0x122b   :  { %v1692_v40 = vmul.f32 %v1688_v35, %v1683_v25 }
0x122d   :  { %v1696_v53 = vsub.f32 %v1640_v21, %v1692_v40 }
0x122f   :  { %2062 = vrcp.f32 %v1696_v53  ;;  %v1720_v54 = vsub.f32 %v1696_v53, %v1847_v51 }
0x1231   :  { %1738 = vperm.xlu1 %1999, %v1720_v54  }
0x1239   :  { %v2063_v3 = vpop.eup %2062 }
0x123a   :  { %1701 = vperm.xlu0 %1998, %v2063_v3  }
0x1283   :  { %v1668_v36 = vpop.permute.xlu1 %1667 }
0x1284   :  { %v1689_v55 = vmul.f32 %v1688_v35, %v1668_v36 }
0x1286   :  { %v1693_v8 = vsub.f32 %v1637_v33, %v1689_v55 }
0x1287   :  { %v1673_v9 = vpop.permute.xlu0 %1672 }
0x1288   :  { %v1690_v16 = vmul.f32 %v1688_v35, %v1673_v9  ;;  %1723 = vperm.xlu1 %1999, %v1693_v8  }
0x128a   :  { %v1694_v62 = vsub.f32 %v1638_v42, %v1690_v16 }
0x128b   :  { %v1678_v45 = vpop.permute.xlu1 %1677 }
0x128c   :  { %v1691_v58 = vmul.f32 %v1688_v35, %v1678_v45  ;;  %1728 = vperm.xlu0 %1998, %v1694_v62  }
0x128e   :  { %v1695_v61 = vsub.f32 %v1639_v20, %v1691_v58 }
0x1290   :  { %1733 = vperm.xlu1 %1999, %v1695_v61   ;;  %2001 = vset.pattern.permute.xlu0 %v2098_v34 }
0x1294   :  { %2000 = vset.pattern.permute.xlu1 %v2098_v34 }
0x12b0   :  { %v1739_v0 = vpop.permute.xlu1 %1738 }
0x12b9   :  { %v1702_v60 = vpop.permute.xlu0 %1701 }
0x12ba   :  { %v1704_v63 = vmul.f32 %v1702_v60, %v1696_v53 }
0x12bc   :  { %v1744_v48 = vrot.slane %v1704_v63, %v2221_v2 }
0x12be   :  { %v1748_v46 = vmul.f32 %v1744_v48, %v1739_v0 }
0x12c0   :  { %v1752_v6 = vsub.f32 %v1696_v53, %v1748_v46 }
0x12c2   :  { %2064 = vrcp.f32 %v1752_v6  ;;  %v1776_v37 = vsub.f32 %v1752_v6, %v1848_v7 }
0x12cc   :  { %v2065_v5 = vpop.eup %2064 }
0x12cd   :  { %1757 = vperm.xlu0 %2001, %v2065_v5  }
0x1307   :  { %v1724_v29 = vpop.permute.xlu1 %1723 }
0x1308   :  { %v1745_v10 = vmul.f32 %v1744_v48, %v1724_v29 }
0x130a   :  { %v1749_v39 = vsub.f32 %v1693_v8, %v1745_v10 }
0x130b   :  { %v1729_v43 = vpop.permute.xlu0 %1728 }
0x130c   :  { %v1746_v27 = vmul.f32 %v1744_v48, %v1729_v43  ;;  %1779 = vperm.xlu1 %2000, %v1749_v39  }
0x130e   :  { %v1750_v15 = vsub.f32 %v1694_v62, %v1746_v27 }
0x130f   :  { %v1734_v1 = vpop.permute.xlu1 %1733 }
0x1310   :  { %v1747_v31 = vmul.f32 %v1744_v48, %v1734_v1  ;;  %1784 = vperm.xlu1 %2000, %v1750_v15  }
0x1312   :  { %v1751_v2 = vsub.f32 %v1695_v61, %v1747_v31 }
0x1314   :  { %1789 = vperm.xlu0 %2001, %v1751_v2   ;;  %1794 = vperm.xlu1 %2000, %v1776_v37  }
0x134c   :  { %v1758_v56 = vpop.permute.xlu0 %1757 }
0x134d   :  { %v1760_v22 = vmul.f32 %v1758_v56, %v1752_v6 }
0x134f   :  { %v1800_v17 = vrot.slane %v1760_v22, %v2237_v13 }
0x138b   :  { %v1780_v23 = vpop.permute.xlu1 %1779 }
0x138c   :  { %v1801_v26 = vmul.f32 %v1800_v17, %v1780_v23 }
0x138e   :  { %v1805_v18 = vsub.f32 %v1749_v39, %v1801_v26 }
0x138f   :  { %v1785_v52 = vpop.permute.xlu1 %1784 }
0x1390   :  { %1809 = vst [vmem:[%s2487_s1] sm:$0xff] %v1805_v18  ;;  %v1802_v47 = vmul.f32 %v1800_v17, %v1785_v52 }
0x1392   :  { %v1806_v4 = vsub.f32 %v1750_v15, %v1802_v47 }
0x1393   :  { %v1795_v59 = vpop.permute.xlu1 %1794  ;;  %v1790_v14 = vpop.permute.xlu0 %1789 }
0x1394   :  { %1810 = vst [vmem:[%s2487_s1 + $0x8] sm:$0xff] %v1806_v4  ;;  %v1804_v41 = vmul.f32 %v1800_v17, %v1795_v59  ;;  %v1803_v50 = vmul.f32 %v1800_v17, %v1790_v14 }
0x1396   :  { %v1808_v21 = vsub.f32 %v1752_v6, %v1804_v41  ;;  %v1807_v13 = vsub.f32 %v1751_v2, %v1803_v50 }
0x1398   :  { %1812 = vst [vmem:[%s2487_s1 + $0x18] sm:$0xff] %v1808_v21  ;;  %1811 = vst [vmem:[%s2487_s1 + $0x10] sm:$0xff] %v1807_v13 }

</bundles_post_ra>
